<compile_context>
chip_gen: v6e
topology: v6e:2x2x1
jax: 0.10.0
libtpu: 0.0.40
codegen_flags: <defaults>
</compile_context>

<pallas_src>
import functools

import numpy as np
import jax
import jax.numpy as jnp
from jax.experimental import pallas as pl
from jax.experimental.pallas import tpu as pltpu


# ---------------------------------------------------------------------------
# Polyphase tap derivation (mirrors make_kernel + Upsample.__init__ exactly).
# ---------------------------------------------------------------------------
def _polyphase_taps(k1d, pad, up=2):
    """Taps so that out[up*i + p] = sum_s w * x_pad[i + s], x_pad = pad(x, (lp, rp))."""
    pad0, pad1 = pad
    L = len(k1d)
    assert pad0 + pad1 == L - 1, "unexpected upfirdn pad convention"
    raw = []
    for p in range(up):
        tp = []
        for kk in range(L):
            c = p + kk - pad0
            if c % up == 0:
                tp.append((c // up, float(k1d[kk])))
        raw.append(tp)
    offs = [s for tp in raw for s, _ in tp]
    lp = max(0, -min(offs))
    rp = max(0, max(offs))
    taps = tuple(tuple((s + lp, w) for s, w in tp) for tp in raw)
    return taps, lp, rp


def _pick_tn(n, slab_bytes, target_bytes=2 * 1024 * 1024):
    """Largest divisor of n keeping blocks <= target and >= 2 grid steps."""
    if n <= 1:
        return 1
    best = 1
    for d in range(1, n // 2 + 1):
        if n % d == 0 and d * slab_bytes <= target_bytes:
            best = d
    return best


# ---------------------------------------------------------------------------
# Pallas kernel builder (cached per static configuration).
# ---------------------------------------------------------------------------
@functools.lru_cache(maxsize=None)
def _build_upsample2x_call(n, h, w, hp, wp, tn, taps, fused_w, dtype_name):
    dtype = jnp.dtype(dtype_name)
    w2 = 2 * w
    out_cols = 2 * w2                       # [row-phase block, 2W columns]

    # TODO(synk): for very large images (e.g. 1024x1024 on v7x's 64 MiB VMEM)
    # tile H with an (lp+rp)-row halo via manual DMA instead of whole slabs.
    def kernel(xp_ref, o_ref):
        for py in range(2):                 # output row parity
            # vertical polyphase pass (f32 accumulation, sublane shifts only)
            t = None
            for s, wv in taps[py]:
                term = xp_ref[:, s:s + h, :].astype(jnp.float32) * wv
                t = term if t is None else t + term
            # horizontal polyphase pass, independent chain per column parity
            phases = []
            for px in range(2):
                ph = None
                for s, wv in taps[px]:
                    term = t[:, :, s:s + w] * wv
                    ph = term if ph is None else ph + term
                phases.append(ph)
            base = py * w2
            if fused_w:
                # in-register column interleave -> lane-dense (tn, h, 2W) store
                row = jnp.stack(phases, axis=-1).reshape(tn, h, w2)
                o_ref[:, :, base:base + w2] = row.astype(o_ref.dtype)
            else:
                # phase-blocked store; wrapper interleaves with one transpose
                o_ref[:, :, base:base + w] = phases[0].astype(o_ref.dtype)
                o_ref[:, :, base + w:base + w2] = phases[1].astype(o_ref.dtype)

    n_taps = sum(len(t) for t in taps)
    macs = n * h * (n_taps * wp + 2 * n_taps * w)
    bytes_accessed = n * (hp * wp + h * out_cols) * dtype.itemsize
    in_block = tn * hp * wp * dtype.itemsize
    out_block = tn * h * out_cols * dtype.itemsize
    vmem_limit = int(min(64 * 1024 * 1024,
                         max(32 * 1024 * 1024, 8 * (in_block + out_block))))

    return pl.pallas_call(
        kernel,
        out_shape=jax.ShapeDtypeStruct((n, h, out_cols), dtype),
        grid_spec=pltpu.PrefetchScalarGridSpec(
            num_scalar_prefetch=0,
            grid=(n // tn,),
            in_specs=[pl.BlockSpec((tn, hp, wp), lambda i: (i, 0, 0))],
            out_specs=pl.BlockSpec((tn, h, out_cols), lambda i: (i, 0, 0)),
        ),
        compiler_params=pltpu.CompilerParams(
            dimension_semantics=("parallel",),
            vmem_limit_bytes=vmem_limit,
        ),
        cost_estimate=pl.CostEstimate(
            flops=int(2 * macs), transcendentals=0,
            bytes_accessed=int(bytes_accessed)),
    )


def _upsample2x_forward(x, *, taps, lp, rp, fused_w):
    b, c, h, w = x.shape
    n = b * c
    hp, wp = h + lp + rp, w + lp + rp
    itemsize = jnp.dtype(x.dtype).itemsize

    xs = x.reshape(n, h, w)
    xp = jnp.pad(xs, ((0, 0), (lp, rp), (lp, rp)))           # tiny border only

    slab_bytes = (hp * wp + 4 * h * w) * itemsize
    tn = _pick_tn(n, slab_bytes)
    fir = _build_upsample2x_call(n, h, w, hp, wp, tn, taps, fused_w,
                                 jnp.dtype(x.dtype).name)
    out = fir(xp)                                            # (n, h, 4*w)

    if fused_w:
        # last axis is [py*2W + interleaved column] -> free (bitcast) reshape
        out = out.reshape(n, 2 * h, 2 * w)
    else:
        # last axis is [py*2W + px*W + j] -> interleave columns via transpose
        out = (out.reshape(n, h, 2, 2, w)
                  .transpose(0, 1, 2, 4, 3)
                  .reshape(n, 2 * h, 2 * w))
    return out.reshape(b, c, 2 * h, 2 * w)


# ---------------------------------------------------------------------------
# Direct (non-polyphase) pure-JAX reference: mirrors upfirdn2d_native.
# ---------------------------------------------------------------------------
def upsample_ref(x, kernel2d, factor, pad):
    b, c, h, w = x.shape
    pad0, pad1 = pad
    kh, kw = kernel2d.shape
    xf = x.reshape(b * c, h, w)
    xu = jnp.zeros((b * c, h * factor, w * factor), x.dtype)
    xu = xu.at[:, ::factor, ::factor].set(xf)
    xp = jnp.pad(xu, ((0, 0), (pad0, pad1), (pad0, pad1)))
    ho = xp.shape[1] - kh + 1
    wo = xp.shape[2] - kw + 1
    acc = jnp.zeros((b * c, ho, wo), jnp.float32)
    for i in range(kh):
        for j in range(kw):
            acc = acc + float(kernel2d[i, j]) * xp[
                :, i:i + ho, j:j + wo].astype(jnp.float32)
    return acc.astype(x.dtype).reshape(b, c, ho, wo)


# ---------------------------------------------------------------------------
# Upsample module (forward only)
# ---------------------------------------------------------------------------
class Upsample:
    def __init__(self, kernel, factor=2):
        assert factor == 2, "Generator only uses factor=2"
        k = np.asarray(kernel, dtype=np.float32)
        assert k.ndim == 1, "separable 1-D blur kernel expected (e.g. [1,3,3,1])"
        self.factor = factor
        # 1-D per-axis FIR; outer product == make_kernel(kernel) * factor**2
        k1 = np.flip(k) / float(k.sum()) * factor
        self.kernel_1d = k1
        self.kernel = np.outer(k1, k1).astype(np.float32)    # (KH, KW)
        p = k.shape[0] - factor
        self.pad = ((p + 1) // 2 + factor - 1, p // 2)
        self.taps, self.lp, self.rp = _polyphase_taps(k1, self.pad, factor)
        self._fns = {}

    def __call__(self, x):
        assert x.ndim == 4, "expected NCHW input"
        key = (tuple(int(d) for d in x.shape), jnp.dtype(x.dtype).name)
        fn = self._fns.get(key)
        if fn is not None:
            return fn(x)
        errors = []
        for fused_w in (True, False):                        # preferred, fallback
            cand = jax.jit(functools.partial(
                _upsample2x_forward, taps=self.taps, lp=self.lp, rp=self.rp,
                fused_w=fused_w))
            try:
                out = jax.block_until_ready(cand(x))
                # one-time validation per shape; falls back if Mosaic mislowers
                ref = upsample_ref(x, self.kernel, self.factor, self.pad)
                np.testing.assert_allclose(np.asarray(out), np.asarray(ref),
                                           rtol=1e-5, atol=1e-5)
            except Exception as e:
                errors.append(e)
                continue
            self._fns[key] = cand
            return out
        raise errors[-1]


if __name__ == "__main__":
    key = jax.random.PRNGKey(0)
    x = jax.random.normal(key, (2, 4, 16, 16), dtype=jnp.float32)

    mod = Upsample(kernel=[1, 3, 3, 1], factor=2)

    out = jax.block_until_ready(mod(x))
    assert out.shape == (2, 4, 32, 32), out.shape

    ref = jax.block_until_ready(upsample_ref(x, mod.kernel, mod.factor, mod.pad))
    np.testing.assert_allclose(np.asarray(out), np.asarray(ref),
                               rtol=1e-5, atol=1e-5)

    # second call exercises the cached jitted pallas path
    out2 = jax.block_until_ready(mod(x))
    assert out2.shape == out.shape

    print("KERNEL_OK")
</pallas_src>

<mosaic_0001>
module attributes {stable_mosaic.version = 11 : i64} {
  func.func @kernel(%arg0: i32, %arg1: memref<4x18x18xf32, #tpu.memory_space<vmem>>, %arg2: memref<4x16x64xf32, #tpu.memory_space<vmem>>) attributes {dimension_semantics = [#tpu.dimension_semantics<parallel>], iteration_bounds = array<i64: 2>, scalar_prefetch = 0 : i64, scratch_operands = 0 : i64, tpu.core_type = #tpu.core_type<tc>, window_params = [{transform_indices = @transform_0, window_bounds = array<i64: 4, 18, 18>}, {transform_indices = @transform_1, window_bounds = array<i64: 4, 16, 64>}]} {
    %c0 = arith.constant 0 : index
    %c0_0 = arith.constant 0 : index
    %c0_1 = arith.constant 0 : index
    %0 = vector.load %arg1[%c0, %c0_0, %c0_1] : memref<4x18x18xf32, #tpu.memory_space<vmem>>, vector<4x16x18xf32>
    %cst = arith.constant 2.500000e-01 : f32
    %1 = vector.broadcast %cst : f32 to vector<4x16x18xf32>
    %2 = arith.mulf %0, %1 : vector<4x16x18xf32>
    %c0_2 = arith.constant 0 : index
    %c1 = arith.constant 1 : index
    %c0_3 = arith.constant 0 : index
    %3 = vector.load %arg1[%c0_2, %c1, %c0_3] : memref<4x18x18xf32, #tpu.memory_space<vmem>>, vector<4x16x18xf32>
    %cst_4 = arith.constant 7.500000e-01 : f32
    %4 = vector.broadcast %cst_4 : f32 to vector<4x16x18xf32>
    %5 = arith.mulf %3, %4 : vector<4x16x18xf32>
    %6 = arith.addf %2, %5 : vector<4x16x18xf32>
    %7 = vector.extract_strided_slice %6 {offsets = [0, 0, 0], sizes = [4, 16, 16], strides = [1, 1, 1]} : vector<4x16x18xf32> to vector<4x16x16xf32>
    %cst_5 = arith.constant 2.500000e-01 : f32
    %8 = vector.broadcast %cst_5 : f32 to vector<4x16x16xf32>
    %9 = arith.mulf %7, %8 : vector<4x16x16xf32>
    %10 = vector.extract_strided_slice %6 {offsets = [0, 0, 1], sizes = [4, 16, 16], strides = [1, 1, 1]} : vector<4x16x18xf32> to vector<4x16x16xf32>
    %cst_6 = arith.constant 7.500000e-01 : f32
    %11 = vector.broadcast %cst_6 : f32 to vector<4x16x16xf32>
    %12 = arith.mulf %10, %11 : vector<4x16x16xf32>
    %13 = arith.addf %9, %12 : vector<4x16x16xf32>
    %14 = vector.extract_strided_slice %6 {offsets = [0, 0, 1], sizes = [4, 16, 16], strides = [1, 1, 1]} : vector<4x16x18xf32> to vector<4x16x16xf32>
    %cst_7 = arith.constant 7.500000e-01 : f32
    %15 = vector.broadcast %cst_7 : f32 to vector<4x16x16xf32>
    %16 = arith.mulf %14, %15 : vector<4x16x16xf32>
    %17 = vector.extract_strided_slice %6 {offsets = [0, 0, 2], sizes = [4, 16, 16], strides = [1, 1, 1]} : vector<4x16x18xf32> to vector<4x16x16xf32>
    %cst_8 = arith.constant 2.500000e-01 : f32
    %18 = vector.broadcast %cst_8 : f32 to vector<4x16x16xf32>
    %19 = arith.mulf %17, %18 : vector<4x16x16xf32>
    %20 = arith.addf %16, %19 : vector<4x16x16xf32>
    %21 = vector.shape_cast %13 : vector<4x16x16xf32> to vector<4x16x16x1xf32>
    %22 = vector.shape_cast %20 : vector<4x16x16xf32> to vector<4x16x16x1xf32>
    %23 = tpu.concatenate %21, %22 in 3 : vector<4x16x16x1xf32>, vector<4x16x16x1xf32> -> vector<4x16x16x2xf32>
    %24 = vector.shape_cast %23 : vector<4x16x16x2xf32> to vector<4x16x32xf32>
    %c0_9 = arith.constant 0 : index
    %c0_10 = arith.constant 0 : index
    %c0_11 = arith.constant 0 : index
    %25 = vector.load %arg2[%c0_9, %c0_10, %c0_11] : memref<4x16x64xf32, #tpu.memory_space<vmem>>, vector<4x16x32xf32>
    tpu.vector_store %arg2[%c0_9, %c0_10, %c0_11], %24 {strides = array<i32>} : memref<4x16x64xf32, #tpu.memory_space<vmem>>, vector<4x16x32xf32>,
    %c0_12 = arith.constant 0 : index
    %c1_13 = arith.constant 1 : index
    %c0_14 = arith.constant 0 : index
    %26 = vector.load %arg1[%c0_12, %c1_13, %c0_14] : memref<4x18x18xf32, #tpu.memory_space<vmem>>, vector<4x16x18xf32>
    %cst_15 = arith.constant 7.500000e-01 : f32
    %27 = vector.broadcast %cst_15 : f32 to vector<4x16x18xf32>
    %28 = arith.mulf %26, %27 : vector<4x16x18xf32>
    %c0_16 = arith.constant 0 : index
    %c2 = arith.constant 2 : index
    %c0_17 = arith.constant 0 : index
    %29 = vector.load %arg1[%c0_16, %c2, %c0_17] : memref<4x18x18xf32, #tpu.memory_space<vmem>>, vector<4x16x18xf32>
    %cst_18 = arith.constant 2.500000e-01 : f32
    %30 = vector.broadcast %cst_18 : f32 to vector<4x16x18xf32>
    %31 = arith.mulf %29, %30 : vector<4x16x18xf32>
    %32 = arith.addf %28, %31 : vector<4x16x18xf32>
    %33 = vector.extract_strided_slice %32 {offsets = [0, 0, 0], sizes = [4, 16, 16], strides = [1, 1, 1]} : vector<4x16x18xf32> to vector<4x16x16xf32>
    %cst_19 = arith.constant 2.500000e-01 : f32
    %34 = vector.broadcast %cst_19 : f32 to vector<4x16x16xf32>
    %35 = arith.mulf %33, %34 : vector<4x16x16xf32>
    %36 = vector.extract_strided_slice %32 {offsets = [0, 0, 1], sizes = [4, 16, 16], strides = [1, 1, 1]} : vector<4x16x18xf32> to vector<4x16x16xf32>
    %cst_20 = arith.constant 7.500000e-01 : f32
    %37 = vector.broadcast %cst_20 : f32 to vector<4x16x16xf32>
    %38 = arith.mulf %36, %37 : vector<4x16x16xf32>
    %39 = arith.addf %35, %38 : vector<4x16x16xf32>
    %40 = vector.extract_strided_slice %32 {offsets = [0, 0, 1], sizes = [4, 16, 16], strides = [1, 1, 1]} : vector<4x16x18xf32> to vector<4x16x16xf32>
    %cst_21 = arith.constant 7.500000e-01 : f32
    %41 = vector.broadcast %cst_21 : f32 to vector<4x16x16xf32>
    %42 = arith.mulf %40, %41 : vector<4x16x16xf32>
    %43 = vector.extract_strided_slice %32 {offsets = [0, 0, 2], sizes = [4, 16, 16], strides = [1, 1, 1]} : vector<4x16x18xf32> to vector<4x16x16xf32>
    %cst_22 = arith.constant 2.500000e-01 : f32
    %44 = vector.broadcast %cst_22 : f32 to vector<4x16x16xf32>
    %45 = arith.mulf %43, %44 : vector<4x16x16xf32>
    %46 = arith.addf %42, %45 : vector<4x16x16xf32>
    %47 = vector.shape_cast %39 : vector<4x16x16xf32> to vector<4x16x16x1xf32>
    %48 = vector.shape_cast %46 : vector<4x16x16xf32> to vector<4x16x16x1xf32>
    %49 = tpu.concatenate %47, %48 in 3 : vector<4x16x16x1xf32>, vector<4x16x16x1xf32> -> vector<4x16x16x2xf32>
    %50 = vector.shape_cast %49 : vector<4x16x16x2xf32> to vector<4x16x32xf32>
    %c0_23 = arith.constant 0 : index
    %c0_24 = arith.constant 0 : index
    %c32 = arith.constant 32 : index
    %51 = vector.load %arg2[%c0_23, %c0_24, %c32] : memref<4x16x64xf32, #tpu.memory_space<vmem>>, vector<4x16x32xf32>
    tpu.vector_store %arg2[%c0_23, %c0_24, %c32], %50 {strides = array<i32>} : memref<4x16x64xf32, #tpu.memory_space<vmem>>, vector<4x16x32xf32>,
    return
  }
  func.func @transform_0(%arg0: i32) -> (i32, i32, i32) {
    %c0_i32 = arith.constant 0 : i32
    %c0_i32_0 = arith.constant 0 : i32
    %c0_i32_1 = arith.constant 0 : i32
    return %arg0, %c0_i32, %c0_i32_0 : i32, i32, i32
  }
  func.func @transform_1(%arg0: i32) -> (i32, i32, i32) {
    %c0_i32 = arith.constant 0 : i32
    %c0_i32_0 = arith.constant 0 : i32
    %c0_i32_1 = arith.constant 0 : i32
    return %arg0, %c0_i32, %c0_i32_0 : i32, i32, i32
  }
}

module attributes {stable_mosaic.version = 11 : i64} {
  func.func @kernel(%arg0: i32, %arg1: memref<4x18x18xf32, #tpu.memory_space<vmem>>, %arg2: memref<4x16x64xf32, #tpu.memory_space<vmem>>) attributes {dimension_semantics = [#tpu.dimension_semantics<parallel>], iteration_bounds = array<i64: 2>, scalar_prefetch = 0 : i64, scratch_operands = 0 : i64, tpu.core_type = #tpu.core_type<tc>, window_params = [{transform_indices = @transform_0, window_bounds = array<i64: 4, 18, 18>}, {transform_indices = @transform_1, window_bounds = array<i64: 4, 16, 64>}]} {
    %c0 = arith.constant 0 : index
    %c0_0 = arith.constant 0 : index
    %c0_1 = arith.constant 0 : index
    %0 = vector.load %arg1[%c0, %c0_0, %c0_1] : memref<4x18x18xf32, #tpu.memory_space<vmem>>, vector<4x16x18xf32>
    %cst = arith.constant 2.500000e-01 : f32
    %1 = vector.broadcast %cst : f32 to vector<4x16x18xf32>
    %2 = arith.mulf %0, %1 : vector<4x16x18xf32>
    %c0_2 = arith.constant 0 : index
    %c1 = arith.constant 1 : index
    %c0_3 = arith.constant 0 : index
    %3 = vector.load %arg1[%c0_2, %c1, %c0_3] : memref<4x18x18xf32, #tpu.memory_space<vmem>>, vector<4x16x18xf32>
    %cst_4 = arith.constant 7.500000e-01 : f32
    %4 = vector.broadcast %cst_4 : f32 to vector<4x16x18xf32>
    %5 = arith.mulf %3, %4 : vector<4x16x18xf32>
    %6 = arith.addf %2, %5 : vector<4x16x18xf32>
    %7 = vector.extract_strided_slice %6 {offsets = [0, 0, 0], sizes = [4, 16, 16], strides = [1, 1, 1]} : vector<4x16x18xf32> to vector<4x16x16xf32>
    %cst_5 = arith.constant 2.500000e-01 : f32
    %8 = vector.broadcast %cst_5 : f32 to vector<4x16x16xf32>
    %9 = arith.mulf %7, %8 : vector<4x16x16xf32>
    %10 = vector.extract_strided_slice %6 {offsets = [0, 0, 1], sizes = [4, 16, 16], strides = [1, 1, 1]} : vector<4x16x18xf32> to vector<4x16x16xf32>
    %cst_6 = arith.constant 7.500000e-01 : f32
    %11 = vector.broadcast %cst_6 : f32 to vector<4x16x16xf32>
    %12 = arith.mulf %10, %11 : vector<4x16x16xf32>
    %13 = arith.addf %9, %12 : vector<4x16x16xf32>
    %14 = vector.extract_strided_slice %6 {offsets = [0, 0, 1], sizes = [4, 16, 16], strides = [1, 1, 1]} : vector<4x16x18xf32> to vector<4x16x16xf32>
    %cst_7 = arith.constant 7.500000e-01 : f32
    %15 = vector.broadcast %cst_7 : f32 to vector<4x16x16xf32>
    %16 = arith.mulf %14, %15 : vector<4x16x16xf32>
    %17 = vector.extract_strided_slice %6 {offsets = [0, 0, 2], sizes = [4, 16, 16], strides = [1, 1, 1]} : vector<4x16x18xf32> to vector<4x16x16xf32>
    %cst_8 = arith.constant 2.500000e-01 : f32
    %18 = vector.broadcast %cst_8 : f32 to vector<4x16x16xf32>
    %19 = arith.mulf %17, %18 : vector<4x16x16xf32>
    %20 = arith.addf %16, %19 : vector<4x16x16xf32>
    %c0_9 = arith.constant 0 : index
    %c0_10 = arith.constant 0 : index
    %c0_11 = arith.constant 0 : index
    %21 = vector.load %arg2[%c0_9, %c0_10, %c0_11] : memref<4x16x64xf32, #tpu.memory_space<vmem>>, vector<4x16x16xf32>
    tpu.vector_store %arg2[%c0_9, %c0_10, %c0_11], %13 {strides = array<i32>} : memref<4x16x64xf32, #tpu.memory_space<vmem>>, vector<4x16x16xf32>,
    %c0_12 = arith.constant 0 : index
    %c0_13 = arith.constant 0 : index
    %c16 = arith.constant 16 : index
    %22 = vector.load %arg2[%c0_12, %c0_13, %c16] : memref<4x16x64xf32, #tpu.memory_space<vmem>>, vector<4x16x16xf32>
    tpu.vector_store %arg2[%c0_12, %c0_13, %c16], %20 {strides = array<i32>} : memref<4x16x64xf32, #tpu.memory_space<vmem>>, vector<4x16x16xf32>,
    %c0_14 = arith.constant 0 : index
    %c1_15 = arith.constant 1 : index
    %c0_16 = arith.constant 0 : index
    %23 = vector.load %arg1[%c0_14, %c1_15, %c0_16] : memref<4x18x18xf32, #tpu.memory_space<vmem>>, vector<4x16x18xf32>
    %cst_17 = arith.constant 7.500000e-01 : f32
    %24 = vector.broadcast %cst_17 : f32 to vector<4x16x18xf32>
    %25 = arith.mulf %23, %24 : vector<4x16x18xf32>
    %c0_18 = arith.constant 0 : index
    %c2 = arith.constant 2 : index
    %c0_19 = arith.constant 0 : index
    %26 = vector.load %arg1[%c0_18, %c2, %c0_19] : memref<4x18x18xf32, #tpu.memory_space<vmem>>, vector<4x16x18xf32>
    %cst_20 = arith.constant 2.500000e-01 : f32
    %27 = vector.broadcast %cst_20 : f32 to vector<4x16x18xf32>
    %28 = arith.mulf %26, %27 : vector<4x16x18xf32>
    %29 = arith.addf %25, %28 : vector<4x16x18xf32>
    %30 = vector.extract_strided_slice %29 {offsets = [0, 0, 0], sizes = [4, 16, 16], strides = [1, 1, 1]} : vector<4x16x18xf32> to vector<4x16x16xf32>
    %cst_21 = arith.constant 2.500000e-01 : f32
    %31 = vector.broadcast %cst_21 : f32 to vector<4x16x16xf32>
    %32 = arith.mulf %30, %31 : vector<4x16x16xf32>
    %33 = vector.extract_strided_slice %29 {offsets = [0, 0, 1], sizes = [4, 16, 16], strides = [1, 1, 1]} : vector<4x16x18xf32> to vector<4x16x16xf32>
    %cst_22 = arith.constant 7.500000e-01 : f32
    %34 = vector.broadcast %cst_22 : f32 to vector<4x16x16xf32>
    %35 = arith.mulf %33, %34 : vector<4x16x16xf32>
    %36 = arith.addf %32, %35 : vector<4x16x16xf32>
    %37 = vector.extract_strided_slice %29 {offsets = [0, 0, 1], sizes = [4, 16, 16], strides = [1, 1, 1]} : vector<4x16x18xf32> to vector<4x16x16xf32>
    %cst_23 = arith.constant 7.500000e-01 : f32
    %38 = vector.broadcast %cst_23 : f32 to vector<4x16x16xf32>
    %39 = arith.mulf %37, %38 : vector<4x16x16xf32>
    %40 = vector.extract_strided_slice %29 {offsets = [0, 0, 2], sizes = [4, 16, 16], strides = [1, 1, 1]} : vector<4x16x18xf32> to vector<4x16x16xf32>
    %cst_24 = arith.constant 2.500000e-01 : f32
    %41 = vector.broadcast %cst_24 : f32 to vector<4x16x16xf32>
    %42 = arith.mulf %40, %41 : vector<4x16x16xf32>
    %43 = arith.addf %39, %42 : vector<4x16x16xf32>
    %c0_25 = arith.constant 0 : index
    %c0_26 = arith.constant 0 : index
    %c32 = arith.constant 32 : index
    %44 = vector.load %arg2[%c0_25, %c0_26, %c32] : memref<4x16x64xf32, #tpu.memory_space<vmem>>, vector<4x16x16xf32>
    tpu.vector_store %arg2[%c0_25, %c0_26, %c32], %36 {strides = array<i32>} : memref<4x16x64xf32, #tpu.memory_space<vmem>>, vector<4x16x16xf32>,
    %c0_27 = arith.constant 0 : index
    %c0_28 = arith.constant 0 : index
    %c48 = arith.constant 48 : index
    %45 = vector.load %arg2[%c0_27, %c0_28, %c48] : memref<4x16x64xf32, #tpu.memory_space<vmem>>, vector<4x16x16xf32>
    tpu.vector_store %arg2[%c0_27, %c0_28, %c48], %43 {strides = array<i32>} : memref<4x16x64xf32, #tpu.memory_space<vmem>>, vector<4x16x16xf32>,
    return
  }
  func.func @transform_0(%arg0: i32) -> (i32, i32, i32) {
    %c0_i32 = arith.constant 0 : i32
    %c0_i32_0 = arith.constant 0 : i32
    %c0_i32_1 = arith.constant 0 : i32
    return %arg0, %c0_i32, %c0_i32_0 : i32, i32, i32
  }
  func.func @transform_1(%arg0: i32) -> (i32, i32, i32) {
    %c0_i32 = arith.constant 0 : i32
    %c0_i32_0 = arith.constant 0 : i32
    %c0_i32_1 = arith.constant 0 : i32
    return %arg0, %c0_i32, %c0_i32_0 : i32, i32, i32
  }
}

</mosaic_0001>

<bundles_post_ra>
// kernel: _upsample2x_forward.1
= control target key start
LH: loop header
LB: loop body
LE: loop exit
PB: predicated region body
PF: predicated region fallthrough
CT: control target
= control target key end

     0   :  { %s9351_s6 = smov 0   ;;  %s14932_s0 = inlined_call_operand.vmem [shape: f32[8,18,18], index: 0, kind: input, shape index: {}]   ;;  %s14933_s1 = inlined_call_operand.vmem [shape: f32[8,16,64], index: 1, kind: output, shape index: {}]  }
   0x1 LB: > { %s9273_s7 = sadd.s32 4294967295, %s9320_s6   ;;  %p9277_p0 = scmp.ge.s32.totalorder %s9320_s6, 1  ;;  %s9320_s6 = sphi %s9351_s6, %s11_s6  }
   0x2   : > { %p89_p1 = scmp.lt.s32.totalorder %s9320_s6, 3 }
   0x4   : > { %p90_p2 = pnand %p9277_p0, %p89_p1 }
   0x6   : > { %93 = sbr.rel (%p90_p2) target bundleno = 2186 (0x88a), region = 24 }
   0xb   : > { %s9278_s8 = sshll.u32 %s9273_s7, 2  ;;  %s9322_s13 = smov 127   ;;  %v261_v56 = vlaneseq  ;;  %vm15123_vm0 = vcmask 7168   ;;  %vm4518_vm1 = vcmask 15360   ;;  %vm4527_vm2 = vcmask 31744  }
   0xc   : > { %p112_p3 = scmp.lt.s32.totalorder %s9278_s8, 7  ;;  %s9325_s14 = smov 2   ;;  %vm4536_vm3 = vcmask 48128   ;;  %vm4545_vm4 = vcmask 64512   ;;  %vm4554_vm5 = vcmask 80896   ;;  %vm4563_vm6 = vcmask 97280  }
   0xd   : > { %v9441_v57 = vshrl.u32 %v261_v56, 7  ;;  %s9326_s15 = smov 4   ;;  %s9327_s16 = smov 6   ;;  %vm4572_vm7 = vcmask 113664   ;;  %vm4581_vm8 = vcmask 130048   ;;  %vm4590_vm9 = vcmask 146432  }
   0xe   : > { %s16528_s8 = smov (!%p112_p3, %s9278_s8), 7  ;;  %s9328_s17 = smov 8   ;;  %vm4599_vm10 = vcmask 162816   ;;  %vm4608_vm11 = vcmask 179200   ;;  %vm15139_vm12 = vcmask 195584   ;;  %vm15126_vm13 = vcmask 211968  }
   0xf   : > { %s9286_s9 = smul.u32 24, %s16528_s8  ;;  %v9444_v58 = vsub.s32 0, %v9441_v57  ;;  %v9448_v62 = vsub.s32 1, %v9441_v57  ;;  %s9329_s18 = smov 10   ;;  %vm15125_vm14 = vcmask 228352   ;;  %vm15124_vm15 = vcmask 244736  }
  0x10   : > { %s9330_s19 = smov 12   ;;  %s9331_s20 = smov 14  }
  0x11   : > { %s9365_s12 = scalar_lea.vmem %s14932_s0, %s9286_s9  ;;  %15244 = vst [vmem:[#allocation4_spill] sm:$0xff] %v9444_v58  ;;  %15245 = vst [vmem:[#allocation5_spill] sm:$0xff] %v9448_v62  ;;  %s9332_s21 = smov 16  }
  0x12   : > { %v125_v0 = vld [vmem:[%s9365_s12] sm:$0xff]  ;;  %v126_v2 = vld [vmem:[%s9365_s12 + $0x8] sm:$0xff]  ;;  %v127_v7 = vld [vmem:[%s9365_s12 + $0x18] sm:$0xff]  ;;  %s9333_s22 = smov 18   ;;  %s9334_s23 = smov 20  }
  0x13   : > { %v141_v1 = vld [vmem:[%s9365_s12 + $0x1] sm:$0xff]  ;;  %v133_v3 = vmul.f32 0.25, %v125_v0  ;;  %v134_v5 = vmul.f32 0.25, %v126_v2  ;;  %v142_v6 = vld [vmem:[%s9365_s12 + $0x9] sm:$0xff]  ;;  %v143_v8 = vld [vmem:[%s9365_s12 + $0x19] sm:$0xff]  ;;  %v135_v10 = vmul.f32 0.25, %v127_v7 }
  0x14   : > { %v149_v4 = vmul.f32 0.75, %v141_v1  ;;  %v150_v9 = vmul.f32 0.75, %v142_v6  ;;  %v151_v11 = vmul.f32 0.75, %v143_v8  ;;  %v128_v12 = vld [vmem:[%s9365_s12 + $0x20] sm:$0xff]  ;;  %v130_v14 = vld [vmem:[%s9365_s12 + $0x38] sm:$0xff]  ;;  %v129_v20 = vld [vmem:[%s9365_s12 + $0x30] sm:$0xff] }
  0x15   : > { %v144_v13 = vld [vmem:[%s9365_s12 + $0x21] sm:$0xff]  ;;  %v136_v16 = vmul.f32 0.25, %v128_v12  ;;  %v138_v18 = vmul.f32 0.25, %v130_v14  ;;  %v146_v19 = vld [vmem:[%s9365_s12 + $0x39] sm:$0xff]  ;;  %v145_v21 = vld [vmem:[%s9365_s12 + $0x31] sm:$0xff]  ;;  %v137_v25 = vmul.f32 0.25, %v129_v20 }
  0x16   : > { %v157_v15 = vadd.f32 %v149_v4, %v133_v3  ;;  %v152_v17 = vmul.f32 0.75, %v144_v13  ;;  %v158_v22 = vadd.f32 %v150_v9, %v134_v5  ;;  %v159_v23 = vadd.f32 %v151_v11, %v135_v10  ;;  %v131_v26 = vld [vmem:[%s9365_s12 + $0x48] sm:$0xff]  ;;  %v132_v30 = vld [vmem:[%s9365_s12 + $0x50] sm:$0xff]  ;;  %s9335_s24 = smov 22   ;;  %s9336_s25 = smov 24  }
  0x17   : > { %v154_v24 = vmul.f32 0.75, %v146_v19  ;;  %v153_v29 = vmul.f32 0.75, %v145_v21  ;;  %v148_v31 = vld [vmem:[%s9365_s12 + $0x51] sm:$0xff]  ;;  %v147_v32 = vld [vmem:[%s9365_s12 + $0x49] sm:$0xff]  ;;  %v139_v36 = vmul.f32 0.25, %v131_v26  ;;  %v140_v40 = vmul.f32 0.25, %v132_v30 }
  0x18   : > { %v9380_v27 = vmul.f32 0.75, %v157_v15  ;;  %v160_v28 = vadd.f32 %v152_v17, %v136_v16  ;;  %v9385_v33 = vmul.f32 0.75, %v159_v23  ;;  %v9389_v34 = vmul.f32 0.75, %v158_v22  ;;  %s9337_s26 = smov 26   ;;  %s9338_s27 = smov 28  }
  0x19   : > { %v161_v35 = vadd.f32 %v153_v29, %v137_v25  ;;  %v155_v37 = vmul.f32 0.75, %v147_v32  ;;  %v162_v39 = vadd.f32 %v154_v24, %v138_v18  ;;  %v156_v41 = vmul.f32 0.75, %v148_v31  ;;  %s9339_s28 = smov 30   ;;  %s9285_s29 = sshll.u32 %s16528_s8, 4 }
  0x1a   : > { %189 = vrot.lane.b32.xlu0 %v9380_v27, %s9322_s13  ;;  %193 = vrot.lane.b32.xlu1 %v9385_v33, %s9322_s13  ;;  %v9393_v38 = vmul.f32 0.75, %v160_v28  ;;  %v165_v48 = vmul.f32 0.25, %v157_v15  ;;  %v166_v49 = vmul.f32 0.25, %v158_v22  ;;  %v9416_v50 = vmul.f32 0.25, %v159_v23  ;;  %s12097_s3 = scalar_lea.vmem %s14933_s1, %s9285_s29  ;;  %s9340_s4 = smov 32  }
  0x1b   : > { %v9397_v42 = vmul.f32 0.75, %v161_v35  ;;  %v163_v43 = vadd.f32 %v155_v37, %v139_v36  ;;  %v9401_v44 = vmul.f32 0.75, %v162_v39  ;;  %v164_v45 = vadd.f32 %v156_v41, %v140_v40 }
  0x1c   : > { %v9419_v51 = vmul.f32 0.25, %v160_v28  ;;  %v9423_v52 = vmul.f32 0.25, %v161_v35  ;;  %v9427_v53 = vmul.f32 0.25, %v162_v39  ;;  %v9452_v0 = vsub.s32 2, %v9441_v57 }
  0x1d   : > { %v9405_v46 = vmul.f32 0.75, %v163_v43  ;;  %v9409_v47 = vmul.f32 0.75, %v164_v45  ;;  %v9431_v54 = vmul.f32 0.25, %v163_v43  ;;  %v9435_v55 = vmul.f32 0.25, %v164_v45 }
  0x1e   : > { %191 = vrot.lane.b32.xlu0 %v9389_v34, %s9322_s13  ;;  %195 = vrot.lane.b32.xlu1 %v9393_v38, %s9322_s13  ;;  %15246 = vst [vmem:[#allocation6_spill] sm:$0xff] %v9452_v0  ;;  %v9456_v2 = vsub.s32 3, %v9441_v57  ;;  %v9460_v4 = vsub.s32 4, %v9441_v57  ;;  %v9464_v6 = vsub.s32 5, %v9441_v57  ;;  %v9468_v8 = vsub.s32 6, %v9441_v57 }
  0x1f   : > { %15242 = vst [vmem:[#allocation2_spill] sm:$0xff] %v9405_v46  ;;  %15243 = vst [vmem:[#allocation3_spill] sm:$0xff] %v9409_v47  ;;  %v9472_v11 = vsub.s32 7, %v9441_v57 }
  0x20   : > { %15247 = vst [vmem:[#allocation7_spill] sm:$0xff] %v9456_v2  ;;  %15248 = vst [vmem:[#allocation8_spill] sm:$0xff] %v9460_v4 }
  0x21   : > { %15249 = vst [vmem:[#allocation9_spill] sm:$0xff] %v9464_v6  ;;  %15250 = vst [vmem:[#allocation10_spill] sm:$0xff] %v9468_v8 }
  0x22   : > { %197 = vrot.lane.b32.xlu0 %v9397_v42, %s9322_s13  ;;  %199 = vrot.lane.b32.xlu1 %v9401_v44, %s9322_s13  ;;  %15251 = vst [vmem:[#allocation11_spill] sm:$0xff] %v9472_v11 }
  0x26   : > { %201 = vrot.lane.b32.xlu0 %v9405_v46, %s9322_s13  ;;  %203 = vrot.lane.b32.xlu1 %v9409_v47, %s9322_s13 }
  0x2a   : > { %229 = vrot.lane.b32.xlu0 %v165_v48, %s9322_s13  ;;  %231 = vrot.lane.b32.xlu1 %v166_v49, %s9322_s13 }
  0x2e   : > { %233 = vrot.lane.b32.xlu0 %v9416_v50, %s9322_s13  ;;  %235 = vrot.lane.b32.xlu1 %v9419_v51, %s9322_s13 }
  0x32   : > { %237 = vrot.lane.b32.xlu0 %v9423_v52, %s9322_s13  ;;  %239 = vrot.lane.b32.xlu1 %v9427_v53, %s9322_s13 }
  0x36   : > { %241 = vrot.lane.b32.xlu0 %v9431_v54, %s9322_s13  ;;  %243 = vrot.lane.b32.xlu1 %v9435_v55, %s9322_s13 }
  0x8c   : > { %v190_v59 = vpop.permute.xlu0 %189  ;;  %v194_v20 = vpop.permute.xlu1 %193 }
  0x8d   : > { %v213_v60 = vadd.f32 %v190_v59, %v165_v48  ;;  %v215_v22 = vadd.f32 %v194_v20, %v9416_v50 }
  0x8f   : > { %v264_v61 = vrot.slane %v213_v60, %v9444_v58  ;;  %v275_v63 = vrot.slane %v213_v60, %v9448_v62  ;;  %v286_v1 = vrot.slane %v213_v60, %v9452_v0  ;;  %v297_v3 = vrot.slane %v213_v60, %v9456_v2 }
  0x90   : > { %v308_v5 = vrot.slane %v213_v60, %v9460_v4  ;;  %v319_v7 = vrot.slane %v213_v60, %v9464_v6  ;;  %v192_v9 = vpop.permute.xlu0 %191  ;;  %v330_v10 = vrot.slane %v213_v60, %v9468_v8  ;;  %v341_v13 = vrot.slane %v213_v60, %v9472_v11  ;;  %v196_v28 = vpop.permute.xlu1 %195 }
  0x91   : > { %270 = vbcast.lane.b32.xlu1 %v264_v61, 264  ;;  %266 = vbcast.lane.b32.xlu0 %v264_v61, 256  ;;  %v214_v12 = vadd.f32 %v192_v9, %v166_v49  ;;  %v440_v24 = vrot.slane %v215_v22, %v9444_v58  ;;  %v451_v25 = vrot.slane %v215_v22, %v9448_v62 }
  0x92   : > { %v462_v26 = vrot.slane %v215_v22, %v9452_v0  ;;  %v473_v29 = vrot.slane %v215_v22, %v9456_v2  ;;  %v484_v30 = vrot.slane %v215_v22, %v9460_v4  ;;  %v495_v35 = vrot.slane %v215_v22, %v9464_v6 }
  0x93   : > { %v352_v14 = vrot.slane %v214_v12, %v9444_v58  ;;  %v363_v15 = vrot.slane %v214_v12, %v9448_v62  ;;  %v374_v16 = vrot.slane %v214_v12, %v9452_v0  ;;  %v385_v17 = vrot.slane %v214_v12, %v9456_v2 }
  0x94   : > { %v396_v18 = vrot.slane %v214_v12, %v9460_v4  ;;  %v407_v19 = vrot.slane %v214_v12, %v9464_v6  ;;  %v418_v21 = vrot.slane %v214_v12, %v9468_v8  ;;  %v429_v23 = vrot.slane %v214_v12, %v9472_v11  ;;  %v9489_v31 = vpop.permute.xlu1 %199  ;;  %v198_v32 = vpop.permute.xlu0 %197 }
  0x95   : > { %281 = vbcast.lane.b32.xlu1 %v275_v63, 264  ;;  %277 = vbcast.lane.b32.xlu0 %v275_v63, 256  ;;  %v506_v39 = vrot.slane %v215_v22, %v9468_v8  ;;  %v216_v40 = vadd.f32 %v196_v28, %v9419_v51  ;;  %v517_v41 = vrot.slane %v215_v22, %v9472_v11 }
  0x97   : > { %v528_v48 = vrot.slane %v216_v40, %v9444_v58  ;;  %v539_v51 = vrot.slane %v216_v40, %v9448_v62  ;;  %v550_v56 = vrot.slane %v216_v40, %v9452_v0  ;;  %v561_v61 = vrot.slane %v216_v40, %v9456_v2 }
  0x98   : > { %v9492_v36 = vpop.permute.xlu1 %203  ;;  %v9494_v37 = vpop.permute.xlu0 %201  ;;  %v583_v9 = vrot.slane %v216_v40, %v9464_v6 }
  0x99   : > { %292 = vbcast.lane.b32.xlu1 %v286_v1, 264  ;;  %288 = vbcast.lane.b32.xlu0 %v286_v1, 256 }
  0x9c   : > { %v9499_v43 = vpop.permute.xlu1 %231  ;;  %v9501_v45 = vpop.permute.xlu0 %229 }
  0x9d   : > { %303 = vbcast.lane.b32.xlu1 %v297_v3, 264  ;;  %299 = vbcast.lane.b32.xlu0 %v297_v3, 256  ;;  %v572_v3 = vrot.slane %v216_v40, %v9460_v4 }
  0xa0   : > { %v9504_v49 = vpop.permute.xlu1 %235  ;;  %v9506_v50 = vpop.permute.xlu0 %233 }
  0xa1   : > { %314 = vbcast.lane.b32.xlu1 %v308_v5, 264  ;;  %310 = vbcast.lane.b32.xlu0 %v308_v5, 256 }
  0xa4   : > { %v9510_v59 = vpop.permute.xlu1 %239  ;;  %v9512_v60 = vpop.permute.xlu0 %237 }
  0xa5   : > { %325 = vbcast.lane.b32.xlu1 %v319_v7, 264  ;;  %321 = vbcast.lane.b32.xlu0 %v319_v7, 256 }
  0xa8   : > { %v9515_v63 = vpop.permute.xlu1 %243  ;;  %v9517_v1 = vpop.permute.xlu0 %241 }
  0xa9   : > { %336 = vbcast.lane.b32.xlu1 %v330_v10, 264  ;;  %332 = vbcast.lane.b32.xlu0 %v330_v10, 256  ;;  %15252 = vst [vmem:[#allocation12_spill] sm:$0xff] %v9515_v63  ;;  %15253 = vst [vmem:[#allocation13_spill] sm:$0xff] %v9517_v1 }
  0xad   : > { %347 = vbcast.lane.b32.xlu1 %v341_v13, 264  ;;  %343 = vbcast.lane.b32.xlu0 %v341_v13, 256  ;;  %v594_v13 = vrot.slane %v216_v40, %v9468_v8 }
  0xb1   : > { %358 = vbcast.lane.b32.xlu1 %v352_v14, 264  ;;  %354 = vbcast.lane.b32.xlu0 %v352_v14, 256  ;;  %v217_v14 = vadd.f32 %v198_v32, %v9423_v52 }
  0xb3   : > { %v616_v20 = vrot.slane %v217_v14, %v9444_v58  ;;  %v627_v52 = vrot.slane %v217_v14, %v9448_v62 }
  0xb5   : > { %369 = vbcast.lane.b32.xlu1 %v363_v15, 264  ;;  %365 = vbcast.lane.b32.xlu0 %v363_v15, 256 }
  0xb9   : > { %380 = vbcast.lane.b32.xlu1 %v374_v16, 264  ;;  %376 = vbcast.lane.b32.xlu0 %v374_v16, 256 }
  0xbd   : > { %391 = vbcast.lane.b32.xlu1 %v385_v17, 264  ;;  %387 = vbcast.lane.b32.xlu0 %v385_v17, 256  ;;  %v605_v17 = vrot.slane %v216_v40, %v9472_v11 }
  0xc1   : > { %402 = vbcast.lane.b32.xlu1 %v396_v18, 264  ;;  %398 = vbcast.lane.b32.xlu0 %v396_v18, 256 }
  0xc5   : > { %413 = vbcast.lane.b32.xlu1 %v407_v19, 264  ;;  %409 = vbcast.lane.b32.xlu0 %v407_v19, 256 }
  0xc9   : > { %424 = vbcast.lane.b32.xlu1 %v418_v21, 264  ;;  %420 = vbcast.lane.b32.xlu0 %v418_v21, 256 }
  0xcd   : > { %435 = vbcast.lane.b32.xlu1 %v429_v23, 264  ;;  %431 = vbcast.lane.b32.xlu0 %v429_v23, 256 }
  0xd1   : > { %446 = vbcast.lane.b32.xlu1 %v440_v24, 264  ;;  %442 = vbcast.lane.b32.xlu0 %v440_v24, 256 }
  0xd5   : > { %457 = vbcast.lane.b32.xlu1 %v451_v25, 264  ;;  %453 = vbcast.lane.b32.xlu0 %v451_v25, 256  ;;  %v638_v25 = vrot.slane %v217_v14, %v9452_v0 }
  0xd9   : > { %468 = vbcast.lane.b32.xlu1 %v462_v26, 264  ;;  %464 = vbcast.lane.b32.xlu0 %v462_v26, 256 }
  0xdd   : > { %479 = vbcast.lane.b32.xlu1 %v473_v29, 264  ;;  %475 = vbcast.lane.b32.xlu0 %v473_v29, 256  ;;  %v649_v29 = vrot.slane %v217_v14, %v9456_v2 }
  0xe1   : > { %490 = vbcast.lane.b32.xlu1 %v484_v30, 264  ;;  %486 = vbcast.lane.b32.xlu0 %v484_v30, 256 }
  0xe5   : > { %501 = vbcast.lane.b32.xlu1 %v495_v35, 264  ;;  %497 = vbcast.lane.b32.xlu0 %v495_v35, 256  ;;  %v660_v35 = vrot.slane %v217_v14, %v9460_v4 }
  0xe9   : > { %512 = vbcast.lane.b32.xlu1 %v506_v39, 264  ;;  %508 = vbcast.lane.b32.xlu0 %v506_v39, 256 }
  0xed   : > { %523 = vbcast.lane.b32.xlu1 %v517_v41, 264  ;;  %519 = vbcast.lane.b32.xlu0 %v517_v41, 256  ;;  %v671_v41 = vrot.slane %v217_v14, %v9464_v6 }
  0xf1   : > { %534 = vbcast.lane.b32.xlu1 %v528_v48, 264  ;;  %530 = vbcast.lane.b32.xlu0 %v528_v48, 256 }
  0xf5   : > { %545 = vbcast.lane.b32.xlu1 %v539_v51, 264  ;;  %541 = vbcast.lane.b32.xlu0 %v539_v51, 256 }
  0xf9   : > { %556 = vbcast.lane.b32.xlu1 %v550_v56, 264  ;;  %552 = vbcast.lane.b32.xlu0 %v550_v56, 256  ;;  %v682_v56 = vrot.slane %v217_v14, %v9468_v8 }
  0xfd   : > { %567 = vbcast.lane.b32.xlu1 %v561_v61, 264  ;;  %563 = vbcast.lane.b32.xlu0 %v561_v61, 256  ;;  %v218_v61 = vadd.f32 %v9489_v31, %v9427_v53 }
  0xff   : > { %v715_v31 = vrot.slane %v218_v61, %v9448_v62 }
 0x101   : > { %578 = vbcast.lane.b32.xlu1 %v572_v3, 264  ;;  %574 = vbcast.lane.b32.xlu0 %v572_v3, 256 }
 0x103   : > { %v9520_v5 = vpop.permute.xlu1 %270  ;;  %v9522_v7 = vpop.permute.xlu0 %266 }
 0x105   : > { %589 = vbcast.lane.b32.xlu1 %v583_v9, 264  ;;  %585 = vbcast.lane.b32.xlu0 %v583_v9, 256 }
 0x107   : > { %v9525_v10 = vpop.permute.xlu1 %281  ;;  %v9527_v12 = vpop.permute.xlu0 %277 }
 0x109   : > { %600 = vbcast.lane.b32.xlu1 %v594_v13, 264  ;;  %596 = vbcast.lane.b32.xlu0 %v594_v13, 256  ;;  %v693_v13 = vrot.slane %v217_v14, %v9472_v11 }
 0x10b   : > { %v9531_v15 = vpop.permute.xlu1 %292  ;;  %v9533_v16 = vpop.permute.xlu0 %288 }
 0x10d   : > { %611 = vbcast.lane.b32.xlu1 %v605_v17, 264  ;;  %607 = vbcast.lane.b32.xlu0 %v605_v17, 256  ;;  %v704_v17 = vrot.slane %v218_v61, %v9444_v58 }
 0x10f   : > { %v9536_v18 = vpop.permute.xlu1 %303  ;;  %v9538_v19 = vpop.permute.xlu0 %299 }
 0x111   : > { %622 = vbcast.lane.b32.xlu1 %v616_v20, 264  ;;  %618 = vbcast.lane.b32.xlu0 %v616_v20, 256 }
 0x113   : > { %v9541_v21 = vpop.permute.xlu1 %314  ;;  %v9543_v22 = vpop.permute.xlu0 %310 }
 0x115   : > { %633 = vbcast.lane.b32.xlu1 %v627_v52, 264  ;;  %629 = vbcast.lane.b32.xlu0 %v627_v52, 256 }
 0x117   : > { %v9546_v23 = vpop.permute.xlu1 %325  ;;  %v9548_v24 = vpop.permute.xlu0 %321 }
 0x119   : > { %644 = vbcast.lane.b32.xlu1 %v638_v25, 264  ;;  %640 = vbcast.lane.b32.xlu0 %v638_v25, 256 }
 0x11b   : > { %v9551_v26 = vpop.permute.xlu1 %336  ;;  %v9553_v28 = vpop.permute.xlu0 %332 }
 0x11d   : > { %655 = vbcast.lane.b32.xlu1 %v649_v29, 264  ;;  %651 = vbcast.lane.b32.xlu0 %v649_v29, 256 }
 0x11f   : > { %v9556_v30 = vpop.permute.xlu1 %347  ;;  %v9558_v32 = vpop.permute.xlu0 %343 }
 0x121   : > { %666 = vbcast.lane.b32.xlu1 %v660_v35, 264  ;;  %662 = vbcast.lane.b32.xlu0 %v660_v35, 256  ;;  %v726_v35 = vrot.slane %v218_v61, %v9452_v0 }
 0x123   : > { %v9561_v39 = vpop.permute.xlu1 %358  ;;  %v9563_v40 = vpop.permute.xlu0 %354 }
 0x125   : > { %677 = vbcast.lane.b32.xlu1 %v671_v41, 264  ;;  %673 = vbcast.lane.b32.xlu0 %v671_v41, 256 }
 0x127   : > { %v9566_v48 = vpop.permute.xlu1 %369  ;;  %v9568_v51 = vpop.permute.xlu0 %365 }
 0x129   : > { %688 = vbcast.lane.b32.xlu1 %v682_v56, 264  ;;  %684 = vbcast.lane.b32.xlu0 %v682_v56, 256 }
 0x12b   : > { %v9573_v3 = vpop.permute.xlu1 %380  ;;  %v9575_v9 = vpop.permute.xlu0 %376 }
 0x12d   : > { %699 = vbcast.lane.b32.xlu1 %v693_v13, 264  ;;  %695 = vbcast.lane.b32.xlu0 %v693_v13, 256  ;;  %v737_v13 = vrot.slane %v218_v61, %v9456_v2 }
 0x12f   : > { %v9579_v20 = vpop.permute.xlu1 %391  ;;  %v9581_v52 = vpop.permute.xlu0 %387 }
 0x131   : > { %710 = vbcast.lane.b32.xlu1 %v704_v17, 264  ;;  %706 = vbcast.lane.b32.xlu0 %v704_v17, 256 }
 0x133   : > { %v9583_v25 = vpop.permute.xlu1 %402  ;;  %v9585_v53 = vpop.permute.xlu0 %398 }
 0x135   : > { %721 = vbcast.lane.b32.xlu1 %v715_v31, 264  ;;  %717 = vbcast.lane.b32.xlu0 %v715_v31, 256  ;;  %v748_v31 = vrot.slane %v218_v61, %v9460_v4 }
 0x137   : > { %v9588_v29 = vpop.permute.xlu1 %413  ;;  %v9590_v14 = vpop.permute.xlu0 %409 }
 0x138   : > { %15254 = vst [vmem:[#allocation14_spill] sm:$0xff] %v9590_v14 }
 0x139   : > { %732 = vbcast.lane.b32.xlu1 %v726_v35, 264  ;;  %728 = vbcast.lane.b32.xlu0 %v726_v35, 256  ;;  %v759_v35 = vrot.slane %v218_v61, %v9464_v6 }
 0x13b   : > { %v9593_v41 = vpop.permute.xlu1 %424  ;;  %v9595_v56 = vpop.permute.xlu0 %420 }
 0x13d   : > { %743 = vbcast.lane.b32.xlu1 %v737_v13, 264  ;;  %739 = vbcast.lane.b32.xlu0 %v737_v13, 256  ;;  %v770_v13 = vrot.slane %v218_v61, %v9468_v8 }
 0x13f   : > { %v9598_v17 = vpop.permute.xlu1 %435  ;;  %v9600_v63 = vpop.permute.xlu0 %431 }
 0x140   : > { %15255 = vst [vmem:[#allocation15_spill] sm:$0xff] %v9598_v17  ;;  %15256 = vst [vmem:[#allocation16_spill] sm:$0xff] %v9600_v63  ;;  %v219_v63 = vadd.f32 %v9494_v37, %v9431_v54 }
 0x141   : > { %754 = vbcast.lane.b32.xlu1 %v748_v31, 264  ;;  %750 = vbcast.lane.b32.xlu0 %v748_v31, 256 }
 0x142   : > { %v803_v54 = vrot.slane %v219_v63, %v9448_v62 }
 0x143   : > { %v9603_v47 = vpop.permute.xlu1 %446  ;;  %v9605_v1 = vpop.permute.xlu0 %442 }
 0x144   : > { %15257 = vst [vmem:[#allocation17_spill] sm:$0xff] %v9603_v47  ;;  %15258 = vst [vmem:[#allocation18_spill] sm:$0xff] %v9605_v1  ;;  %v781_v1 = vrot.slane %v218_v61, %v9472_v11 }
 0x145   : > { %765 = vbcast.lane.b32.xlu1 %v759_v35, 264  ;;  %761 = vbcast.lane.b32.xlu0 %v759_v35, 256 }
 0x147   : > { %v9608_v46 = vpop.permute.xlu1 %457  ;;  %v9610_v14 = vpop.permute.xlu0 %453 }
 0x148   : > { %15259 = vst [vmem:[#allocation19_spill] sm:$0xff] %v9608_v46  ;;  %15260 = vst [vmem:[#allocation20_spill] sm:$0xff] %v9610_v14  ;;  %v792_v14 = vrot.slane %v219_v63, %v9444_v58 }
 0x149   : > { %776 = vbcast.lane.b32.xlu1 %v770_v13, 264  ;;  %772 = vbcast.lane.b32.xlu0 %v770_v13, 256 }
 0x14b   : > { %v9615_v31 = vpop.permute.xlu1 %468  ;;  %v9617_v47 = vpop.permute.xlu0 %464 }
 0x14d   : > { %787 = vbcast.lane.b32.xlu1 %v781_v1, 264  ;;  %783 = vbcast.lane.b32.xlu0 %v781_v1, 256  ;;  %v814_v1 = vrot.slane %v219_v63, %v9452_v0 }
 0x14f   : > { %v9620_v35 = vpop.permute.xlu1 %479  ;;  %v9622_v46 = vpop.permute.xlu0 %475 }
 0x150   : > { %15261 = vst [vmem:[#allocation21_spill] sm:$0xff] %v9620_v35  ;;  %15262 = vst [vmem:[#allocation22_spill] sm:$0xff] %v9622_v46 }
 0x151   : > { %798 = vbcast.lane.b32.xlu1 %v792_v14, 264  ;;  %794 = vbcast.lane.b32.xlu0 %v792_v14, 256  ;;  %v825_v14 = vrot.slane %v219_v63, %v9456_v2 }
 0x153   : > { %v9625_v13 = vpop.permute.xlu1 %490  ;;  %v9627_v17 = vpop.permute.xlu0 %486 }
 0x154   : > { %15263 = vst [vmem:[#allocation23_spill] sm:$0xff] %v9625_v13  ;;  %15264 = vst [vmem:[#allocation24_spill] sm:$0xff] %v9627_v17 }
 0x155   : > { %809 = vbcast.lane.b32.xlu1 %v803_v54, 264  ;;  %805 = vbcast.lane.b32.xlu0 %v803_v54, 256  ;;  %v836_v54 = vrot.slane %v219_v63, %v9460_v4 }
 0x157   : > { %v9630_v37 = vpop.permute.xlu1 %501  ;;  %v9632_v61 = vpop.permute.xlu0 %497 }
 0x158   : > { %15265 = vst [vmem:[#allocation25_spill] sm:$0xff] %v9630_v37  ;;  %15266 = vst [vmem:[#allocation26_spill] sm:$0xff] %v9632_v61 }
 0x159   : > { %820 = vbcast.lane.b32.xlu1 %v814_v1, 264  ;;  %816 = vbcast.lane.b32.xlu0 %v814_v1, 256  ;;  %v847_v1 = vrot.slane %v219_v63, %v9464_v6 }
 0x15b   : > { %v9635_v46 = vpop.permute.xlu1 %512  ;;  %v9637_v35 = vpop.permute.xlu0 %508 }
 0x15c   : > { %15267 = vst [vmem:[#allocation27_spill] sm:$0xff] %v9635_v46  ;;  %15268 = vst [vmem:[#allocation28_spill] sm:$0xff] %v9637_v35 }
 0x15d   : > { %831 = vbcast.lane.b32.xlu1 %v825_v14, 264  ;;  %827 = vbcast.lane.b32.xlu0 %v825_v14, 256  ;;  %v858_v14 = vrot.slane %v219_v63, %v9468_v8 }
 0x15f   : > { %v9640_v17 = vpop.permute.xlu1 %523  ;;  %v9642_v13 = vpop.permute.xlu0 %519 }
 0x160   : > { %15269 = vst [vmem:[#allocation29_spill] sm:$0xff] %v9640_v17  ;;  %15270 = vst [vmem:[#allocation30_spill] sm:$0xff] %v9642_v13  ;;  %v220_v13 = vadd.f32 %v9492_v36, %v9435_v55 }
 0x161   : > { %842 = vbcast.lane.b32.xlu1 %v836_v54, 264  ;;  %838 = vbcast.lane.b32.xlu0 %v836_v54, 256 }
 0x162   : > { %v891_v55 = vrot.slane %v220_v13, %v9448_v62 }
 0x163   : > { %v9645_v61 = vpop.permute.xlu1 %534  ;;  %v9647_v37 = vpop.permute.xlu0 %530 }
 0x164   : > { %15271 = vst [vmem:[#allocation31_spill] sm:$0xff] %v9645_v61  ;;  %15272 = vst [vmem:[#allocation32_spill] sm:$0xff] %v9647_v37  ;;  %v869_v37 = vrot.slane %v219_v63, %v9472_v11 }
 0x165   : > { %853 = vbcast.lane.b32.xlu1 %v847_v1, 264  ;;  %849 = vbcast.lane.b32.xlu0 %v847_v1, 256 }
 0x167   : > { %v9650_v35 = vpop.permute.xlu1 %545  ;;  %v9652_v46 = vpop.permute.xlu0 %541 }
 0x168   : > { %15273 = vst [vmem:[#allocation33_spill] sm:$0xff] %v9650_v35  ;;  %15274 = vst [vmem:[#allocation34_spill] sm:$0xff] %v9652_v46  ;;  %v880_v46 = vrot.slane %v220_v13, %v9444_v58 }
 0x169   : > { %864 = vbcast.lane.b32.xlu1 %v858_v14, 264  ;;  %860 = vbcast.lane.b32.xlu0 %v858_v14, 256 }
 0x16b   : > { %v9657_v54 = vpop.permute.xlu1 %556  ;;  %v9659_v61 = vpop.permute.xlu0 %552 }
 0x16d   : > { %875 = vbcast.lane.b32.xlu1 %v869_v37, 264  ;;  %871 = vbcast.lane.b32.xlu0 %v869_v37, 256  ;;  %v902_v37 = vrot.slane %v220_v13, %v9452_v0 }
 0x16f   : > { %v9662_v1 = vpop.permute.xlu1 %567  ;;  %v9664_v35 = vpop.permute.xlu0 %563 }
 0x170   : > { %15275 = vst [vmem:[#allocation35_spill] sm:$0xff] %v9662_v1  ;;  %15276 = vst [vmem:[#allocation36_spill] sm:$0xff] %v9664_v35 }
 0x171   : > { %886 = vbcast.lane.b32.xlu1 %v880_v46, 264  ;;  %882 = vbcast.lane.b32.xlu0 %v880_v46, 256  ;;  %v913_v46 = vrot.slane %v220_v13, %v9456_v2 }
 0x173   : > { %v9667_v14 = vpop.permute.xlu1 %578  ;;  %v9669_v17 = vpop.permute.xlu0 %574 }
 0x174   : > { %15277 = vst [vmem:[#allocation37_spill] sm:$0xff] %v9667_v14  ;;  %15278 = vst [vmem:[#allocation38_spill] sm:$0xff] %v9669_v17 }
 0x175   : > { %897 = vbcast.lane.b32.xlu1 %v891_v55, 264  ;;  %893 = vbcast.lane.b32.xlu0 %v891_v55, 256  ;;  %v924_v55 = vrot.slane %v220_v13, %v9460_v4 }
 0x177   : > { %v9672_v36 = vpop.permute.xlu1 %589  ;;  %v9674_v63 = vpop.permute.xlu0 %585 }
 0x178   : > { %15279 = vst [vmem:[#allocation39_spill] sm:$0xff] %v9672_v36  ;;  %15280 = vst [vmem:[#allocation40_spill] sm:$0xff] %v9674_v63 }
 0x179   : > { %908 = vbcast.lane.b32.xlu1 %v902_v37, 264  ;;  %904 = vbcast.lane.b32.xlu0 %v902_v37, 256  ;;  %v935_v37 = vrot.slane %v220_v13, %v9464_v6 }
 0x17b   : > { %v9677_v35 = vpop.permute.xlu1 %600  ;;  %v9679_v1 = vpop.permute.xlu0 %596 }
 0x17c   : > { %15281 = vst [vmem:[#allocation41_spill] sm:$0xff] %v9677_v35  ;;  %15282 = vst [vmem:[#allocation42_spill] sm:$0xff] %v9679_v1 }
 0x17d   : > { %919 = vbcast.lane.b32.xlu1 %v913_v46, 264  ;;  %915 = vbcast.lane.b32.xlu0 %v913_v46, 256  ;;  %v946_v46 = vrot.slane %v220_v13, %v9468_v8 }
 0x17f   : > { %v9682_v17 = vpop.permute.xlu1 %611  ;;  %v9684_v14 = vpop.permute.xlu0 %607 }
 0x180   : > { %15283 = vst [vmem:[#allocation43_spill] sm:$0xff] %v9682_v17  ;;  %15284 = vst [vmem:[#allocation44_spill] sm:$0xff] %v9684_v14  ;;  %v253_v14 = vadd.f32 %v9501_v45, %v9380_v27 }
 0x181   : > { %930 = vbcast.lane.b32.xlu1 %v924_v55, 264  ;;  %926 = vbcast.lane.b32.xlu0 %v924_v55, 256 }
 0x182   : > { %v980_v27 = vrot.slane %v253_v14, %v9448_v62 }
 0x183   : > { %v9687_v63 = vpop.permute.xlu1 %622  ;;  %v9689_v36 = vpop.permute.xlu0 %618 }
 0x184   : > { %15285 = vst [vmem:[#allocation45_spill] sm:$0xff] %v9687_v63  ;;  %15286 = vst [vmem:[#allocation46_spill] sm:$0xff] %v9689_v36  ;;  %v957_v36 = vrot.slane %v220_v13, %v9472_v11 }
 0x185   : > { %941 = vbcast.lane.b32.xlu1 %v935_v37, 264  ;;  %937 = vbcast.lane.b32.xlu0 %v935_v37, 256 }
 0x187   : > { %v9692_v1 = vpop.permute.xlu1 %633  ;;  %v9694_v35 = vpop.permute.xlu0 %629 }
 0x188   : > { %15287 = vst [vmem:[#allocation47_spill] sm:$0xff] %v9692_v1  ;;  %15288 = vst [vmem:[#allocation48_spill] sm:$0xff] %v9694_v35  ;;  %v968_v35 = vrot.slane %v253_v14, %v9444_v58 }
 0x189   : > { %952 = vbcast.lane.b32.xlu1 %v946_v46, 264  ;;  %948 = vbcast.lane.b32.xlu0 %v946_v46, 256 }
 0x18b   : > { %v9699_v55 = vpop.permute.xlu1 %644  ;;  %v9701_v63 = vpop.permute.xlu0 %640 }
 0x18d   : > { %963 = vbcast.lane.b32.xlu1 %v957_v36, 264  ;;  %959 = vbcast.lane.b32.xlu0 %v957_v36, 256  ;;  %v992_v36 = vrot.slane %v253_v14, %v9452_v0 }
 0x18f   : > { %v9704_v37 = vpop.permute.xlu1 %655  ;;  %v9706_v1 = vpop.permute.xlu0 %651 }
 0x190   : > { %15289 = vst [vmem:[#allocation49_spill] sm:$0xff] %v9704_v37  ;;  %15290 = vst [vmem:[#allocation50_spill] sm:$0xff] %v9706_v1 }
 0x191   : > { %975 = vbcast.lane.b32.xlu1 %v968_v35, 265  ;;  %971 = vbcast.lane.b32.xlu0 %v968_v35, 257  ;;  %v1004_v35 = vrot.slane %v253_v14, %v9456_v2 }
 0x193   : > { %v9709_v46 = vpop.permute.xlu1 %666  ;;  %v9711_v17 = vpop.permute.xlu0 %662 }
 0x194   : > { %15291 = vst [vmem:[#allocation51_spill] sm:$0xff] %v9709_v46  ;;  %15292 = vst [vmem:[#allocation52_spill] sm:$0xff] %v9711_v17 }
 0x195   : > { %987 = vbcast.lane.b32.xlu1 %v980_v27, 265  ;;  %983 = vbcast.lane.b32.xlu0 %v980_v27, 257  ;;  %v1016_v27 = vrot.slane %v253_v14, %v9460_v4 }
 0x197   : > { %v9714_v45 = vpop.permute.xlu1 %677  ;;  %v9716_v13 = vpop.permute.xlu0 %673 }
 0x198   : > { %15293 = vst [vmem:[#allocation53_spill] sm:$0xff] %v9714_v45  ;;  %15294 = vst [vmem:[#allocation54_spill] sm:$0xff] %v9716_v13 }
 0x199   : > { %999 = vbcast.lane.b32.xlu1 %v992_v36, 265  ;;  %995 = vbcast.lane.b32.xlu0 %v992_v36, 257  ;;  %v1028_v36 = vrot.slane %v253_v14, %v9464_v6 }
 0x19b   : > { %v9719_v1 = vpop.permute.xlu1 %688  ;;  %v9721_v37 = vpop.permute.xlu0 %684 }
 0x19c   : > { %15295 = vst [vmem:[#allocation55_spill] sm:$0xff] %v9719_v1  ;;  %15296 = vst [vmem:[#allocation56_spill] sm:$0xff] %v9721_v37 }
 0x19d   : > { %1011 = vbcast.lane.b32.xlu1 %v1004_v35, 265  ;;  %1007 = vbcast.lane.b32.xlu0 %v1004_v35, 257  ;;  %v1040_v35 = vrot.slane %v253_v14, %v9468_v8 }
 0x19f   : > { %v9724_v17 = vpop.permute.xlu1 %699  ;;  %v9726_v46 = vpop.permute.xlu0 %695 }
 0x1a0   : > { %15297 = vst [vmem:[#allocation57_spill] sm:$0xff] %v9724_v17  ;;  %15298 = vst [vmem:[#allocation58_spill] sm:$0xff] %v9726_v46  ;;  %v254_v46 = vadd.f32 %v9499_v43, %v9389_v34 }
 0x1a1   : > { %1023 = vbcast.lane.b32.xlu1 %v1016_v27, 265  ;;  %1019 = vbcast.lane.b32.xlu0 %v1016_v27, 257 }
 0x1a2   : > { %v1076_v34 = vrot.slane %v254_v46, %v9448_v62 }
 0x1a3   : > { %v9729_v13 = vpop.permute.xlu1 %710  ;;  %v9731_v45 = vpop.permute.xlu0 %706 }
 0x1a4   : > { %15299 = vst [vmem:[#allocation59_spill] sm:$0xff] %v9729_v13  ;;  %15300 = vst [vmem:[#allocation60_spill] sm:$0xff] %v9731_v45  ;;  %v1052_v45 = vrot.slane %v253_v14, %v9472_v11 }
 0x1a5   : > { %1035 = vbcast.lane.b32.xlu1 %v1028_v36, 265  ;;  %1031 = vbcast.lane.b32.xlu0 %v1028_v36, 257 }
 0x1a7   : > { %v9734_v37 = vpop.permute.xlu1 %721  ;;  %v9736_v1 = vpop.permute.xlu0 %717 }
 0x1a8   : > { %15301 = vst [vmem:[#allocation61_spill] sm:$0xff] %v9734_v37  ;;  %15302 = vst [vmem:[#allocation62_spill] sm:$0xff] %v9736_v1  ;;  %v1064_v1 = vrot.slane %v254_v46, %v9444_v58 }
 0x1a9   : > { %1047 = vbcast.lane.b32.xlu1 %v1040_v35, 265  ;;  %1043 = vbcast.lane.b32.xlu0 %v1040_v35, 257 }
 0x1ab   : > { %v9741_v27 = vpop.permute.xlu1 %732  ;;  %v9743_v13 = vpop.permute.xlu0 %728 }
 0x1ac   : > { %15303 = vst [vmem:[#allocation63_spill] sm:$0xff] %v9743_v13 }
 0x1ad   : > { %1059 = vbcast.lane.b32.xlu1 %v1052_v45, 265  ;;  %1055 = vbcast.lane.b32.xlu0 %v1052_v45, 257  ;;  %v1088_v45 = vrot.slane %v254_v46, %v9452_v0 }
 0x1af   : > { %v9746_v36 = vpop.permute.xlu1 %743  ;;  %v9748_v37 = vpop.permute.xlu0 %739 }
 0x1b0   : > { %15304 = vst [vmem:[#allocation64_spill] sm:$0xff] %v9746_v36  ;;  %15305 = vst [vmem:[#allocation65_spill] sm:$0xff] %v9748_v37 }
 0x1b1   : > { %1071 = vbcast.lane.b32.xlu1 %v1064_v1, 265  ;;  %1067 = vbcast.lane.b32.xlu0 %v1064_v1, 257  ;;  %v1100_v1 = vrot.slane %v254_v46, %v9456_v2 }
 0x1b3   : > { %v9751_v35 = vpop.permute.xlu1 %754  ;;  %v9753_v17 = vpop.permute.xlu0 %750 }
 0x1b4   : > { %15306 = vst [vmem:[#allocation66_spill] sm:$0xff] %v9751_v35  ;;  %15307 = vst [vmem:[#allocation67_spill] sm:$0xff] %v9753_v17 }
 0x1b5   : > { %1083 = vbcast.lane.b32.xlu1 %v1076_v34, 265  ;;  %1079 = vbcast.lane.b32.xlu0 %v1076_v34, 257  ;;  %v1112_v34 = vrot.slane %v254_v46, %v9460_v4 }
 0x1b7   : > { %v9756_v43 = vpop.permute.xlu1 %765  ;;  %v9758_v14 = vpop.permute.xlu0 %761 }
 0x1b8   : > { %15308 = vst [vmem:[#allocation68_spill] sm:$0xff] %v9756_v43  ;;  %15309 = vst [vmem:[#allocation69_spill] sm:$0xff] %v9758_v14 }
 0x1b9   : > { %1095 = vbcast.lane.b32.xlu1 %v1088_v45, 265  ;;  %1091 = vbcast.lane.b32.xlu0 %v1088_v45, 257  ;;  %v1124_v45 = vrot.slane %v254_v46, %v9464_v6 }
 0x1bb   : > { %v9761_v37 = vpop.permute.xlu1 %776  ;;  %v9763_v36 = vpop.permute.xlu0 %772 }
 0x1bc   : > { %15310 = vst [vmem:[#allocation70_spill] sm:$0xff] %v9761_v37  ;;  %15311 = vst [vmem:[#allocation71_spill] sm:$0xff] %v9763_v36 }
 0x1bd   : > { %1107 = vbcast.lane.b32.xlu1 %v1100_v1, 265  ;;  %1103 = vbcast.lane.b32.xlu0 %v1100_v1, 257  ;;  %v1136_v1 = vrot.slane %v254_v46, %v9468_v8 }
 0x1bf   : > { %v9766_v17 = vpop.permute.xlu1 %787  ;;  %v9768_v35 = vpop.permute.xlu0 %783 }
 0x1c0   : > { %15312 = vst [vmem:[#allocation72_spill] sm:$0xff] %v9766_v17  ;;  %15313 = vst [vmem:[#allocation73_spill] sm:$0xff] %v9768_v35  ;;  %v255_v35 = vadd.f32 %v9506_v50, %v9385_v33 }
 0x1c1   : > { %1119 = vbcast.lane.b32.xlu1 %v1112_v34, 265  ;;  %1115 = vbcast.lane.b32.xlu0 %v1112_v34, 257 }
 0x1c2   : > { %v1172_v33 = vrot.slane %v255_v35, %v9448_v62 }
 0x1c3   : > { %v9771_v14 = vpop.permute.xlu1 %798  ;;  %v9773_v43 = vpop.permute.xlu0 %794 }
 0x1c4   : > { %15314 = vst [vmem:[#allocation74_spill] sm:$0xff] %v9771_v14  ;;  %15315 = vst [vmem:[#allocation75_spill] sm:$0xff] %v9773_v43  ;;  %v1148_v43 = vrot.slane %v254_v46, %v9472_v11 }
 0x1c5   : > { %1131 = vbcast.lane.b32.xlu1 %v1124_v45, 265  ;;  %1127 = vbcast.lane.b32.xlu0 %v1124_v45, 257 }
 0x1c7   : > { %v9776_v36 = vpop.permute.xlu1 %809  ;;  %v9778_v37 = vpop.permute.xlu0 %805 }
 0x1c8   : > { %15316 = vst [vmem:[#allocation76_spill] sm:$0xff] %v9776_v36  ;;  %15317 = vst [vmem:[#allocation77_spill] sm:$0xff] %v9778_v37  ;;  %v1160_v37 = vrot.slane %v255_v35, %v9444_v58 }
 0x1c9   : > { %1143 = vbcast.lane.b32.xlu1 %v1136_v1, 265  ;;  %1139 = vbcast.lane.b32.xlu0 %v1136_v1, 257 }
 0x1cb   : > { %v9783_v34 = vpop.permute.xlu1 %820  ;;  %v9785_v14 = vpop.permute.xlu0 %816 }
 0x1cc   : > { %15318 = vst [vmem:[#allocation78_spill] sm:$0xff] %v9783_v34  ;;  %15319 = vst [vmem:[#allocation79_spill] sm:$0xff] %v9785_v14 }
 0x1cd   : > { %1155 = vbcast.lane.b32.xlu1 %v1148_v43, 265  ;;  %1151 = vbcast.lane.b32.xlu0 %v1148_v43, 257  ;;  %v1184_v43 = vrot.slane %v255_v35, %v9452_v0 }
 0x1cf   : > { %v9788_v45 = vpop.permute.xlu1 %831  ;;  %v9790_v36 = vpop.permute.xlu0 %827 }
 0x1d0   : > { %15320 = vst [vmem:[#allocation80_spill] sm:$0xff] %v9788_v45  ;;  %15321 = vst [vmem:[#allocation81_spill] sm:$0xff] %v9790_v36 }
 0x1d1   : > { %1167 = vbcast.lane.b32.xlu1 %v1160_v37, 265  ;;  %1163 = vbcast.lane.b32.xlu0 %v1160_v37, 257  ;;  %v1196_v37 = vrot.slane %v255_v35, %v9456_v2 }
 0x1d3   : > { %v9793_v1 = vpop.permute.xlu1 %842  ;;  %v9795_v17 = vpop.permute.xlu0 %838 }
 0x1d4   : > { %15322 = vst [vmem:[#allocation82_spill] sm:$0xff] %v9793_v1  ;;  %15323 = vst [vmem:[#allocation83_spill] sm:$0xff] %v9795_v17 }
 0x1d5   : > { %1179 = vbcast.lane.b32.xlu1 %v1172_v33, 265  ;;  %1175 = vbcast.lane.b32.xlu0 %v1172_v33, 257  ;;  %v1208_v33 = vrot.slane %v255_v35, %v9460_v4 }
 0x1d7   : > { %v9798_v50 = vpop.permute.xlu1 %853  ;;  %v9800_v46 = vpop.permute.xlu0 %849 }
 0x1d8   : > { %15324 = vst [vmem:[#allocation84_spill] sm:$0xff] %v9798_v50  ;;  %15325 = vst [vmem:[#allocation85_spill] sm:$0xff] %v9800_v46 }
 0x1d9   : > { %1191 = vbcast.lane.b32.xlu1 %v1184_v43, 265  ;;  %1187 = vbcast.lane.b32.xlu0 %v1184_v43, 257  ;;  %v1220_v43 = vrot.slane %v255_v35, %v9464_v6 }
 0x1db   : > { %v9803_v14 = vpop.permute.xlu1 %864  ;;  %v9805_v36 = vpop.permute.xlu0 %860 }
 0x1dc   : > { %15326 = vst [vmem:[#allocation86_spill] sm:$0xff] %v9803_v14  ;;  %15327 = vst [vmem:[#allocation87_spill] sm:$0xff] %v9805_v36 }
 0x1dd   : > { %1203 = vbcast.lane.b32.xlu1 %v1196_v37, 265  ;;  %1199 = vbcast.lane.b32.xlu0 %v1196_v37, 257  ;;  %v1232_v37 = vrot.slane %v255_v35, %v9468_v8 }
 0x1df   : > { %v9808_v17 = vpop.permute.xlu1 %875  ;;  %v9810_v1 = vpop.permute.xlu0 %871 }
 0x1e0   : > { %15328 = vst [vmem:[#allocation88_spill] sm:$0xff] %v9808_v17  ;;  %15329 = vst [vmem:[#allocation89_spill] sm:$0xff] %v9810_v1  ;;  %v256_v1 = vadd.f32 %v9504_v49, %v9393_v38 }
 0x1e1   : > { %1215 = vbcast.lane.b32.xlu1 %v1208_v33, 265  ;;  %1211 = vbcast.lane.b32.xlu0 %v1208_v33, 257 }
 0x1e2   : > { %v1268_v38 = vrot.slane %v256_v1, %v9448_v62  ;;  %v1340_v34 = vrot.slane %v256_v1, %v9472_v11 }
 0x1e3   : > { %v9813_v46 = vpop.permute.xlu1 %886  ;;  %v9815_v50 = vpop.permute.xlu0 %882 }
 0x1e4   : > { %15330 = vst [vmem:[#allocation90_spill] sm:$0xff] %v9813_v46  ;;  %15331 = vst [vmem:[#allocation91_spill] sm:$0xff] %v9815_v50  ;;  %v1244_v50 = vrot.slane %v255_v35, %v9472_v11 }
 0x1e5   : > { %1227 = vbcast.lane.b32.xlu1 %v1220_v43, 265  ;;  %1223 = vbcast.lane.b32.xlu0 %v1220_v43, 257 }
 0x1e7   : > { %v9818_v36 = vpop.permute.xlu1 %897  ;;  %v9820_v14 = vpop.permute.xlu0 %893 }
 0x1e8   : > { %15332 = vst [vmem:[#allocation92_spill] sm:$0xff] %v9818_v36  ;;  %15333 = vst [vmem:[#allocation93_spill] sm:$0xff] %v9820_v14  ;;  %v1256_v14 = vrot.slane %v256_v1, %v9444_v58 }
 0x1e9   : > { %1239 = vbcast.lane.b32.xlu1 %v1232_v37, 265  ;;  %1235 = vbcast.lane.b32.xlu0 %v1232_v37, 257 }
 0x1eb   : > { %v9825_v33 = vpop.permute.xlu1 %908  ;;  %v9827_v46 = vpop.permute.xlu0 %904 }
 0x1ec   : > { %15334 = vst [vmem:[#allocation94_spill] sm:$0xff] %v9825_v33  ;;  %15335 = vst [vmem:[#allocation95_spill] sm:$0xff] %v9827_v46 }
 0x1ed   : > { %1251 = vbcast.lane.b32.xlu1 %v1244_v50, 265  ;;  %1247 = vbcast.lane.b32.xlu0 %v1244_v50, 257  ;;  %v1280_v50 = vrot.slane %v256_v1, %v9452_v0 }
 0x1ef   : > { %v9830_v43 = vpop.permute.xlu1 %919  ;;  %v9832_v36 = vpop.permute.xlu0 %915 }
 0x1f0   : > { %15336 = vst [vmem:[#allocation96_spill] sm:$0xff] %v9830_v43  ;;  %15337 = vst [vmem:[#allocation97_spill] sm:$0xff] %v9832_v36 }
 0x1f1   : > { %1263 = vbcast.lane.b32.xlu1 %v1256_v14, 265  ;;  %1259 = vbcast.lane.b32.xlu0 %v1256_v14, 257  ;;  %v1292_v14 = vrot.slane %v256_v1, %v9456_v2 }
 0x1f3   : > { %v9835_v37 = vpop.permute.xlu1 %930  ;;  %v9837_v17 = vpop.permute.xlu0 %926 }
 0x1f4   : > { %15338 = vst [vmem:[#allocation98_spill] sm:$0xff] %v9835_v37  ;;  %15339 = vst [vmem:[#allocation99_spill] sm:$0xff] %v9837_v17 }
 0x1f5   : > { %1275 = vbcast.lane.b32.xlu1 %v1268_v38, 265  ;;  %1271 = vbcast.lane.b32.xlu0 %v1268_v38, 257  ;;  %v1304_v38 = vrot.slane %v256_v1, %v9460_v4 }
 0x1f7   : > { %v9840_v49 = vpop.permute.xlu1 %941  ;;  %v9842_v35 = vpop.permute.xlu0 %937 }
 0x1f8   : > { %15340 = vst [vmem:[#allocation100_spill] sm:$0xff] %v9840_v49  ;;  %15341 = vst [vmem:[#allocation101_spill] sm:$0xff] %v9842_v35 }
 0x1f9   : > { %1287 = vbcast.lane.b32.xlu1 %v1280_v50, 265  ;;  %1283 = vbcast.lane.b32.xlu0 %v1280_v50, 257  ;;  %v1316_v50 = vrot.slane %v256_v1, %v9464_v6 }
 0x1fb   : > { %v9845_v46 = vpop.permute.xlu1 %952  ;;  %v9847_v36 = vpop.permute.xlu0 %948 }
 0x1fc   : > { %15342 = vst [vmem:[#allocation102_spill] sm:$0xff] %v9845_v46  ;;  %15343 = vst [vmem:[#allocation103_spill] sm:$0xff] %v9847_v36  ;;  %v9323_v46 = vmov 1983009808  }
 0x1fd   : > { %1299 = vbcast.lane.b32.xlu1 %v1292_v14, 265  ;;  %1295 = vbcast.lane.b32.xlu0 %v1292_v14, 257  ;;  %v1865_v36 = vunpack.c.l.s4 %v9323_v46  ;;  %v1328_v14 = vrot.slane %v256_v1, %v9468_v8 }
 0x1ff   : > { %v9850_v17 = vpop.permute.xlu1 %963  ;;  %v9852_v37 = vpop.permute.xlu0 %959 }
 0x200   : > { %15344 = vst [vmem:[#allocation104_spill] sm:$0xff] %v9850_v17  ;;  %15345 = vst [vmem:[#allocation105_spill] sm:$0xff] %v9852_v37  ;;  %v1866_v37 = vunpack.c.0.s8 %v1865_v36  ;;  %v9859_v17 = vadd.f32 %v9512_v60, %v9397_v42 }
 0x201   : > { %1311 = vbcast.lane.b32.xlu1 %v1304_v38, 265  ;;  %1307 = vbcast.lane.b32.xlu0 %v1304_v38, 257 }
 0x202   : > { %v9877_v1 = vsub.s32 %v1866_v37, %v9441_v57 }
 0x203   : > { %v976_v35 = vpop.permute.xlu1 %975  ;;  %v972_v49 = vpop.permute.xlu0 %971 }
 0x204   : > { %v1734_v46 = vsel %vm15123_vm0, %v9522_v7, %v972_v49  ;;  %15348 = vst [vmem:[#allocation108_spill] sm:$0xff] %v9877_v1 }
 0x205   : > { %1323 = vbcast.lane.b32.xlu1 %v1316_v50, 265  ;;  %1319 = vbcast.lane.b32.xlu0 %v1316_v50, 257  ;;  %v9864_v50 = vsel %vm15123_vm0, %v9520_v5, %v976_v35 }
 0x206   : > { %15346 = vst [vmem:[#allocation106_spill] sm:$0xff] %v9864_v50 }
 0x207   : > { %v988_v43 = vpop.permute.xlu1 %987  ;;  %v984_v33 = vpop.permute.xlu0 %983 }
 0x208   : > { %v9881_v5 = vsel %vm15123_vm0, %v9525_v10, %v988_v43 }
 0x209   : > { %1335 = vbcast.lane.b32.xlu1 %v1328_v14, 265  ;;  %1331 = vbcast.lane.b32.xlu0 %v1328_v14, 257  ;;  %15349 = vst [vmem:[#allocation109_spill] sm:$0xff] %v9881_v5  ;;  %v1364_v14 = vrot.slane %v9859_v17, %v9448_v62 }
 0x20b   : > { %v1000_v38 = vpop.permute.xlu1 %999  ;;  %v996_v45 = vpop.permute.xlu0 %995 }
 0x20c   : > { %v9870_v13 = vsel %vm15123_vm0, %v9531_v15, %v1000_v38  ;;  %v1738_v36 = vsel %vm15123_vm0, %v9533_v16, %v996_v45  ;;  %v1352_v15 = vrot.slane %v9859_v17, %v9444_v58  ;;  %v1736_v16 = vsel %vm15123_vm0, %v9527_v12, %v984_v33 }
 0x20d   : > { %15347 = vst [vmem:[#allocation107_spill] sm:$0xff] %v9870_v13  ;;  %v2135_v42 = vcombine.high %v9864_v50, %v9870_v13  ;;  %v1863_v60 = vcombine.high %v1734_v46, %v1738_v36  ;;  %1347 = vbcast.lane.b32.xlu1 %v1340_v34, 265  ;;  %1343 = vbcast.lane.b32.xlu0 %v1340_v34, 257 }
 0x20e   : > { %v1862_v45 = vcombine.low %v1734_v46, %v1738_v36  ;;  %v1388_v13 = vrot.slane %v9859_v17, %v9456_v2 }
 0x20f   : > { %v1012_v7 = vpop.permute.xlu1 %1011  ;;  %v1008_v49 = vpop.permute.xlu0 %1007  ;;  %v9898_v12 = vrot.slane %v2135_v42, %v9877_v1 }
 0x210   : > { %v9889_v35 = vsel %vm15123_vm0, %v9536_v18, %v1012_v7  ;;  %v1740_v34 = vsel %vm15123_vm0, %v9538_v19, %v1008_v49  ;;  %v9910_v36 = vrot.slane %v1862_v45, %v9877_v1  ;;  %v9913_v7 = vrot.slane %v1863_v60, %v9877_v1 }
 0x211   : > { %15350 = vst [vmem:[#allocation110_spill] sm:$0xff] %v9889_v35  ;;  %v2151_v10 = vcombine.high %v9881_v5, %v9889_v35  ;;  %v1878_v43 = vcombine.low %v1736_v16, %v1740_v34  ;;  %v1879_v37 = vcombine.high %v1736_v16, %v1740_v34  ;;  %1359 = vbcast.lane.b32.xlu1 %v1352_v15, 265 }
 0x212   : > { %1355 = vbcast.lane.b32.xlu0 %v1352_v15, 257 }
 0x213   : > { %v9901_v33 = vrot.slane %v2151_v10, %v9877_v1  ;;  %v9904_v18 = vrot.slane %v1878_v43, %v9877_v1  ;;  %v9907_v19 = vrot.slane %v1879_v37, %v9877_v1  ;;  %v1024_v38 = vpop.permute.xlu1 %1023  ;;  %v1020_v46 = vpop.permute.xlu0 %1019  ;;  %v1376_v10 = vrot.slane %v9859_v17, %v9452_v0 }
 0x214   : > { %v9324_v43 = vmov 1934713408   ;;  %v9931_v16 = vsel %vm15123_vm0, %v9541_v21, %v1024_v38 }
 0x215   : > { %v2214_v42 = vcombine.low %v9898_v12, %v9901_v33  ;;  %1371 = vbcast.lane.b32.xlu1 %v1364_v14, 265  ;;  %v1927_v15 = vcombine.high %v9910_v36, %v9904_v18  ;;  %v1929_v37 = vunpack.c.l.s4 %v9324_v43  ;;  %15351 = vst [vmem:[#allocation111_spill] sm:$0xff] %v9931_v16 }
 0x216   : > { %1367 = vbcast.lane.b32.xlu0 %v1364_v14, 257  ;;  %v1742_v14 = vsel %vm15123_vm0, %v9543_v22, %v1020_v46 }
 0x217   : > { %v1036_v34 = vpop.permute.xlu1 %1035  ;;  %v1032_v60 = vpop.permute.xlu0 %1031  ;;  %v1930_v35 = vunpack.c.0.s8 %v1929_v37 }
 0x218   : > { %v9945_v21 = vsel %vm15123_vm0, %v9546_v23, %v1036_v34  ;;  %v1744_v46 = vsel %vm15123_vm0, %v9548_v24, %v1032_v60  ;;  %v1926_v24 = vcombine.low %v9910_v36, %v9904_v18  ;;  %v9974_v18 = vadd.f32 %v9510_v59, %v9401_v44 }
 0x219   : > { %1383 = vbcast.lane.b32.xlu1 %v1376_v10, 265  ;;  %15353 = vst [vmem:[#allocation113_spill] sm:$0xff] %v9945_v21  ;;  %v9960_v37 = vsub.s32 %v1930_v35, %v9441_v57 }
 0x21a   : > { %1379 = vbcast.lane.b32.xlu0 %v1376_v10, 257 }
 0x21b   : > { %v1048_v49 = vpop.permute.xlu1 %1047  ;;  %v1044_v50 = vpop.permute.xlu0 %1043  ;;  %15355 = vst [vmem:[#allocation115_spill] sm:$0xff] %v9960_v37  ;;  %v9985_v44 = vrot.slane %v1927_v15, %v9960_v37  ;;  %v15359_v15 = vcombine.high %v9898_v12, %v9901_v33 }
 0x21c   : > { %v9937_v45 = vsel %vm15123_vm0, %v9551_v26, %v1048_v49  ;;  %v1746_v43 = vsel %vm15123_vm0, %v9553_v28, %v1044_v50  ;;  %v1400_v26 = vrot.slane %v9859_v17, %v9460_v4 }
 0x21d   : > { %15352 = vst [vmem:[#allocation112_spill] sm:$0xff] %v9937_v45  ;;  %v2167_v10 = vcombine.high %v9931_v16, %v9937_v45  ;;  %v1895_v5 = vcombine.high %v1742_v14, %v1746_v43  ;;  %1395 = vbcast.lane.b32.xlu1 %v1388_v13, 265  ;;  %v1894_v28 = vcombine.low %v1742_v14, %v1746_v43 }
 0x21e   : > { %1391 = vbcast.lane.b32.xlu0 %v1388_v13, 257 }
 0x21f   : > { %v1060_v38 = vpop.permute.xlu1 %1059  ;;  %v1056_v22 = vpop.permute.xlu0 %1055  ;;  %v2181_v60 = vrot.slane %v2167_v10, %v9877_v1  ;;  %v1902_v57 = vrot.slane %v1894_v28, %v9877_v1  ;;  %v1909_v35 = vrot.slane %v1895_v5, %v9877_v1  ;;  %v1424_v10 = vrot.slane %v9859_v17, %v9468_v8 }
 0x220   : > { %v9953_v50 = vsel %vm15123_vm0, %v9556_v30, %v1060_v38  ;;  %v1748_v13 = vsel %vm15123_vm0, %v9558_v32, %v1056_v22  ;;  %v1412_v30 = vrot.slane %v9859_v17, %v9464_v6  ;;  %v9982_v5 = vrot.slane %v1926_v24, %v9960_v37 }
 0x221   : > { %15354 = vst [vmem:[#allocation114_spill] sm:$0xff] %v9953_v50  ;;  %v2183_v23 = vcombine.high %v9945_v21, %v9953_v50  ;;  %v1910_v49 = vcombine.low %v1744_v46, %v1748_v13  ;;  %v1911_v34 = vcombine.high %v1744_v46, %v1748_v13  ;;  %1407 = vbcast.lane.b32.xlu1 %v1400_v26, 265  ;;  %v15548_v21 = vld [vmem:[#allocation94_spill] sm:$0xff] }
 0x222   : > { %1403 = vbcast.lane.b32.xlu0 %v1400_v26, 257  ;;  %15357 = vst [vmem:[#allocation117_spill] sm:$0xff] %v9982_v5 }
 0x223   : > { %v2197_v32 = vrot.slane %v2183_v23, %v9877_v1  ;;  %v1918_v14 = vrot.slane %v1910_v49, %v9877_v1  ;;  %v1925_v43 = vrot.slane %v1911_v34, %v9877_v1  ;;  %v1072_v38 = vpop.permute.xlu1 %1071  ;;  %v1068_v22 = vpop.permute.xlu0 %1067  ;;  %v9979_v34 = vrot.slane %v2214_v42, %v9960_v37 }
 0x225   : > { %v2246_v36 = vcombine.low %v2181_v60, %v2197_v32  ;;  %v2247_v26 = vcombine.high %v2181_v60, %v2197_v32  ;;  %1419 = vbcast.lane.b32.xlu1 %v1412_v30, 265  ;;  %v1958_v46 = vcombine.low %v1902_v57, %v1918_v14  ;;  %v1959_v13 = vcombine.high %v1902_v57, %v1918_v14 }
 0x226   : > { %v1974_v23 = vcombine.low %v1909_v35, %v1925_v43  ;;  %v1975_v49 = vcombine.high %v1909_v35, %v1925_v43  ;;  %1415 = vbcast.lane.b32.xlu0 %v1412_v30, 257  ;;  %15356 = vst [vmem:[#allocation116_spill] sm:$0xff] %v9979_v34  ;;  %v1436_v60 = vrot.slane %v9859_v17, %v9472_v11 }
 0x227   : > { %v1084_v59 = vpop.permute.xlu1 %1083  ;;  %v1080_v28 = vpop.permute.xlu0 %1079  ;;  %v9990_v32 = vrot.slane %v1958_v46, %v9960_v37  ;;  %v9993_v14 = vrot.slane %v1959_v13, %v9960_v37  ;;  %v10005_v30 = vrot.slane %v15359_v15, %v9960_v37  ;;  %v15361_v17 = vcombine.low %v9913_v7, %v9907_v19 }
 0x228   : > { %v9996_v42 = vrot.slane %v1974_v23, %v9960_v37  ;;  %v9999_v24 = vrot.slane %v1975_v49, %v9960_v37  ;;  %v15362_v57 = vcombine.high %v9913_v7, %v9907_v19  ;;  %v10020_v46 = vrot.slane %v2246_v36, %v9960_v37 }
 0x229   : > { %15358 = vst [vmem:[#allocation118_spill] sm:$0xff] %v9990_v32  ;;  %15360 = vst [vmem:[#allocation119_spill] sm:$0xff] %v10005_v30  ;;  %v10011_v43 = vrot.slane %v15361_v17, %v9960_v37  ;;  %1431 = vbcast.lane.b32.xlu1 %v1424_v10, 265  ;;  %v10023_v12 = vrot.slane %v2247_v26, %v9960_v37  ;;  %v10041_v15 = vsel %vm15123_vm0, %v9561_v39, %v1072_v38  ;;  %v15375_v30 = vld [vmem:[#allocation16_spill] sm:$0xff] }
 0x22a   : > { %v10017_v35 = vrot.slane %v15362_v57, %v9960_v37  ;;  %15363 = vst [vmem:[#allocation120_spill] sm:$0xff] %v10020_v46  ;;  %1427 = vbcast.lane.b32.xlu0 %v1424_v10, 257  ;;  %15365 = vst [vmem:[#allocation122_spill] sm:$0xff] %v10041_v15  ;;  %v1750_v17 = vsel %vm15123_vm0, %v9563_v40, %v1068_v22  ;;  %v1460_v10 = vrot.slane %v9974_v18, %v9448_v62 }
 0x22b   : > { %15364 = vst [vmem:[#allocation121_spill] sm:$0xff] %v10023_v12  ;;  %v1096_v19 = vpop.permute.xlu1 %1095  ;;  %v1092_v7 = vpop.permute.xlu0 %1091  ;;  %v1484_v13 = vrot.slane %v9974_v18, %v9456_v2 }
 0x22c   : > { %v10047_v57 = vsel %vm15123_vm0, %v9573_v3, %v1096_v19  ;;  %v1754_v23 = vsel %vm15123_vm0, %v9575_v9, %v1092_v7  ;;  %v10063_v9 = vsel %vm15123_vm0, %v9566_v48, %v1084_v59  ;;  %v1752_v7 = vsel %vm15123_vm0, %v9568_v51, %v1080_v28 }
 0x22d   : > { %15366 = vst [vmem:[#allocation123_spill] sm:$0xff] %v10047_v57  ;;  %v2271_v26 = vcombine.high %v10041_v15, %v10047_v57  ;;  %v1999_v49 = vcombine.high %v1750_v17, %v1754_v23  ;;  %1443 = vbcast.lane.b32.xlu1 %v1436_v60, 265  ;;  %15367 = vst [vmem:[#allocation124_spill] sm:$0xff] %v10063_v9  ;;  %v1998_v39 = vcombine.low %v1750_v17, %v1754_v23 }
 0x22e   : > { %1439 = vbcast.lane.b32.xlu0 %v1436_v60, 257  ;;  %v1448_v60 = vrot.slane %v9974_v18, %v9444_v58 }
 0x22f   : > { %v1108_v22 = vpop.permute.xlu1 %1107  ;;  %v1104_v19 = vpop.permute.xlu0 %1103  ;;  %v10080_v51 = vrot.slane %v2271_v26, %v9877_v1 }
 0x230   : > { %v10071_v38 = vsel %vm15123_vm0, %v9579_v20, %v1108_v22  ;;  %v1756_v3 = vsel %vm15123_vm0, %v9581_v52, %v1104_v19  ;;  %v10093_v22 = vrot.slane %v1999_v49, %v9877_v1  ;;  %v1472_v49 = vrot.slane %v9974_v18, %v9452_v0 }
 0x231   : > { %15368 = vst [vmem:[#allocation125_spill] sm:$0xff] %v10071_v38  ;;  %v2287_v48 = vcombine.high %v10063_v9, %v10071_v38  ;;  %v2014_v59 = vcombine.low %v1752_v7, %v1756_v3  ;;  %v2015_v40 = vcombine.high %v1752_v7, %v1756_v3  ;;  %1455 = vbcast.lane.b32.xlu1 %v1448_v60, 265  ;;  %v15399_v38 = vld [vmem:[#allocation23_spill] sm:$0xff] }
 0x232   : > { %1451 = vbcast.lane.b32.xlu0 %v1448_v60, 257  ;;  %v2006_v3 = vrot.slane %v1998_v39, %v9877_v1 }
 0x233   : > { %v10083_v28 = vrot.slane %v2287_v48, %v9877_v1  ;;  %v10086_v20 = vrot.slane %v2014_v59, %v9877_v1  ;;  %v10089_v52 = vrot.slane %v2015_v40, %v9877_v1  ;;  %v1120_v23 = vpop.permute.xlu1 %1119  ;;  %v1116_v17 = vpop.permute.xlu0 %1115 }
 0x234   : > { %v10110_v33 = vsel %vm15123_vm0, %v9583_v25, %v1120_v23  ;;  %v1758_v7 = vsel %vm15123_vm0, %v9585_v53, %v1116_v17  ;;  %v1496_v53 = vrot.slane %v9974_v18, %v9460_v4 }
 0x235   : > { %v2350_v26 = vcombine.low %v10080_v51, %v10083_v28  ;;  %1467 = vbcast.lane.b32.xlu1 %v1460_v10, 265  ;;  %v2063_v60 = vcombine.high %v2006_v3, %v10086_v20  ;;  %15369 = vst [vmem:[#allocation126_spill] sm:$0xff] %v10110_v33  ;;  %v2062_v34 = vcombine.low %v2006_v3, %v10086_v20  ;;  %v15377_v20 = vld [vmem:[#allocation13_spill] sm:$0xff] }
 0x236   : > { %1463 = vbcast.lane.b32.xlu0 %v1460_v10, 257 }
 0x237   : > { %v1132_v39 = vpop.permute.xlu1 %1131  ;;  %v1128_v48 = vpop.permute.xlu0 %1127  ;;  %v10154_v9 = vrot.slane %v2350_v26, %v9960_v37 }
 0x238   : > { %v10124_v25 = vsel %vm15123_vm0, %v9588_v29, %v1132_v39 }
 0x239   : > { %1479 = vbcast.lane.b32.xlu1 %v1472_v49, 265  ;;  %15371 = vst [vmem:[#allocation128_spill] sm:$0xff] %v10124_v25 }
 0x23a   : > { %1475 = vbcast.lane.b32.xlu0 %v1472_v49, 257 }
 0x23b   : > { %v1144_v59 = vpop.permute.xlu1 %1143  ;;  %v1140_v36 = vpop.permute.xlu0 %1139 }
 0x23c   : > { %v10116_v10 = vsel %vm15123_vm0, %v9593_v41, %v1144_v59  ;;  %v1762_v40 = vsel %vm15123_vm0, %v9595_v56, %v1140_v36  ;;  %v15372_v41 = vld [vmem:[#allocation14_spill] sm:$0xff]  ;;  %v15373_v56 = vld [vmem:[#allocation15_spill] sm:$0xff] }
 0x23d   : > { %15370 = vst [vmem:[#allocation127_spill] sm:$0xff] %v10116_v10  ;;  %v2303_v49 = vcombine.high %v10110_v33, %v10116_v10  ;;  %v2031_v19 = vcombine.high %v1758_v7, %v1762_v40  ;;  %1491 = vbcast.lane.b32.xlu1 %v1484_v13, 265  ;;  %v1760_v17 = vsel %vm15123_vm0, %v15372_v41, %v1128_v48  ;;  %15378 = vst [vmem:[#allocation15_spill] sm:$0xff] %v10154_v9 }
 0x23e   : > { %1487 = vbcast.lane.b32.xlu0 %v1484_v13, 257  ;;  %v2030_v59 = vcombine.low %v1758_v7, %v1762_v40  ;;  %v1508_v48 = vrot.slane %v9974_v18, %v9464_v6 }
 0x23f   : > { %v1156_v23 = vpop.permute.xlu1 %1155  ;;  %v1152_v12 = vpop.permute.xlu0 %1151  ;;  %v2317_v40 = vrot.slane %v2303_v49, %v9877_v1  ;;  %v1520_v49 = vrot.slane %v9974_v18, %v9468_v8 }
 0x240   : > { %v10132_v36 = vsel %vm15123_vm0, %v15373_v56, %v1156_v23  ;;  %v1764_v13 = vsel %vm15123_vm0, %v15375_v30, %v1152_v12  ;;  %v2038_v56 = vrot.slane %v2030_v59, %v9877_v1  ;;  %v10160_v59 = vrot.slane %v2063_v60, %v9960_v37 }
 0x241   : > { %15374 = vst [vmem:[#allocation14_spill] sm:$0xff] %v10132_v36  ;;  %v2319_v29 = vcombine.high %v10124_v25, %v10132_v36  ;;  %v2046_v39 = vcombine.low %v1760_v17, %v1764_v13  ;;  %v2047_v46 = vcombine.high %v1760_v17, %v1764_v13  ;;  %1503 = vbcast.lane.b32.xlu1 %v1496_v53, 265  ;;  %v15376_v13 = vld [vmem:[#allocation2_spill] sm:$0xff]  ;;  %v15404_v25 = vld [vmem:[#allocation28_spill] sm:$0xff] }
 0x242   : > { %1499 = vbcast.lane.b32.xlu0 %v1496_v53, 257  ;;  %v2045_v17 = vrot.slane %v2031_v19, %v9877_v1  ;;  %v10149_v3 = vadd.f32 %v15377_v20, %v15376_v13  ;;  %v10157_v19 = vrot.slane %v2062_v34, %v9960_v37  ;;  %v15382_v60 = vcombine.high %v10080_v51, %v10083_v28 }
 0x243   : > { %v2333_v7 = vrot.slane %v2319_v29, %v9877_v1  ;;  %v2054_v23 = vrot.slane %v2046_v39, %v9877_v1  ;;  %v2061_v30 = vrot.slane %v2047_v46, %v9877_v1  ;;  %v1168_v12 = vpop.permute.xlu1 %1167  ;;  %v1164_v41 = vpop.permute.xlu0 %1163 }
 0x244   : > { %15379 = vst [vmem:[#allocation16_spill] sm:$0xff] %v10157_v19 }
 0x245   : > { %v2382_v53 = vcombine.low %v2317_v40, %v2333_v7  ;;  %v2383_v15 = vcombine.high %v2317_v40, %v2333_v7  ;;  %1515 = vbcast.lane.b32.xlu1 %v1508_v48, 265  ;;  %v2094_v29 = vcombine.low %v2038_v56, %v2054_v23  ;;  %v2095_v39 = vcombine.high %v2038_v56, %v2054_v23 }
 0x246   : > { %v2110_v57 = vcombine.low %v2045_v17, %v2061_v30  ;;  %v2111_v46 = vcombine.high %v2045_v17, %v2061_v30  ;;  %1511 = vbcast.lane.b32.xlu0 %v1508_v48, 257  ;;  %v1532_v7 = vrot.slane %v9974_v18, %v9472_v11  ;;  %v10180_v48 = vrot.slane %v15382_v60, %v9960_v37  ;;  %v15389_v60 = vld [vmem:[#allocation17_spill] sm:$0xff] }
 0x247   : > { %v1180_v13 = vpop.permute.xlu1 %1179  ;;  %v1176_v40 = vpop.permute.xlu0 %1175  ;;  %v10165_v20 = vrot.slane %v2094_v29, %v9960_v37  ;;  %v10168_v23 = vrot.slane %v2095_v39, %v9960_v37  ;;  %v15384_v18 = vcombine.low %v10093_v22, %v10089_v52  ;;  %v10195_v17 = vrot.slane %v2382_v53, %v9960_v37 }
 0x248   : > { %v10171_v26 = vrot.slane %v2110_v57, %v9960_v37  ;;  %v10174_v34 = vrot.slane %v2111_v46, %v9960_v37  ;;  %15383 = vst [vmem:[#allocation129_spill] sm:$0xff] %v10180_v48  ;;  %v15385_v57 = vcombine.high %v10093_v22, %v10089_v52  ;;  %v10198_v51 = vrot.slane %v2383_v15, %v9960_v37 }
 0x249   : > { %15380 = vst [vmem:[#allocation2_spill] sm:$0xff] %v10165_v20  ;;  %v10186_v30 = vrot.slane %v15384_v18, %v9960_v37  ;;  %15387 = vst [vmem:[#allocation131_spill] sm:$0xff] %v10195_v17  ;;  %1527 = vbcast.lane.b32.xlu1 %v1520_v49, 265  ;;  %v10216_v18 = vsel %vm15123_vm0, %v15389_v60, %v1168_v12  ;;  %v15396_v60 = vld [vmem:[#allocation21_spill] sm:$0xff]  ;;  %v1556_v48 = vrot.slane %v10149_v3, %v9448_v62 }
 0x24a   : > { %15381 = vst [vmem:[#allocation13_spill] sm:$0xff] %v10174_v34  ;;  %v10192_v56 = vrot.slane %v15385_v57, %v9960_v37  ;;  %15388 = vst [vmem:[#allocation132_spill] sm:$0xff] %v10198_v51  ;;  %1523 = vbcast.lane.b32.xlu0 %v1520_v49, 257  ;;  %v15391_v57 = vld [vmem:[#allocation18_spill] sm:$0xff]  ;;  %v15395_v49 = vld [vmem:[#allocation20_spill] sm:$0xff] }
 0x24b   : > { %v1192_v52 = vpop.permute.xlu1 %1191  ;;  %v1188_v22 = vpop.permute.xlu0 %1187  ;;  %15390 = vst [vmem:[#allocation17_spill] sm:$0xff] %v10216_v18  ;;  %v1766_v28 = vsel %vm15123_vm0, %v15391_v57, %v1164_v41  ;;  %v1768_v12 = vsel %vm15123_vm0, %v15395_v49, %v1176_v40  ;;  %v15398_v41 = vld [vmem:[#allocation22_spill] sm:$0xff] }
 0x24c   : > { %15386 = vst [vmem:[#allocation130_spill] sm:$0xff] %v10192_v56  ;;  %v10222_v39 = vsel %vm15123_vm0, %v9615_v31, %v1192_v52  ;;  %v1770_v46 = vsel %vm15123_vm0, %v9617_v47, %v1188_v22  ;;  %v15393_v52 = vld [vmem:[#allocation19_spill] sm:$0xff]  ;;  %v15405_v56 = vld [vmem:[#allocation25_spill] sm:$0xff] }
 0x24d   : > { %15392 = vst [vmem:[#allocation18_spill] sm:$0xff] %v10222_v39  ;;  %v2679_v15 = vcombine.high %v10216_v18, %v10222_v39  ;;  %v2407_v53 = vcombine.high %v1766_v28, %v1770_v46  ;;  %1539 = vbcast.lane.b32.xlu1 %v1532_v7, 265  ;;  %v10238_v47 = vsel %vm15123_vm0, %v15393_v52, %v1180_v13  ;;  %v15410_v39 = vld [vmem:[#allocation30_spill] sm:$0xff] }
 0x24e   : > { %1535 = vbcast.lane.b32.xlu0 %v1532_v7, 257  ;;  %15394 = vst [vmem:[#allocation19_spill] sm:$0xff] %v10238_v47  ;;  %v1544_v7 = vrot.slane %v10149_v3, %v9444_v58  ;;  %v2406_v29 = vcombine.low %v1766_v28, %v1770_v46 }
 0x24f   : > { %v1204_v22 = vpop.permute.xlu1 %1203  ;;  %v1200_v57 = vpop.permute.xlu0 %1199  ;;  %v10255_v40 = vrot.slane %v2679_v15, %v9877_v1 }
 0x250   : > { %v10246_v17 = vsel %vm15123_vm0, %v15396_v60, %v1204_v22  ;;  %v1772_v31 = vsel %vm15123_vm0, %v15398_v41, %v1200_v57  ;;  %v1580_v22 = vrot.slane %v10149_v3, %v9456_v2 }
 0x251   : > { %15397 = vst [vmem:[#allocation20_spill] sm:$0xff] %v10246_v17  ;;  %v2695_v13 = vcombine.high %v10238_v47, %v10246_v17  ;;  %v2422_v52 = vcombine.low %v1768_v12, %v1772_v31  ;;  %v2423_v51 = vcombine.high %v1768_v12, %v1772_v31  ;;  %1551 = vbcast.lane.b32.xlu1 %v1544_v7, 265 }
 0x252   : > { %1547 = vbcast.lane.b32.xlu0 %v1544_v7, 257  ;;  %v2414_v12 = vrot.slane %v2406_v29, %v9877_v1  ;;  %v10268_v31 = vrot.slane %v2407_v53, %v9877_v1  ;;  %v1568_v53 = vrot.slane %v10149_v3, %v9452_v0 }
 0x253   : > { %v10258_v28 = vrot.slane %v2695_v13, %v9877_v1  ;;  %v10261_v46 = vrot.slane %v2422_v52, %v9877_v1  ;;  %v10264_v49 = vrot.slane %v2423_v51, %v9877_v1  ;;  %v1216_v60 = vpop.permute.xlu1 %1215  ;;  %v1212_v41 = vpop.permute.xlu0 %1211  ;;  %v15401_v51 = vld [vmem:[#allocation24_spill] sm:$0xff] }
 0x254   : > { %v10285_v33 = vsel %vm15123_vm0, %v15399_v38, %v1216_v60  ;;  %v1774_v7 = vsel %vm15123_vm0, %v15401_v51, %v1212_v41  ;;  %v1592_v41 = vrot.slane %v10149_v3, %v9460_v4  ;;  %v15407_v51 = vld [vmem:[#allocation26_spill] sm:$0xff] }
 0x255   : > { %v2758_v15 = vcombine.low %v10255_v40, %v10258_v28  ;;  %1563 = vbcast.lane.b32.xlu1 %v1556_v48, 265  ;;  %v2471_v57 = vcombine.high %v2414_v12, %v10261_v46  ;;  %15400 = vst [vmem:[#allocation21_spill] sm:$0xff] %v10285_v33 }
 0x256   : > { %1559 = vbcast.lane.b32.xlu0 %v1556_v48, 257  ;;  %v15402_v48 = vld [vmem:[#allocation27_spill] sm:$0xff] }
 0x257   : > { %v1228_v29 = vpop.permute.xlu1 %1227  ;;  %v1224_v13 = vpop.permute.xlu0 %1223 }
 0x258   : > { %v10299_v38 = vsel %vm15123_vm0, %v15405_v56, %v1228_v29 }
 0x259   : > { %1575 = vbcast.lane.b32.xlu1 %v1568_v53, 265  ;;  %15406 = vst [vmem:[#allocation23_spill] sm:$0xff] %v10299_v38 }
 0x25a   : > { %1571 = vbcast.lane.b32.xlu0 %v1568_v53, 257 }
 0x25b   : > { %v1240_v52 = vpop.permute.xlu1 %1239  ;;  %v1236_v9 = vpop.permute.xlu0 %1235 }
 0x25c   : > { %v10291_v10 = vsel %vm15123_vm0, %v15402_v48, %v1240_v52  ;;  %v1778_v36 = vsel %vm15123_vm0, %v15404_v25, %v1236_v9  ;;  %v1776_v52 = vsel %vm15123_vm0, %v15407_v51, %v1224_v13  ;;  %v15408_v9 = vld [vmem:[#allocation29_spill] sm:$0xff]  ;;  %v1604_v13 = vrot.slane %v10149_v3, %v9464_v6 }
 0x25d   : > { %15403 = vst [vmem:[#allocation22_spill] sm:$0xff] %v10291_v10  ;;  %v2711_v53 = vcombine.high %v10285_v33, %v10291_v10  ;;  %v2439_v34 = vcombine.high %v1774_v7, %v1778_v36  ;;  %1587 = vbcast.lane.b32.xlu1 %v1580_v22, 265  ;;  %v2438_v48 = vcombine.low %v1774_v7, %v1778_v36 }
 0x25e   : > { %1583 = vbcast.lane.b32.xlu0 %v1580_v22, 257  ;;  %v2470_v10 = vcombine.low %v2414_v12, %v10261_v46  ;;  %v15412_v46 = vld [vmem:[#allocation12_spill] sm:$0xff] }
 0x25f   : > { %v1252_v60 = vpop.permute.xlu1 %1251  ;;  %v1248_v18 = vpop.permute.xlu0 %1247  ;;  %v2725_v36 = vrot.slane %v2711_v53, %v9877_v1  ;;  %v1616_v53 = vrot.slane %v10149_v3, %v9468_v8 }
 0x260   : > { %v10307_v25 = vsel %vm15123_vm0, %v15408_v9, %v1252_v60  ;;  %v1780_v22 = vsel %vm15123_vm0, %v15410_v39, %v1248_v18  ;;  %v2446_v9 = vrot.slane %v2438_v48, %v9877_v1  ;;  %v10335_v48 = vrot.slane %v2471_v57, %v9960_v37 }
 0x261   : > { %15409 = vst [vmem:[#allocation24_spill] sm:$0xff] %v10307_v25  ;;  %v2727_v56 = vcombine.high %v10299_v38, %v10307_v25  ;;  %v2454_v29 = vcombine.low %v1776_v52, %v1780_v22  ;;  %v2455_v33 = vcombine.high %v1776_v52, %v1780_v22  ;;  %1599 = vbcast.lane.b32.xlu1 %v1592_v41, 265  ;;  %v15411_v22 = vld [vmem:[#allocation3_spill] sm:$0xff] }
 0x262   : > { %1595 = vbcast.lane.b32.xlu0 %v1592_v41, 257  ;;  %v2453_v52 = vrot.slane %v2439_v34, %v9877_v1  ;;  %v10324_v12 = vadd.f32 %v15412_v46, %v15411_v22  ;;  %v10329_v38 = vrot.slane %v2758_v15, %v9960_v37  ;;  %v10332_v34 = vrot.slane %v2470_v10, %v9960_v37 }
 0x263   : > { %v2741_v7 = vrot.slane %v2727_v56, %v9877_v1  ;;  %v2462_v60 = vrot.slane %v2454_v29, %v9877_v1  ;;  %v2469_v39 = vrot.slane %v2455_v33, %v9877_v1  ;;  %v1264_v18 = vpop.permute.xlu1 %1263  ;;  %v1260_v51 = vpop.permute.xlu0 %1259  ;;  %v15416_v57 = vcombine.high %v10255_v40, %v10258_v28 }
 0x264   : > { %15413 = vst [vmem:[#allocation27_spill] sm:$0xff] %v10329_v38  ;;  %15414 = vst [vmem:[#allocation28_spill] sm:$0xff] %v10332_v34  ;;  %v15434_v38 = vld [vmem:[#allocation38_spill] sm:$0xff] }
 0x265   : > { %v2790_v41 = vcombine.low %v2725_v36, %v2741_v7  ;;  %v2791_v47 = vcombine.high %v2725_v36, %v2741_v7  ;;  %1611 = vbcast.lane.b32.xlu1 %v1604_v13, 265  ;;  %v2502_v56 = vcombine.low %v2446_v9, %v2462_v60  ;;  %v2503_v29 = vcombine.high %v2446_v9, %v2462_v60 }
 0x266   : > { %v2518_v17 = vcombine.low %v2453_v52, %v2469_v39  ;;  %v2519_v33 = vcombine.high %v2453_v52, %v2469_v39  ;;  %1607 = vbcast.lane.b32.xlu0 %v1604_v13, 257  ;;  %v1628_v7 = vrot.slane %v10149_v3, %v9472_v11  ;;  %v10355_v13 = vrot.slane %v15416_v57, %v9960_v37  ;;  %v15422_v57 = vld [vmem:[#allocation31_spill] sm:$0xff] }
 0x267   : > { %v1276_v22 = vpop.permute.xlu1 %1275  ;;  %v1272_v36 = vpop.permute.xlu0 %1271  ;;  %v10340_v46 = vrot.slane %v2502_v56, %v9960_v37  ;;  %v10343_v60 = vrot.slane %v2503_v29, %v9960_v37  ;;  %v15418_v3 = vcombine.low %v10268_v31, %v10264_v49  ;;  %v10370_v52 = vrot.slane %v2790_v41, %v9960_v37 }
 0x268   : > { %v10346_v15 = vrot.slane %v2518_v17, %v9960_v37  ;;  %v10349_v10 = vrot.slane %v2519_v33, %v9960_v37  ;;  %15417 = vst [vmem:[#allocation26_spill] sm:$0xff] %v10355_v13  ;;  %v15419_v17 = vcombine.high %v10268_v31, %v10264_v49  ;;  %v10373_v40 = vrot.slane %v2791_v47, %v9960_v37 }
 0x269   : > { %15415 = vst [vmem:[#allocation25_spill] sm:$0xff] %v10340_v46  ;;  %v10361_v39 = vrot.slane %v15418_v3, %v9960_v37  ;;  %15420 = vst [vmem:[#allocation29_spill] sm:$0xff] %v10370_v52  ;;  %1623 = vbcast.lane.b32.xlu1 %v1616_v53, 265  ;;  %v10391_v3 = vsel %vm15123_vm0, %v15422_v57, %v1264_v18  ;;  %v15429_v57 = vld [vmem:[#allocation35_spill] sm:$0xff] }
 0x26a   : > { %v10367_v9 = vrot.slane %v15419_v17, %v9960_v37  ;;  %15421 = vst [vmem:[#allocation30_spill] sm:$0xff] %v10373_v40  ;;  %1619 = vbcast.lane.b32.xlu0 %v1616_v53, 257  ;;  %15423 = vst [vmem:[#allocation3_spill] sm:$0xff] %v10391_v3  ;;  %v15424_v17 = vld [vmem:[#allocation32_spill] sm:$0xff]  ;;  %v15428_v53 = vld [vmem:[#allocation34_spill] sm:$0xff] }
 0x26b   : > { %v1288_v49 = vpop.permute.xlu1 %1287  ;;  %v1284_v31 = vpop.permute.xlu0 %1283  ;;  %v1782_v29 = vsel %vm15123_vm0, %v15424_v17, %v1260_v51  ;;  %v1784_v18 = vsel %vm15123_vm0, %v15428_v53, %v1272_v36  ;;  %v15431_v51 = vld [vmem:[#allocation36_spill] sm:$0xff] }
 0x26c   : > { %v10397_v56 = vsel %vm15123_vm0, %v9657_v54, %v1288_v49  ;;  %v1786_v33 = vsel %vm15123_vm0, %v9659_v61, %v1284_v31  ;;  %v15426_v49 = vld [vmem:[#allocation33_spill] sm:$0xff] }
 0x26d   : > { %15425 = vst [vmem:[#allocation12_spill] sm:$0xff] %v10397_v56  ;;  %v2815_v47 = vcombine.high %v10391_v3, %v10397_v56  ;;  %v2543_v41 = vcombine.high %v1782_v29, %v1786_v33  ;;  %1635 = vbcast.lane.b32.xlu1 %v1628_v7, 265  ;;  %v10413_v61 = vsel %vm15123_vm0, %v15426_v49, %v1276_v22  ;;  %v15437_v3 = vld [vmem:[#allocation42_spill] sm:$0xff] }
 0x26e   : > { %1631 = vbcast.lane.b32.xlu0 %v1628_v7, 257  ;;  %15427 = vst [vmem:[#allocation31_spill] sm:$0xff] %v10413_v61  ;;  %v1640_v7 = vrot.slane %v10324_v12, %v9444_v58  ;;  %v2542_v28 = vcombine.low %v1782_v29, %v1786_v33  ;;  %v1652_v58 = vrot.slane %v10324_v12, %v9448_v62  ;;  %v15432_v62 = vld [vmem:[#allocation37_spill] sm:$0xff] }
 0x26f   : > { %v1300_v31 = vpop.permute.xlu1 %1299  ;;  %v1296_v17 = vpop.permute.xlu0 %1295  ;;  %v10430_v36 = vrot.slane %v2815_v47, %v9877_v1  ;;  %v1676_v47 = vrot.slane %v10324_v12, %v9456_v2 }
 0x270   : > { %v10421_v52 = vsel %vm15123_vm0, %v15429_v57, %v1300_v31  ;;  %v1788_v54 = vsel %vm15123_vm0, %v15431_v51, %v1296_v17 }
 0x271   : > { %15430 = vst [vmem:[#allocation32_spill] sm:$0xff] %v10421_v52  ;;  %v2831_v22 = vcombine.high %v10413_v61, %v10421_v52  ;;  %v2558_v49 = vcombine.low %v1784_v18, %v1788_v54  ;;  %v2559_v40 = vcombine.high %v1784_v18, %v1788_v54  ;;  %1647 = vbcast.lane.b32.xlu1 %v1640_v7, 265 }
 0x272   : > { %1643 = vbcast.lane.b32.xlu0 %v1640_v7, 257  ;;  %v2550_v18 = vrot.slane %v2542_v28, %v9877_v1  ;;  %v10441_v54 = vrot.slane %v2543_v41, %v9877_v1  ;;  %v1664_v41 = vrot.slane %v10324_v12, %v9452_v0 }
 0x273   : > { %v10433_v29 = vrot.slane %v2831_v22, %v9877_v1  ;;  %v2566_v33 = vrot.slane %v2558_v49, %v9877_v1  ;;  %v10437_v53 = vrot.slane %v2559_v40, %v9877_v1  ;;  %v1312_v57 = vpop.permute.xlu1 %1311  ;;  %v1308_v51 = vpop.permute.xlu0 %1307 }
 0x274   : > { %v10457_v13 = vsel %vm15123_vm0, %v15432_v62, %v1312_v57  ;;  %v1688_v62 = vrot.slane %v10324_v12, %v9460_v4  ;;  %v15438_v57 = vld [vmem:[#allocation39_spill] sm:$0xff] }
 0x275   : > { %1659 = vbcast.lane.b32.xlu1 %v1652_v58, 265  ;;  %v2607_v17 = vcombine.high %v2550_v18, %v2566_v33  ;;  %v2622_v7 = vcombine.low %v10441_v54, %v10437_v53  ;;  %v2623_v40 = vcombine.high %v10441_v54, %v10437_v53  ;;  %15433 = vst [vmem:[#allocation33_spill] sm:$0xff] %v10457_v13 }
 0x276   : > { %1655 = vbcast.lane.b32.xlu0 %v1652_v58, 257  ;;  %v1790_v53 = vsel %vm15123_vm0, %v15434_v38, %v1308_v51  ;;  %v15435_v58 = vld [vmem:[#allocation41_spill] sm:$0xff] }
 0x277   : > { %v1324_v22 = vpop.permute.xlu1 %1323  ;;  %v1320_v28 = vpop.permute.xlu0 %1319 }
 0x278   : > { %v10473_v38 = vsel %vm15123_vm0, %v15438_v57, %v1324_v22  ;;  %v2606_v22 = vcombine.low %v2550_v18, %v2566_v33  ;;  %v1700_v57 = vrot.slane %v10324_v12, %v9464_v6  ;;  %v15462_v6 = vld [vmem:[#allocation48_spill] sm:$0xff] }
 0x279   : > { %1671 = vbcast.lane.b32.xlu1 %v1664_v41, 265  ;;  %15439 = vst [vmem:[#allocation35_spill] sm:$0xff] %v10473_v38 }
 0x27a   : > { %1667 = vbcast.lane.b32.xlu0 %v1664_v41, 257 }
 0x27b   : > { %v1336_v49 = vpop.permute.xlu1 %1335  ;;  %v1332_v31 = vpop.permute.xlu0 %1331 }
 0x27c   : > { %v10463_v54 = vsel %vm15123_vm0, %v15435_v58, %v1336_v49  ;;  %v1794_v0 = vsel %vm15123_vm0, %v15437_v3, %v1332_v31  ;;  %v15440_v49 = vld [vmem:[#allocation43_spill] sm:$0xff]  ;;  %v15442_v31 = vld [vmem:[#allocation40_spill] sm:$0xff] }
 0x27d   : > { %15436 = vst [vmem:[#allocation34_spill] sm:$0xff] %v10463_v54  ;;  %v2847_v41 = vcombine.high %v10457_v13, %v10463_v54  ;;  %v2575_v56 = vcombine.high %v1790_v53, %v1794_v0  ;;  %1683 = vbcast.lane.b32.xlu1 %v1676_v47, 265  ;;  %v2574_v51 = vcombine.low %v1790_v53, %v1794_v0  ;;  %v15443_v54 = vld [vmem:[#allocation44_spill] sm:$0xff] }
 0x27e   : > { %1679 = vbcast.lane.b32.xlu0 %v1676_v47, 257  ;;  %v1792_v13 = vsel %vm15123_vm0, %v15442_v31, %v1320_v28 }
 0x27f   : > { %v1348_v2 = vpop.permute.xlu1 %1347  ;;  %v1344_v3 = vpop.permute.xlu0 %1343  ;;  %v2861_v0 = vrot.slane %v2847_v41, %v9877_v1  ;;  %v2582_v28 = vrot.slane %v2574_v51, %v9877_v1  ;;  %v10497_v51 = vrot.slane %v2607_v17, %v9960_v37  ;;  %v10514_v17 = vrot.slane %v2622_v7, %v9960_v37  ;;  %v15457_v7 = vld [vmem:[#allocation46_spill] sm:$0xff] }
 0x280   : > { %v10477_v58 = vsel %vm15123_vm0, %v15440_v49, %v1348_v2  ;;  %v1796_v61 = vsel %vm15123_vm0, %v15443_v54, %v1344_v3  ;;  %v2589_v49 = vrot.slane %v2575_v56, %v9877_v1 }
 0x281   : > { %15441 = vst [vmem:[#allocation36_spill] sm:$0xff] %v10477_v58  ;;  %v2863_v47 = vcombine.high %v10473_v38, %v10477_v58  ;;  %1695 = vbcast.lane.b32.xlu1 %v1688_v62, 265  ;;  %v2590_v4 = vcombine.low %v1792_v13, %v1796_v61  ;;  %v2591_v52 = vcombine.high %v1792_v13, %v1796_v61  ;;  %v15475_v38 = vld [vmem:[#allocation58_spill] sm:$0xff] }
 0x282   : > { %1691 = vbcast.lane.b32.xlu0 %v1688_v62, 257 }
 0x283   : > { %v2877_v2 = vrot.slane %v2863_v47, %v9877_v1  ;;  %v1360_v53 = vpop.permute.xlu1 %1359  ;;  %v2598_v31 = vrot.slane %v2590_v4, %v9877_v1  ;;  %v2605_v54 = vrot.slane %v2591_v52, %v9877_v1  ;;  %v10494_v47 = vrot.slane %v2606_v22, %v9960_v37 }
 0x284   : > { %v1356_v3 = vpop.permute.xlu0 %1355  ;;  %v1712_v4 = vrot.slane %v10324_v12, %v9468_v8  ;;  %v1991_v8 = vcombine.high %v9982_v5, %v9990_v32 }
 0x285   : > { %v2926_v13 = vcombine.low %v2861_v0, %v2877_v2  ;;  %v2927_v61 = vcombine.high %v2861_v0, %v2877_v2  ;;  %1707 = vbcast.lane.b32.xlu1 %v1700_v57, 265  ;;  %v2638_v33 = vcombine.low %v2582_v28, %v2598_v31  ;;  %v2639_v18 = vcombine.high %v2582_v28, %v2598_v31 }
 0x286   : > { %v2654_v41 = vcombine.low %v2589_v49, %v2605_v54  ;;  %v2655_v62 = vcombine.high %v2589_v49, %v2605_v54  ;;  %1703 = vbcast.lane.b32.xlu0 %v1700_v57, 257  ;;  %15444 = vst [vmem:[#allocation37_spill] sm:$0xff] %v10494_v47  ;;  %v10517_v28 = vrot.slane %v2623_v40, %v9960_v37 }
 0x287   : > { %v1372_v56 = vpop.permute.xlu1 %1371  ;;  %v10502_v52 = vrot.slane %v2638_v33, %v9960_v37  ;;  %v10505_v0 = vrot.slane %v2639_v18, %v9960_v37  ;;  %v10520_v49 = vrot.slane %v2926_v13, %v9960_v37  ;;  %v1724_v31 = vrot.slane %v10324_v12, %v9472_v11  ;;  %v15452_v33 = vld [vmem:[#allocation45_spill] sm:$0xff] }
 0x288   : > { %v10508_v2 = vrot.slane %v2654_v41, %v9960_v37  ;;  %v10511_v57 = vrot.slane %v2655_v62, %v9960_v37  ;;  %v1368_v22 = vpop.permute.xlu0 %1367  ;;  %15447 = vst [vmem:[#allocation42_spill] sm:$0xff] %v10517_v28  ;;  %v10525_v54 = vrot.slane %v2927_v61, %v9960_v37  ;;  %v15450_v62 = vcombine.low %v10430_v36, %v10433_v29 }
 0x289   : > { %15445 = vst [vmem:[#allocation38_spill] sm:$0xff] %v10502_v52  ;;  %15448 = vst [vmem:[#allocation39_spill] sm:$0xff] %v10520_v49  ;;  %1719 = vbcast.lane.b32.xlu1 %v1712_v4, 265  ;;  %v10549_v40 = vsel %vm15123_vm0, %v15452_v33, %v1360_v53  ;;  %v15455_v61 = vcombine.high %v10430_v36, %v10433_v29  ;;  %v1798_v11 = vsel %vm15123_vm0, %v15457_v7, %v1356_v3  ;;  %v15463_v7 = vld [vmem:[#allocation50_spill] sm:$0xff]  ;;  %v15472_v49 = vld [vmem:[#allocation57_spill] sm:$0xff] }
 0x28a   : > { %15446 = vst [vmem:[#allocation41_spill] sm:$0xff] %v10511_v57  ;;  %15449 = vst [vmem:[#allocation43_spill] sm:$0xff] %v10525_v54  ;;  %1715 = vbcast.lane.b32.xlu0 %v1712_v4, 257  ;;  %v10545_v4 = vrot.slane %v15450_v62, %v9960_v37 }
 0x28b   : > { %v1384_v18 = vpop.permute.xlu1 %1383  ;;  %15453 = vst [vmem:[#allocation44_spill] sm:$0xff] %v10549_v40  ;;  %v10559_v41 = vrot.slane %v15455_v61, %v9960_v37  ;;  %v15460_v61 = vld [vmem:[#allocation49_spill] sm:$0xff] }
 0x28c   : > { %15451 = vst [vmem:[#allocation40_spill] sm:$0xff] %v10545_v4  ;;  %v10553_v13 = vsel %vm15123_vm0, %v9699_v55, %v1384_v18  ;;  %v1380_v12 = vpop.permute.xlu0 %1379  ;;  %v2127_v18 = vcombine.high %v10157_v19, %v10165_v20  ;;  %v1800_v20 = vsel %vm15123_vm0, %v15462_v6, %v1368_v22  ;;  %v2535_v22 = vcombine.high %v10332_v34, %v10340_v46  ;;  %v15466_v46 = vld [vmem:[#allocation55_spill] sm:$0xff]  ;;  %v15474_v4 = vld [vmem:[#allocation54_spill] sm:$0xff] }
 0x28d   : > { %15454 = vst [vmem:[#allocation45_spill] sm:$0xff] %v10553_v13  ;;  %15456 = vst [vmem:[#allocation133_spill] sm:$0xff] %v10559_v41  ;;  %v3223_v62 = vcombine.high %v10549_v40, %v10553_v13  ;;  %v1802_v53 = vsel %vm15123_vm0, %v9701_v63, %v1380_v12  ;;  %1731 = vbcast.lane.b32.xlu1 %v1724_v31, 265  ;;  %v15458_v63 = vld [vmem:[#allocation47_spill] sm:$0xff]  ;;  %v15470_v41 = vld [vmem:[#allocation53_spill] sm:$0xff] }
 0x28e   : > { %v2951_v33 = vcombine.high %v1798_v11, %v1802_v53  ;;  %1727 = vbcast.lane.b32.xlu0 %v1724_v31, 257  ;;  %v10579_v12 = vsel %vm15123_vm0, %v15458_v63, %v1372_v56  ;;  %v2950_v31 = vcombine.low %v1798_v11, %v1802_v53  ;;  %v15500_v13 = vld [vmem:[#allocation68_spill] sm:$0xff] }
 0x28f   : > { %v1396_v29 = vpop.permute.xlu1 %1395  ;;  %15459 = vst [vmem:[#allocation46_spill] sm:$0xff] %v10579_v12  ;;  %v10596_v53 = vrot.slane %v3223_v62, %v9877_v1 }
 0x290   : > { %v10583_v55 = vsel %vm15123_vm0, %v15460_v61, %v1396_v29  ;;  %v1392_v36 = vpop.permute.xlu0 %1391 }
 0x291   : > { %15461 = vst [vmem:[#allocation47_spill] sm:$0xff] %v10583_v55  ;;  %v3239_v3 = vcombine.high %v10579_v12, %v10583_v55  ;;  %v1804_v19 = vsel %vm15123_vm0, %v15463_v7, %v1392_v36  ;;  %4048 = vrot.lane.b32.xlu1 %v2127_v18, %s9325_s14  ;;  %v2671_v36 = vcombine.high %v10494_v47, %v10502_v52 }
 0x292   : > { %v2966_v11 = vcombine.low %v1800_v20, %v1804_v19  ;;  %v2967_v56 = vcombine.high %v1800_v20, %v1804_v19  ;;  %4046 = vrot.lane.b32.xlu0 %v1991_v8, %s9325_s14  ;;  %v2958_v7 = vrot.slane %v2950_v31, %v9877_v1  ;;  %v2965_v18 = vrot.slane %v2951_v33, %v9877_v1 }
 0x293   : > { %v10599_v29 = vrot.slane %v3239_v3, %v9877_v1  ;;  %v1408_v6 = vpop.permute.xlu1 %1407  ;;  %v15468_v3 = vld [vmem:[#allocation52_spill] sm:$0xff] }
 0x294   : > { %v2974_v19 = vrot.slane %v2966_v11, %v9877_v1  ;;  %v2981_v8 = vrot.slane %v2967_v56, %v9877_v1  ;;  %v1404_v20 = vpop.permute.xlu0 %1403  ;;  %v15464_v11 = vld [vmem:[#allocation51_spill] sm:$0xff] }
 0x295   : > { %v3302_v62 = vcombine.low %v10596_v53, %v10599_v29  ;;  %4052 = vrot.lane.b32.xlu1 %v2671_v36, %s9325_s14  ;;  %v10617_v56 = vsel %vm15123_vm0, %v15464_v11, %v1408_v6  ;;  %v1806_v36 = vsel %vm15123_vm0, %v15468_v3, %v1404_v20 }
 0x296   : > { %v3015_v63 = vcombine.high %v2958_v7, %v2974_v19  ;;  %v3030_v61 = vcombine.low %v2965_v18, %v2981_v8  ;;  %v3031_v52 = vcombine.high %v2965_v18, %v2981_v8  ;;  %4050 = vrot.lane.b32.xlu0 %v2535_v22, %s9325_s14  ;;  %15465 = vst [vmem:[#allocation49_spill] sm:$0xff] %v10617_v56  ;;  %v15469_v8 = vld [vmem:[#allocation56_spill] sm:$0xff] }
 0x297   : > { %v1420_v31 = vpop.permute.xlu1 %1419  ;;  %v3014_v57 = vcombine.low %v2958_v7, %v2974_v19 }
 0x298   : > { %v1416_v33 = vpop.permute.xlu0 %1415  ;;  %v10631_v6 = vsel %vm15123_vm0, %v15470_v41, %v1420_v31 }
 0x299   : > { %15471 = vst [vmem:[#allocation50_spill] sm:$0xff] %v10631_v6  ;;  %v1808_v20 = vsel %vm15123_vm0, %v15474_v4, %v1416_v33  ;;  %v10650_v19 = vrot.slane %v3014_v57, %v9960_v37 }
 0x29b   : > { %v1432_v47 = vpop.permute.xlu1 %1431  ;;  %15476 = vst [vmem:[#allocation55_spill] sm:$0xff] %v10650_v19 }
 0x29c   : > { %v10621_v34 = vsel %vm15123_vm0, %v15466_v46, %v1432_v47  ;;  %v1428_v32 = vpop.permute.xlu0 %1427 }
 0x29d   : > { %15467 = vst [vmem:[#allocation48_spill] sm:$0xff] %v10621_v34  ;;  %v3255_v18 = vcombine.high %v10617_v56, %v10621_v34  ;;  %v1810_v22 = vsel %vm15123_vm0, %v15469_v8, %v1428_v32  ;;  %v15502_v56 = vld [vmem:[#allocation72_spill] sm:$0xff]  ;;  %v15504_v34 = vld [vmem:[#allocation69_spill] sm:$0xff] }
 0x29e   : > { %v2983_v5 = vcombine.high %v1806_v36, %v1810_v22  ;;  %v2982_v11 = vcombine.low %v1806_v36, %v1810_v22 }
 0x29f   : > { %v1444_v54 = vpop.permute.xlu1 %1443  ;;  %v3269_v41 = vrot.slane %v3255_v18, %v9877_v1  ;;  %v10653_v18 = vrot.slane %v3015_v63, %v9960_v37  ;;  %v10671_v63 = vrot.slane %v3302_v62, %v9960_v37 }
 0x2a0   : > { %v10635_v46 = vsel %vm15123_vm0, %v15472_v49, %v1444_v54  ;;  %v1440_v47 = vpop.permute.xlu0 %1439  ;;  %v2990_v49 = vrot.slane %v2982_v11, %v9877_v1  ;;  %v2997_v54 = vrot.slane %v2983_v5, %v9877_v1  ;;  %v10656_v11 = vrot.slane %v3030_v61, %v9960_v37 }
 0x2a1   : > { %15473 = vst [vmem:[#allocation51_spill] sm:$0xff] %v10635_v46  ;;  %v3271_v3 = vcombine.high %v10631_v6, %v10635_v46  ;;  %v1812_v32 = vsel %vm15123_vm0, %v15475_v38, %v1440_v47  ;;  %15478 = vst [vmem:[#allocation56_spill] sm:$0xff] %v10671_v63  ;;  %v10674_v61 = vrot.slane %v3031_v52, %v9960_v37 }
 0x2a2   : > { %v2998_v8 = vcombine.low %v1808_v20, %v1812_v32  ;;  %v2999_v58 = vcombine.high %v1808_v20, %v1812_v32 }
 0x2a3   : > { %v3285_v31 = vrot.slane %v3271_v3, %v9877_v1  ;;  %v1456_v36 = vpop.permute.xlu1 %1455 }
 0x2a4   : > { %v3006_v4 = vrot.slane %v2998_v8, %v9877_v1  ;;  %v3013_v33 = vrot.slane %v2999_v58, %v9877_v1  ;;  %v1452_v22 = vpop.permute.xlu0 %1451 }
 0x2a5   : > { %v3334_v28 = vcombine.low %v3269_v41, %v3285_v31  ;;  %v3335_v40 = vcombine.high %v3269_v41, %v3285_v31 }
 0x2a6   : > { %v3046_v38 = vcombine.low %v2990_v49, %v3006_v4  ;;  %v3047_v47 = vcombine.high %v2990_v49, %v3006_v4  ;;  %v3062_v20 = vcombine.low %v2997_v54, %v3013_v33  ;;  %v3063_v7 = vcombine.high %v2997_v54, %v3013_v33 }
 0x2a7   : > { %v1468_v5 = vpop.permute.xlu1 %1467  ;;  %v10677_v41 = vrot.slane %v3334_v28, %v9960_v37  ;;  %v10680_v31 = vrot.slane %v3335_v40, %v9960_v37  ;;  %v15486_v40 = vld [vmem:[#allocation60_spill] sm:$0xff] }
 0x2a8   : > { %v10659_v3 = vrot.slane %v3046_v38, %v9960_v37  ;;  %v10662_v58 = vrot.slane %v3047_v47, %v9960_v37  ;;  %v10665_v32 = vrot.slane %v3062_v20, %v9960_v37  ;;  %v10668_v8 = vrot.slane %v3063_v7, %v9960_v37  ;;  %v1464_v57 = vpop.permute.xlu0 %1463  ;;  %v15483_v7 = vld [vmem:[#allocation59_spill] sm:$0xff] }
 0x2a9   : > { %15479 = vst [vmem:[#allocation53_spill] sm:$0xff] %v10677_v41  ;;  %15480 = vst [vmem:[#allocation57_spill] sm:$0xff] %v10680_v31  ;;  %v15481_v47 = vcombine.high %v10596_v53, %v10599_v29  ;;  %v10706_v62 = vsel %vm15123_vm0, %v15483_v7, %v1456_v36  ;;  %v1814_v38 = vsel %vm15123_vm0, %v15486_v40, %v1452_v22  ;;  %v15487_v53 = vld [vmem:[#allocation63_spill] sm:$0xff]  ;;  %v15488_v40 = vld [vmem:[#allocation61_spill] sm:$0xff] }
 0x2aa   : > { %15477 = vst [vmem:[#allocation52_spill] sm:$0xff] %v10659_v3  ;;  %v3079_v49 = vcombine.high %v10650_v19, %v10659_v3  ;;  %15484 = vst [vmem:[#allocation58_spill] sm:$0xff] %v10706_v62  ;;  %v10729_v7 = vsel %vm15123_vm0, %v15488_v40, %v1468_v5  ;;  %v15492_v3 = vld [vmem:[#allocation62_spill] sm:$0xff]  ;;  %v15493_v19 = vld [vmem:[#allocation65_spill] sm:$0xff] }
 0x2ab   : > { %v1480_v52 = vpop.permute.xlu1 %1479  ;;  %v10702_v20 = vrot.slane %v15481_v47, %v9960_v37  ;;  %15489 = vst [vmem:[#allocation60_spill] sm:$0xff] %v10729_v7 }
 0x2ac   : > { %v10710_v28 = vsel %vm15123_vm0, %v9741_v27, %v1480_v52  ;;  %4054 = vrot.lane.b32.xlu0 %v3079_v49, %s9325_s14  ;;  %v1476_v33 = vpop.permute.xlu0 %1475  ;;  %v1816_v27 = vsel %vm15123_vm0, %v15492_v3, %v1464_v57 }
 0x2ad   : > { %15482 = vst [vmem:[#allocation54_spill] sm:$0xff] %v10702_v20  ;;  %15485 = vst [vmem:[#allocation59_spill] sm:$0xff] %v10710_v28  ;;  %v3359_v4 = vcombine.high %v10706_v62, %v10710_v28  ;;  %v1818_v29 = vsel %vm15123_vm0, %v15487_v53, %v1476_v33  ;;  %v15490_v33 = vld [vmem:[#allocation64_spill] sm:$0xff]  ;;  %v15498_v28 = vld [vmem:[#allocation67_spill] sm:$0xff] }
 0x2ae   : > { %v3087_v47 = vcombine.high %v1814_v38, %v1818_v29  ;;  %v3086_v54 = vcombine.low %v1814_v38, %v1818_v29 }
 0x2af   : > { %v1492_v52 = vpop.permute.xlu1 %1491  ;;  %v10742_v5 = vrot.slane %v3359_v4, %v9877_v1 }
 0x2b0   : > { %v10733_v53 = vsel %vm15123_vm0, %v15490_v33, %v1492_v52  ;;  %v1488_v36 = vpop.permute.xlu0 %1487  ;;  %v3094_v52 = vrot.slane %v3086_v54, %v9877_v1  ;;  %v3101_v40 = vrot.slane %v3087_v47, %v9877_v1  ;;  %v15494_v54 = vld [vmem:[#allocation66_spill] sm:$0xff] }
 0x2b1   : > { %15491 = vst [vmem:[#allocation63_spill] sm:$0xff] %v10733_v53  ;;  %v3375_v49 = vcombine.high %v10729_v7, %v10733_v53  ;;  %v1820_v41 = vsel %vm15123_vm0, %v15493_v19, %v1488_v36 }
 0x2b2   : > { %v3102_v22 = vcombine.low %v1816_v27, %v1820_v41  ;;  %v3103_v31 = vcombine.high %v1816_v27, %v1820_v41 }
 0x2b3   : > { %v10745_v38 = vrot.slane %v3375_v49, %v9877_v1  ;;  %v1504_v29 = vpop.permute.xlu1 %1503 }
 0x2b4   : > { %v3110_v3 = vrot.slane %v3102_v22, %v9877_v1  ;;  %v3117_v57 = vrot.slane %v3103_v31, %v9877_v1  ;;  %v1500_v33 = vpop.permute.xlu0 %1499  ;;  %v10757_v47 = vsel %vm15123_vm0, %v15494_v54, %v1504_v29  ;;  %v15496_v22 = vld [vmem:[#allocation70_spill] sm:$0xff] }
 0x2b5   : > { %v3438_v19 = vcombine.low %v10742_v5, %v10745_v38  ;;  %v3439_v41 = vcombine.high %v10742_v5, %v10745_v38  ;;  %15495 = vst [vmem:[#allocation61_spill] sm:$0xff] %v10757_v47  ;;  %v1822_v7 = vsel %vm15123_vm0, %v15498_v28, %v1500_v33  ;;  %v15499_v38 = vld [vmem:[#allocation71_spill] sm:$0xff] }
 0x2b6   : > { %v3151_v4 = vcombine.high %v3094_v52, %v3110_v3  ;;  %v3166_v36 = vcombine.low %v3101_v40, %v3117_v57  ;;  %v3167_v27 = vcombine.high %v3101_v40, %v3117_v57  ;;  %v3150_v12 = vcombine.low %v3094_v52, %v3110_v3 }
 0x2b7   : > { %v1516_v49 = vpop.permute.xlu1 %1515 }
 0x2b8   : > { %v1512_v20 = vpop.permute.xlu0 %1511  ;;  %v10771_v29 = vsel %vm15123_vm0, %v15500_v13, %v1516_v49  ;;  %v10790_v3 = vrot.slane %v3150_v12, %v9960_v37 }
 0x2b9   : > { %15501 = vst [vmem:[#allocation62_spill] sm:$0xff] %v10771_v29  ;;  %v1824_v28 = vsel %vm15123_vm0, %v15504_v34, %v1512_v20 }
 0x2ba   : > { %15506 = vst [vmem:[#allocation66_spill] sm:$0xff] %v10790_v3 }
 0x2bb   : > { %v1528_v63 = vpop.permute.xlu1 %1527 }
 0x2bc   : > { %v10761_v31 = vsel %vm15123_vm0, %v15496_v22, %v1528_v63  ;;  %v1524_v62 = vpop.permute.xlu0 %1523 }
 0x2bd   : > { %15497 = vst [vmem:[#allocation64_spill] sm:$0xff] %v10761_v31  ;;  %v3391_v5 = vcombine.high %v10757_v47, %v10761_v31  ;;  %v1826_v40 = vsel %vm15123_vm0, %v15499_v38, %v1524_v62  ;;  %v15505_v47 = vld [vmem:[#allocation73_spill] sm:$0xff] }
 0x2be   : > { %v3119_v57 = vcombine.high %v1822_v7, %v1826_v40  ;;  %v3118_v54 = vcombine.low %v1822_v7, %v1826_v40 }
 0x2bf   : > { %v1540_v53 = vpop.permute.xlu1 %1539  ;;  %v3405_v13 = vrot.slane %v3391_v5, %v9877_v1  ;;  %v10793_v5 = vrot.slane %v3151_v4, %v9960_v37  ;;  %v10811_v4 = vrot.slane %v3438_v19, %v9960_v37  ;;  %v15518_v19 = vld [vmem:[#allocation78_spill] sm:$0xff] }
 0x2c0   : > { %v10775_v63 = vsel %vm15123_vm0, %v15502_v56, %v1540_v53  ;;  %v1536_v22 = vpop.permute.xlu0 %1535  ;;  %v3126_v56 = vrot.slane %v3118_v54, %v9877_v1  ;;  %v3133_v53 = vrot.slane %v3119_v57, %v9877_v1  ;;  %v10796_v54 = vrot.slane %v3166_v36, %v9960_v37 }
 0x2c1   : > { %15503 = vst [vmem:[#allocation65_spill] sm:$0xff] %v10775_v63  ;;  %v3407_v33 = vcombine.high %v10771_v29, %v10775_v63  ;;  %v1828_v62 = vsel %vm15123_vm0, %v15505_v47, %v1536_v22  ;;  %15511 = vst [vmem:[#allocation72_spill] sm:$0xff] %v10811_v4  ;;  %v10814_v36 = vrot.slane %v3167_v27, %v9960_v37 }
 0x2c2   : > { %v3134_v38 = vcombine.low %v1824_v28, %v1828_v62  ;;  %v3135_v31 = vcombine.high %v1824_v28, %v1828_v62  ;;  %15507 = vst [vmem:[#allocation70_spill] sm:$0xff] %v10796_v54  ;;  %v15567_v54 = vld [vmem:[#allocation100_spill] sm:$0xff] }
 0x2c3   : > { %v3421_v7 = vrot.slane %v3407_v33, %v9877_v1  ;;  %v1552_v49 = vpop.permute.xlu1 %1551  ;;  %15512 = vst [vmem:[#allocation69_spill] sm:$0xff] %v10814_v36 }
 0x2c4   : > { %v3142_v34 = vrot.slane %v3134_v38, %v9877_v1  ;;  %v3149_v20 = vrot.slane %v3135_v31, %v9877_v1  ;;  %v1548_v40 = vpop.permute.xlu0 %1547 }
 0x2c5   : > { %v3470_v29 = vcombine.low %v3405_v13, %v3421_v7  ;;  %v3471_v63 = vcombine.high %v3405_v13, %v3421_v7 }
 0x2c6   : > { %v3182_v47 = vcombine.low %v3126_v56, %v3142_v34  ;;  %v3183_v22 = vcombine.high %v3126_v56, %v3142_v34  ;;  %v3198_v28 = vcombine.low %v3133_v53, %v3149_v20  ;;  %v3199_v52 = vcombine.high %v3133_v53, %v3149_v20 }
 0x2c7   : > { %v1564_v57 = vpop.permute.xlu1 %1563  ;;  %v10817_v13 = vrot.slane %v3470_v29, %v9960_v37  ;;  %v10820_v7 = vrot.slane %v3471_v63, %v9960_v37  ;;  %v15522_v63 = vld [vmem:[#allocation80_spill] sm:$0xff] }
 0x2c8   : > { %v10799_v33 = vrot.slane %v3182_v47, %v9960_v37  ;;  %v10802_v31 = vrot.slane %v3183_v22, %v9960_v37  ;;  %v10805_v62 = vrot.slane %v3198_v28, %v9960_v37  ;;  %v10808_v38 = vrot.slane %v3199_v52, %v9960_v37  ;;  %v1560_v12 = vpop.permute.xlu0 %1559  ;;  %v15516_v28 = vld [vmem:[#allocation74_spill] sm:$0xff] }
 0x2c9   : > { %15513 = vst [vmem:[#allocation73_spill] sm:$0xff] %v10817_v13  ;;  %15514 = vst [vmem:[#allocation134_spill] sm:$0xff] %v10820_v7  ;;  %v10839_v22 = vrot.slane %v3439_v41, %v9960_v37  ;;  %v10843_v52 = vsel %vm15123_vm0, %v15516_v28, %v1552_v49 }
 0x2ca   : > { %15508 = vst [vmem:[#allocation67_spill] sm:$0xff] %v10799_v33  ;;  %15509 = vst [vmem:[#allocation71_spill] sm:$0xff] %v10805_v62  ;;  %v3215_v56 = vcombine.high %v10790_v3, %v10799_v33 }
 0x2cb   : > { %15510 = vst [vmem:[#allocation68_spill] sm:$0xff] %v10808_v38  ;;  %v1576_v27 = vpop.permute.xlu1 %1575  ;;  %15515 = vst [vmem:[#allocation135_spill] sm:$0xff] %v10839_v22  ;;  %v15526_v38 = vld [vmem:[#allocation79_spill] sm:$0xff] }
 0x2cc   : > { %15517 = vst [vmem:[#allocation74_spill] sm:$0xff] %v10843_v52  ;;  %v10847_v34 = vsel %vm15123_vm0, %v15518_v19, %v1576_v27  ;;  %4056 = vrot.lane.b32.xlu1 %v3215_v56, %s9325_s14  ;;  %v1572_v29 = vpop.permute.xlu0 %1571  ;;  %v15520_v27 = vld [vmem:[#allocation76_spill] sm:$0xff] }
 0x2cd   : > { %15519 = vst [vmem:[#allocation78_spill] sm:$0xff] %v10847_v34  ;;  %v3767_v20 = vcombine.high %v10843_v52, %v10847_v34  ;;  %v10862_v56 = vsel %vm15123_vm0, %v15520_v27, %v1564_v57  ;;  %v15524_v57 = vld [vmem:[#allocation81_spill] sm:$0xff]  ;;  %v10882_v36 = vsel %vm15123_vm0, %v15526_v38, %v1572_v29  ;;  %v15527_v52 = vld [vmem:[#allocation82_spill] sm:$0xff]  ;;  %v15531_v34 = vld [vmem:[#allocation75_spill] sm:$0xff] }
 0x2ce   : > { %15521 = vst [vmem:[#allocation76_spill] sm:$0xff] %v10862_v56  ;;  %v15532_v29 = vld [vmem:[#allocation87_spill] sm:$0xff] }
 0x2cf   : > { %v1588_v28 = vpop.permute.xlu1 %1587  ;;  %v3781_v41 = vrot.slane %v3767_v20, %v9877_v1 }
 0x2d0   : > { %v10866_v53 = vsel %vm15123_vm0, %v15522_v63, %v1588_v28  ;;  %v1584_v33 = vpop.permute.xlu0 %1583  ;;  %v15525_v63 = vld [vmem:[#allocation77_spill] sm:$0xff] }
 0x2d1   : > { %15523 = vst [vmem:[#allocation80_spill] sm:$0xff] %v10866_v53  ;;  %v3783_v47 = vcombine.high %v10862_v56, %v10866_v53  ;;  %v10874_v27 = vsel %vm15123_vm0, %v15524_v57, %v1584_v33  ;;  %v10878_v28 = vsel %vm15123_vm0, %v15525_v63, %v1560_v12  ;;  %v10896_v12 = vsel %vm15123_vm0, %v15531_v34, %v1548_v40  ;;  %v15534_v53 = vld [vmem:[#allocation84_spill] sm:$0xff] }
 0x2d3   : > { %v3797_v49 = vrot.slane %v3783_v47, %v9877_v1  ;;  %v1600_v3 = vpop.permute.xlu1 %1599  ;;  %v3510_v47 = vcombine.low %v10878_v28, %v10874_v27 }
 0x2d4   : > { %v1596_v13 = vpop.permute.xlu0 %1595 }
 0x2d5   : > { %v3846_v4 = vcombine.low %v3781_v41, %v3797_v49  ;;  %v3847_v19 = vcombine.high %v3781_v41, %v3797_v49  ;;  %v10888_v41 = vsel %vm15123_vm0, %v15527_v52, %v1600_v3  ;;  %v15529_v49 = vld [vmem:[#allocation86_spill] sm:$0xff]  ;;  %v3494_v3 = vcombine.low %v10896_v12, %v10882_v36  ;;  %v15533_v52 = vld [vmem:[#allocation83_spill] sm:$0xff] }
 0x2d6   : > { %15528 = vst [vmem:[#allocation81_spill] sm:$0xff] %v10888_v41  ;;  %v10908_v56 = vsel %vm15123_vm0, %v15533_v52, %v1596_v13 }
 0x2d7   : > { %v1612_v7 = vpop.permute.xlu1 %1611 }
 0x2d8   : > { %v1608_v22 = vpop.permute.xlu0 %1607  ;;  %v10913_v40 = vsel %vm15123_vm0, %v15534_v53, %v1612_v7  ;;  %v3502_v7 = vrot.slane %v3494_v3, %v9877_v1 }
 0x2d9   : > { %15535 = vst [vmem:[#allocation79_spill] sm:$0xff] %v10913_v40 }
 0x2db   : > { %v1624_v20 = vpop.permute.xlu1 %1623 }
 0x2dc   : > { %v10892_v33 = vsel %vm15123_vm0, %v15529_v49, %v1624_v20  ;;  %v1620_v57 = vpop.permute.xlu0 %1619  ;;  %v3518_v49 = vrot.slane %v3510_v47, %v9877_v1  ;;  %v15539_v47 = vld [vmem:[#allocation89_spill] sm:$0xff] }
 0x2dd   : > { %15530 = vst [vmem:[#allocation77_spill] sm:$0xff] %v10892_v33  ;;  %v3799_v38 = vcombine.high %v10888_v41, %v10892_v33  ;;  %v10902_v63 = vsel %vm15123_vm0, %v15532_v29, %v1620_v57  ;;  %v15536_v41 = vld [vmem:[#allocation88_spill] sm:$0xff]  ;;  %v15538_v33 = vld [vmem:[#allocation85_spill] sm:$0xff] }
 0x2de   : > { %v3526_v34 = vcombine.low %v10908_v56, %v10902_v63  ;;  %v10923_v55 = vsel %vm15123_vm0, %v15538_v33, %v1608_v22  ;;  %v3558_v46 = vcombine.low %v3502_v7, %v3518_v49 }
 0x2df   : > { %v1636_v20 = vpop.permute.xlu1 %1635 }
 0x2e0   : > { %v10919_v57 = vsel %vm15123_vm0, %v15536_v41, %v1636_v20  ;;  %v1632_v29 = vpop.permute.xlu0 %1631  ;;  %v3813_v41 = vrot.slane %v3799_v38, %v9877_v1  ;;  %v3534_v22 = vrot.slane %v3526_v34, %v9877_v1  ;;  %v10939_v3 = vrot.slane %v3558_v46, %v9960_v37 }
 0x2e1   : > { %15537 = vst [vmem:[#allocation82_spill] sm:$0xff] %v10919_v57  ;;  %v3815_v13 = vcombine.high %v10913_v40, %v10919_v57  ;;  %v10929_v52 = vsel %vm15123_vm0, %v15539_v47, %v1632_v29 }
 0x2e2   : > { %v3542_v53 = vcombine.low %v10923_v55, %v10929_v52  ;;  %15540 = vst [vmem:[#allocation86_spill] sm:$0xff] %v10939_v3 }
 0x2e3   : > { %v3829_v20 = vrot.slane %v3815_v13, %v9877_v1  ;;  %v1648_v6 = vpop.permute.xlu1 %1647 }
 0x2e4   : > { %v3550_v33 = vrot.slane %v3542_v53, %v9877_v1  ;;  %v1644_v40 = vpop.permute.xlu0 %1643  ;;  %v10953_v53 = vrot.slane %v3846_v4, %v9960_v37 }
 0x2e5   : > { %v3878_v57 = vcombine.low %v3813_v41, %v3829_v20  ;;  %v3879_v25 = vcombine.high %v3813_v41, %v3829_v20  ;;  %v10958_v20 = vrot.slane %v3847_v19, %v9960_v37  ;;  %v15554_v19 = vcombine.low %v9985_v44, %v9993_v14 }
 0x2e6   : > { %v3590_v29 = vcombine.low %v3534_v22, %v3550_v33  ;;  %15544 = vst [vmem:[#allocation84_spill] sm:$0xff] %v10953_v53 }
 0x2e7   : > { %v1660_v47 = vpop.permute.xlu1 %1659  ;;  %v10945_v13 = vrot.slane %v3878_v57, %v9960_v37  ;;  %v10948_v45 = vrot.slane %v3879_v25, %v9960_v37  ;;  %15545 = vst [vmem:[#allocation88_spill] sm:$0xff] %v10958_v20 }
 0x2e8   : > { %v10942_v16 = vrot.slane %v3590_v29, %v9960_v37  ;;  %v1656_v38 = vpop.permute.xlu0 %1655  ;;  %v15546_v29 = vld [vmem:[#allocation90_spill] sm:$0xff] }
 0x2e9   : > { %15542 = vst [vmem:[#allocation87_spill] sm:$0xff] %v10945_v13  ;;  %15543 = vst [vmem:[#allocation83_spill] sm:$0xff] %v10948_v45  ;;  %v10962_v57 = vsel %vm15123_vm0, %v15546_v29, %v1648_v6  ;;  %v3591_v13 = vcombine.high %v3534_v22, %v3550_v33  ;;  %v3559_v45 = vcombine.high %v3502_v7, %v3518_v49  ;;  %v15557_v49 = vld [vmem:[#allocation97_spill] sm:$0xff] }
 0x2ea   : > { %15541 = vst [vmem:[#allocation75_spill] sm:$0xff] %v10942_v16  ;;  %v3623_v34 = vcombine.high %v10939_v3, %v10942_v16  ;;  %15547 = vst [vmem:[#allocation85_spill] sm:$0xff] %v10962_v57  ;;  %v15552_v16 = vld [vmem:[#allocation96_spill] sm:$0xff]  ;;  %v15556_v22 = vcombine.low %v10653_v18, %v10662_v58 }
 0x2eb   : > { %v1672_v41 = vpop.permute.xlu1 %1671 }
 0x2ec   : > { %v10966_v25 = vsel %vm15123_vm0, %v15548_v21, %v1672_v41  ;;  %4058 = vrot.lane.b32.xlu0 %v3623_v34, %s9325_s14  ;;  %v1668_v50 = vpop.permute.xlu0 %1667  ;;  %v15550_v41 = vld [vmem:[#allocation92_spill] sm:$0xff] }
 0x2ed   : > { %15549 = vst [vmem:[#allocation89_spill] sm:$0xff] %v10966_v25  ;;  %v3903_v4 = vcombine.high %v10962_v57, %v10966_v25  ;;  %v10981_v34 = vsel %vm15123_vm0, %v15550_v41, %v1660_v47  ;;  %v3573_v25 = vrot.slane %v3559_v45, %v9960_v37 }
 0x2ee   : > { %15551 = vst [vmem:[#allocation90_spill] sm:$0xff] %v10981_v34 }
 0x2ef   : > { %v1684_v29 = vpop.permute.xlu1 %1683  ;;  %v3917_v21 = vrot.slane %v3903_v4, %v9877_v1 }
 0x2f0   : > { %v10985_v3 = vsel %vm15123_vm0, %v15552_v16, %v1684_v29  ;;  %4078 = vrot.lane.b32.xlu0 %v15554_v19, %s9326_s15  ;;  %v1680_v46 = vpop.permute.xlu0 %1679  ;;  %v15555_v16 = vcombine.low %v10335_v48, %v10343_v60  ;;  %v3605_v19 = vrot.slane %v3591_v13, %v9960_v37 }
 0x2f1   : > { %15553 = vst [vmem:[#allocation94_spill] sm:$0xff] %v10985_v3  ;;  %v3919_v6 = vcombine.high %v10981_v34, %v10985_v3  ;;  %v11007_v7 = vsel %vm15123_vm0, %v15557_v49, %v1680_v46  ;;  %v15560_v34 = vld [vmem:[#allocation98_spill] sm:$0xff]  ;;  %v15564_v49 = vld [vmem:[#allocation91_spill] sm:$0xff] }
 0x2f2   : > { %v3624_v4 = vcombine.low %v3573_v25, %v3605_v19  ;;  %v15562_v3 = vld [vmem:[#allocation102_spill] sm:$0xff] }
 0x2f3   : > { %v3933_v47 = vrot.slane %v3919_v6, %v9877_v1  ;;  %v1696_v41 = vpop.permute.xlu1 %1695  ;;  %v15558_v6 = vld [vmem:[#allocation93_spill] sm:$0xff] }
 0x2f4   : > { %4082 = vrot.lane.b32.xlu0 %v15555_v16, %s9326_s15  ;;  %v1692_v29 = vpop.permute.xlu0 %1691  ;;  %v11011_v16 = vsel %vm15123_vm0, %v15558_v6, %v1656_v38  ;;  %v11030_v6 = vsel %vm15123_vm0, %v15564_v49, %v1644_v40 }
 0x2f5   : > { %v3982_v20 = vcombine.low %v3917_v21, %v3933_v47  ;;  %v3983_v53 = vcombine.high %v3917_v21, %v3933_v47  ;;  %v15559_v21 = vld [vmem:[#allocation95_spill] sm:$0xff]  ;;  %v3646_v47 = vcombine.low %v11011_v16, %v11007_v7 }
 0x2f6   : > { %v11015_v13 = vsel %vm15123_vm0, %v15559_v21, %v1668_v50  ;;  %v15565_v21 = vld [vmem:[#allocation103_spill] sm:$0xff] }
 0x2f7   : > { %v1708_v57 = vpop.permute.xlu1 %1707 }
 0x2f8   : > { %4086 = vrot.lane.b32.xlu0 %v15556_v22, %s9326_s15  ;;  %v1704_v33 = vpop.permute.xlu0 %1703  ;;  %v11021_v22 = vsel %vm15123_vm0, %v15560_v34, %v1696_v41  ;;  %v3630_v34 = vcombine.low %v11030_v6, %v11015_v13  ;;  %v15566_v41 = vld [vmem:[#allocation99_spill] sm:$0xff]  ;;  %v11047_v40 = vsel %vm15123_vm0, %v15567_v54, %v1708_v57  ;;  %v15573_v57 = vld [vmem:[#allocation105_spill] sm:$0xff] }
 0x2f9   : > { %15561 = vst [vmem:[#allocation92_spill] sm:$0xff] %v11021_v22  ;;  %15568 = vst [vmem:[#allocation97_spill] sm:$0xff] %v11047_v40 }
 0x2fb   : > { %v1720_v45 = vpop.permute.xlu1 %1719 }
 0x2fc   : > { %v11025_v46 = vsel %vm15123_vm0, %v15562_v3, %v1720_v45  ;;  %4090 = vrot.lane.b32.xlu0 %v3624_v4, %s9326_s15  ;;  %v1716_v38 = vpop.permute.xlu0 %1715  ;;  %v11042_v3 = vsel %vm15123_vm0, %v15566_v41, %v1692_v29  ;;  %v3654_v45 = vrot.slane %v3646_v47, %v9877_v1  ;;  %v15571_v29 = vcombine.high %v9985_v44, %v9993_v14  ;;  %v15572_v41 = vld [vmem:[#allocation101_spill] sm:$0xff] }
 0x2fd   : > { %15563 = vst [vmem:[#allocation96_spill] sm:$0xff] %v11025_v46  ;;  %v3935_v50 = vcombine.high %v11021_v22, %v11025_v46  ;;  %v11036_v62 = vsel %vm15123_vm0, %v15565_v21, %v1716_v38  ;;  %v15569_v22 = vld [vmem:[#allocation104_spill] sm:$0xff]  ;;  %v11061_v47 = vsel %vm15123_vm0, %v15572_v41, %v1704_v33 }
 0x2fe   : > { %v3662_v49 = vcombine.low %v11042_v3, %v11036_v62 }
 0x2ff   : > { %v1732_v4 = vpop.permute.xlu1 %1731  ;;  %v3949_v44 = vrot.slane %v3935_v50, %v9877_v1 }
 0x300   : > { %v11053_v38 = vsel %vm15123_vm0, %v15569_v22, %v1732_v4  ;;  %4110 = vrot.lane.b32.xlu0 %v15571_v29, %s9327_s16  ;;  %v1728_v21 = vpop.permute.xlu0 %1727  ;;  %v3638_v22 = vrot.slane %v3630_v34, %v9877_v1  ;;  %v3670_v33 = vrot.slane %v3662_v49, %v9877_v1  ;;  %v15577_v49 = vcombine.high %v10653_v18, %v10662_v58 }
 0x301   : > { %15570 = vst [vmem:[#allocation93_spill] sm:$0xff] %v11053_v38  ;;  %v3951_v54 = vcombine.high %v11047_v40, %v11053_v38  ;;  %v11067_v46 = vsel %vm15123_vm0, %v15573_v57, %v1728_v21  ;;  %v15574_v40 = vcombine.high %v10335_v48, %v10343_v60  ;;  %v3543_v60 = vcombine.high %v10923_v55, %v10929_v52  ;;  %v15726_v55 = vld [vmem:[#allocation73_spill] sm:$0xff] }
 0x302   : > { %v3678_v4 = vcombine.low %v11061_v47, %v11067_v46  ;;  %v3694_v29 = vcombine.low %v3638_v22, %v3654_v45  ;;  %v3511_v58 = vcombine.high %v10878_v28, %v10874_v27  ;;  %v3495_v27 = vcombine.high %v10896_v12, %v10882_v36 }
 0x303   : > { %v3965_v14 = vrot.slane %v3951_v54, %v9877_v1  ;;  %vm4653_vm0 = vcmask 261120  }
 0x304   : > { %v3686_v41 = vrot.slane %v3678_v4, %v9877_v1  ;;  %4114 = vrot.lane.b32.xlu0 %v15574_v40, %s9327_s16  ;;  %v11081_v38 = vrot.slane %v3694_v29, %v9960_v37  ;;  %v3625_v40 = vcombine.high %v3573_v25, %v3605_v19  ;;  %v3527_v29 = vcombine.high %v10908_v56, %v10902_v63 }
 0x305   : > { %v4014_v21 = vcombine.low %v3949_v44, %v3965_v14  ;;  %v4015_v57 = vcombine.high %v3949_v44, %v3965_v14  ;;  %v11101_v44 = vrot.slane %v3982_v20, %v9960_v37  ;;  %v11104_v14 = vrot.slane %v3983_v53, %v9960_v37 }
 0x306   : > { %v3726_v34 = vcombine.low %v3670_v33, %v3686_v41  ;;  %15575 = vst [vmem:[#allocation95_spill] sm:$0xff] %v11081_v38  ;;  %v3557_v56 = vrot.slane %v3543_v60, %v9877_v1  ;;  %v3525_v28 = vrot.slane %v3511_v58, %v9877_v1  ;;  %v3541_v63 = vrot.slane %v3527_v29, %v9877_v1 }
 0x307   : > { %v11091_v54 = vrot.slane %v4014_v21, %v9960_v37  ;;  %v11094_v48 = vrot.slane %v4015_v57, %v9960_v37  ;;  %v15578_v25 = vcombine.low %v10011_v43, %v9996_v42  ;;  %v15579_v19 = vcombine.low %v10160_v59, %v10168_v23 }
 0x308   : > { %v11084_v50 = vrot.slane %v3726_v34, %v9960_v37  ;;  %4118 = vrot.lane.b32.xlu0 %v15577_v49, %s9327_s16  ;;  %v3509_v21 = vrot.slane %v3495_v27, %v9877_v1  ;;  %v3606_v36 = vcombine.low %v3541_v63, %v3557_v56  ;;  %v3727_v12 = vcombine.high %v3670_v33, %v3686_v41 }
 0x309   : > { %v3695_v34 = vcombine.high %v3638_v22, %v3654_v45  ;;  %v15580_v49 = vcombine.low %v10361_v39, %v10346_v15  ;;  %v15581_v60 = vcombine.low %v10497_v51, %v10505_v0  ;;  %v15582_v45 = vcombine.low %v10656_v11, %v10665_v32 }
 0x30a   : > { %15576 = vst [vmem:[#allocation98_spill] sm:$0xff] %v11084_v50  ;;  %v3759_v4 = vcombine.high %v11081_v38, %v11084_v50  ;;  %v3574_v57 = vcombine.low %v3509_v21, %v3525_v28  ;;  %v15583_v22 = vcombine.low %v10793_v5, %v10802_v31  ;;  %v15584_v27 = vcombine.high %v10011_v43, %v9996_v42  ;;  %v4678_v38 = vld [vmem:[%s9365_s12 + $0x2] sm:$0xff] }
 0x30b   : > { %v3709_v33 = vrot.slane %v3695_v34, %v9960_v37  ;;  %v15588_v42 = vcombine.high %v10656_v11, %v10665_v32  ;;  %v15589_v43 = vcombine.high %v10793_v5, %v10802_v31  ;;  %v15590_v31 = vcombine.low %v10017_v35, %v9999_v24  ;;  %v15596_v34 = vld [vmem:[#allocation71_spill] sm:$0xff] }
 0x30c   : > { %4122 = vrot.lane.b32.xlu0 %v3625_v40, %s9327_s16  ;;  %4060 = vrot.lane.b32.xlu1 %v3759_v4, %s9325_s14  ;;  %v3614_v40 = vrot.slane %v3606_v36, %v9960_v37  ;;  %v3741_v4 = vrot.slane %v3727_v12, %v9960_v37  ;;  %v3582_v58 = vrot.slane %v3574_v57, %v9960_v37  ;;  %v15595_v57 = vld [vmem:[#allocation70_spill] sm:$0xff] }
 0x30d   : > { %v15587_v36 = vcombine.high %v10497_v51, %v10505_v0  ;;  %v3663_v51 = vcombine.high %v11042_v3, %v11036_v62  ;;  %v3631_v0 = vcombine.high %v11030_v6, %v11015_v13  ;;  %v15591_v62 = vcombine.low %v10186_v30, %v10171_v26 }
 0x30e   : > { %v3626_v41 = vcombine.low %v3582_v58, %v3614_v40  ;;  %v3760_v29 = vcombine.low %v3709_v33, %v3741_v4  ;;  %v15592_v3 = vcombine.low %v10367_v9, %v10349_v10 }
 0x30f   : > { %v11199_v5 = vrot.slane %v3663_v51, %v9877_v1 }
 0x310   : > { %4142 = vrot.lane.b32.xlu0 %v15578_v25, %s9328_s17  ;;  %4080 = vrot.lane.b32.xlu1 %v15579_v19, %s9326_s15  ;;  %v15585_v25 = vcombine.high %v10160_v59, %v10168_v23  ;;  %v15586_v19 = vcombine.high %v10361_v39, %v10346_v15  ;;  %v3679_v59 = vcombine.high %v11061_v47, %v11067_v46 }
 0x311   : > { %v3627_v23 = vcombine.high %v3582_v58, %v3614_v40  ;;  %v3761_v15 = vcombine.high %v3709_v33, %v3741_v4  ;;  %v3647_v39 = vcombine.high %v11011_v16, %v11007_v7  ;;  %v3607_v7 = vcombine.high %v3541_v63, %v3557_v56  ;;  %v15598_v4 = vld [vmem:[#allocation114_spill] sm:$0xff]  ;;  %v15599_v58 = vld [vmem:[#allocation113_spill] sm:$0xff] }
 0x312   : > { %v11193_v11 = vrot.slane %v3679_v59, %v9877_v1  ;;  %v11210_v16 = vrot.slane %v3631_v0, %v9877_v1  ;;  %v3575_v46 = vcombine.high %v3509_v21, %v3525_v28  ;;  %v15593_v47 = vcombine.low %v10514_v17, %v10508_v2 }
 0x313   : > { %v11196_v32 = vrot.slane %v3647_v39, %v9877_v1  ;;  %v3621_v56 = vrot.slane %v3607_v7, %v9960_v37  ;;  %v15594_v21 = vcombine.low %v10674_v61, %v10668_v8  ;;  %v2182_v33 = vcombine.low %v15599_v58, %v15598_v4  ;;  %v15609_v39 = vld [vmem:[#allocation23_spill] sm:$0xff] }
 0x314   : > { %4146 = vrot.lane.b32.xlu0 %v15580_v49, %s9328_s17  ;;  %4084 = vrot.lane.b32.xlu1 %v15581_v60, %s9326_s15  ;;  %v3742_v13 = vcombine.low %v11199_v5, %v11193_v11  ;;  %v3589_v12 = vrot.slane %v3575_v46, %v9960_v37  ;;  %v15597_v49 = vcombine.low %v15595_v57, %v15596_v34  ;;  %v15620_v58 = vld [vmem:[#allocation47_spill] sm:$0xff] }
 0x315   : > { %v3710_v6 = vcombine.low %v11210_v16, %v11196_v32  ;;  %v15615_v46 = vcombine.high %v10514_v17, %v10508_v2 }
 0x316   : > { %v3750_v63 = vrot.slane %v3742_v13, %v9960_v37  ;;  %v3628_v60 = vcombine.low %v3589_v12, %v3621_v56  ;;  %v15614_v13 = vcombine.high %v10367_v9, %v10349_v10  ;;  %v15619_v10 = vld [vmem:[#allocation50_spill] sm:$0xff] }
 0x317   : > { %v3718_v28 = vrot.slane %v3710_v6, %v9960_v37 }
 0x318   : > { %4150 = vrot.lane.b32.xlu0 %v15582_v45, %s9328_s17  ;;  %4088 = vrot.lane.b32.xlu1 %v15583_v22, %s9326_s15  ;;  %v15600_v45 = vld [vmem:[#allocation110_spill] sm:$0xff]  ;;  %v15601_v22 = vld [vmem:[#allocation109_spill] sm:$0xff] }
 0x319   : > { %v3762_v40 = vcombine.low %v3718_v28, %v3750_v63 }
 0x31c   : > { %4154 = vrot.lane.b32.xlu0 %v3626_v41, %s9328_s17  ;;  %4092 = vrot.lane.b32.xlu1 %v3760_v29, %s9326_s15  ;;  %v2150_v41 = vcombine.low %v15601_v22, %v15600_v45  ;;  %v15602_v29 = vld [vmem:[#allocation112_spill] sm:$0xff] }
 0x31d   : > { %v15622_v22 = vld [vmem:[#allocation48_spill] sm:$0xff] }
 0x31e   : > { %v11260_v0 = vrot.slane %v2150_v41, %v9877_v1  ;;  %v15623_v41 = vld [vmem:[#allocation49_spill] sm:$0xff] }
 0x320   : > { %4174 = vrot.lane.b32.xlu0 %v15584_v27, %s9329_s18  ;;  %4112 = vrot.lane.b32.xlu1 %v15585_v25, %s9327_s16  ;;  %v15603_v27 = vld [vmem:[#allocation111_spill] sm:$0xff] }
 0x321   : > { %v2166_v25 = vcombine.low %v15603_v27, %v15602_v29  ;;  %v3254_v29 = vcombine.low %v15623_v41, %v15622_v22  ;;  %v15624_v27 = vcombine.high %v10674_v61, %v10668_v8  ;;  %v15628_v8 = vld [vmem:[#allocation82_spill] sm:$0xff]  ;;  %v15629_v61 = vld [vmem:[#allocation79_spill] sm:$0xff]  ;;  %v15637_v41 = vld [vmem:[#allocation13_spill] sm:$0xff] }
 0x322   : > { %v15636_v22 = vld [vmem:[#allocation130_spill] sm:$0xff] }
 0x324   : > { %4178 = vrot.lane.b32.xlu0 %v15586_v19, %s9329_s18  ;;  %4116 = vrot.lane.b32.xlu1 %v15587_v36, %s9327_s16  ;;  %v15604_v19 = vcombine.high %v10017_v35, %v9999_v24  ;;  %v15605_v36 = vcombine.high %v10186_v30, %v10171_v26  ;;  %v11263_v24 = vrot.slane %v2166_v25, %v9877_v1  ;;  %v15610_v35 = vld [vmem:[#allocation20_spill] sm:$0xff]  ;;  %v15612_v26 = vld [vmem:[#allocation22_spill] sm:$0xff]  ;;  %v15613_v30 = vld [vmem:[#allocation21_spill] sm:$0xff] }
 0x325   : > { %v2710_v7 = vcombine.low %v15613_v30, %v15612_v26  ;;  %v15625_v25 = vcombine.high %v15595_v57, %v15596_v34  ;;  %v3763_v57 = vcombine.high %v3718_v28, %v3750_v63  ;;  %v11329_v26 = vrot.slane %v3254_v29, %v9877_v1  ;;  %v15630_v30 = vld [vmem:[#allocation80_spill] sm:$0xff] }
 0x326   : > { %v15638_v29 = vcombine.low %v15636_v22, %v15637_v41 }
 0x327   : > { %v11295_v17 = vrot.slane %v2710_v7, %v9877_v1  ;;  %v15631_v7 = vld [vmem:[#allocation76_spill] sm:$0xff] }
 0x328   : > { %4182 = vrot.lane.b32.xlu0 %v15588_v42, %s9329_s18  ;;  %4120 = vrot.lane.b32.xlu1 %v15589_v43, %s9327_s16  ;;  %v15606_v42 = vld [vmem:[#allocation107_spill] sm:$0xff]  ;;  %v15607_v43 = vld [vmem:[#allocation106_spill] sm:$0xff] }
 0x329   : > { %v2134_v59 = vcombine.low %v15607_v43, %v15606_v42  ;;  %v15626_v43 = vld [vmem:[#allocation45_spill] sm:$0xff] }
 0x32b   : > { %v11278_v6 = vrot.slane %v2134_v59, %v9877_v1  ;;  %v15627_v59 = vld [vmem:[#allocation44_spill] sm:$0xff] }
 0x32c   : > { %4186 = vrot.lane.b32.xlu0 %v3627_v23, %s9329_s18  ;;  %4124 = vrot.lane.b32.xlu1 %v3761_v15, %s9327_s16  ;;  %v11255_v23 = vrot.slane %v2182_v33, %v9877_v1  ;;  %v15608_v15 = vld [vmem:[#allocation24_spill] sm:$0xff]  ;;  %v15621_v33 = vld [vmem:[#allocation46_spill] sm:$0xff] }
 0x32d   : > { %v2726_v51 = vcombine.low %v15609_v39, %v15608_v15  ;;  %v2198_v4 = vcombine.low %v11278_v6, %v11260_v0  ;;  %v3238_v45 = vcombine.low %v15621_v33, %v15620_v58  ;;  %v3222_v15 = vcombine.low %v15627_v59, %v15626_v43 }
 0x32e   : > { %v3743_v59 = vcombine.high %v11199_v5, %v11193_v11 }
 0x32f   : > { %v2206_v34 = vrot.slane %v2198_v4, %v9960_v37 }
 0x330   : > { %4206 = vrot.lane.b32.xlu0 %v15590_v31, %s9330_s19  ;;  %4144 = vrot.lane.b32.xlu1 %v15591_v62, %s9328_s17  ;;  %v15611_v31 = vld [vmem:[#allocation19_spill] sm:$0xff]  ;;  %v11386_v11 = vrot.slane %v3743_v59, %v9960_v37  ;;  %v15649_v59 = vld [vmem:[#allocation125_spill] sm:$0xff] }
 0x331   : > { %v2694_v62 = vcombine.low %v15611_v31, %v15610_v35  ;;  %v3629_v35 = vcombine.high %v3589_v12, %v3621_v56  ;;  %v11339_v12 = vrot.slane %v3222_v15, %v9877_v1 }
 0x333   : > { %v11292_v2 = vrot.slane %v2694_v62, %v9877_v1  ;;  %v11326_v62 = vrot.slane %v3238_v45, %v9877_v1  ;;  %v11357_v45 = vpop.permute.xlu0 %4046 }
 0x334   : > { %4210 = vrot.lane.b32.xlu0 %v15592_v3, %s9330_s19  ;;  %4148 = vrot.lane.b32.xlu1 %v15593_v47, %s9328_s17  ;;  %v2230_v3 = vcombine.low %v11263_v24, %v11255_v23  ;;  %v15616_v47 = vld [vmem:[#allocation18_spill] sm:$0xff] }
 0x335   : > { %v3286_v4 = vcombine.low %v11339_v12, %v11326_v62 }
 0x337   : > { %v3294_v15 = vrot.slane %v3286_v4, %v9960_v37  ;;  %v11388_v5 = vpop.permute.xlu0 %4050  ;;  %v15648_v4 = vld [vmem:[#allocation126_spill] sm:$0xff] }
 0x338   : > { %4214 = vrot.lane.b32.xlu0 %v15594_v21, %s9330_s19  ;;  %4152 = vrot.lane.b32.xlu1 %v15597_v49, %s9328_s17  ;;  %v15617_v21 = vld [vmem:[#allocation17_spill] sm:$0xff] }
 0x339   : > { %v2678_v49 = vcombine.low %v15617_v21, %v15616_v47  ;;  %v15634_v21 = vld [vmem:[#allocation78_spill] sm:$0xff] }
 0x33c   : > { %4218 = vrot.lane.b32.xlu0 %v3628_v60, %s9330_s19  ;;  %4156 = vrot.lane.b32.xlu1 %v3762_v40, %s9328_s17  ;;  %v11285_v60 = vrot.slane %v2726_v51, %v9877_v1  ;;  %v15618_v40 = vld [vmem:[#allocation51_spill] sm:$0xff]  ;;  %v3814_v51 = vcombine.low %v15629_v61, %v15628_v8  ;;  %v3711_v61 = vcombine.high %v11210_v16, %v11196_v32  ;;  %v15642_v16 = vld [vmem:[#allocation69_spill] sm:$0xff] }
 0x33d   : > { %v3270_v9 = vcombine.low %v15619_v10, %v15618_v40 }
 0x33e   : > { %v2774_v42 = vcombine.low %v11295_v17, %v11285_v60  ;;  %v11346_v10 = vrot.slane %v3814_v51, %v9877_v1  ;;  %v15639_v51 = vld [vmem:[#allocation42_spill] sm:$0xff]  ;;  %v11394_v32 = vrot.slane %v3711_v61, %v9960_v37 }
 0x33f   : > { %v11318_v39 = vrot.slane %v3270_v9, %v9877_v1 }
 0x340   : > { %4238 = vrot.lane.b32.xlu0 %v15604_v19, %s9331_s20  ;;  %4176 = vrot.lane.b32.xlu1 %v15605_v36, %s9329_s18  ;;  %v2238_v19 = vrot.slane %v2230_v3, %v9960_v37  ;;  %v11311_v36 = vrot.slane %v2678_v49, %v9877_v1  ;;  %v15633_v3 = vld [vmem:[#allocation81_spill] sm:$0xff]  ;;  %v2782_v56 = vrot.slane %v2774_v42, %v9960_v37  ;;  %v15635_v49 = vld [vmem:[#allocation74_spill] sm:$0xff] }
 0x341   : > { %v3318_v28 = vcombine.low %v11329_v26, %v11318_v39  ;;  %v3766_v40 = vcombine.low %v15635_v49, %v15634_v21  ;;  %v15646_v21 = vld [vmem:[#allocation128_spill] sm:$0xff] }
 0x342   : > { %v2742_v31 = vcombine.low %v11311_v36, %v11292_v2  ;;  %v2262_v63 = vcombine.low %v2206_v34, %v2238_v19 }
 0x343   : > { %v11366_v42 = vrot.slane %v3766_v40, %v9877_v1  ;;  %v15647_v40 = vld [vmem:[#allocation127_spill] sm:$0xff] }
 0x344   : > { %4242 = vrot.lane.b32.xlu0 %v15614_v13, %s9331_s20  ;;  %4180 = vrot.lane.b32.xlu1 %v15615_v46, %s9329_s18  ;;  %v3782_v13 = vcombine.low %v15631_v7, %v15630_v30  ;;  %v15632_v46 = vld [vmem:[#allocation77_spill] sm:$0xff]  ;;  %v2750_v9 = vrot.slane %v2742_v31, %v9960_v37 }
 0x345   : > { %v3798_v47 = vcombine.low %v15633_v3, %v15632_v46  ;;  %v11401_v3 = vpop.permute.xlu0 %4054 }
 0x346   : > { %v11352_v58 = vrot.slane %v3782_v13, %v9877_v1  ;;  %v15643_v13 = vld [vmem:[#allocation68_spill] sm:$0xff] }
 0x347   : > { %v11355_v33 = vrot.slane %v3798_v47, %v9877_v1  ;;  %v15644_v46 = vcombine.low %v15642_v16, %v15643_v13 }
 0x348   : > { %4246 = vrot.lane.b32.xlu0 %v15624_v27, %s9331_s20  ;;  %4184 = vrot.lane.b32.xlu1 %v15625_v25, %s9329_s18  ;;  %v2806_v27 = vcombine.low %v2750_v9, %v2782_v56  ;;  %v3326_v25 = vrot.slane %v3318_v28, %v9960_v37  ;;  %v3830_v8 = vcombine.low %v11366_v42, %v11352_v58  ;;  %v15645_v28 = vld [vmem:[#allocation14_spill] sm:$0xff] }
 0x349   : > { %v3862_v43 = vcombine.low %v11355_v33, %v11346_v10  ;;  %v2318_v49 = vcombine.low %v15646_v21, %v15645_v28  ;;  %v15655_v28 = vld [vmem:[#allocation35_spill] sm:$0xff] }
 0x34a   : > { %v3350_v30 = vcombine.low %v3294_v15, %v3326_v25  ;;  %v11391_v7 = vrot.slane %v3830_v8, %v9960_v37  ;;  %v15650_v8 = vld [vmem:[#allocation124_spill] sm:$0xff] }
 0x34b   : > { %v11383_v31 = vrot.slane %v3862_v43, %v9960_v37  ;;  %v2263_v43 = vcombine.high %v2206_v34, %v2238_v19  ;;  %v2286_v61 = vcombine.low %v15650_v8, %v15649_v59  ;;  %v15654_v34 = vld [vmem:[#allocation36_spill] sm:$0xff]  ;;  %v15658_v59 = vld [vmem:[#allocation34_spill] sm:$0xff]  ;;  %v15659_v8 = vld [vmem:[#allocation33_spill] sm:$0xff] }
 0x34c   : > { %4250 = vrot.lane.b32.xlu0 %v3629_v35, %s9331_s20  ;;  %4188 = vrot.lane.b32.xlu1 %v3763_v57, %s9329_s18  ;;  %v15640_v35 = vld [vmem:[#allocation41_spill] sm:$0xff]  ;;  %v2862_v21 = vcombine.low %v15655_v28, %v15654_v34  ;;  %v15664_v28 = vld [vmem:[#allocation62_spill] sm:$0xff] }
 0x34d   : > { %v15641_v57 = vcombine.low %v15639_v51, %v15640_v35  ;;  %v3894_v47 = vcombine.low %v11391_v7, %v11383_v31  ;;  %v15663_v34 = vld [vmem:[#allocation65_spill] sm:$0xff] }
 0x350   : > { %4270 = vrot.lane.b32.xlu0 %v2262_v63, %s9332_s21  ;;  %4208 = vrot.lane.b32.xlu1 %v15638_v29, %s9330_s19  ;;  %v3764_v63 = vcombine.low %v11394_v32, %v11386_v11  ;;  %v2302_v29 = vcombine.low %v15648_v4, %v15647_v40  ;;  %v2807_v40 = vcombine.high %v2750_v9, %v2782_v56  ;;  %v15661_v9 = vld [vmem:[#allocation12_spill] sm:$0xff] }
 0x351   : > { %v11439_v4 = vrot.slane %v2286_v61, %v9877_v1 }
 0x354   : > { %4274 = vrot.lane.b32.xlu0 %v2806_v27, %s9332_s21  ;;  %4212 = vrot.lane.b32.xlu1 %v15641_v57, %s9330_s19  ;;  %v2231_v57 = vcombine.high %v11263_v24, %v11255_v23  ;;  %v2199_v23 = vcombine.high %v11278_v6, %v11260_v0  ;;  %v11434_v24 = vrot.slane %v2302_v29, %v9877_v1  ;;  %v15662_v29 = vld [vmem:[#allocation3_spill] sm:$0xff] }
 0x355   : > { %v15660_v6 = vcombine.high %v15639_v51, %v15640_v35  ;;  %v2814_v61 = vcombine.low %v15662_v29, %v15661_v9  ;;  %v15668_v9 = vld [vmem:[#allocation61_spill] sm:$0xff] }
 0x358   : > { %4278 = vrot.lane.b32.xlu0 %v3350_v30, %s9332_s21  ;;  %4216 = vrot.lane.b32.xlu1 %v15644_v46, %s9330_s19  ;;  %v11420_v30 = vrot.slane %v2318_v49, %v9877_v1  ;;  %v15651_v46 = vcombine.high %v15636_v22, %v15637_v41  ;;  %v15656_v22 = vld [vmem:[#allocation32_spill] sm:$0xff]  ;;  %v15657_v41 = vld [vmem:[#allocation31_spill] sm:$0xff] }
 0x35a   : > { %v2366_v0 = vcombine.low %v11434_v24, %v11420_v30 }
 0x35c   : > { %4282 = vrot.lane.b32.xlu0 %v3894_v47, %s9332_s21  ;;  %4220 = vrot.lane.b32.xlu1 %v3764_v63, %s9330_s19  ;;  %v15652_v47 = vld [vmem:[#allocation123_spill] sm:$0xff]  ;;  %v15653_v63 = vld [vmem:[#allocation122_spill] sm:$0xff] }
 0x35d   : > { %v2270_v19 = vcombine.low %v15653_v63, %v15652_v47  ;;  %v11446_v47 = vrot.slane %v2231_v57, %v9960_v37  ;;  %v11461_v63 = vrot.slane %v2862_v21, %v9877_v1  ;;  %v11464_v57 = vrot.slane %v2199_v23, %v9960_v37  ;;  %v15665_v21 = vld [vmem:[#allocation63_spill] sm:$0xff] }
 0x35e   : > { %v11413_v27 = vpop.permute.xlu0 %4058  ;;  %v11481_v23 = vrot.slane %v2366_v0, %v9960_v37 }
 0x35f   : > { %v11456_v56 = vrot.slane %v2270_v19, %v9877_v1 }
 0x360   : > { %4302 = vrot.lane.b32.xlu0 %v2263_v43, %s9333_s22  ;;  %4240 = vrot.lane.b32.xlu1 %v15651_v46, %s9331_s20  ;;  %v2830_v43 = vcombine.low %v15657_v41, %v15656_v22  ;;  %v2846_v46 = vcombine.low %v15659_v8, %v15658_v59  ;;  %v3351_v41 = vcombine.high %v3294_v15, %v3326_v25  ;;  %v15666_v59 = vld [vmem:[#allocation60_spill] sm:$0xff] }
 0x361   : > { %v2334_v51 = vcombine.low %v11456_v56, %v11439_v4  ;;  %v3374_v8 = vcombine.low %v15666_v59, %v15665_v21  ;;  %v15669_v25 = vcombine.high %v15642_v16, %v15643_v13  ;;  %v2264_v15 = vcombine.low %v11464_v57, %v11446_v47  ;;  %v15672_v16 = vld [vmem:[#allocation93_spill] sm:$0xff] }
 0x362   : > { %v11436_v49 = vpop.permute.xlu0 %4078  ;;  %v11473_v35 = vrot.slane %v2830_v43, %v9877_v1  ;;  %v11476_v19 = vrot.slane %v2846_v46, %v9877_v1  ;;  %v2775_v43 = vcombine.high %v11295_v17, %v11285_v60  ;;  %v11495_v46 = vrot.slane %v2814_v61, %v9877_v1  ;;  %v15673_v13 = vld [vmem:[#allocation97_spill] sm:$0xff] }
 0x363   : > { %v3950_v59 = vcombine.low %v15673_v13, %v15672_v16  ;;  %v3895_v60 = vcombine.high %v11391_v7, %v11383_v31  ;;  %v3765_v17 = vcombine.high %v11394_v32, %v11386_v11  ;;  %v11513_v61 = vrot.slane %v2334_v51, %v9960_v37  ;;  %v15675_v31 = vld [vmem:[#allocation90_spill] sm:$0xff]  ;;  %v15676_v16 = vld [vmem:[#allocation96_spill] sm:$0xff] }
 0x364   : > { %4306 = vrot.lane.b32.xlu0 %v2807_v40, %s9333_s22  ;;  %4244 = vrot.lane.b32.xlu1 %v15660_v6, %s9331_s20  ;;  %v3406_v40 = vcombine.low %v15664_v28, %v15663_v34  ;;  %v15667_v6 = vld [vmem:[#allocation64_spill] sm:$0xff]  ;;  %v2910_v0 = vcombine.low %v11476_v19, %v11461_v63  ;;  %v15670_v34 = vld [vmem:[#allocation59_spill] sm:$0xff]  ;;  %v15671_v28 = vld [vmem:[#allocation58_spill] sm:$0xff]  ;;  %v3319_v51 = vcombine.high %v11329_v26, %v11318_v39 }
 0x365   : > { %v3390_v29 = vcombine.low %v15668_v9, %v15667_v6  ;;  %v2743_v9 = vcombine.high %v11311_v36, %v11292_v2  ;;  %v15677_v11 = vld [vmem:[#allocation92_spill] sm:$0xff]  ;;  %v2789_v2 = vrot.slane %v2775_v43, %v9960_v37  ;;  %v3287_v26 = vcombine.high %v11339_v12, %v11326_v62 }
 0x366   : > { %v11468_v22 = vpop.permute.xlu0 %4082  ;;  %v11502_v21 = vrot.slane %v3406_v40, %v9877_v1  ;;  %v2878_v40 = vcombine.low %v11495_v46, %v11473_v35  ;;  %v3934_v32 = vcombine.low %v15677_v11, %v15676_v16  ;;  %v2918_v36 = vrot.slane %v2910_v0, %v9960_v37 }
 0x367   : > { %v2757_v0 = vrot.slane %v2743_v9, %v9960_v37  ;;  %v3333_v9 = vrot.slane %v3319_v51, %v9960_v37  ;;  %v3831_v51 = vcombine.high %v11366_v42, %v11352_v58 }
 0x368   : > { %4310 = vrot.lane.b32.xlu0 %v3351_v41, %s9333_s22  ;;  %4248 = vrot.lane.b32.xlu1 %v15669_v25, %s9331_s20  ;;  %v3358_v41 = vcombine.low %v15671_v28, %v15670_v34  ;;  %v11520_v25 = vrot.slane %v3374_v8, %v9877_v1  ;;  %v11523_v34 = vrot.slane %v3390_v29, %v9877_v1  ;;  %v15674_v28 = vld [vmem:[#allocation94_spill] sm:$0xff] }
 0x369   : > { %v3918_v7 = vcombine.low %v15675_v31, %v15674_v28  ;;  %v2398_v8 = vcombine.low %v11513_v61, %v11481_v23  ;;  %v15678_v28 = vld [vmem:[#allocation89_spill] sm:$0xff]  ;;  %v2886_v39 = vrot.slane %v2878_v40, %v9960_v37  ;;  %v11559_v11 = vrot.slane %v3934_v32, %v9877_v1 }
 0x36a   : > { %v11506_v6 = vpop.permute.xlu0 %4086  ;;  %v11538_v29 = vrot.slane %v3358_v41, %v9877_v1  ;;  %v3454_v13 = vcombine.low %v11523_v34, %v11502_v21  ;;  %v2808_v40 = vcombine.low %v2757_v0, %v2789_v2  ;;  %v3845_v20 = vrot.slane %v3831_v51, %v9960_v37 }
 0x36b   : > { %v11556_v16 = vrot.slane %v3918_v7, %v9877_v1  ;;  %v2942_v62 = vcombine.low %v2886_v39, %v2918_v36  ;;  %v3863_v7 = vcombine.high %v11355_v33, %v11346_v10  ;;  %v2265_v51 = vcombine.high %v11464_v57, %v11446_v47 }
 0x36c   : > { %4314 = vrot.lane.b32.xlu0 %v3895_v60, %s9333_s22  ;;  %4252 = vrot.lane.b32.xlu1 %v3765_v17, %s9331_s20  ;;  %v15679_v60 = vld [vmem:[#allocation85_spill] sm:$0xff]  ;;  %v11545_v17 = vrot.slane %v3950_v59, %v9877_v1  ;;  %v3422_v41 = vcombine.low %v11538_v29, %v11520_v25  ;;  %v11561_v59 = vpop.permute.xlu1 %4048  ;;  %v3462_v12 = vrot.slane %v3454_v13, %v9960_v37 }
 0x36d   : > { %v3902_v31 = vcombine.low %v15679_v60, %v15678_v28  ;;  %v3877_v10 = vrot.slane %v3863_v7, %v9960_v37  ;;  %v2367_v47 = vcombine.high %v11434_v24, %v11420_v30 }
 0x36e   : > { %v11547_v43 = vpop.permute.xlu0 %4090  ;;  %v3998_v32 = vcombine.low %v11559_v11, %v11545_v17 }
 0x36f   : > { %v11570_v28 = vrot.slane %v3902_v31, %v9877_v1  ;;  %v3897_v24 = vcombine.high %v3845_v20, %v3877_v10  ;;  %v15728_v1 = vld [vmem:[#allocation54_spill] sm:$0xff] }
 0x370   : > { %4334 = vrot.lane.b32.xlu0 %v2264_v15, %s9334_s23  ;;  %4272 = vrot.lane.b32.xlu1 %v2398_v8, %s9332_s21  ;;  %v3301_v15 = vrot.slane %v3287_v26, %v9960_v37  ;;  %v3430_v8 = vrot.slane %v3422_v41, %v9960_v37  ;;  %v4006_v33 = vrot.slane %v3998_v32, %v9960_v37  ;;  %v11586_v31 = vpop.permute.xlu1 %4052 }
 0x371   : > { %v3966_v13 = vcombine.low %v11570_v28, %v11556_v16  ;;  %15680 = vst [vmem:[#allocation102_spill] sm:$0xff] %v11586_v31  ;;  %v15800_v31 = vld [vmem:[#allocation118_spill] sm:$0xff] }
 0x372   : > { %v11574_v60 = vpop.permute.xlu0 %4110  ;;  %v3352_v26 = vcombine.low %v3301_v15, %v3333_v9  ;;  %v3486_v41 = vcombine.low %v3430_v8, %v3462_v12 }
 0x373   : > { %v3974_v58 = vrot.slane %v3966_v13, %v9960_v37  ;;  %v2399_v13 = vcombine.high %v11513_v61, %v11481_v23  ;;  %v3353_v61 = vcombine.high %v3301_v15, %v3333_v9 }
 0x374   : > { %4338 = vrot.lane.b32.xlu0 %v2808_v40, %s9334_s23  ;;  %4276 = vrot.lane.b32.xlu1 %v2942_v62, %s9332_s21  ;;  %v11594_v42 = vpop.permute.xlu1 %4056  ;;  %v3896_v62 = vcombine.low %v3845_v20, %v3877_v10 }
 0x375   : > { %15681 = vst [vmem:[#allocation91_spill] sm:$0xff] %v11594_v42  ;;  %v4030_v7 = vcombine.low %v3974_v58, %v4006_v33 }
 0x376   : > { %v11588_v18 = vpop.permute.xlu0 %4114 }
 0x378   : > { %4342 = vrot.lane.b32.xlu0 %v3352_v26, %s9334_s23  ;;  %4280 = vrot.lane.b32.xlu1 %v3486_v41, %s9332_s21 }
 0x37a   : > { %v11596_v40 = vpop.permute.xlu0 %4118 }
 0x37c   : > { %4346 = vrot.lane.b32.xlu0 %v3896_v62, %s9334_s23  ;;  %4284 = vrot.lane.b32.xlu1 %v4030_v7, %s9332_s21  ;;  %v2809_v62 = vcombine.high %v2757_v0, %v2789_v2  ;;  %v2943_v7 = vcombine.high %v2886_v39, %v2918_v36  ;;  %v2381_v2 = vrot.slane %v2367_v47, %v9960_v37  ;;  %v15692_v47 = vld [vmem:[#allocation29_spill] sm:$0xff] }
 0x37d   : > { %v2911_v36 = vcombine.high %v11476_v19, %v11461_v63  ;;  %v4031_v39 = vcombine.high %v3974_v58, %v4006_v33  ;;  %v3455_v63 = vcombine.high %v11523_v34, %v11502_v21  ;;  %v3999_v34 = vcombine.high %v11559_v11, %v11545_v17 }
 0x37e   : > { %v11600_v32 = vpop.permute.xlu1 %4060  ;;  %v11602_v53 = vpop.permute.xlu0 %4122 }
 0x37f   : > { %15682 = vst [vmem:[#allocation103_spill] sm:$0xff] %v11600_v32  ;;  %v3469_v21 = vrot.slane %v3455_v63, %v9960_v37 }
 0x380   : > { %4366 = vrot.lane.b32.xlu0 %v2265_v51, %s9335_s24  ;;  %4304 = vrot.lane.b32.xlu1 %v2399_v13, %s9333_s22  ;;  %v3487_v51 = vcombine.high %v3430_v8, %v3462_v12  ;;  %v2335_v13 = vcombine.high %v11456_v56, %v11439_v4  ;;  %v2879_v4 = vcombine.high %v11495_v46, %v11473_v35  ;;  %v15687_v35 = vld [vmem:[#allocation116_spill] sm:$0xff] }
 0x381   : > { %v2925_v56 = vrot.slane %v2911_v36, %v9960_v37  ;;  %v3423_v8 = vcombine.high %v11538_v29, %v11520_v25  ;;  %v15688_v46 = vld [vmem:[#allocation120_spill] sm:$0xff]  ;;  %v3967_v29 = vcombine.high %v11570_v28, %v11556_v16 }
 0x382   : > { %v11610_v26 = vpop.permute.xlu1 %4080  ;;  %v11612_v41 = vpop.permute.xlu0 %4142  ;;  %v2349_v9 = vrot.slane %v2335_v13, %v9960_v37  ;;  %v2893_v15 = vrot.slane %v2879_v4, %v9960_v37  ;;  %v15689_v10 = vcombine.low %v15687_v35, %v15688_v46 }
 0x383   : > { %15683 = vst [vmem:[#allocation99_spill] sm:$0xff] %v11610_v26  ;;  %v3437_v25 = vrot.slane %v3423_v8, %v9960_v37  ;;  %v3981_v36 = vrot.slane %v3967_v29, %v9960_v37  ;;  %v15700_v8 = vld [vmem:[#allocation87_spill] sm:$0xff] }
 0x384   : > { %4370 = vrot.lane.b32.xlu0 %v2809_v62, %s9335_s24  ;;  %4308 = vrot.lane.b32.xlu1 %v2943_v7, %s9333_s22  ;;  %v2400_v20 = vcombine.low %v2349_v9, %v2381_v2  ;;  %v2944_v62 = vcombine.low %v2893_v15, %v2925_v56  ;;  %v15691_v7 = vld [vmem:[#allocation27_spill] sm:$0xff]  ;;  %v2401_v29 = vcombine.high %v2349_v9, %v2381_v2 }
 0x385   : > { %v3488_v13 = vcombine.low %v3437_v25, %v3469_v21 }
 0x386   : > { %v11618_v57 = vpop.permute.xlu1 %4084  ;;  %v11620_v23 = vpop.permute.xlu0 %4146 }
 0x387   : > { %15684 = vst [vmem:[#allocation100_spill] sm:$0xff] %v11618_v57 }
 0x388   : > { %4374 = vrot.lane.b32.xlu0 %v3353_v61, %s9335_s24  ;;  %4312 = vrot.lane.b32.xlu1 %v3487_v51, %s9333_s22  ;;  %v15693_v61 = vcombine.low %v15691_v7, %v15692_v47  ;;  %v4013_v51 = vrot.slane %v3999_v34, %v9960_v37 }
 0x38a   : > { %v11629_v0 = vpop.permute.xlu1 %4088  ;;  %v11631_v30 = vpop.permute.xlu0 %4150  ;;  %v4032_v63 = vcombine.low %v3981_v36, %v4013_v51 }
 0x38b   : > { %15685 = vst [vmem:[#allocation104_spill] sm:$0xff] %v11629_v0 }
 0x38c   : > { %4378 = vrot.lane.b32.xlu0 %v3897_v24, %s9335_s24  ;;  %4316 = vrot.lane.b32.xlu1 %v4031_v39, %s9333_s22  ;;  %v15695_v24 = vld [vmem:[#allocation56_spill] sm:$0xff]  ;;  %v15696_v39 = vld [vmem:[#allocation53_spill] sm:$0xff] }
 0x38d   : > { %v15697_v16 = vcombine.low %v15695_v24, %v15696_v39 }
 0x38e   : > { %v11641_v19 = vpop.permute.xlu1 %4092  ;;  %v11643_v12 = vpop.permute.xlu0 %4154 }
 0x38f   : > { %15686 = vst [vmem:[#allocation101_spill] sm:$0xff] %v11641_v19  ;;  %v15733_v19 = vld [vmem:[#allocation88_spill] sm:$0xff] }
 0x390   : > { %4398 = vrot.lane.b32.xlu0 %v15689_v10, %s9336_s25  ;;  %4336 = vrot.lane.b32.xlu1 %v2400_v20, %s9334_s23  ;;  %v15699_v20 = vld [vmem:[#allocation84_spill] sm:$0xff] }
 0x391   : > { %v15701_v10 = vcombine.low %v15699_v20, %v15700_v8 }
 0x392   : > { %v11656_v33 = vpop.permute.xlu1 %4112  ;;  %v11658_v58 = vpop.permute.xlu0 %4174 }
 0x393   : > { %15690 = vst [vmem:[#allocation105_spill] sm:$0xff] %v11656_v33 }
 0x394   : > { %4402 = vrot.lane.b32.xlu0 %v15693_v61, %s9336_s25  ;;  %4340 = vrot.lane.b32.xlu1 %v2944_v62, %s9334_s23  ;;  %v15703_v61 = vcombine.high %v15687_v35, %v15688_v46  ;;  %v15707_v35 = vcombine.high %v15695_v24, %v15696_v39  ;;  %v4033_v46 = vcombine.high %v3981_v36, %v4013_v51  ;;  %v15712_v24 = vld [vmem:[#allocation131_spill] sm:$0xff]  ;;  %v15715_v51 = vld [vmem:[#allocation121_spill] sm:$0xff] }
 0x396   : > { %v11669_v17 = vpop.permute.xlu1 %4116  ;;  %v11671_v11 = vpop.permute.xlu0 %4178 }
 0x397   : > { %15694 = vst [vmem:[#allocation70_spill] sm:$0xff] %v11669_v17  ;;  %v4681_v17 = vld [vmem:[%s9365_s12 + $0x22] sm:$0xff] }
 0x398   : > { %4406 = vrot.lane.b32.xlu0 %v15697_v16, %s9336_s25  ;;  %4344 = vrot.lane.b32.xlu1 %v3488_v13, %s9334_s23 }
 0x39a   : > { %v11679_v28 = vpop.permute.xlu1 %4120  ;;  %v11681_v4 = vpop.permute.xlu0 %4182 }
 0x39b   : > { %15698 = vst [vmem:[#allocation71_spill] sm:$0xff] %v11679_v28  ;;  %v15734_v28 = vld [vmem:[#allocation83_spill] sm:$0xff] }
 0x39c   : > { %4410 = vrot.lane.b32.xlu0 %v15701_v10, %s9336_s25  ;;  %4348 = vrot.lane.b32.xlu1 %v4032_v63, %s9334_s23  ;;  %v2945_v10 = vcombine.high %v2893_v15, %v2925_v56  ;;  %v15705_v63 = vcombine.high %v15691_v7, %v15692_v47  ;;  %v15709_v7 = vcombine.high %v15699_v20, %v15700_v8  ;;  %v15711_v47 = vld [vmem:[#allocation15_spill] sm:$0xff]  ;;  %v15718_v20 = vld [vmem:[#allocation40_spill] sm:$0xff] }
 0x39d   : > { %v15713_v39 = vcombine.low %v15711_v47, %v15712_v24  ;;  %v15719_v8 = vld [vmem:[#allocation39_spill] sm:$0xff]  ;;  %v15735_v0 = vcombine.low %v15733_v19, %v15734_v28 }
 0x39e   : > { %v11688_v34 = vpop.permute.xlu1 %4124  ;;  %v11690_v62 = vpop.permute.xlu0 %4186 }
 0x39f   : > { %15702 = vst [vmem:[#allocation114_spill] sm:$0xff] %v11688_v34 }
 0x3a0   : > { %4368 = vrot.lane.b32.xlu1 %v2401_v29, %s9335_s24  ;;  %4430 = vrot.lane.b32.xlu0 %v15703_v61, %s9337_s26  ;;  %v3489_v29 = vcombine.high %v3437_v25, %v3469_v21  ;;  %v15714_v61 = vld [vmem:[#allocation119_spill] sm:$0xff] }
 0x3a1   : > { %v15716_v36 = vcombine.low %v15714_v61, %v15715_v51 }
 0x3a2   : > { %v11697_v13 = vpop.permute.xlu1 %4144  ;;  %v11699_v16 = vpop.permute.xlu0 %4206 }
 0x3a3   : > { %15704 = vst [vmem:[#allocation113_spill] sm:$0xff] %v11697_v13 }
 0x3a4   : > { %4372 = vrot.lane.b32.xlu1 %v2945_v10, %s9335_s24  ;;  %4434 = vrot.lane.b32.xlu0 %v15705_v63, %s9337_s26 }
 0x3a6   : > { %v11706_v2 = vpop.permute.xlu1 %4148  ;;  %v11708_v9 = vpop.permute.xlu0 %4210 }
 0x3a7   : > { %15706 = vst [vmem:[#allocation110_spill] sm:$0xff] %v11706_v2 }
 0x3a8   : > { %4376 = vrot.lane.b32.xlu1 %v3489_v29, %s9335_s24  ;;  %4438 = vrot.lane.b32.xlu0 %v15707_v35, %s9337_s26  ;;  %v15720_v29 = vcombine.low %v15718_v20, %v15719_v8  ;;  %v15721_v35 = vld [vmem:[#allocation26_spill] sm:$0xff] }
 0x3aa   : > { %v11715_v56 = vpop.permute.xlu1 %4152  ;;  %v11717_v15 = vpop.permute.xlu0 %4214 }
 0x3ab   : > { %15708 = vst [vmem:[#allocation109_spill] sm:$0xff] %v11715_v56 }
 0x3ac   : > { %4380 = vrot.lane.b32.xlu1 %v4033_v46, %s9335_s24  ;;  %4442 = vrot.lane.b32.xlu0 %v15709_v7, %s9337_s26  ;;  %v15722_v46 = vld [vmem:[#allocation30_spill] sm:$0xff] }
 0x3ad   : > { %v15723_v7 = vcombine.low %v15721_v35, %v15722_v46 }
 0x3ae   : > { %v11724_v21 = vpop.permute.xlu1 %4156  ;;  %v11726_v25 = vpop.permute.xlu0 %4218 }
 0x3af   : > { %15710 = vst [vmem:[#allocation112_spill] sm:$0xff] %v11724_v21  ;;  %v15729_v21 = vld [vmem:[#allocation57_spill] sm:$0xff] }
 0x3b0   : > { %4400 = vrot.lane.b32.xlu1 %v15713_v39, %s9336_s25  ;;  %4462 = vrot.lane.b32.xlu0 %v15716_v36, %s9338_s27  ;;  %v15725_v36 = vld [vmem:[#allocation72_spill] sm:$0xff]  ;;  %v15730_v34 = vcombine.low %v15728_v1, %v15729_v21 }
 0x3b1   : > { %v15727_v37 = vcombine.low %v15725_v36, %v15726_v55  ;;  %v15743_v42 = vcombine.high %v15725_v36, %v15726_v55  ;;  %v15746_v55 = vcombine.high %v11101_v44, %v11091_v54 }
 0x3b2   : > { %v11736_v10 = vpop.permute.xlu1 %4176  ;;  %v11738_v63 = vpop.permute.xlu0 %4238 }
 0x3b3   : > { %15717 = vst [vmem:[#allocation111_spill] sm:$0xff] %v11736_v10 }
 0x3b4   : > { %4404 = vrot.lane.b32.xlu1 %v15720_v29, %s9336_s25  ;;  %4466 = vrot.lane.b32.xlu0 %v15723_v7, %s9338_s27  ;;  %v15732_v7 = vcombine.low %v11101_v44, %v11091_v54  ;;  %v15751_v54 = vld [vmem:[#allocation132_spill] sm:$0xff] }
 0x3b6   : > { %v11748_v39 = vpop.permute.xlu1 %4180  ;;  %v11750_v52 = vpop.permute.xlu0 %4242 }
 0x3b7   : > { %15724 = vst [vmem:[#allocation107_spill] sm:$0xff] %v11748_v39 }
 0x3b8   : > { %4408 = vrot.lane.b32.xlu1 %v15727_v37, %s9336_s25  ;;  %4470 = vrot.lane.b32.xlu0 %v15730_v34, %s9338_s27  ;;  %v15737_v34 = vcombine.high %v15711_v47, %v15712_v24  ;;  %v15741_v47 = vcombine.high %v15721_v35, %v15722_v46  ;;  %v4666_v46 = vld [vmem:[%s9365_s12 + $0x31] sm:$0xff] }
 0x3b9   : > { %v4674_v36 = vmul.f32 0.75, %v4666_v46 }
 0x3ba   : > { %v11760_v29 = vpop.permute.xlu1 %4184  ;;  %v11762_v56 = vpop.permute.xlu0 %4246 }
 0x3bb   : > { %15731 = vst [vmem:[#allocation106_spill] sm:$0xff] %v11760_v29  ;;  %v4662_v29 = vld [vmem:[%s9365_s12 + $0x1] sm:$0xff] }
 0x3bc   : > { %4412 = vrot.lane.b32.xlu1 %v15732_v7, %s9336_s25  ;;  %4474 = vrot.lane.b32.xlu0 %v15735_v0, %s9338_s27  ;;  %v15738_v7 = vcombine.high %v15714_v61, %v15715_v51  ;;  %v4670_v24 = vmul.f32 0.75, %v4662_v29  ;;  %v4686_v61 = vmul.f32 0.25, %v4678_v38  ;;  %v4664_v51 = vld [vmem:[%s9365_s12 + $0x19] sm:$0xff] }
 0x3bd   : > { %v4672_v38 = vmul.f32 0.75, %v4664_v51  ;;  %v4682_v29 = vld [vmem:[%s9365_s12 + $0x32] sm:$0xff]  ;;  %v4684_v51 = vld [vmem:[%s9365_s12 + $0x4a] sm:$0xff] }
 0x3be   : > { %v11772_v37 = vpop.permute.xlu1 %4188  ;;  %v11774_v50 = vpop.permute.xlu0 %4250 }
 0x3bf   : > { %15736 = vst [vmem:[#allocation24_spill] sm:$0xff] %v11772_v37  ;;  %v15740_v37 = vcombine.high %v15718_v20, %v15719_v8  ;;  %v15744_v20 = vcombine.high %v15728_v1, %v15729_v21  ;;  %v4694_v8 = vadd.f32 %v4686_v61, %v4670_v24  ;;  %v15747_v1 = vcombine.high %v15733_v19, %v15734_v28  ;;  %v4668_v61 = vld [vmem:[%s9365_s12 + $0x49] sm:$0xff] }
 0x3c0   : > { %4432 = vrot.lane.b32.xlu1 %v15737_v34, %s9337_s26  ;;  %4494 = vrot.lane.b32.xlu0 %v15738_v7, %s9339_s28  ;;  %v4680_v34 = vld [vmem:[%s9365_s12 + $0x1a] sm:$0xff]  ;;  %v4690_v24 = vmul.f32 0.25, %v4682_v29 }
 0x3c1   : > { %v4688_v35 = vmul.f32 0.25, %v4680_v34 }
 0x3c2   : > { %v11786_v32 = vpop.permute.xlu1 %4208  ;;  %v11788_v0 = vpop.permute.xlu0 %4270  ;;  %v4698_v28 = vadd.f32 %v4690_v24, %v4674_v36  ;;  %v15760_v24 = vld [vmem:[#allocation135_spill] sm:$0xff] }
 0x3c3   : > { %15739 = vst [vmem:[#allocation23_spill] sm:$0xff] %v11786_v32  ;;  %v4696_v21 = vadd.f32 %v4688_v35, %v4672_v38  ;;  %v4676_v38 = vmul.f32 0.75, %v4668_v61  ;;  %v4692_v35 = vmul.f32 0.25, %v4684_v51  ;;  %v15761_v61 = vld [vmem:[#allocation134_spill] sm:$0xff] }
 0x3c4   : > { %4436 = vrot.lane.b32.xlu1 %v15740_v37, %s9337_s26  ;;  %4498 = vrot.lane.b32.xlu0 %v15741_v47, %s9339_s28  ;;  %v15762_v51 = vcombine.low %v15760_v24, %v15761_v61 }
 0x3c5   : > { %v11840_v19 = vmul.f32 0.75, %v4696_v21 }
 0x3c6   : > { %v11800_v7 = vpop.permute.xlu1 %4212  ;;  %v11802_v39 = vpop.permute.xlu0 %4274 }
 0x3c7   : > { %15742 = vst [vmem:[#allocation20_spill] sm:$0xff] %v11800_v7  ;;  %15753 = vst [vmem:[#allocation18_spill] sm:$0xff] %v11840_v19 }
 0x3c8   : > { %4440 = vrot.lane.b32.xlu1 %v15743_v42, %s9337_s26  ;;  %4502 = vrot.lane.b32.xlu0 %v15744_v20, %s9339_s28  ;;  %v11826_v42 = vmul.f32 0.75, %v4694_v8 }
 0x3ca   : > { %v11814_v37 = vpop.permute.xlu1 %4216  ;;  %v11816_v47 = vpop.permute.xlu0 %4278  ;;  %15748 = vst [vmem:[#allocation22_spill] sm:$0xff] %v11826_v42 }
 0x3cb   : > { %15745 = vst [vmem:[#allocation19_spill] sm:$0xff] %v11814_v37  ;;  %v15750_v37 = vld [vmem:[#allocation129_spill] sm:$0xff] }
 0x3cc   : > { %4444 = vrot.lane.b32.xlu1 %v15746_v55, %s9337_s26  ;;  %4506 = vrot.lane.b32.xlu0 %v15747_v1, %s9339_s28  ;;  %v15752_v44 = vcombine.low %v15750_v37, %v15751_v54  ;;  %v15755_v55 = vld [vmem:[#allocation133_spill] sm:$0xff]  ;;  %v15756_v1 = vld [vmem:[#allocation43_spill] sm:$0xff] }
 0x3ce   : > { %v11830_v34 = vpop.permute.xlu1 %4220  ;;  %v11832_v20 = vpop.permute.xlu0 %4282 }
 0x3cf   : > { %15749 = vst [vmem:[#allocation21_spill] sm:$0xff] %v11830_v34  ;;  %v15757_v34 = vcombine.low %v15755_v55, %v15756_v1 }
 0x3d0   : > { %4464 = vrot.lane.b32.xlu1 %v15752_v44, %s9338_s27  ;;  %4726 = vrot.lane.b32.xlu0 %v11826_v42, %s9322_s13  ;;  %v11852_v44 = vmul.f32 0.75, %v4698_v28  ;;  %v4700_v42 = vadd.f32 %v4692_v35, %v4676_v38  ;;  %v15765_v38 = vcombine.low %v11104_v14, %v11094_v48  ;;  %v11876_v35 = vmul.f32 0.25, %v4694_v8 }
 0x3d2   : > { %v11842_v46 = vpop.permute.xlu1 %4240  ;;  %v11844_v29 = vpop.permute.xlu0 %4302  ;;  %15758 = vst [vmem:[#allocation51_spill] sm:$0xff] %v11852_v44 }
 0x3d3   : > { %15754 = vst [vmem:[#allocation17_spill] sm:$0xff] %v11842_v46 }
 0x3d4   : > { %4468 = vrot.lane.b32.xlu1 %v15757_v34, %s9338_s27  ;;  %4730 = vrot.lane.b32.xlu0 %v11840_v19, %s9322_s13  ;;  %v11864_v34 = vmul.f32 0.75, %v4700_v42 }
 0x3d6   : > { %v11854_v7 = vpop.permute.xlu1 %4244  ;;  %v11856_v36 = vpop.permute.xlu0 %4306  ;;  %15763 = vst [vmem:[#allocation47_spill] sm:$0xff] %v11864_v34 }
 0x3d7   : > { %15759 = vst [vmem:[#allocation50_spill] sm:$0xff] %v11854_v7  ;;  %v4663_v7 = vld [vmem:[%s9365_s12 + $0x9] sm:$0xff] }
 0x3d8   : > { %4472 = vrot.lane.b32.xlu1 %v15762_v51, %s9338_s27  ;;  %4734 = vrot.lane.b32.xlu0 %v11852_v44, %s9322_s13 }
 0x3da   : > { %v11866_v19 = vpop.permute.xlu1 %4248  ;;  %v11868_v2 = vpop.permute.xlu0 %4310 }
 0x3db   : > { %15764 = vst [vmem:[#allocation46_spill] sm:$0xff] %v11866_v19  ;;  %v15767_v19 = vcombine.high %v15750_v37, %v15751_v54  ;;  %v4671_v37 = vmul.f32 0.75, %v4663_v7 }
 0x3dc   : > { %4476 = vrot.lane.b32.xlu1 %v15765_v38, %s9338_s27  ;;  %4738 = vrot.lane.b32.xlu0 %v11864_v34, %s9322_s13  ;;  %v11888_v38 = vmul.f32 0.25, %v4696_v21  ;;  %v4679_v34 = vld [vmem:[%s9365_s12 + $0xa] sm:$0xff]  ;;  %v11902_v21 = vmul.f32 0.25, %v4698_v28  ;;  %v11916_v28 = vmul.f32 0.25, %v4700_v42 }
 0x3dd   : > { %v4687_v54 = vmul.f32 0.25, %v4679_v34  ;;  %v4689_v34 = vmul.f32 0.25, %v4681_v17  ;;  %v4669_v42 = vld [vmem:[%s9365_s12 + $0x51] sm:$0xff] }
 0x3de   : > { %v11878_v51 = vpop.permute.xlu1 %4252  ;;  %v11880_v44 = vpop.permute.xlu0 %4314  ;;  %15768 = vst [vmem:[#allocation49_spill] sm:$0xff] %v11888_v38  ;;  %15771 = vst [vmem:[#allocation44_spill] sm:$0xff] %v11902_v21 }
 0x3df   : > { %15766 = vst [vmem:[#allocation48_spill] sm:$0xff] %v11878_v51  ;;  %v15770_v51 = vcombine.high %v15755_v55, %v15756_v1  ;;  %v15773_v55 = vcombine.high %v15760_v24, %v15761_v61  ;;  %v4695_v1 = vadd.f32 %v4687_v54, %v4671_v37  ;;  %15774 = vst [vmem:[#allocation79_spill] sm:$0xff] %v11916_v28 }
 0x3e0   : > { %4496 = vrot.lane.b32.xlu1 %v15767_v19, %s9339_s28  ;;  %4766 = vrot.lane.b32.xlu0 %v11876_v35, %s9322_s13  ;;  %v4665_v19 = vld [vmem:[%s9365_s12 + $0x21] sm:$0xff]  ;;  %v15776_v24 = vcombine.high %v11104_v14, %v11094_v48  ;;  %v4677_v14 = vmul.f32 0.75, %v4669_v42 }
 0x3e1   : > { %v4673_v7 = vmul.f32 0.75, %v4665_v19  ;;  %v11928_v61 = vmul.f32 0.75, %v4695_v1  ;;  %v4685_v19 = vld [vmem:[%s9365_s12 + $0x52] sm:$0xff] }
 0x3e2   : > { %v11892_v46 = vpop.permute.xlu1 %4272  ;;  %v11894_v8 = vpop.permute.xlu0 %4334 }
 0x3e3   : > { %15769 = vst [vmem:[#allocation45_spill] sm:$0xff] %v11892_v46  ;;  %15777 = vst [vmem:[#allocation76_spill] sm:$0xff] %v11928_v61  ;;  %v4697_v37 = vadd.f32 %v4689_v34, %v4673_v7 }
 0x3e4   : > { %4500 = vrot.lane.b32.xlu1 %v15770_v51, %s9339_s28  ;;  %4770 = vrot.lane.b32.xlu0 %v11888_v38, %s9322_s13  ;;  %v4667_v51 = vld [vmem:[%s9365_s12 + $0x39] sm:$0xff] }
 0x3e5   : > { %v4683_v38 = vld [vmem:[%s9365_s12 + $0x3a] sm:$0xff]  ;;  %v4675_v17 = vmul.f32 0.75, %v4667_v51 }
 0x3e6   : > { %v11906_v32 = vpop.permute.xlu1 %4276  ;;  %v11908_v46 = vpop.permute.xlu0 %4338  ;;  %v4691_v54 = vmul.f32 0.25, %v4683_v38 }
 0x3e7   : > { %15772 = vst [vmem:[#allocation82_spill] sm:$0xff] %v11906_v32 }
 0x3e8   : > { %4504 = vrot.lane.b32.xlu1 %v15773_v55, %s9339_s28  ;;  %4774 = vrot.lane.b32.xlu0 %v11902_v21, %s9322_s13  ;;  %v4699_v48 = vadd.f32 %v4691_v54, %v4675_v17 }
 0x3ea   : > { %v11920_v32 = vpop.permute.xlu1 %4280  ;;  %v11922_v57 = vpop.permute.xlu0 %4342  ;;  %v11948_v34 = vmul.f32 0.75, %v4699_v48 }
 0x3eb   : > { %15775 = vst [vmem:[#allocation80_spill] sm:$0xff] %v11920_v32  ;;  %v11940_v32 = vmul.f32 0.75, %v4697_v37 }
 0x3ec   : > { %4508 = vrot.lane.b32.xlu1 %v15776_v24, %s9339_s28  ;;  %4778 = vrot.lane.b32.xlu0 %v11916_v28, %s9322_s13  ;;  %v4693_v24 = vmul.f32 0.25, %v4685_v19  ;;  %15781 = vst [vmem:[#allocation74_spill] sm:$0xff] %v11948_v34  ;;  %v11964_v19 = vmul.f32 0.25, %v4695_v1 }
 0x3ed   : > { %15779 = vst [vmem:[#allocation81_spill] sm:$0xff] %v11940_v32 }
 0x3ee   : > { %v11934_v55 = vpop.permute.xlu1 %4284  ;;  %v11936_v21 = vpop.permute.xlu0 %4346  ;;  %v4701_v51 = vadd.f32 %v4693_v24, %v4677_v14  ;;  %15785 = vst [vmem:[#allocation41_spill] sm:$0xff] %v11964_v19  ;;  %v11972_v24 = vmul.f32 0.25, %v4697_v37 }
 0x3ef   : > { %15778 = vst [vmem:[#allocation77_spill] sm:$0xff] %v11934_v55 }
 0x3f0   : > { %4728 = vrot.lane.b32.xlu1 %v11928_v61, %s9322_s13  ;;  %v11956_v17 = vmul.f32 0.75, %v4701_v51  ;;  %15787 = vst [vmem:[#allocation68_spill] sm:$0xff] %v11972_v24 }
 0x3f2   : > { %v11942_v7 = vpop.permute.xlu1 %4304  ;;  %v11944_v38 = vpop.permute.xlu0 %4366  ;;  %15783 = vst [vmem:[#allocation13_spill] sm:$0xff] %v11956_v17 }
 0x3f3   : > { %15780 = vst [vmem:[#allocation78_spill] sm:$0xff] %v11942_v7 }
 0x3f4   : > { %4732 = vrot.lane.b32.xlu1 %v11940_v32, %s9322_s13 }
 0x3f6   : > { %v11950_v28 = vpop.permute.xlu1 %4308  ;;  %v11952_v55 = vpop.permute.xlu0 %4370 }
 0x3f7   : > { %15782 = vst [vmem:[#allocation130_spill] sm:$0xff] %v11950_v28 }
 0x3f8   : > { %4736 = vrot.lane.b32.xlu1 %v11948_v34, %s9322_s13 }
 0x3fa   : > { %v11958_v54 = vpop.permute.xlu1 %4312  ;;  %v11960_v42 = vpop.permute.xlu0 %4374 }
 0x3fb   : > { %15784 = vst [vmem:[#allocation42_spill] sm:$0xff] %v11958_v54  ;;  %v11980_v54 = vmul.f32 0.25, %v4699_v48 }
 0x3fc   : > { %4740 = vrot.lane.b32.xlu1 %v11956_v17, %s9322_s13 }
 0x3fd   : > { %15789 = vst [vmem:[#allocation128_spill] sm:$0xff] %v11980_v54 }
 0x3fe   : > { %v11966_v32 = vpop.permute.xlu1 %4316  ;;  %v11968_v14 = vpop.permute.xlu0 %4378 }
 0x3ff   : > { %15786 = vst [vmem:[#allocation69_spill] sm:$0xff] %v11966_v32  ;;  %v11988_v32 = vmul.f32 0.25, %v4701_v51 }
 0x400   : > { %4768 = vrot.lane.b32.xlu1 %v11964_v19, %s9322_s13 }
 0x401   : > { %15791 = vst [vmem:[#allocation126_spill] sm:$0xff] %v11988_v32 }
 0x402   : > { %v11974_v34 = vpop.permute.xlu1 %4336  ;;  %v11976_v61 = vpop.permute.xlu0 %4398 }
 0x403   : > { %15788 = vst [vmem:[#allocation14_spill] sm:$0xff] %v11974_v34 }
 0x404   : > { %4772 = vrot.lane.b32.xlu1 %v11972_v24, %s9322_s13 }
 0x406   : > { %v11982_v1 = vpop.permute.xlu1 %4340  ;;  %v11984_v17 = vpop.permute.xlu0 %4402 }
 0x407   : > { %15790 = vst [vmem:[#allocation127_spill] sm:$0xff] %v11982_v1 }
 0x408   : > { %4776 = vrot.lane.b32.xlu1 %v11980_v54, %s9322_s13 }
 0x40a   : > { %v11990_v37 = vpop.permute.xlu1 %4344  ;;  %v11992_v19 = vpop.permute.xlu0 %4406 }
 0x40b   : > { %15792 = vst [vmem:[#allocation125_spill] sm:$0xff] %v11990_v37 }
 0x40c   : > { %4780 = vrot.lane.b32.xlu1 %v11988_v32, %s9322_s13 }
 0x40e   : > { %v11996_v28 = vpop.permute.xlu1 %4348  ;;  %v11998_v48 = vpop.permute.xlu0 %4410 }
 0x40f   : > { %15793 = vst [vmem:[#allocation124_spill] sm:$0xff] %v11996_v28 }
 0x412   : > { %v12000_v24 = vpop.permute.xlu1 %4368  ;;  %v4431_v1 = vpop.permute.xlu0 %4430 }
 0x413   : > { %15794 = vst [vmem:[#allocation123_spill] sm:$0xff] %v12000_v24  ;;  %v15799_v24 = vld [vmem:[#allocation117_spill] sm:$0xff] }
 0x416   : > { %v12002_v34 = vpop.permute.xlu1 %4372  ;;  %v12004_v7 = vpop.permute.xlu0 %4434 }
 0x417   : > { %15795 = vst [vmem:[#allocation122_spill] sm:$0xff] %v12002_v34  ;;  %v15801_v34 = vcombine.low %v15799_v24, %v15800_v31  ;;  %v15802_v31 = vld [vmem:[#allocation28_spill] sm:$0xff] }
 0x419   : > { %v4519_v13 = vsel %vm4518_vm1, %v15801_v34, %v11357_v45  ;;  %v15803_v45 = vld [vmem:[#allocation25_spill] sm:$0xff] }
 0x41a   : > { %v12006_v51 = vpop.permute.xlu1 %4376  ;;  %v12008_v54 = vpop.permute.xlu0 %4438  ;;  %v15804_v34 = vcombine.low %v15802_v31, %v15803_v45 }
 0x41b   : > { %15796 = vst [vmem:[#allocation36_spill] sm:$0xff] %v12006_v51  ;;  %v4528_v51 = vsel %vm4527_vm2, %v4519_v13, %v11436_v49 }
 0x41c   : > { %v4521_v24 = vsel %vm4518_vm1, %v15804_v34, %v11388_v5  ;;  %v15809_v34 = vld [vmem:[#allocation75_spill] sm:$0xff] }
 0x41d   : > { %v4530_v13 = vsel %vm4527_vm2, %v4521_v24, %v11468_v22 }
 0x41e   : > { %v12010_v37 = vpop.permute.xlu1 %4380  ;;  %v12012_v10 = vpop.permute.xlu0 %4442 }
 0x41f   : > { %15797 = vst [vmem:[#allocation35_spill] sm:$0xff] %v12010_v37 }
 0x422   : > { %v12014_v32 = vpop.permute.xlu1 %4400  ;;  %v4463_v28 = vpop.permute.xlu0 %4462 }
 0x423   : > { %15798 = vst [vmem:[#allocation32_spill] sm:$0xff] %v12014_v32  ;;  %v4537_v32 = vsel %vm4536_vm3, %v4528_v51, %v11574_v60 }
 0x424   : > { %v4546_v26 = vsel %vm4545_vm4, %v4537_v32, %v11612_v41  ;;  %v4539_v41 = vsel %vm4536_vm3, %v4530_v13, %v11588_v18  ;;  %v15808_v18 = vld [vmem:[#allocation86_spill] sm:$0xff] }
 0x425   : > { %v4555_v49 = vsel %vm4554_vm5, %v4546_v26, %v11658_v58  ;;  %v15805_v26 = vld [vmem:[#allocation55_spill] sm:$0xff]  ;;  %v15806_v58 = vld [vmem:[#allocation52_spill] sm:$0xff]  ;;  %v15810_v24 = vcombine.low %v15808_v18, %v15809_v34 }
 0x426   : > { %v12023_v37 = vpop.permute.xlu1 %4404  ;;  %v12025_v33 = vpop.permute.xlu0 %4466  ;;  %v4564_v60 = vsel %vm4563_vm6, %v4555_v49, %v11699_v16  ;;  %v15807_v22 = vcombine.low %v15805_v26, %v15806_v58  ;;  %v4548_v16 = vsel %vm4545_vm4, %v4539_v41, %v11620_v23 }
 0x427   : > { %v4573_v5 = vsel %vm4572_vm7, %v4564_v60, %v11738_v63  ;;  %v4525_v63 = vsel %vm4518_vm1, %v15810_v24, %v11413_v27  ;;  %v4557_v49 = vsel %vm4554_vm5, %v4548_v16, %v11671_v11 }
 0x428   : > { %v4523_v31 = vsel %vm4518_vm1, %v15807_v22, %v11401_v3  ;;  %v4582_v45 = vsel %vm4581_vm8, %v4573_v5, %v11788_v0  ;;  %v4566_v23 = vsel %vm4563_vm6, %v4557_v49, %v11708_v9 }
 0x429   : > { %v4591_v13 = vsel %vm4590_vm9, %v4582_v45, %v11844_v29  ;;  %v4532_v3 = vsel %vm4527_vm2, %v4523_v31, %v11506_v6  ;;  %v4575_v29 = vsel %vm4572_vm7, %v4566_v23, %v11750_v52  ;;  %v15814_v23 = vld [vmem:[#allocation4_spill] sm:$0xff] }
 0x42a   : > { %v12042_v51 = vpop.permute.xlu1 %4408  ;;  %v12044_v32 = vpop.permute.xlu0 %4470  ;;  %v4600_v0 = vsel %vm4599_vm10, %v4591_v13, %v11894_v8  ;;  %v4541_v11 = vsel %vm4536_vm3, %v4532_v3, %v11596_v40  ;;  %v4584_v8 = vsel %vm4581_vm8, %v4575_v29, %v11802_v39  ;;  %v15812_v13 = vld [vmem:[#allocation2_spill] sm:$0xff] }
 0x42b   : > { %v4609_v6 = vsel %vm4608_vm11, %v4600_v0, %v11944_v38  ;;  %v4550_v9 = vsel %vm4545_vm4, %v4541_v11, %v11631_v30  ;;  %v4593_v52 = vsel %vm4590_vm9, %v4584_v8, %v11856_v36  ;;  %v4534_v30 = vsel %vm4527_vm2, %v4525_v63, %v11547_v43 }
 0x42c   : > { %v4618_v41 = vsel %vm15139_vm12, %v4609_v6, %v11976_v61  ;;  %v4559_v40 = vsel %vm4554_vm5, %v4550_v9, %v11681_v4  ;;  %v4602_v4 = vsel %vm4599_vm10, %v4593_v52, %v11908_v46  ;;  %v15816_v6 = vld [vmem:[#allocation105_spill] sm:$0xff]  ;;  %v15820_v52 = vld [vmem:[#allocation38_spill] sm:$0xff] }
 0x42d   : > { %v4627_v5 = vsel %vm15126_vm13, %v4618_v41, %v4431_v1  ;;  %v4568_v39 = vsel %vm4563_vm6, %v4559_v40, %v11717_v15  ;;  %v4543_v1 = vsel %vm4536_vm3, %v4534_v30, %v11602_v53  ;;  %v4611_v43 = vsel %vm4608_vm11, %v4602_v4, %v11952_v55  ;;  %v15818_v41 = vld [vmem:[#allocation102_spill] sm:$0xff]  ;;  %v15819_v40 = vld [vmem:[#allocation37_spill] sm:$0xff]  ;;  %v15822_v30 = vld [vmem:[#allocation111_spill] sm:$0xff] }
 0x42e   : > { %v12074_v60 = vpop.permute.xlu1 %4412  ;;  %v4475_v27 = vpop.permute.xlu0 %4474  ;;  %v4636_v36 = vsel %vm15125_vm14, %v4627_v5, %v4463_v28  ;;  %v4577_v26 = vsel %vm4572_vm7, %v4568_v39, %v11762_v56  ;;  %v4552_v15 = vsel %vm4545_vm4, %v4543_v1, %v11643_v12  ;;  %v4620_v28 = vsel %vm15139_vm12, %v4611_v43, %v11984_v17  ;;  %v15823_v4 = vld [vmem:[#allocation5_spill] sm:$0xff] }
 0x42f   : > { %v4586_v46 = vsel %vm4581_vm8, %v4577_v26, %v11816_v47  ;;  %v4561_v53 = vsel %vm4554_vm5, %v4552_v15, %v11690_v62  ;;  %v4629_v55 = vsel %vm15126_vm13, %v4620_v28, %v12004_v7  ;;  %v15821_v5 = vcombine.low %v15819_v40, %v15820_v52  ;;  %v15825_v26 = vld [vmem:[#allocation23_spill] sm:$0xff]  ;;  %v15826_v15 = vld [vmem:[#allocation70_spill] sm:$0xff]  ;;  %v15827_v28 = vld [vmem:[#allocation17_spill] sm:$0xff] }
 0x430   : > { %v4595_v56 = vsel %vm4590_vm9, %v4586_v46, %v11868_v2  ;;  %v4570_v12 = vsel %vm4563_vm6, %v4561_v53, %v11726_v25  ;;  %v4638_v17 = vsel %vm15125_vm14, %v4629_v55, %v12025_v33  ;;  %v15849_v52 = vld [vmem:[#allocation82_spill] sm:$0xff] }
 0x431   : > { %v4604_v47 = vsel %vm4599_vm10, %v4595_v56, %v11922_v57  ;;  %v4579_v62 = vsel %vm4572_vm7, %v4570_v12, %v11774_v50  ;;  %v15828_v56 = vld [vmem:[#allocation110_spill] sm:$0xff]  ;;  %v15829_v12 = vld [vmem:[#allocation45_spill] sm:$0xff] }
 0x432   : > { %v12106_v61 = vpop.permute.xlu1 %4432  ;;  %v4495_v38 = vpop.permute.xlu0 %4494  ;;  %v4613_v2 = vsel %vm4608_vm11, %v4604_v47, %v11960_v42  ;;  %v4588_v25 = vsel %vm4581_vm8, %v4579_v62, %v11832_v20  ;;  %v15832_v62 = vld [vmem:[#allocation67_spill] sm:$0xff] }
 0x433   : > { %v4645_v58 = vsel %vm15124_vm15, %v4636_v36, %v4495_v38  ;;  %v4622_v57 = vsel %vm15139_vm12, %v4613_v2, %v11992_v19  ;;  %v4597_v33 = vsel %vm4590_vm9, %v4588_v25, %v11880_v44  ;;  %v15824_v38 = vld [vmem:[#allocation100_spill] sm:$0xff]  ;;  %v15834_v25 = vld [vmem:[#allocation107_spill] sm:$0xff] }
 0x434   : > { %4654 = vst.msk [vmem:[%s12097_s3] sm:$0xff] %vm4653_vm0, %v4645_v58  ;;  %v4631_v50 = vsel %vm15126_vm13, %v4622_v57, %v12008_v54  ;;  %v4606_v42 = vsel %vm4599_vm10, %v4597_v33, %v11936_v21  ;;  %v15835_v33 = vld [vmem:[#allocation78_spill] sm:$0xff] }
 0x435   : > { %v4640_v16 = vsel %vm15125_vm14, %v4631_v50, %v12044_v32  ;;  %v4615_v19 = vsel %vm4608_vm11, %v4606_v42, %v11968_v14  ;;  %v15836_v42 = vld [vmem:[#allocation6_spill] sm:$0xff] }
 0x436   : > { %v12135_v22 = vpop.permute.xlu1 %4436  ;;  %v4499_v31 = vpop.permute.xlu0 %4498  ;;  %v4624_v44 = vsel %vm15139_vm12, %v4615_v19, %v11998_v48  ;;  %v15811_v48 = vld [vmem:[#allocation16_spill] sm:$0xff]  ;;  %v15838_v19 = vld [vmem:[#allocation95_spill] sm:$0xff] }
 0x437   : > { %v4647_v7 = vsel %vm15124_vm15, %v4638_v17, %v4499_v31  ;;  %v4633_v54 = vsel %vm15126_vm13, %v4624_v44, %v12012_v10  ;;  %v15813_v3 = vcombine.low %v15811_v48, %v15812_v13  ;;  %v15830_v17 = vld [vmem:[#allocation91_spill] sm:$0xff]  ;;  %v15831_v31 = vld [vmem:[#allocation66_spill] sm:$0xff] }
 0x438   : > { %4656 = vst.msk [vmem:[%s12097_s3 + $0x10] sm:$0xff] %vm4653_vm0, %v4647_v7  ;;  %v4642_v21 = vsel %vm15125_vm14, %v4633_v54, %v4475_v27  ;;  %v15815_v27 = vld [vmem:[#allocation99_spill] sm:$0xff]  ;;  %v15833_v2 = vcombine.low %v15831_v31, %v15832_v62  ;;  %v15843_v48 = vld [vmem:[#allocation14_spill] sm:$0xff] }
 0x439   : > { %v4520_v10 = vsel %vm4518_vm1, %v15813_v3, %v11561_v59  ;;  %v4522_v59 = vsel %vm4518_vm1, %v15821_v5, %v15818_v41  ;;  %v15848_v41 = vld [vmem:[#allocation109_spill] sm:$0xff]  ;;  %v15857_v31 = vld [vmem:[#allocation46_spill] sm:$0xff] }
 0x43a   : > { %v12156_v45 = vpop.permute.xlu1 %4440  ;;  %v4503_v20 = vpop.permute.xlu0 %4502  ;;  %v4529_v11 = vsel %vm4527_vm2, %v4520_v10, %v15815_v27  ;;  %v4531_v1 = vsel %vm4527_vm2, %v4522_v59, %v15824_v38  ;;  %v4524_v7 = vsel %vm4518_vm1, %v15833_v2, %v15830_v17  ;;  %v15844_v10 = vld [vmem:[#allocation71_spill] sm:$0xff]  ;;  %v15845_v27 = vld [vmem:[#allocation50_spill] sm:$0xff]  ;;  %v15850_v59 = vld [vmem:[#allocation32_spill] sm:$0xff] }
 0x43b   : > { %v4649_v18 = vsel %vm15124_vm15, %v4640_v16, %v4503_v20  ;;  %v4538_v9 = vsel %vm4536_vm3, %v4529_v11, %v15816_v6  ;;  %v4540_v46 = vsel %vm4536_vm3, %v4531_v1, %v15826_v15  ;;  %v15837_v20 = vld [vmem:[#allocation103_spill] sm:$0xff]  ;;  %v15852_v38 = vld [vmem:[#allocation130_spill] sm:$0xff] }
 0x43c   : > { %4658 = vst.msk [vmem:[%s12097_s3 + $0x20] sm:$0xff] %vm4653_vm0, %v4649_v18  ;;  %v4549_v55 = vsel %vm4545_vm4, %v4540_v46, %v15828_v56  ;;  %v15839_v18 = vld [vmem:[#allocation98_spill] sm:$0xff]  ;;  %v15846_v6 = vld [vmem:[#allocation123_spill] sm:$0xff] }
 0x43d   : > { %v4558_v57 = vsel %vm4554_vm5, %v4549_v55, %v15834_v25  ;;  %v15840_v44 = vcombine.low %v15838_v19, %v15839_v18  ;;  %v15854_v46 = vld [vmem:[#allocation114_spill] sm:$0xff]  ;;  %v15856_v55 = vld [vmem:[#allocation127_spill] sm:$0xff]  ;;  %v15859_v25 = vld [vmem:[#allocation112_spill] sm:$0xff] }
 0x43e   : > { %v12168_v34 = vpop.permute.xlu1 %4444  ;;  %v4507_v32 = vpop.permute.xlu0 %4506  ;;  %v15858_v2 = vld [vmem:[#allocation122_spill] sm:$0xff] }
 0x43f   : > { %v4651_v24 = vsel %vm15124_vm15, %v4642_v21, %v4507_v32  ;;  %v4526_v54 = vsel %vm4518_vm1, %v15840_v44, %v15837_v20  ;;  %v15841_v21 = vld [vmem:[#allocation104_spill] sm:$0xff]  ;;  %v15862_v19 = vld [vmem:[#allocation42_spill] sm:$0xff] }
 0x440   : > { %4660 = vst.msk [vmem:[%s12097_s3 + $0x30] sm:$0xff] %vm4653_vm0, %v4651_v24  ;;  %v4533_v32 = vsel %vm4527_vm2, %v4524_v7, %v15841_v21  ;;  %v15842_v24 = vld [vmem:[#allocation20_spill] sm:$0xff] }
 0x442   : > { %v4465_v14 = vpop.permute.xlu1 %4464  ;;  %v4727_v63 = vpop.permute.xlu0 %4726 }
 0x443   : > { %v12174_v49 = vadd.f32 %v4727_v63, %v11876_v35  ;;  %v15817_v35 = vld [vmem:[#allocation113_spill] sm:$0xff]  ;;  %v4567_v63 = vsel %vm4563_vm6, %v4558_v57, %v15842_v24 }
 0x444   : > { %v4547_v8 = vsel %vm4545_vm4, %v4538_v9, %v15817_v35  ;;  %v4576_v11 = vsel %vm4572_vm7, %v4567_v63, %v15845_v27  ;;  %v15847_v35 = vld [vmem:[#allocation101_spill] sm:$0xff]  ;;  %v15867_v27 = vld [vmem:[#allocation36_spill] sm:$0xff] }
 0x445   : > { %v4801_v0 = vrot.slane %v12174_v49, %v15814_v23  ;;  %v4556_v39 = vsel %vm4554_vm5, %v4547_v8, %v15822_v30  ;;  %v4812_v36 = vrot.slane %v12174_v49, %v15823_v4  ;;  %v4823_v16 = vrot.slane %v12174_v49, %v15836_v42  ;;  %v15865_v63 = vld [vmem:[#allocation125_spill] sm:$0xff] }
 0x446   : > { %v4469_v29 = vpop.permute.xlu1 %4468  ;;  %v4565_v43 = vsel %vm4563_vm6, %v4556_v39, %v15825_v26  ;;  %v4535_v8 = vsel %vm4527_vm2, %v4526_v54, %v15847_v35  ;;  %v4585_v5 = vsel %vm4581_vm8, %v4576_v11, %v15849_v52  ;;  %v15851_v39 = vld [vmem:[#allocation106_spill] sm:$0xff]  ;;  %v15863_v54 = vld [vmem:[#allocation8_spill] sm:$0xff] }
 0x447   : > { %4807 = vbcast.lane.b32.xlu1 %v4801_v0, 264  ;;  %4803 = vbcast.lane.b32.xlu0 %v4801_v0, 256  ;;  %v4574_v53 = vsel %vm4572_vm7, %v4565_v43, %v15827_v28  ;;  %v4542_v0 = vsel %vm4536_vm3, %v4533_v32, %v15844_v10  ;;  %v4594_v1 = vsel %vm4590_vm9, %v4585_v5, %v15852_v38  ;;  %v15853_v43 = vld [vmem:[#allocation7_spill] sm:$0xff]  ;;  %v15864_v32 = vld [vmem:[#allocation21_spill] sm:$0xff]  ;;  %v15866_v10 = vld [vmem:[#allocation48_spill] sm:$0xff] }
 0x448   : > { %v4583_v47 = vsel %vm4581_vm8, %v4574_v53, %v15829_v12  ;;  %v4551_v40 = vsel %vm4545_vm4, %v4542_v0, %v15848_v41  ;;  %v4834_v15 = vrot.slane %v12174_v49, %v15853_v43  ;;  %v4544_v28 = vsel %vm4536_vm3, %v4535_v8, %v15854_v46  ;;  %v15855_v53 = vld [vmem:[#allocation19_spill] sm:$0xff]  ;;  %v15871_v5 = vld [vmem:[#allocation124_spill] sm:$0xff] }
 0x449   : > { %v4592_v50 = vsel %vm4590_vm9, %v4583_v47, %v15835_v33  ;;  %v4603_v12 = vsel %vm4599_vm10, %v4594_v1, %v15856_v55  ;;  %v4553_v57 = vsel %vm4545_vm4, %v4544_v28, %v15859_v25  ;;  %v15860_v33 = vld [vmem:[#allocation80_spill] sm:$0xff]  ;;  %v4845_v21 = vrot.slane %v12174_v49, %v15863_v54  ;;  %v15875_v55 = vld [vmem:[#allocation41_spill] sm:$0xff] }
 0x44a   : > { %v12202_v58 = vpop.permute.xlu1 %4472  ;;  %v4601_v13 = vsel %vm4599_vm10, %v4592_v50, %v15843_v48 }
 0x44b   : > { %4818 = vbcast.lane.b32.xlu1 %v4812_v36, 264  ;;  %4814 = vbcast.lane.b32.xlu0 %v4812_v36, 256  ;;  %v4610_v9 = vsel %vm4608_vm11, %v4601_v13, %v15846_v6  ;;  %v4560_v36 = vsel %vm4554_vm5, %v4551_v40, %v15851_v39  ;;  %v15868_v6 = vld [vmem:[#allocation77_spill] sm:$0xff] }
 0x44c   : > { %v4619_v30 = vsel %vm15139_vm12, %v4610_v9, %v15850_v59  ;;  %v4569_v56 = vsel %vm4563_vm6, %v4560_v36, %v15855_v53  ;;  %v15870_v40 = vld [vmem:[#allocation9_spill] sm:$0xff]  ;;  %v15874_v53 = vld [vmem:[#allocation11_spill] sm:$0xff] }
 0x44d   : > { %v4628_v26 = vsel %vm15126_vm13, %v4619_v30, %v12106_v61  ;;  %v4578_v62 = vsel %vm4572_vm7, %v4569_v56, %v15857_v31  ;;  %v4612_v61 = vsel %vm4608_vm11, %v4603_v12, %v15858_v2  ;;  %v4856_v52 = vrot.slane %v12174_v49, %v15870_v40 }
 0x44e   : > { %v4477_v3 = vpop.permute.xlu1 %4476  ;;  %v4637_v47 = vsel %vm15125_vm14, %v4628_v26, %v4465_v14  ;;  %v4587_v50 = vsel %vm4581_vm8, %v4578_v62, %v15860_v33  ;;  %v4621_v14 = vsel %vm15139_vm12, %v4612_v61, %v12023_v37  ;;  %v15873_v26 = vld [vmem:[#allocation10_spill] sm:$0xff]  ;;  %v4731_v62 = vpop.permute.xlu0 %4730  ;;  %v15876_v61 = vld [vmem:[#allocation49_spill] sm:$0xff] }
 0x44f   : > { %4829 = vbcast.lane.b32.xlu1 %v4823_v16, 264  ;;  %4825 = vbcast.lane.b32.xlu0 %v4823_v16, 256  ;;  %v15861_v16 = vld [vmem:[#allocation24_spill] sm:$0xff]  ;;  %v4596_v18 = vsel %vm4590_vm9, %v4587_v50, %v15862_v19  ;;  %v4630_v44 = vsel %vm15126_vm13, %v4621_v14, %v12135_v22 }
 0x450   : > { %v4562_v20 = vsel %vm4554_vm5, %v4553_v57, %v15861_v16  ;;  %v4605_v37 = vsel %vm4599_vm10, %v4596_v18, %v15865_v63  ;;  %v4639_v48 = vsel %vm15125_vm14, %v4630_v44, %v4469_v29  ;;  %v15869_v29 = vld [vmem:[#allocation69_spill] sm:$0xff]  ;;  %v15877_v63 = vld [vmem:[#allocation68_spill] sm:$0xff] }
 0x451   : > { %v4571_v24 = vsel %vm4563_vm6, %v4562_v20, %v15864_v32  ;;  %v4614_v11 = vsel %vm4608_vm11, %v4605_v37, %v15867_v27 }
 0x452   : > { %v4497_v17 = vpop.permute.xlu1 %4496  ;;  %v4580_v0 = vsel %vm4572_vm7, %v4571_v24, %v15866_v10  ;;  %v4623_v35 = vsel %vm15139_vm12, %v4614_v11, %v12042_v51  ;;  %v15872_v51 = vld [vmem:[#allocation35_spill] sm:$0xff]  ;;  %v4735_v18 = vpop.permute.xlu0 %4734 }
 0x453   : > { %v4646_v7 = vsel %vm15124_vm15, %v4637_v47, %v4497_v17  ;;  %4840 = vbcast.lane.b32.xlu1 %v4834_v15, 264  ;;  %4836 = vbcast.lane.b32.xlu0 %v4834_v15, 256  ;;  %v4589_v9 = vsel %vm4581_vm8, %v4580_v0, %v15868_v6  ;;  %v4632_v41 = vsel %vm15126_vm13, %v4623_v35, %v12156_v45 }
 0x454   : > { %4655 = vst.msk [vmem:[%s12097_s3 + $0x8] sm:$0xff] %vm4653_vm0, %v4646_v7  ;;  %v4598_v8 = vsel %vm4590_vm9, %v4589_v9, %v15869_v29  ;;  %v4641_v30 = vsel %vm15125_vm14, %v4632_v41, %v12202_v58  ;;  %v4867_v15 = vrot.slane %v12174_v49, %v15873_v26  ;;  %v4752_v7 = vadd.f32 %v4731_v62, %v15876_v61 }
 0x455   : > { %v4607_v59 = vsel %vm4599_vm10, %v4598_v8, %v15871_v5 }
 0x456   : > { %v4501_v13 = vpop.permute.xlu1 %4500  ;;  %v4616_v36 = vsel %vm4608_vm11, %v4607_v59, %v15872_v51  ;;  %v4977_v57 = vrot.slane %v4752_v7, %v15814_v23  ;;  %v4988_v33 = vrot.slane %v4752_v7, %v15823_v4  ;;  %v4999_v50 = vrot.slane %v4752_v7, %v15836_v42  ;;  %v12347_v32 = vpop.permute.xlu0 %4738 }
 0x457   : > { %v4648_v22 = vsel %vm15124_vm15, %v4639_v48, %v4501_v13  ;;  %4851 = vbcast.lane.b32.xlu1 %v4845_v21, 264  ;;  %4847 = vbcast.lane.b32.xlu0 %v4845_v21, 256  ;;  %v4625_v45 = vsel %vm15139_vm12, %v4616_v36, %v12074_v60  ;;  %v4878_v60 = vrot.slane %v12174_v49, %v15874_v53 }
 0x458   : > { %4657 = vst.msk [vmem:[%s12097_s3 + $0x18] sm:$0xff] %vm4653_vm0, %v4648_v22  ;;  %v4634_v1 = vsel %vm15126_vm13, %v4625_v45, %v12168_v34  ;;  %v5010_v16 = vrot.slane %v4752_v7, %v15853_v43  ;;  %v5021_v20 = vrot.slane %v4752_v7, %v15863_v54  ;;  %v5032_v44 = vrot.slane %v4752_v7, %v15870_v40 }
 0x459   : > { %v4643_v58 = vsel %vm15125_vm14, %v4634_v1, %v4477_v3  ;;  %v5043_v24 = vrot.slane %v4752_v7, %v15873_v26  ;;  %v5054_v48 = vrot.slane %v4752_v7, %v15874_v53 }
 0x45a   : > { %v4505_v39 = vpop.permute.xlu1 %4504  ;;  %v12354_v10 = vpop.permute.xlu0 %4766 }
 0x45b   : > { %v4650_v38 = vsel %vm15124_vm15, %v4641_v30, %v4505_v39  ;;  %4862 = vbcast.lane.b32.xlu1 %v4856_v52, 264  ;;  %4858 = vbcast.lane.b32.xlu0 %v4856_v52, 256 }
 0x45c   : > { %4659 = vst.msk [vmem:[%s12097_s3 + $0x28] sm:$0xff] %vm4653_vm0, %v4650_v38  ;;  %v15880_v38 = vld [vmem:[#allocation44_spill] sm:$0xff] }
 0x45d   : > { %v4754_v45 = vadd.f32 %v4735_v18, %v15880_v38 }
 0x45e   : > { %v4509_v46 = vpop.permute.xlu1 %4508  ;;  %v12359_v11 = vpop.permute.xlu0 %4770 }
 0x45f   : > { %v4652_v28 = vsel %vm15124_vm15, %v4643_v58, %v4509_v46  ;;  %4873 = vbcast.lane.b32.xlu1 %v4867_v15, 264  ;;  %4869 = vbcast.lane.b32.xlu0 %v4867_v15, 256  ;;  %v5197_v61 = vrot.slane %v4754_v45, %v15863_v54 }
 0x460   : > { %4661 = vst.msk [vmem:[%s12097_s3 + $0x38] sm:$0xff] %vm4653_vm0, %v4652_v28  ;;  %vm15983_vm0 = vcmask 7168  }
 0x461   : > { %vm15984_vm15 = vmmov %vm15983_vm0 }
 0x462   : > { %v4729_v56 = vpop.permute.xlu1 %4728  ;;  %v12365_v35 = vpop.permute.xlu0 %4774  ;;  %vm15986_vm14 = vmmov %vm15983_vm0 }
 0x463   : > { %v4751_v12 = vadd.f32 %v4729_v56, %v15875_v55  ;;  %4884 = vbcast.lane.b32.xlu1 %v4878_v60, 264  ;;  %4880 = vbcast.lane.b32.xlu0 %v4878_v60, 256  ;;  %v5153_v60 = vrot.slane %v4754_v45, %v15814_v23  ;;  %vm15987_vm13 = vmmov %vm15983_vm0 }
 0x464   : > { %vm16079_vm12 = vmmov %vm15983_vm0 }
 0x465   : > { %v4889_v34 = vrot.slane %v4751_v12, %v15814_v23  ;;  %v4900_v3 = vrot.slane %v4751_v12, %v15823_v4  ;;  %v4911_v47 = vrot.slane %v4751_v12, %v15836_v42  ;;  %v4922_v17 = vrot.slane %v4751_v12, %v15853_v43 }
 0x466   : > { %v4933_v49 = vrot.slane %v4751_v12, %v15863_v54  ;;  %v4944_v31 = vrot.slane %v4751_v12, %v15870_v40  ;;  %v4955_v2 = vrot.slane %v4751_v12, %v15873_v26  ;;  %v4966_v25 = vrot.slane %v4751_v12, %v15874_v53  ;;  %v4733_v14 = vpop.permute.xlu1 %4732  ;;  %v12370_v41 = vpop.permute.xlu0 %4778 }
 0x467   : > { %4895 = vbcast.lane.b32.xlu1 %v4889_v34, 264  ;;  %4891 = vbcast.lane.b32.xlu0 %v4889_v34, 256  ;;  %v4753_v37 = vadd.f32 %v4733_v14, %v15877_v63  ;;  %v5164_v12 = vrot.slane %v4754_v45, %v15823_v4  ;;  %v5219_v14 = vrot.slane %v4754_v45, %v15873_v26 }
 0x469   : > { %v5065_v0 = vrot.slane %v4753_v37, %v15814_v23  ;;  %v5076_v22 = vrot.slane %v4753_v37, %v15823_v4  ;;  %v5087_v6 = vrot.slane %v4753_v37, %v15836_v42  ;;  %v5098_v29 = vrot.slane %v4753_v37, %v15853_v43 }
 0x46a   : > { %v12342_v19 = vpop.permute.xlu1 %4736  ;;  %v5109_v52 = vrot.slane %v4753_v37, %v15863_v54  ;;  %v5120_v30 = vrot.slane %v4753_v37, %v15870_v40  ;;  %v5131_v36 = vrot.slane %v4753_v37, %v15873_v26  ;;  %v5142_v58 = vrot.slane %v4753_v37, %v15874_v53 }
 0x46b   : > { %4906 = vbcast.lane.b32.xlu1 %v4900_v3, 264  ;;  %4902 = vbcast.lane.b32.xlu0 %v4900_v3, 256 }
 0x46e   : > { %v12345_v21 = vpop.permute.xlu1 %4740 }
 0x46f   : > { %4917 = vbcast.lane.b32.xlu1 %v4911_v47, 264  ;;  %4913 = vbcast.lane.b32.xlu0 %v4911_v47, 256  ;;  %v5175_v47 = vrot.slane %v4754_v45, %v15836_v42 }
 0x472   : > { %v12352_v13 = vpop.permute.xlu1 %4768 }
 0x473   : > { %4928 = vbcast.lane.b32.xlu1 %v4922_v17, 264  ;;  %4924 = vbcast.lane.b32.xlu0 %v4922_v17, 256 }
 0x476   : > { %v12357_v27 = vpop.permute.xlu1 %4772 }
 0x477   : > { %4939 = vbcast.lane.b32.xlu1 %v4933_v49, 264  ;;  %4935 = vbcast.lane.b32.xlu0 %v4933_v49, 256 }
 0x47a   : > { %v12363_v9 = vpop.permute.xlu1 %4776 }
 0x47b   : > { %4950 = vbcast.lane.b32.xlu1 %v4944_v31, 264  ;;  %4946 = vbcast.lane.b32.xlu0 %v4944_v31, 256  ;;  %v5186_v31 = vrot.slane %v4754_v45, %v15853_v43 }
 0x47e   : > { %v12368_v8 = vpop.permute.xlu1 %4780 }
 0x47f   : > { %4961 = vbcast.lane.b32.xlu1 %v4955_v2, 264  ;;  %4957 = vbcast.lane.b32.xlu0 %v4955_v2, 256 }
 0x483   : > { %4972 = vbcast.lane.b32.xlu1 %v4966_v25, 264  ;;  %4968 = vbcast.lane.b32.xlu0 %v4966_v25, 256 }
 0x487   : > { %4983 = vbcast.lane.b32.xlu1 %v4977_v57, 264  ;;  %4979 = vbcast.lane.b32.xlu0 %v4977_v57, 256  ;;  %v5208_v57 = vrot.slane %v4754_v45, %v15870_v40 }
 0x48b   : > { %4994 = vbcast.lane.b32.xlu1 %v4988_v33, 264  ;;  %4990 = vbcast.lane.b32.xlu0 %v4988_v33, 256 }
 0x48f   : > { %5005 = vbcast.lane.b32.xlu1 %v4999_v50, 264  ;;  %5001 = vbcast.lane.b32.xlu0 %v4999_v50, 256 }
 0x493   : > { %5016 = vbcast.lane.b32.xlu1 %v5010_v16, 264  ;;  %5012 = vbcast.lane.b32.xlu0 %v5010_v16, 256  ;;  %v15889_v16 = vld [vmem:[#allocation128_spill] sm:$0xff] }
 0x497   : > { %5027 = vbcast.lane.b32.xlu1 %v5021_v20, 264  ;;  %5023 = vbcast.lane.b32.xlu0 %v5021_v20, 256  ;;  %v4755_v20 = vadd.f32 %v12342_v19, %v15889_v16  ;;  %v15898_v16 = vld [vmem:[#allocation79_spill] sm:$0xff] }
 0x499   : > { %v5241_v63 = vrot.slane %v4755_v20, %v15814_v23  ;;  %v5274_v38 = vrot.slane %v4755_v20, %v15853_v43 }
 0x49b   : > { %5038 = vbcast.lane.b32.xlu1 %v5032_v44, 264  ;;  %5034 = vbcast.lane.b32.xlu0 %v5032_v44, 256 }
 0x49f   : > { %5049 = vbcast.lane.b32.xlu1 %v5043_v24, 264  ;;  %5045 = vbcast.lane.b32.xlu0 %v5043_v24, 256  ;;  %v5230_v24 = vrot.slane %v4754_v45, %v15874_v53 }
 0x4a3   : > { %5060 = vbcast.lane.b32.xlu1 %v5054_v48, 264  ;;  %5056 = vbcast.lane.b32.xlu0 %v5054_v48, 256 }
 0x4a7   : > { %5071 = vbcast.lane.b32.xlu1 %v5065_v0, 264  ;;  %5067 = vbcast.lane.b32.xlu0 %v5065_v0, 256 }
 0x4ab   : > { %5082 = vbcast.lane.b32.xlu1 %v5076_v22, 264  ;;  %5078 = vbcast.lane.b32.xlu0 %v5076_v22, 256  ;;  %v5252_v22 = vrot.slane %v4755_v20, %v15823_v4 }
 0x4af   : > { %5093 = vbcast.lane.b32.xlu1 %v5087_v6, 264  ;;  %5089 = vbcast.lane.b32.xlu0 %v5087_v6, 256 }
 0x4b3   : > { %5104 = vbcast.lane.b32.xlu1 %v5098_v29, 264  ;;  %5100 = vbcast.lane.b32.xlu0 %v5098_v29, 256 }
 0x4b7   : > { %5115 = vbcast.lane.b32.xlu1 %v5109_v52, 264  ;;  %5111 = vbcast.lane.b32.xlu0 %v5109_v52, 256  ;;  %v5263_v52 = vrot.slane %v4755_v20, %v15836_v42 }
 0x4b9   : > { %v12373_v5 = vpop.permute.xlu1 %4807  ;;  %v12375_v59 = vpop.permute.xlu0 %4803 }
 0x4ba   : > { %15878 = vst [vmem:[#allocation31_spill] sm:$0xff] %v12373_v5 }
 0x4bb   : > { %5126 = vbcast.lane.b32.xlu1 %v5120_v30, 264  ;;  %5122 = vbcast.lane.b32.xlu0 %v5120_v30, 256 }
 0x4bd   : > { %v12378_v39 = vpop.permute.xlu1 %4818  ;;  %v12380_v51 = vpop.permute.xlu0 %4814 }
 0x4be   : > { %15879 = vst [vmem:[#allocation34_spill] sm:$0xff] %v12378_v39 }
 0x4bf   : > { %5137 = vbcast.lane.b32.xlu1 %v5131_v36, 264  ;;  %5133 = vbcast.lane.b32.xlu0 %v5131_v36, 256 }
 0x4c1   : > { %v12384_v1 = vpop.permute.xlu1 %4829  ;;  %v12386_v15 = vpop.permute.xlu0 %4825 }
 0x4c2   : > { %15881 = vst [vmem:[#allocation33_spill] sm:$0xff] %v12384_v1 }
 0x4c3   : > { %5148 = vbcast.lane.b32.xlu1 %v5142_v58, 264  ;;  %5144 = vbcast.lane.b32.xlu0 %v5142_v58, 256 }
 0x4c5   : > { %v12389_v46 = vpop.permute.xlu1 %4840  ;;  %v12391_v28 = vpop.permute.xlu0 %4836 }
 0x4c6   : > { %15882 = vst [vmem:[#allocation12_spill] sm:$0xff] %v12389_v46 }
 0x4c7   : > { %5159 = vbcast.lane.b32.xlu1 %v5153_v60, 264  ;;  %5155 = vbcast.lane.b32.xlu0 %v5153_v60, 256  ;;  %v5285_v60 = vrot.slane %v4755_v20, %v15863_v54 }
 0x4c9   : > { %v12394_v56 = vpop.permute.xlu1 %4851  ;;  %v12396_v55 = vpop.permute.xlu0 %4847 }
 0x4ca   : > { %15883 = vst [vmem:[#allocation3_spill] sm:$0xff] %v12394_v56 }
 0x4cb   : > { %5170 = vbcast.lane.b32.xlu1 %v5164_v12, 264  ;;  %5166 = vbcast.lane.b32.xlu0 %v5164_v12, 256 }
 0x4cd   : > { %v12399_v34 = vpop.permute.xlu1 %4862  ;;  %v12401_v3 = vpop.permute.xlu0 %4858 }
 0x4ce   : > { %15884 = vst [vmem:[#allocation65_spill] sm:$0xff] %v12399_v34 }
 0x4cf   : > { %5181 = vbcast.lane.b32.xlu1 %v5175_v47, 264  ;;  %5177 = vbcast.lane.b32.xlu0 %v5175_v47, 256 }
 0x4d1   : > { %v12404_v17 = vpop.permute.xlu1 %4873  ;;  %v12406_v49 = vpop.permute.xlu0 %4869 }
 0x4d2   : > { %15885 = vst [vmem:[#allocation62_spill] sm:$0xff] %v12404_v17 }
 0x4d3   : > { %5192 = vbcast.lane.b32.xlu1 %v5186_v31, 264  ;;  %5188 = vbcast.lane.b32.xlu0 %v5186_v31, 256  ;;  %v5296_v31 = vrot.slane %v4755_v20, %v15870_v40 }
 0x4d5   : > { %v12409_v62 = vpop.permute.xlu1 %4884  ;;  %v12411_v2 = vpop.permute.xlu0 %4880 }
 0x4d6   : > { %15886 = vst [vmem:[#allocation63_spill] sm:$0xff] %v12409_v62 }
 0x4d7   : > { %5203 = vbcast.lane.b32.xlu1 %v5197_v61, 264  ;;  %5199 = vbcast.lane.b32.xlu0 %v5197_v61, 256 }
 0x4d9   : > { %v12414_v7 = vpop.permute.xlu1 %4895  ;;  %v12416_v25 = vpop.permute.xlu0 %4891 }
 0x4da   : > { %15887 = vst [vmem:[#allocation60_spill] sm:$0xff] %v12414_v7 }
 0x4db   : > { %5214 = vbcast.lane.b32.xlu1 %v5208_v57, 264  ;;  %5210 = vbcast.lane.b32.xlu0 %v5208_v57, 256 }
 0x4dd   : > { %v12419_v33 = vpop.permute.xlu1 %4906  ;;  %v12421_v50 = vpop.permute.xlu0 %4902 }
 0x4de   : > { %15888 = vst [vmem:[#allocation64_spill] sm:$0xff] %v12419_v33 }
 0x4df   : > { %5225 = vbcast.lane.b32.xlu1 %v5219_v14, 264  ;;  %5221 = vbcast.lane.b32.xlu0 %v5219_v14, 256  ;;  %v5307_v14 = vrot.slane %v4755_v20, %v15873_v26 }
 0x4e1   : > { %v12426_v18 = vpop.permute.xlu1 %4917  ;;  %v12428_v44 = vpop.permute.xlu0 %4913 }
 0x4e2   : > { %15890 = vst [vmem:[#allocation61_spill] sm:$0xff] %v12426_v18 }
 0x4e3   : > { %5236 = vbcast.lane.b32.xlu1 %v5230_v24, 264  ;;  %5232 = vbcast.lane.b32.xlu0 %v5230_v24, 256  ;;  %v4756_v24 = vadd.f32 %v12347_v32, %v15898_v16 }
 0x4e5   : > { %v12432_v37 = vpop.permute.xlu1 %4928  ;;  %v12434_v48 = vpop.permute.xlu0 %4924  ;;  %v5340_v32 = vrot.slane %v4756_v24, %v15823_v4 }
 0x4e6   : > { %15891 = vst [vmem:[#allocation59_spill] sm:$0xff] %v12432_v37 }
 0x4e7   : > { %5247 = vbcast.lane.b32.xlu1 %v5241_v63, 264  ;;  %5243 = vbcast.lane.b32.xlu0 %v5241_v63, 256 }
 0x4e9   : > { %v12436_v0 = vpop.permute.xlu1 %4939  ;;  %v12438_v19 = vpop.permute.xlu0 %4935 }
 0x4ea   : > { %15892 = vst [vmem:[#allocation58_spill] sm:$0xff] %v12436_v0 }
 0x4eb   : > { %5258 = vbcast.lane.b32.xlu1 %v5252_v22, 264  ;;  %5254 = vbcast.lane.b32.xlu0 %v5252_v22, 256 }
 0x4ed   : > { %v12441_v6 = vpop.permute.xlu1 %4950  ;;  %v12443_v29 = vpop.permute.xlu0 %4946 }
 0x4ee   : > { %15893 = vst [vmem:[#allocation93_spill] sm:$0xff] %v12441_v6 }
 0x4ef   : > { %5269 = vbcast.lane.b32.xlu1 %v5263_v52, 264  ;;  %5265 = vbcast.lane.b32.xlu0 %v5263_v52, 256  ;;  %v5318_v52 = vrot.slane %v4755_v20, %v15874_v53 }
 0x4f1   : > { %v12446_v30 = vpop.permute.xlu1 %4961  ;;  %v12448_v36 = vpop.permute.xlu0 %4957 }
 0x4f2   : > { %15894 = vst [vmem:[#allocation97_spill] sm:$0xff] %v12446_v30 }
 0x4f3   : > { %5280 = vbcast.lane.b32.xlu1 %v5274_v38, 264  ;;  %5276 = vbcast.lane.b32.xlu0 %v5274_v38, 256 }
 0x4f5   : > { %v12451_v45 = vpop.permute.xlu1 %4972  ;;  %v12453_v58 = vpop.permute.xlu0 %4968 }
 0x4f6   : > { %15895 = vst [vmem:[#allocation94_spill] sm:$0xff] %v12451_v45 }
 0x4f7   : > { %5291 = vbcast.lane.b32.xlu1 %v5285_v60, 264  ;;  %5287 = vbcast.lane.b32.xlu0 %v5285_v60, 256 }
 0x4f9   : > { %v12456_v12 = vpop.permute.xlu1 %4983  ;;  %v12458_v47 = vpop.permute.xlu0 %4979 }
 0x4fa   : > { %15896 = vst [vmem:[#allocation90_spill] sm:$0xff] %v12456_v12 }
 0x4fb   : > { %5302 = vbcast.lane.b32.xlu1 %v5296_v31, 264  ;;  %5298 = vbcast.lane.b32.xlu0 %v5296_v31, 256  ;;  %v5329_v31 = vrot.slane %v4756_v24, %v15814_v23 }
 0x4fd   : > { %v12461_v61 = vpop.permute.xlu1 %4994  ;;  %v12463_v57 = vpop.permute.xlu0 %4990 }
 0x4fe   : > { %15897 = vst [vmem:[#allocation96_spill] sm:$0xff] %v12461_v61  ;;  %v5406_v61 = vrot.slane %v4756_v24, %v15874_v53 }
 0x4ff   : > { %5313 = vbcast.lane.b32.xlu1 %v5307_v14, 264  ;;  %5309 = vbcast.lane.b32.xlu0 %v5307_v14, 256 }
 0x501   : > { %v12468_v63 = vpop.permute.xlu1 %5005  ;;  %v12470_v22 = vpop.permute.xlu0 %5001 }
 0x502   : > { %15899 = vst [vmem:[#allocation92_spill] sm:$0xff] %v12468_v63 }
 0x503   : > { %5324 = vbcast.lane.b32.xlu1 %v5318_v52, 264  ;;  %5320 = vbcast.lane.b32.xlu0 %v5318_v52, 256  ;;  %v5351_v52 = vrot.slane %v4756_v24, %v15836_v42 }
 0x505   : > { %v12473_v38 = vpop.permute.xlu1 %5016  ;;  %v12475_v60 = vpop.permute.xlu0 %5012 }
 0x506   : > { %15900 = vst [vmem:[#allocation89_spill] sm:$0xff] %v12473_v38 }
 0x507   : > { %5335 = vbcast.lane.b32.xlu1 %v5329_v31, 264  ;;  %5331 = vbcast.lane.b32.xlu0 %v5329_v31, 256  ;;  %v5362_v31 = vrot.slane %v4756_v24, %v15853_v43 }
 0x509   : > { %v12478_v14 = vpop.permute.xlu1 %5027  ;;  %v12480_v7 = vpop.permute.xlu0 %5023 }
 0x50a   : > { %15901 = vst [vmem:[#allocation85_spill] sm:$0xff] %v12478_v14  ;;  %v15907_v14 = vld [vmem:[#allocation126_spill] sm:$0xff] }
 0x50b   : > { %5346 = vbcast.lane.b32.xlu1 %v5340_v32, 264  ;;  %5342 = vbcast.lane.b32.xlu0 %v5340_v32, 256  ;;  %v5373_v32 = vrot.slane %v4756_v24, %v15863_v54  ;;  %v4757_v63 = vadd.f32 %v12345_v21, %v15907_v14 }
 0x50d   : > { %v12483_v16 = vpop.permute.xlu1 %5038  ;;  %v12485_v20 = vpop.permute.xlu0 %5034  ;;  %v5428_v21 = vrot.slane %v4757_v63, %v15823_v4  ;;  %v5494_v39 = vrot.slane %v4757_v63, %v15874_v53 }
 0x50e   : > { %15902 = vst [vmem:[#allocation116_spill] sm:$0xff] %v12483_v16 }
 0x50f   : > { %5357 = vbcast.lane.b32.xlu1 %v5351_v52, 264  ;;  %5353 = vbcast.lane.b32.xlu0 %v5351_v52, 256  ;;  %v5384_v52 = vrot.slane %v4756_v24, %v15870_v40 }
 0x511   : > { %v12488_v0 = vpop.permute.xlu1 %5049  ;;  %v12490_v18 = vpop.permute.xlu0 %5045 }
 0x512   : > { %15903 = vst [vmem:[#allocation120_spill] sm:$0xff] %v12488_v0  ;;  %v5417_v0 = vrot.slane %v4757_v63, %v15814_v23 }
 0x513   : > { %5368 = vbcast.lane.b32.xlu1 %v5362_v31, 264  ;;  %5364 = vbcast.lane.b32.xlu0 %v5362_v31, 256  ;;  %v5395_v31 = vrot.slane %v4756_v24, %v15873_v26 }
 0x515   : > { %v12493_v33 = vpop.permute.xlu1 %5060  ;;  %v12495_v30 = vpop.permute.xlu0 %5056 }
 0x516   : > { %15904 = vst [vmem:[#allocation27_spill] sm:$0xff] %v12493_v33 }
 0x517   : > { %5379 = vbcast.lane.b32.xlu1 %v5373_v32, 264  ;;  %5375 = vbcast.lane.b32.xlu0 %v5373_v32, 256 }
 0x519   : > { %v12498_v6 = vpop.permute.xlu1 %5071  ;;  %v12500_v37 = vpop.permute.xlu0 %5067 }
 0x51a   : > { %15905 = vst [vmem:[#allocation29_spill] sm:$0xff] %v12498_v6 }
 0x51b   : > { %5390 = vbcast.lane.b32.xlu1 %v5384_v52, 264  ;;  %5386 = vbcast.lane.b32.xlu0 %v5384_v52, 256 }
 0x51d   : > { %v12503_v45 = vpop.permute.xlu1 %5082  ;;  %v12505_v12 = vpop.permute.xlu0 %5078 }
 0x51e   : > { %15906 = vst [vmem:[#allocation56_spill] sm:$0xff] %v12503_v45 }
 0x51f   : > { %5401 = vbcast.lane.b32.xlu1 %v5395_v31, 264  ;;  %5397 = vbcast.lane.b32.xlu0 %v5395_v31, 256 }
 0x521   : > { %v12510_v32 = vpop.permute.xlu1 %5093  ;;  %v12512_v6 = vpop.permute.xlu0 %5089 }
 0x522   : > { %15908 = vst [vmem:[#allocation53_spill] sm:$0xff] %v12510_v32 }
 0x523   : > { %5412 = vbcast.lane.b32.xlu1 %v5406_v61, 264  ;;  %5408 = vbcast.lane.b32.xlu0 %v5406_v61, 256  ;;  %v5439_v61 = vrot.slane %v4757_v63, %v15836_v42 }
 0x525   : > { %v12515_v52 = vpop.permute.xlu1 %5104  ;;  %v12517_v45 = vpop.permute.xlu0 %5100 }
 0x526   : > { %15909 = vst [vmem:[#allocation84_spill] sm:$0xff] %v12515_v52 }
 0x527   : > { %5423 = vbcast.lane.b32.xlu1 %v5417_v0, 264  ;;  %5419 = vbcast.lane.b32.xlu0 %v5417_v0, 256  ;;  %v5450_v0 = vrot.slane %v4757_v63, %v15853_v43 }
 0x529   : > { %v12520_v31 = vpop.permute.xlu1 %5115  ;;  %v12522_v16 = vpop.permute.xlu0 %5111 }
 0x52a   : > { %15910 = vst [vmem:[#allocation87_spill] sm:$0xff] %v12520_v31 }
 0x52b   : > { %5434 = vbcast.lane.b32.xlu1 %v5428_v21, 264  ;;  %5430 = vbcast.lane.b32.xlu0 %v5428_v21, 256  ;;  %v5461_v21 = vrot.slane %v4757_v63, %v15863_v54 }
 0x52d   : > { %v12525_v14 = vpop.permute.xlu1 %5126  ;;  %v12527_v24 = vpop.permute.xlu0 %5122 }
 0x52e   : > { %15911 = vst [vmem:[#allocation15_spill] sm:$0xff] %v12525_v14 }
 0x52f   : > { %5445 = vbcast.lane.b32.xlu1 %v5439_v61, 264  ;;  %5441 = vbcast.lane.b32.xlu0 %v5439_v61, 256  ;;  %v5472_v61 = vrot.slane %v4757_v63, %v15870_v40 }
 0x531   : > { %v12530_v32 = vpop.permute.xlu1 %5137  ;;  %v12532_v52 = vpop.permute.xlu0 %5133 }
 0x532   : > { %15912 = vst [vmem:[#allocation131_spill] sm:$0xff] %v12530_v32 }
 0x533   : > { %5456 = vbcast.lane.b32.xlu1 %v5450_v0, 264  ;;  %5452 = vbcast.lane.b32.xlu0 %v5450_v0, 256  ;;  %v5483_v0 = vrot.slane %v4757_v63, %v15873_v26 }
 0x535   : > { %v12535_v31 = vpop.permute.xlu1 %5148  ;;  %v12537_v38 = vpop.permute.xlu0 %5144 }
 0x536   : > { %15913 = vst [vmem:[#allocation119_spill] sm:$0xff] %v12535_v31  ;;  %v15916_v31 = vld [vmem:[#allocation22_spill] sm:$0xff] }
 0x537   : > { %5467 = vbcast.lane.b32.xlu1 %v5461_v21, 264  ;;  %5463 = vbcast.lane.b32.xlu0 %v5461_v21, 256  ;;  %v4790_v56 = vadd.f32 %v12354_v10, %v15916_v31 }
 0x539   : > { %v12540_v14 = vpop.permute.xlu1 %5159  ;;  %v12542_v5 = vpop.permute.xlu0 %5155  ;;  %v5505_v34 = vrot.slane %v4790_v56, %v15814_v23  ;;  %v5517_v10 = vrot.slane %v4790_v56, %v15823_v4 }
 0x53b   : > { %5478 = vbcast.lane.b32.xlu1 %v5472_v61, 264  ;;  %5474 = vbcast.lane.b32.xlu0 %v5472_v61, 256 }
 0x53d   : > { %v12545_v32 = vpop.permute.xlu1 %5170  ;;  %v12547_v33 = vpop.permute.xlu0 %5166 }
 0x53e   : > { %15914 = vst [vmem:[#allocation121_spill] sm:$0xff] %v12545_v32  ;;  %15915 = vst [vmem:[#allocation40_spill] sm:$0xff] %v12547_v33 }
 0x53f   : > { %5489 = vbcast.lane.b32.xlu1 %v5483_v0, 264  ;;  %5485 = vbcast.lane.b32.xlu0 %v5483_v0, 256 }
 0x541   : > { %v12552_v21 = vpop.permute.xlu1 %5181  ;;  %v12554_v1 = vpop.permute.xlu0 %5177 }
 0x542   : > { %15917 = vst [vmem:[#allocation39_spill] sm:$0xff] %v12554_v1 }
 0x543   : > { %5500 = vbcast.lane.b32.xlu1 %v5494_v39, 264  ;;  %5496 = vbcast.lane.b32.xlu0 %v5494_v39, 256  ;;  %v5529_v39 = vrot.slane %v4790_v56, %v15836_v42 }
 0x545   : > { %v12557_v61 = vpop.permute.xlu1 %5192  ;;  %v12559_v17 = vpop.permute.xlu0 %5188 }
 0x546   : > { %15918 = vst [vmem:[#allocation26_spill] sm:$0xff] %v12557_v61  ;;  %15919 = vst [vmem:[#allocation30_spill] sm:$0xff] %v12559_v17 }
 0x547   : > { %5512 = vbcast.lane.b32.xlu1 %v5505_v34, 265  ;;  %5508 = vbcast.lane.b32.xlu0 %v5505_v34, 257  ;;  %v5541_v34 = vrot.slane %v4790_v56, %v15853_v43 }
 0x549   : > { %v12562_v0 = vpop.permute.xlu1 %5203  ;;  %v12564_v46 = vpop.permute.xlu0 %5199 }
 0x54a   : > { %15920 = vst [vmem:[#allocation72_spill] sm:$0xff] %v12562_v0  ;;  %15921 = vst [vmem:[#allocation73_spill] sm:$0xff] %v12564_v46 }
 0x54b   : > { %5524 = vbcast.lane.b32.xlu1 %v5517_v10, 265  ;;  %5520 = vbcast.lane.b32.xlu0 %v5517_v10, 257  ;;  %v5553_v10 = vrot.slane %v4790_v56, %v15863_v54 }
 0x54d   : > { %v12567_v31 = vpop.permute.xlu1 %5214  ;;  %v12569_v63 = vpop.permute.xlu0 %5210 }
 0x54e   : > { %15922 = vst [vmem:[#allocation54_spill] sm:$0xff] %v12567_v31  ;;  %15923 = vst [vmem:[#allocation57_spill] sm:$0xff] %v12569_v63 }
 0x54f   : > { %5536 = vbcast.lane.b32.xlu1 %v5529_v39, 265  ;;  %5532 = vbcast.lane.b32.xlu0 %v5529_v39, 257  ;;  %v5565_v39 = vrot.slane %v4790_v56, %v15870_v40 }
 0x551   : > { %v12572_v62 = vpop.permute.xlu1 %5225  ;;  %v12574_v17 = vpop.permute.xlu0 %5221 }
 0x552   : > { %15924 = vst [vmem:[#allocation88_spill] sm:$0xff] %v12572_v62  ;;  %15925 = vst [vmem:[#allocation83_spill] sm:$0xff] %v12574_v17 }
 0x553   : > { %5548 = vbcast.lane.b32.xlu1 %v5541_v34, 265  ;;  %5544 = vbcast.lane.b32.xlu0 %v5541_v34, 257  ;;  %v5577_v34 = vrot.slane %v4790_v56, %v15873_v26 }
 0x555   : > { %v12577_v46 = vpop.permute.xlu1 %5236  ;;  %v12579_v0 = vpop.permute.xlu0 %5232 }
 0x556   : > { %15926 = vst [vmem:[#allocation129_spill] sm:$0xff] %v12577_v46  ;;  %15927 = vst [vmem:[#allocation132_spill] sm:$0xff] %v12579_v0  ;;  %v15932_v0 = vld [vmem:[#allocation76_spill] sm:$0xff] }
 0x557   : > { %5560 = vbcast.lane.b32.xlu1 %v5553_v10, 265  ;;  %5556 = vbcast.lane.b32.xlu0 %v5553_v10, 257  ;;  %v4791_v46 = vadd.f32 %v12352_v13, %v15932_v0 }
 0x559   : > { %v12582_v63 = vpop.permute.xlu1 %5247  ;;  %v12584_v31 = vpop.permute.xlu0 %5243  ;;  %v5613_v13 = vrot.slane %v4791_v46, %v15823_v4 }
 0x55a   : > { %15928 = vst [vmem:[#allocation133_spill] sm:$0xff] %v12582_v63  ;;  %15929 = vst [vmem:[#allocation43_spill] sm:$0xff] %v12584_v31  ;;  %v5589_v31 = vrot.slane %v4790_v56, %v15874_v53 }
 0x55b   : > { %5572 = vbcast.lane.b32.xlu1 %v5565_v39, 265  ;;  %5568 = vbcast.lane.b32.xlu0 %v5565_v39, 257 }
 0x55d   : > { %v12587_v17 = vpop.permute.xlu1 %5258  ;;  %v12589_v62 = vpop.permute.xlu0 %5254 }
 0x55e   : > { %15930 = vst [vmem:[#allocation135_spill] sm:$0xff] %v12587_v17  ;;  %15931 = vst [vmem:[#allocation134_spill] sm:$0xff] %v12589_v62  ;;  %v5601_v62 = vrot.slane %v4791_v46, %v15814_v23 }
 0x55f   : > { %5584 = vbcast.lane.b32.xlu1 %v5577_v34, 265  ;;  %5580 = vbcast.lane.b32.xlu0 %v5577_v34, 257 }
 0x561   : > { %v12594_v10 = vpop.permute.xlu1 %5269  ;;  %v12596_v63 = vpop.permute.xlu0 %5265 }
 0x562   : > { %15933 = vst [vmem:[#allocation117_spill] sm:$0xff] %v12594_v10  ;;  %15934 = vst [vmem:[#allocation118_spill] sm:$0xff] %v12596_v63 }
 0x563   : > { %5596 = vbcast.lane.b32.xlu1 %v5589_v31, 265  ;;  %5592 = vbcast.lane.b32.xlu0 %v5589_v31, 257  ;;  %v5625_v31 = vrot.slane %v4791_v46, %v15836_v42 }
 0x565   : > { %v12599_v39 = vpop.permute.xlu1 %5280  ;;  %v12601_v17 = vpop.permute.xlu0 %5276 }
 0x566   : > { %15935 = vst [vmem:[#allocation28_spill] sm:$0xff] %v12599_v39  ;;  %15936 = vst [vmem:[#allocation25_spill] sm:$0xff] %v12601_v17 }
 0x567   : > { %5608 = vbcast.lane.b32.xlu1 %v5601_v62, 265  ;;  %5604 = vbcast.lane.b32.xlu0 %v5601_v62, 257  ;;  %v5637_v62 = vrot.slane %v4791_v46, %v15853_v43 }
 0x569   : > { %v12604_v34 = vpop.permute.xlu1 %5291  ;;  %v12606_v33 = vpop.permute.xlu0 %5287 }
 0x56a   : > { %15937 = vst [vmem:[#allocation55_spill] sm:$0xff] %v12604_v34  ;;  %15938 = vst [vmem:[#allocation52_spill] sm:$0xff] %v12606_v33 }
 0x56b   : > { %5620 = vbcast.lane.b32.xlu1 %v5613_v13, 265  ;;  %5616 = vbcast.lane.b32.xlu0 %v5613_v13, 257  ;;  %v5649_v13 = vrot.slane %v4791_v46, %v15863_v54 }
 0x56d   : > { %v12609_v0 = vpop.permute.xlu1 %5302  ;;  %v12611_v56 = vpop.permute.xlu0 %5298 }
 0x56e   : > { %15939 = vst [vmem:[#allocation86_spill] sm:$0xff] %v12609_v0  ;;  %15940 = vst [vmem:[#allocation75_spill] sm:$0xff] %v12611_v56 }
 0x56f   : > { %5632 = vbcast.lane.b32.xlu1 %v5625_v31, 265  ;;  %5628 = vbcast.lane.b32.xlu0 %v5625_v31, 257  ;;  %v5661_v31 = vrot.slane %v4791_v46, %v15870_v40 }
 0x571   : > { %v12614_v17 = vpop.permute.xlu1 %5313  ;;  %v12616_v39 = vpop.permute.xlu0 %5309 }
 0x572   : > { %15941 = vst [vmem:[#allocation16_spill] sm:$0xff] %v12614_v17  ;;  %15942 = vst [vmem:[#allocation2_spill] sm:$0xff] %v12616_v39 }
 0x573   : > { %5644 = vbcast.lane.b32.xlu1 %v5637_v62, 265  ;;  %5640 = vbcast.lane.b32.xlu0 %v5637_v62, 257  ;;  %v5673_v62 = vrot.slane %v4791_v46, %v15873_v26 }
 0x575   : > { %v12619_v33 = vpop.permute.xlu1 %5324  ;;  %v12621_v34 = vpop.permute.xlu0 %5320 }
 0x576   : > { %15943 = vst [vmem:[#allocation4_spill] sm:$0xff] %v12619_v33  ;;  %15944 = vst [vmem:[#allocation99_spill] sm:$0xff] %v12621_v34  ;;  %v15949_v34 = vld [vmem:[#allocation18_spill] sm:$0xff] }
 0x577   : > { %5656 = vbcast.lane.b32.xlu1 %v5649_v13, 265  ;;  %5652 = vbcast.lane.b32.xlu0 %v5649_v13, 257  ;;  %v4792_v33 = vadd.f32 %v12359_v11, %v15949_v34 }
 0x579   : > { %v12624_v56 = vpop.permute.xlu1 %5335  ;;  %v12626_v0 = vpop.permute.xlu0 %5331  ;;  %v5709_v11 = vrot.slane %v4792_v33, %v15823_v4 }
 0x57a   : > { %15945 = vst [vmem:[#allocation105_spill] sm:$0xff] %v12624_v56  ;;  %15946 = vst [vmem:[#allocation113_spill] sm:$0xff] %v12626_v0  ;;  %v5685_v0 = vrot.slane %v4791_v46, %v15874_v53 }
 0x57b   : > { %5668 = vbcast.lane.b32.xlu1 %v5661_v31, 265  ;;  %5664 = vbcast.lane.b32.xlu0 %v5661_v31, 257 }
 0x57d   : > { %v12629_v39 = vpop.permute.xlu1 %5346  ;;  %v12631_v17 = vpop.permute.xlu0 %5342 }
 0x57e   : > { %15947 = vst [vmem:[#allocation102_spill] sm:$0xff] %v12629_v39  ;;  %15948 = vst [vmem:[#allocation37_spill] sm:$0xff] %v12631_v17  ;;  %v5697_v17 = vrot.slane %v4792_v33, %v15814_v23 }
 0x57f   : > { %5680 = vbcast.lane.b32.xlu1 %v5673_v62, 265  ;;  %5676 = vbcast.lane.b32.xlu0 %v5673_v62, 257 }
 0x581   : > { %v12636_v13 = vpop.permute.xlu1 %5357  ;;  %v12638_v56 = vpop.permute.xlu0 %5353 }
 0x582   : > { %15950 = vst [vmem:[#allocation38_spill] sm:$0xff] %v12636_v13  ;;  %15951 = vst [vmem:[#allocation111_spill] sm:$0xff] %v12638_v56 }
 0x583   : > { %5692 = vbcast.lane.b32.xlu1 %v5685_v0, 265  ;;  %5688 = vbcast.lane.b32.xlu0 %v5685_v0, 257  ;;  %v5721_v0 = vrot.slane %v4792_v33, %v15836_v42 }
 0x585   : > { %v12641_v31 = vpop.permute.xlu1 %5368  ;;  %v12643_v39 = vpop.permute.xlu0 %5364 }
 0x586   : > { %15952 = vst [vmem:[#allocation5_spill] sm:$0xff] %v12641_v31  ;;  %15953 = vst [vmem:[#allocation100_spill] sm:$0xff] %v12643_v39 }
 0x587   : > { %5704 = vbcast.lane.b32.xlu1 %v5697_v17, 265  ;;  %5700 = vbcast.lane.b32.xlu0 %v5697_v17, 257  ;;  %v5733_v17 = vrot.slane %v4792_v33, %v15853_v43 }
 0x589   : > { %v12646_v62 = vpop.permute.xlu1 %5379  ;;  %v12648_v63 = vpop.permute.xlu0 %5375 }
 0x58a   : > { %15954 = vst [vmem:[#allocation23_spill] sm:$0xff] %v12646_v62  ;;  %15955 = vst [vmem:[#allocation70_spill] sm:$0xff] %v12648_v63 }
 0x58b   : > { %5716 = vbcast.lane.b32.xlu1 %v5709_v11, 265  ;;  %5712 = vbcast.lane.b32.xlu0 %v5709_v11, 257  ;;  %v5745_v11 = vrot.slane %v4792_v33, %v15863_v54 }
 0x58d   : > { %v12651_v34 = vpop.permute.xlu1 %5390  ;;  %v12653_v46 = vpop.permute.xlu0 %5386 }
 0x58e   : > { %15956 = vst [vmem:[#allocation17_spill] sm:$0xff] %v12651_v34  ;;  %15957 = vst [vmem:[#allocation110_spill] sm:$0xff] %v12653_v46 }
 0x58f   : > { %5728 = vbcast.lane.b32.xlu1 %v5721_v0, 265  ;;  %5724 = vbcast.lane.b32.xlu0 %v5721_v0, 257  ;;  %v5757_v0 = vrot.slane %v4792_v33, %v15870_v40 }
 0x591   : > { %v12656_v56 = vpop.permute.xlu1 %5401  ;;  %v12658_v39 = vpop.permute.xlu0 %5397 }
 0x592   : > { %15958 = vst [vmem:[#allocation45_spill] sm:$0xff] %v12656_v56  ;;  %15959 = vst [vmem:[#allocation91_spill] sm:$0xff] %v12658_v39 }
 0x593   : > { %5740 = vbcast.lane.b32.xlu1 %v5733_v17, 265  ;;  %5736 = vbcast.lane.b32.xlu0 %v5733_v17, 257  ;;  %v5769_v17 = vrot.slane %v4792_v33, %v15873_v26 }
 0x595   : > { %v12661_v63 = vpop.permute.xlu1 %5412  ;;  %v12663_v62 = vpop.permute.xlu0 %5408 }
 0x596   : > { %15960 = vst [vmem:[#allocation66_spill] sm:$0xff] %v12661_v63  ;;  %15961 = vst [vmem:[#allocation67_spill] sm:$0xff] %v12663_v62  ;;  %v15966_v62 = vld [vmem:[#allocation81_spill] sm:$0xff] }
 0x597   : > { %5752 = vbcast.lane.b32.xlu1 %v5745_v11, 265  ;;  %5748 = vbcast.lane.b32.xlu0 %v5745_v11, 257  ;;  %v4793_v63 = vadd.f32 %v12357_v27, %v15966_v62 }
 0x599   : > { %v12666_v46 = vpop.permute.xlu1 %5423  ;;  %v12668_v34 = vpop.permute.xlu0 %5419  ;;  %v5805_v27 = vrot.slane %v4793_v63, %v15823_v4 }
 0x59a   : > { %15962 = vst [vmem:[#allocation107_spill] sm:$0xff] %v12666_v46  ;;  %15963 = vst [vmem:[#allocation78_spill] sm:$0xff] %v12668_v34  ;;  %v5781_v34 = vrot.slane %v4792_v33, %v15874_v53 }
 0x59b   : > { %5764 = vbcast.lane.b32.xlu1 %v5757_v0, 265  ;;  %5760 = vbcast.lane.b32.xlu0 %v5757_v0, 257 }
 0x59d   : > { %v12671_v39 = vpop.permute.xlu1 %5434  ;;  %v12673_v56 = vpop.permute.xlu0 %5430 }
 0x59e   : > { %15964 = vst [vmem:[#allocation6_spill] sm:$0xff] %v12671_v39  ;;  %15965 = vst [vmem:[#allocation103_spill] sm:$0xff] %v12673_v56  ;;  %v5793_v56 = vrot.slane %v4793_v63, %v15814_v23 }
 0x59f   : > { %5776 = vbcast.lane.b32.xlu1 %v5769_v17, 265  ;;  %5772 = vbcast.lane.b32.xlu0 %v5769_v17, 257 }
 0x5a1   : > { %v12678_v11 = vpop.permute.xlu1 %5445  ;;  %v12680_v46 = vpop.permute.xlu0 %5441 }
 0x5a2   : > { %15967 = vst [vmem:[#allocation95_spill] sm:$0xff] %v12678_v11  ;;  %15968 = vst [vmem:[#allocation98_spill] sm:$0xff] %v12680_v46 }
 0x5a3   : > { %5788 = vbcast.lane.b32.xlu1 %v5781_v34, 265  ;;  %5784 = vbcast.lane.b32.xlu0 %v5781_v34, 257  ;;  %v5817_v34 = vrot.slane %v4793_v63, %v15836_v42 }
 0x5a5   : > { %v12683_v0 = vpop.permute.xlu1 %5456  ;;  %v12685_v39 = vpop.permute.xlu0 %5452 }
 0x5a6   : > { %15969 = vst [vmem:[#allocation104_spill] sm:$0xff] %v12683_v0  ;;  %15970 = vst [vmem:[#allocation20_spill] sm:$0xff] %v12685_v39 }
 0x5a7   : > { %5800 = vbcast.lane.b32.xlu1 %v5793_v56, 265  ;;  %5796 = vbcast.lane.b32.xlu0 %v5793_v56, 257  ;;  %v5829_v56 = vrot.slane %v4793_v63, %v15853_v43 }
 0x5a9   : > { %v12688_v17 = vpop.permute.xlu1 %5467  ;;  %v12690_v31 = vpop.permute.xlu0 %5463 }
 0x5aa   : > { %15971 = vst [vmem:[#allocation14_spill] sm:$0xff] %v12688_v17  ;;  %15972 = vst [vmem:[#allocation71_spill] sm:$0xff] %v12690_v31 }
 0x5ab   : > { %5812 = vbcast.lane.b32.xlu1 %v5805_v27, 265  ;;  %5808 = vbcast.lane.b32.xlu0 %v5805_v27, 257  ;;  %v5841_v27 = vrot.slane %v4793_v63, %v15863_v54 }
 0x5ad   : > { %v12693_v62 = vpop.permute.xlu1 %5478  ;;  %v12695_v33 = vpop.permute.xlu0 %5474 }
 0x5ae   : > { %15973 = vst [vmem:[#allocation50_spill] sm:$0xff] %v12693_v62  ;;  %15974 = vst [vmem:[#allocation123_spill] sm:$0xff] %v12695_v33 }
 0x5af   : > { %5824 = vbcast.lane.b32.xlu1 %v5817_v34, 265  ;;  %5820 = vbcast.lane.b32.xlu0 %v5817_v34, 257  ;;  %v5853_v34 = vrot.slane %v4793_v63, %v15870_v40 }
 0x5b1   : > { %v12698_v46 = vpop.permute.xlu1 %5489  ;;  %v12700_v39 = vpop.permute.xlu0 %5485 }
 0x5b2   : > { %15975 = vst [vmem:[#allocation101_spill] sm:$0xff] %v12698_v46  ;;  %15976 = vst [vmem:[#allocation109_spill] sm:$0xff] %v12700_v39 }
 0x5b3   : > { %5836 = vbcast.lane.b32.xlu1 %v5829_v56, 265  ;;  %5832 = vbcast.lane.b32.xlu0 %v5829_v56, 257  ;;  %v5865_v56 = vrot.slane %v4793_v63, %v15873_v26 }
 0x5b5   : > { %v12703_v31 = vpop.permute.xlu1 %5500  ;;  %v12705_v17 = vpop.permute.xlu0 %5496 }
 0x5b6   : > { %15977 = vst [vmem:[#allocation82_spill] sm:$0xff] %v12703_v31  ;;  %15978 = vst [vmem:[#allocation32_spill] sm:$0xff] %v12705_v17  ;;  %v15981_v31 = vld [vmem:[#allocation51_spill] sm:$0xff] }
 0x5b7   : > { %5848 = vbcast.lane.b32.xlu1 %v5841_v27, 265  ;;  %5844 = vbcast.lane.b32.xlu0 %v5841_v27, 257  ;;  %v12716_v17 = vadd.f32 %v12365_v35, %v15981_v31 }
 0x5b9   : > { %v12708_v33 = vpop.permute.xlu1 %5512  ;;  %v5509_v62 = vpop.permute.xlu0 %5508  ;;  %v5889_v35 = vrot.slane %v12716_v17, %v15814_v23  ;;  %v5901_v61 = vrot.slane %v12716_v17, %v15823_v4  ;;  %v5949_v1 = vrot.slane %v12716_v17, %v15870_v40 }
 0x5ba   : > { %15979 = vst [vmem:[#allocation106_spill] sm:$0xff] %v12708_v33  ;;  %v5877_v33 = vrot.slane %v4793_v63, %v15874_v53  ;;  %v6270_v11 = vsel %vm15983_vm0, %v12375_v59, %v5509_v62 }
 0x5bb   : > { %5860 = vbcast.lane.b32.xlu1 %v5853_v34, 265  ;;  %5856 = vbcast.lane.b32.xlu0 %v5853_v34, 257 }
 0x5bd   : > { %v12711_v39 = vpop.permute.xlu1 %5524  ;;  %v5521_v46 = vpop.permute.xlu0 %5520 }
 0x5be   : > { %15980 = vst [vmem:[#allocation130_spill] sm:$0xff] %v12711_v39  ;;  %v6272_v31 = vsel %vm15986_vm14, %v12380_v51, %v5521_v46  ;;  %vm15993_vm14 = vmmov %vm15983_vm0 }
 0x5bf   : > { %5872 = vbcast.lane.b32.xlu1 %v5865_v56, 265  ;;  %5868 = vbcast.lane.b32.xlu0 %v5865_v56, 257 }
 0x5c1   : > { %v12718_v0 = vpop.permute.xlu1 %5536  ;;  %v5533_v27 = vpop.permute.xlu0 %5532 }
 0x5c2   : > { %15982 = vst [vmem:[#allocation7_spill] sm:$0xff] %v12718_v0  ;;  %v6274_v34 = vsel %vm15984_vm15, %v12386_v15, %v5533_v27  ;;  %v15988_v15 = vld [vmem:[#allocation108_spill] sm:$0xff]  ;;  %vm15995_vm15 = vmmov %vm15983_vm0 }
 0x5c3   : > { %v6399_v39 = vcombine.high %v6270_v11, %v6274_v34  ;;  %5884 = vbcast.lane.b32.xlu1 %v5877_v33, 265  ;;  %5880 = vbcast.lane.b32.xlu0 %v5877_v33, 257  ;;  %v6398_v0 = vcombine.low %v6270_v11, %v6274_v34 }
 0x5c5   : > { %v12725_v13 = vpop.permute.xlu1 %5548  ;;  %v5545_v56 = vpop.permute.xlu0 %5544  ;;  %v6406_v51 = vrot.slane %v6398_v0, %v15988_v15  ;;  %v6413_v46 = vrot.slane %v6399_v39, %v15988_v15  ;;  %v5925_v0 = vrot.slane %v12716_v17, %v15853_v43 }
 0x5c6   : > { %15985 = vst [vmem:[#allocation114_spill] sm:$0xff] %v12725_v13  ;;  %v6276_v63 = vsel %vm15987_vm13, %v12391_v28, %v5545_v56  ;;  %vm15992_vm13 = vmmov %vm15983_vm0 }
 0x5c7   : > { %v6414_v59 = vcombine.low %v6272_v31, %v6276_v63  ;;  %v6415_v62 = vcombine.high %v6272_v31, %v6276_v63  ;;  %5896 = vbcast.lane.b32.xlu1 %v5889_v35, 265  ;;  %5892 = vbcast.lane.b32.xlu0 %v5889_v35, 257  ;;  %v5913_v31 = vrot.slane %v12716_v17, %v15836_v42 }
 0x5c9   : > { %v6422_v27 = vrot.slane %v6414_v59, %v15988_v15  ;;  %v6429_v33 = vrot.slane %v6415_v62, %v15988_v15  ;;  %v12735_v13 = vpop.permute.xlu1 %5560  ;;  %v5557_v10 = vpop.permute.xlu0 %5556 }
 0x5ca   : > { %15989 = vst [vmem:[#allocation19_spill] sm:$0xff] %v12735_v13  ;;  %v6278_v39 = vsel %vm15992_vm13, %v12396_v55, %v5557_v10  ;;  %vm16003_vm13 = vmmov %vm15983_vm0 }
 0x5cb   : > { %5908 = vbcast.lane.b32.xlu1 %v5901_v61, 265  ;;  %v6463_v28 = vcombine.high %v6406_v51, %v6422_v27  ;;  %v6478_v11 = vcombine.low %v6413_v46, %v6429_v33  ;;  %v6479_v34 = vcombine.high %v6413_v46, %v6429_v33  ;;  %5904 = vbcast.lane.b32.xlu0 %v5901_v61, 257 }
 0x5cd   : > { %v12741_v56 = vpop.permute.xlu1 %5572  ;;  %v5569_v35 = vpop.permute.xlu0 %5568 }
 0x5ce   : > { %15990 = vst [vmem:[#allocation127_spill] sm:$0xff] %v12741_v56  ;;  %v6280_v13 = vsel %vm15995_vm15, %v12401_v3, %v5569_v35  ;;  %vm16006_vm15 = vmmov %vm15983_vm0 }
 0x5cf   : > { %5920 = vbcast.lane.b32.xlu1 %v5913_v31, 265  ;;  %5916 = vbcast.lane.b32.xlu0 %v5913_v31, 257  ;;  %v5937_v31 = vrot.slane %v12716_v17, %v15863_v54 }
 0x5d1   : > { %v12745_v63 = vpop.permute.xlu1 %5584  ;;  %v5581_v59 = vpop.permute.xlu0 %5580 }
 0x5d2   : > { %15991 = vst [vmem:[#allocation46_spill] sm:$0xff] %v12745_v63  ;;  %v6282_v61 = vsel %vm15993_vm14, %v12406_v49, %v5581_v59  ;;  %v6462_v49 = vcombine.low %v6406_v51, %v6422_v27  ;;  %v15997_v27 = vld [vmem:[#allocation115_spill] sm:$0xff]  ;;  %vm16004_vm14 = vmmov %vm15983_vm0 }
 0x5d3   : > { %v6431_v62 = vcombine.high %v6278_v39, %v6282_v61  ;;  %5932 = vbcast.lane.b32.xlu1 %v5925_v0, 265  ;;  %5928 = vbcast.lane.b32.xlu0 %v5925_v0, 257  ;;  %v6430_v63 = vcombine.low %v6278_v39, %v6282_v61  ;;  %v12773_v61 = vrot.slane %v6463_v28, %v15997_v27 }
 0x5d4   : > { %v12770_v51 = vrot.slane %v6462_v49, %v15997_v27  ;;  %v12792_v28 = vrot.slane %v6478_v11, %v15997_v27  ;;  %v12795_v49 = vrot.slane %v6479_v34, %v15997_v27 }
 0x5d5   : > { %v12753_v33 = vpop.permute.xlu1 %5596  ;;  %v5593_v46 = vpop.permute.xlu0 %5592  ;;  %v6438_v3 = vrot.slane %v6430_v63, %v15988_v15  ;;  %v6445_v35 = vrot.slane %v6431_v62, %v15988_v15  ;;  %v5961_v63 = vrot.slane %v12716_v17, %v15873_v26 }
 0x5d6   : > { %15994 = vst [vmem:[#allocation122_spill] sm:$0xff] %v12753_v33  ;;  %v6284_v56 = vsel %vm15983_vm0, %v12411_v2, %v5593_v46  ;;  %15998 = vst [vmem:[#allocation80_spill] sm:$0xff] %v12770_v51 }
 0x5d7   : > { %v6446_v55 = vcombine.low %v6280_v13, %v6284_v56  ;;  %v6447_v10 = vcombine.high %v6280_v13, %v6284_v56  ;;  %5944 = vbcast.lane.b32.xlu1 %v5937_v31, 265  ;;  %5940 = vbcast.lane.b32.xlu0 %v5937_v31, 257 }
 0x5d9   : > { %v6454_v59 = vrot.slane %v6446_v55, %v15988_v15  ;;  %v6461_v0 = vrot.slane %v6447_v10, %v15988_v15  ;;  %v12763_v33 = vpop.permute.xlu1 %5608  ;;  %v5605_v32 = vpop.permute.xlu0 %5604 }
 0x5da   : > { %15996 = vst [vmem:[#allocation112_spill] sm:$0xff] %v12763_v33 }
 0x5db   : > { %5956 = vbcast.lane.b32.xlu1 %v5949_v1, 265  ;;  %v6494_v2 = vcombine.low %v6438_v3, %v6454_v59  ;;  %v6495_v13 = vcombine.high %v6438_v3, %v6454_v59  ;;  %v6510_v56 = vcombine.low %v6445_v35, %v6461_v0  ;;  %v6511_v39 = vcombine.high %v6445_v35, %v6461_v0  ;;  %v16001_v0 = vld [vmem:[#allocation74_spill] sm:$0xff] }
 0x5dc   : > { %5952 = vbcast.lane.b32.xlu0 %v5949_v1, 257  ;;  %v5973_v59 = vrot.slane %v12716_v17, %v15874_v53  ;;  %v12801_v3 = vadd.f32 %v12363_v9, %v16001_v0 }
 0x5dd   : > { %v12775_v46 = vpop.permute.xlu1 %5620  ;;  %v5617_v31 = vpop.permute.xlu0 %5616  ;;  %v12780_v62 = vrot.slane %v6494_v2, %v15997_v27  ;;  %v12783_v55 = vrot.slane %v6495_v13, %v15997_v27  ;;  %v12786_v1 = vrot.slane %v6510_v56, %v15997_v27  ;;  %v12789_v10 = vrot.slane %v6511_v39, %v15997_v27 }
 0x5de   : > { %15999 = vst [vmem:[#allocation24_spill] sm:$0xff] %v12775_v46  ;;  %v5985_v9 = vrot.slane %v12801_v3, %v15814_v23  ;;  %v6288_v56 = vsel %vm16006_vm15, %v12421_v50, %v5617_v31  ;;  %vm16013_vm15 = vmmov %vm15983_vm0 }
 0x5df   : > { %16000 = vst [vmem:[#allocation42_spill] sm:$0xff] %v12780_v62  ;;  %5968 = vbcast.lane.b32.xlu1 %v5961_v63, 265 }
 0x5e0   : > { %5964 = vbcast.lane.b32.xlu0 %v5961_v63, 257  ;;  %v6286_v63 = vsel %vm16003_vm13, %v12416_v25, %v5605_v32  ;;  %vm16010_vm13 = vmmov %vm15983_vm0 }
 0x5e1   : > { %v12809_v34 = vpop.permute.xlu1 %5632  ;;  %v5629_v13 = vpop.permute.xlu0 %5628 }
 0x5e2   : > { %16002 = vst [vmem:[#allocation8_spill] sm:$0xff] %v12809_v34  ;;  %v6290_v0 = vsel %vm16004_vm14, %v12428_v44, %v5629_v13  ;;  %v5997_v34 = vrot.slane %v12801_v3, %v15823_v4  ;;  %vm16011_vm14 = vmmov %vm15983_vm0 }
 0x5e3   : > { %v6535_v11 = vcombine.high %v6286_v63, %v6290_v0  ;;  %5980 = vbcast.lane.b32.xlu1 %v5973_v59, 265  ;;  %v6534_v35 = vcombine.low %v6286_v63, %v6290_v0  ;;  %v6009_v63 = vrot.slane %v12801_v3, %v15836_v42 }
 0x5e4   : > { %5976 = vbcast.lane.b32.xlu0 %v5973_v59, 257 }
 0x5e5   : > { %v12823_v2 = vpop.permute.xlu1 %5644  ;;  %v5641_v17 = vpop.permute.xlu0 %5640  ;;  %v6542_v50 = vrot.slane %v6534_v35, %v15988_v15  ;;  %v6549_v31 = vrot.slane %v6535_v11, %v15988_v15  ;;  %v6021_v35 = vrot.slane %v12801_v3, %v15853_v43 }
 0x5e6   : > { %16005 = vst [vmem:[#allocation21_spill] sm:$0xff] %v12823_v2  ;;  %v6292_v39 = vsel %vm15983_vm0, %v12434_v48, %v5641_v17 }
 0x5e7   : > { %v6550_v25 = vcombine.low %v6288_v56, %v6292_v39  ;;  %v6551_v32 = vcombine.high %v6288_v56, %v6292_v39  ;;  %5992 = vbcast.lane.b32.xlu1 %v5985_v9, 265 }
 0x5e8   : > { %5988 = vbcast.lane.b32.xlu0 %v5985_v9, 257 }
 0x5e9   : > { %v6558_v44 = vrot.slane %v6550_v25, %v15988_v15  ;;  %v6565_v59 = vrot.slane %v6551_v32, %v15988_v15  ;;  %v12833_v13 = vpop.permute.xlu1 %5656  ;;  %v5653_v33 = vpop.permute.xlu0 %5652 }
 0x5ea   : > { %16007 = vst [vmem:[#allocation125_spill] sm:$0xff] %v12833_v13  ;;  %v6294_v11 = vsel %vm16010_vm13, %v12438_v19, %v5653_v33  ;;  %vm16022_vm13 = vmmov %vm15983_vm0 }
 0x5eb   : > { %6004 = vbcast.lane.b32.xlu1 %v5997_v34, 265  ;;  %v6599_v48 = vcombine.high %v6542_v50, %v6558_v44  ;;  %v6614_v17 = vcombine.low %v6549_v31, %v6565_v59  ;;  %v6615_v56 = vcombine.high %v6549_v31, %v6565_v59 }
 0x5ec   : > { %6000 = vbcast.lane.b32.xlu0 %v5997_v34, 257 }
 0x5ed   : > { %v12839_v9 = vpop.permute.xlu1 %5668  ;;  %v5665_v39 = vpop.permute.xlu0 %5664 }
 0x5ee   : > { %16008 = vst [vmem:[#allocation48_spill] sm:$0xff] %v12839_v9  ;;  %v6296_v13 = vsel %vm16013_vm15, %v12443_v29, %v5665_v39  ;;  %vm16025_vm15 = vmmov %vm15983_vm0 }
 0x5ef   : > { %6016 = vbcast.lane.b32.xlu1 %v6009_v63, 265 }
 0x5f0   : > { %6012 = vbcast.lane.b32.xlu0 %v6009_v63, 257  ;;  %v6033_v63 = vrot.slane %v12801_v3, %v15863_v54 }
 0x5f1   : > { %v12843_v0 = vpop.permute.xlu1 %5680  ;;  %v5677_v25 = vpop.permute.xlu0 %5676 }
 0x5f2   : > { %16009 = vst [vmem:[#allocation36_spill] sm:$0xff] %v12843_v0  ;;  %v6298_v34 = vsel %vm16011_vm14, %v12448_v36, %v5677_v25  ;;  %v6598_v36 = vcombine.low %v6542_v50, %v6558_v44  ;;  %v12871_v50 = vrot.slane %v6599_v48, %v15997_v27  ;;  %v16019_v48 = vld [vmem:[#allocation47_spill] sm:$0xff]  ;;  %vm16023_vm14 = vmmov %vm15983_vm0 }
 0x5f3   : > { %v6567_v32 = vcombine.high %v6294_v11, %v6298_v34  ;;  %6028 = vbcast.lane.b32.xlu1 %v6021_v35, 265  ;;  %v6566_v46 = vcombine.low %v6294_v11, %v6298_v34 }
 0x5f4   : > { %6024 = vbcast.lane.b32.xlu0 %v6021_v35, 257  ;;  %v12868_v44 = vrot.slane %v6598_v36, %v15997_v27  ;;  %v12894_v36 = vrot.slane %v6614_v17, %v15997_v27 }
 0x5f5   : > { %v12851_v59 = vpop.permute.xlu1 %5692  ;;  %v5689_v31 = vpop.permute.xlu0 %5688  ;;  %v6574_v29 = vrot.slane %v6566_v46, %v15988_v15  ;;  %v6581_v39 = vrot.slane %v6567_v32, %v15988_v15  ;;  %v6057_v46 = vrot.slane %v12801_v3, %v15873_v26 }
 0x5f6   : > { %16012 = vst [vmem:[#allocation77_spill] sm:$0xff] %v12851_v59  ;;  %v6300_v0 = vsel %vm15983_vm0, %v12453_v58, %v5689_v31  ;;  %v6045_v59 = vrot.slane %v12801_v3, %v15870_v40  ;;  %16015 = vst [vmem:[#allocation9_spill] sm:$0xff] %v12868_v44 }
 0x5f7   : > { %v6582_v19 = vcombine.low %v6296_v13, %v6300_v0  ;;  %v6583_v33 = vcombine.high %v6296_v13, %v6300_v0  ;;  %6040 = vbcast.lane.b32.xlu1 %v6033_v63, 265 }
 0x5f8   : > { %6036 = vbcast.lane.b32.xlu0 %v6033_v63, 257 }
 0x5f9   : > { %v6590_v25 = vrot.slane %v6582_v19, %v15988_v15  ;;  %v6597_v35 = vrot.slane %v6583_v33, %v15988_v15  ;;  %v12861_v9 = vpop.permute.xlu1 %5704  ;;  %v5701_v2 = vpop.permute.xlu0 %5700  ;;  %v12891_v33 = vadd.f32 %v12370_v41, %v16019_v48 }
 0x5fa   : > { %16014 = vst [vmem:[#allocation69_spill] sm:$0xff] %v12861_v9 }
 0x5fb   : > { %6052 = vbcast.lane.b32.xlu1 %v6045_v59, 265  ;;  %v6630_v58 = vcombine.low %v6574_v29, %v6590_v25  ;;  %v6631_v13 = vcombine.high %v6574_v29, %v6590_v25  ;;  %v6646_v0 = vcombine.low %v6581_v39, %v6597_v35  ;;  %v6647_v11 = vcombine.high %v6581_v39, %v6597_v35 }
 0x5fc   : > { %6048 = vbcast.lane.b32.xlu0 %v6045_v59, 257  ;;  %v12897_v25 = vrot.slane %v6615_v56, %v15997_v27  ;;  %v6069_v35 = vrot.slane %v12801_v3, %v15874_v53 }
 0x5fd   : > { %v12873_v34 = vpop.permute.xlu1 %5716  ;;  %v5713_v31 = vpop.permute.xlu0 %5712  ;;  %v12878_v32 = vrot.slane %v6630_v58, %v15997_v27  ;;  %v12881_v63 = vrot.slane %v6631_v13, %v15997_v27  ;;  %v12884_v59 = vrot.slane %v6646_v0, %v15997_v27  ;;  %v12887_v19 = vrot.slane %v6647_v11, %v15997_v27 }
 0x5fe   : > { %16016 = vst [vmem:[#allocation124_spill] sm:$0xff] %v12873_v34  ;;  %16020 = vst [vmem:[#allocation11_spill] sm:$0xff] %v12897_v25  ;;  %v6302_v11 = vsel %vm16022_vm13, %v12458_v47, %v5701_v2  ;;  %v6081_v13 = vrot.slane %v12891_v33, %v15814_v23  ;;  %v6304_v3 = vsel %vm16025_vm15, %v12463_v57, %v5713_v31 }
 0x5ff   : > { %16017 = vst [vmem:[#allocation35_spill] sm:$0xff] %v12878_v32  ;;  %16018 = vst [vmem:[#allocation10_spill] sm:$0xff] %v12887_v19  ;;  %6064 = vbcast.lane.b32.xlu1 %v6057_v46, 265  ;;  %v6093_v19 = vrot.slane %v12891_v33, %v15823_v4 }
 0x600   : > { %6060 = vbcast.lane.b32.xlu0 %v6057_v46, 257  ;;  %vm16029_vm13 = vmmov %vm15983_vm0 }
 0x601   : > { %v12907_v58 = vpop.permute.xlu1 %5728  ;;  %v5725_v17 = vpop.permute.xlu0 %5724  ;;  %vm16032_vm15 = vmmov %vm15983_vm0 }
 0x602   : > { %16021 = vst [vmem:[#allocation41_spill] sm:$0xff] %v12907_v58  ;;  %v6306_v46 = vsel %vm16023_vm14, %v12470_v22, %v5725_v17  ;;  %vm16030_vm14 = vmmov %vm15983_vm0 }
 0x603   : > { %v6943_v48 = vcombine.high %v6302_v11, %v6306_v46  ;;  %6076 = vbcast.lane.b32.xlu1 %v6069_v35, 265  ;;  %v6942_v41 = vcombine.low %v6302_v11, %v6306_v46  ;;  %v6105_v11 = vrot.slane %v12891_v33, %v15836_v42 }
 0x604   : > { %6072 = vbcast.lane.b32.xlu0 %v6069_v35, 257 }
 0x605   : > { %v12921_v29 = vpop.permute.xlu1 %5740  ;;  %v5737_v56 = vpop.permute.xlu0 %5736  ;;  %v6950_v57 = vrot.slane %v6942_v41, %v15988_v15  ;;  %v6957_v31 = vrot.slane %v6943_v48, %v15988_v15  ;;  %v6117_v41 = vrot.slane %v12891_v33, %v15853_v43 }
 0x606   : > { %16024 = vst [vmem:[#allocation49_spill] sm:$0xff] %v12921_v29  ;;  %v6308_v0 = vsel %vm15983_vm0, %v12475_v60, %v5737_v56  ;;  %v16187_v29 = vld [vmem:[#allocation95_spill] sm:$0xff] }
 0x607   : > { %v6958_v47 = vcombine.low %v6304_v3, %v6308_v0  ;;  %v6959_v2 = vcombine.high %v6304_v3, %v6308_v0  ;;  %6088 = vbcast.lane.b32.xlu1 %v6081_v13, 265 }
 0x608   : > { %6084 = vbcast.lane.b32.xlu0 %v6081_v13, 257 }
 0x609   : > { %v6966_v22 = vrot.slane %v6958_v47, %v15988_v15  ;;  %v6973_v35 = vrot.slane %v6959_v2, %v15988_v15  ;;  %v12931_v17 = vpop.permute.xlu1 %5752  ;;  %v5749_v39 = vpop.permute.xlu0 %5748 }
 0x60a   : > { %16026 = vst [vmem:[#allocation68_spill] sm:$0xff] %v12931_v17  ;;  %v6310_v48 = vsel %vm16029_vm13, %v12480_v7, %v5749_v39  ;;  %vm16039_vm13 = vmmov %vm15983_vm0 }
 0x60b   : > { %6100 = vbcast.lane.b32.xlu1 %v6093_v19, 265  ;;  %v7007_v60 = vcombine.high %v6950_v57, %v6966_v22  ;;  %v7022_v56 = vcombine.low %v6957_v31, %v6973_v35  ;;  %v7023_v3 = vcombine.high %v6957_v31, %v6973_v35 }
 0x60c   : > { %6096 = vbcast.lane.b32.xlu0 %v6093_v19, 257 }
 0x60d   : > { %v12937_v13 = vpop.permute.xlu1 %5764  ;;  %v5761_v0 = vpop.permute.xlu0 %5760 }
 0x60e   : > { %16027 = vst [vmem:[#allocation44_spill] sm:$0xff] %v12937_v13  ;;  %v6312_v25 = vsel %vm16032_vm15, %v12485_v20, %v5761_v0  ;;  %vm16042_vm15 = vmmov %vm15983_vm0 }
 0x60f   : > { %6112 = vbcast.lane.b32.xlu1 %v6105_v11, 265 }
 0x610   : > { %6108 = vbcast.lane.b32.xlu0 %v6105_v11, 257  ;;  %v6129_v11 = vrot.slane %v12891_v33, %v15863_v54 }
 0x611   : > { %v12941_v46 = vpop.permute.xlu1 %5776  ;;  %v5773_v47 = vpop.permute.xlu0 %5772 }
 0x612   : > { %16028 = vst [vmem:[#allocation128_spill] sm:$0xff] %v12941_v46  ;;  %v6314_v19 = vsel %vm16030_vm14, %v12490_v18, %v5773_v47  ;;  %v7006_v18 = vcombine.low %v6950_v57, %v6966_v22  ;;  %v6141_v46 = vrot.slane %v12891_v33, %v15870_v40  ;;  %v12969_v57 = vrot.slane %v7007_v60, %v15997_v27  ;;  %vm16040_vm14 = vmmov %vm15983_vm0 }
 0x613   : > { %v6975_v2 = vcombine.high %v6310_v48, %v6314_v19  ;;  %6124 = vbcast.lane.b32.xlu1 %v6117_v41, 265  ;;  %v6974_v9 = vcombine.low %v6310_v48, %v6314_v19  ;;  %v12988_v60 = vrot.slane %v7022_v56, %v15997_v27 }
 0x614   : > { %6120 = vbcast.lane.b32.xlu0 %v6117_v41, 257  ;;  %v12966_v22 = vrot.slane %v7006_v18, %v15997_v27  ;;  %v6165_v18 = vrot.slane %v12891_v33, %v15874_v53 }
 0x615   : > { %v12949_v35 = vpop.permute.xlu1 %5788  ;;  %v5785_v31 = vpop.permute.xlu0 %5784  ;;  %v6982_v20 = vrot.slane %v6974_v9, %v15988_v15  ;;  %v6989_v0 = vrot.slane %v6975_v2, %v15988_v15  ;;  %v6153_v9 = vrot.slane %v12891_v33, %v15873_v26 }
 0x616   : > { %16031 = vst [vmem:[#allocation79_spill] sm:$0xff] %v12949_v35  ;;  %v6316_v17 = vsel %vm15983_vm0, %v12495_v30, %v5785_v31  ;;  %16034 = vst [vmem:[#allocation22_spill] sm:$0xff] %v12966_v22 }
 0x617   : > { %v6990_v7 = vcombine.low %v6312_v25, %v6316_v17  ;;  %v6991_v39 = vcombine.high %v6312_v25, %v6316_v17  ;;  %6136 = vbcast.lane.b32.xlu1 %v6129_v11, 265 }
 0x618   : > { %6132 = vbcast.lane.b32.xlu0 %v6129_v11, 257 }
 0x619   : > { %v6998_v47 = vrot.slane %v6990_v7, %v15988_v15  ;;  %v7005_v41 = vrot.slane %v6991_v39, %v15988_v15  ;;  %v12959_v58 = vpop.permute.xlu1 %5800  ;;  %v5797_v34 = vpop.permute.xlu0 %5796  ;;  %v12991_v39 = vrot.slane %v7023_v3, %v15997_v27 }
 0x61a   : > { %16033 = vst [vmem:[#allocation126_spill] sm:$0xff] %v12959_v58 }
 0x61b   : > { %6148 = vbcast.lane.b32.xlu1 %v6141_v46, 265  ;;  %v7038_v30 = vcombine.low %v6982_v20, %v6998_v47  ;;  %v7039_v25 = vcombine.high %v6982_v20, %v6998_v47  ;;  %v7054_v17 = vcombine.low %v6989_v0, %v7005_v41  ;;  %v7055_v48 = vcombine.high %v6989_v0, %v7005_v41  ;;  %v16037_v47 = vld [vmem:[#allocation13_spill] sm:$0xff] }
 0x61c   : > { %6144 = vbcast.lane.b32.xlu0 %v6141_v46, 257  ;;  %v12997_v41 = vadd.f32 %v12368_v8, %v16037_v47 }
 0x61d   : > { %v12971_v19 = vpop.permute.xlu1 %5812  ;;  %v5809_v31 = vpop.permute.xlu0 %5808  ;;  %v12976_v2 = vrot.slane %v7038_v30, %v15997_v27  ;;  %v12979_v11 = vrot.slane %v7039_v25, %v15997_v27  ;;  %v12982_v46 = vrot.slane %v7054_v17, %v15997_v27  ;;  %v12985_v7 = vrot.slane %v7055_v48, %v15997_v27 }
 0x61e   : > { %16035 = vst [vmem:[#allocation76_spill] sm:$0xff] %v12971_v19  ;;  %v6318_v48 = vsel %vm16039_vm13, %v12500_v37, %v5797_v34  ;;  %v6177_v8 = vrot.slane %v12997_v41, %v15814_v23  ;;  %v6320_v25 = vsel %vm16042_vm15, %v12505_v12, %v5809_v31  ;;  %v6189_v23 = vrot.slane %v12997_v41, %v15823_v4  ;;  %vm16046_vm13 = vmmov %vm15983_vm0  ;;  %v16086_v19 = vld [vmem:[#allocation132_spill] sm:$0xff] }
 0x61f   : > { %16036 = vst [vmem:[#allocation18_spill] sm:$0xff] %v12976_v2  ;;  %6160 = vbcast.lane.b32.xlu1 %v6153_v9, 265  ;;  %vm16049_vm15 = vmmov %vm15983_vm0 }
 0x620   : > { %6156 = vbcast.lane.b32.xlu0 %v6153_v9, 257 }
 0x621   : > { %v13005_v3 = vpop.permute.xlu1 %5824  ;;  %v5821_v30 = vpop.permute.xlu0 %5820 }
 0x622   : > { %16038 = vst [vmem:[#allocation81_spill] sm:$0xff] %v13005_v3  ;;  %v6322_v9 = vsel %vm16040_vm14, %v12512_v6, %v5821_v30  ;;  %vm16047_vm14 = vmmov %vm15983_vm0  ;;  %v16084_v3 = vld [vmem:[#allocation57_spill] sm:$0xff] }
 0x623   : > { %v7079_v47 = vcombine.high %v6318_v48, %v6322_v9  ;;  %6172 = vbcast.lane.b32.xlu1 %v6165_v18, 265  ;;  %v7078_v0 = vcombine.low %v6318_v48, %v6322_v9  ;;  %v6201_v48 = vrot.slane %v12997_v41, %v15836_v42  ;;  %v6225_v42 = vrot.slane %v12997_v41, %v15863_v54 }
 0x624   : > { %6168 = vbcast.lane.b32.xlu0 %v6165_v18, 257 }
 0x625   : > { %v13019_v56 = vpop.permute.xlu1 %5836  ;;  %v5833_v33 = vpop.permute.xlu0 %5832  ;;  %v7086_v12 = vrot.slane %v7078_v0, %v15988_v15  ;;  %v7093_v31 = vrot.slane %v7079_v47, %v15988_v15  ;;  %v6213_v0 = vrot.slane %v12997_v41, %v15853_v43 }
 0x626   : > { %16041 = vst [vmem:[#allocation51_spill] sm:$0xff] %v13019_v56  ;;  %v6324_v17 = vsel %vm15983_vm0, %v12517_v45, %v5833_v33 }
 0x627   : > { %v7094_v37 = vcombine.low %v6320_v25, %v6324_v17  ;;  %v7095_v34 = vcombine.high %v6320_v25, %v6324_v17  ;;  %6184 = vbcast.lane.b32.xlu1 %v6177_v8, 265 }
 0x628   : > { %6180 = vbcast.lane.b32.xlu0 %v6177_v8, 257 }
 0x629   : > { %v7102_v6 = vrot.slane %v7094_v37, %v15988_v15  ;;  %v7109_v18 = vrot.slane %v7095_v34, %v15988_v15  ;;  %v13029_v30 = vpop.permute.xlu1 %5848  ;;  %v5845_v20 = vpop.permute.xlu0 %5844 }
 0x62a   : > { %16043 = vst [vmem:[#allocation108_spill] sm:$0xff] %v13029_v30  ;;  %v6326_v47 = vsel %vm16046_vm13, %v12522_v16, %v5845_v20  ;;  %vm16054_vm13 = vmmov %vm15983_vm0  ;;  %v16081_v30 = vld [vmem:[#allocation129_spill] sm:$0xff] }
 0x62b   : > { %6196 = vbcast.lane.b32.xlu1 %v6189_v23, 265  ;;  %v7143_v45 = vcombine.high %v7086_v12, %v7102_v6  ;;  %v7158_v33 = vcombine.low %v7093_v31, %v7109_v18  ;;  %v7159_v25 = vcombine.high %v7093_v31, %v7109_v18 }
 0x62c   : > { %6192 = vbcast.lane.b32.xlu0 %v6189_v23, 257 }
 0x62d   : > { %v13035_v8 = vpop.permute.xlu1 %5860  ;;  %v5857_v17 = vpop.permute.xlu0 %5856 }
 0x62e   : > { %16044 = vst [vmem:[#allocation115_spill] sm:$0xff] %v13035_v8 }
 0x62f   : > { %6208 = vbcast.lane.b32.xlu1 %v6201_v48, 265 }
 0x630   : > { %6204 = vbcast.lane.b32.xlu0 %v6201_v48, 257  ;;  %v6328_v48 = vsel %vm16049_vm15, %v12527_v24, %v5857_v17  ;;  %vm16058_vm15 = vmmov %vm15983_vm0 }
 0x631   : > { %v13039_v9 = vpop.permute.xlu1 %5872  ;;  %v5869_v4 = vpop.permute.xlu0 %5868 }
 0x632   : > { %16045 = vst [vmem:[#allocation74_spill] sm:$0xff] %v13039_v9  ;;  %v6330_v37 = vsel %vm16047_vm14, %v12532_v52, %v5869_v4  ;;  %v7142_v52 = vcombine.low %v7086_v12, %v7102_v6  ;;  %vm16056_vm14 = vmmov %vm15983_vm0 }
 0x633   : > { %v7111_v34 = vcombine.high %v6326_v47, %v6330_v37  ;;  %6220 = vbcast.lane.b32.xlu1 %v6213_v0, 265  ;;  %v7110_v23 = vcombine.low %v6326_v47, %v6330_v37 }
 0x634   : > { %6216 = vbcast.lane.b32.xlu0 %v6213_v0, 257  ;;  %v6237_v0 = vrot.slane %v12997_v41, %v15870_v40  ;;  %v13062_v6 = vrot.slane %v7142_v52, %v15997_v27  ;;  %v13065_v40 = vrot.slane %v7143_v45, %v15997_v27  ;;  %v13082_v45 = vrot.slane %v7158_v33, %v15997_v27 }
 0x635   : > { %v13047_v18 = vpop.permute.xlu1 %5884  ;;  %v5881_v31 = vpop.permute.xlu0 %5880  ;;  %v7118_v58 = vrot.slane %v7110_v23, %v15988_v15  ;;  %v7125_v54 = vrot.slane %v7111_v34, %v15988_v15  ;;  %v6249_v34 = vrot.slane %v12997_v41, %v15873_v26  ;;  %v6261_v26 = vrot.slane %v12997_v41, %v15874_v53 }
 0x636   : > { %16048 = vst [vmem:[#allocation47_spill] sm:$0xff] %v13047_v18  ;;  %v6332_v43 = vsel %vm15983_vm0, %v12537_v38, %v5881_v31  ;;  %16050 = vst [vmem:[#allocation13_spill] sm:$0xff] %v13062_v6 }
 0x637   : > { %6232 = vbcast.lane.b32.xlu1 %v6225_v42, 265  ;;  %v7126_v16 = vcombine.low %v6328_v48, %v6332_v43  ;;  %v7127_v20 = vcombine.high %v6328_v48, %v6332_v43 }
 0x638   : > { %6228 = vbcast.lane.b32.xlu0 %v6225_v42, 257 }
 0x639   : > { %v5897_v4 = vpop.permute.xlu1 %5896  ;;  %v7134_v47 = vrot.slane %v7126_v16, %v15988_v15  ;;  %v7141_v24 = vrot.slane %v7127_v20, %v15988_v15  ;;  %v5893_v17 = vpop.permute.xlu0 %5892  ;;  %v13085_v20 = vrot.slane %v7159_v25, %v15997_v27  ;;  %v16063_v25 = vld [vmem:[#allocation26_spill] sm:$0xff] }
 0x63a   : > { %v13105_v41 = vsel %vm16054_vm13, %v12540_v14, %v5897_v4  ;;  %v6663_v14 = vcombine.high %v12868_v44, %v12878_v32  ;;  %v16060_v4 = vld [vmem:[#allocation121_spill] sm:$0xff]  ;;  %vm16061_vm13 = vmmov %vm15983_vm0  ;;  %v16072_v32 = vld [vmem:[#allocation88_spill] sm:$0xff] }
 0x63b   : > { %6244 = vbcast.lane.b32.xlu1 %v6237_v0, 265  ;;  %v7174_v38 = vcombine.low %v7118_v58, %v7134_v47  ;;  %v7175_v37 = vcombine.high %v7118_v58, %v7134_v47  ;;  %v7190_v31 = vcombine.low %v7125_v54, %v7141_v24  ;;  %v7191_v48 = vcombine.high %v7125_v54, %v7141_v24  ;;  %v16068_v54 = vld [vmem:[#allocation30_spill] sm:$0xff] }
 0x63c   : > { %6240 = vbcast.lane.b32.xlu0 %v6237_v0, 257  ;;  %16053 = vst [vmem:[#allocation138_spill] sm:$0xff] %v13085_v20  ;;  %16055 = vst [vmem:[#allocation139_spill] sm:$0xff] %v13105_v41  ;;  %v16122_v20 = vld [vmem:[#allocation86_spill] sm:$0xff] }
 0x63d   : > { %v5909_v12 = vpop.permute.xlu1 %5908  ;;  %v13070_v42 = vrot.slane %v7174_v38, %v15997_v27  ;;  %v13073_v23 = vrot.slane %v7175_v37, %v15997_v27  ;;  %v13076_v58 = vrot.slane %v7190_v31, %v15997_v27  ;;  %v13079_v43 = vrot.slane %v7191_v48, %v15997_v27  ;;  %v5905_v16 = vpop.permute.xlu0 %5904 }
 0x63e   : > { %v6334_v31 = vsel %vm16058_vm15, %v12542_v5, %v5893_v17  ;;  %vm16067_vm15 = vmmov %vm15983_vm0 }
 0x63f   : > { %16051 = vst [vmem:[#allocation136_spill] sm:$0xff] %v13070_v42  ;;  %16052 = vst [vmem:[#allocation137_spill] sm:$0xff] %v13079_v43  ;;  %6256 = vbcast.lane.b32.xlu1 %v6249_v34, 265 }
 0x640   : > { %6252 = vbcast.lane.b32.xlu0 %v6249_v34, 257  ;;  %v16059_v34 = vld [vmem:[#allocation39_spill] sm:$0xff] }
 0x641   : > { %v5921_v47 = vpop.permute.xlu1 %5920  ;;  %v5917_v37 = vpop.permute.xlu0 %5916 }
 0x642   : > { %v13109_v38 = vsel %vm16056_vm14, %v12552_v21, %v5921_v47  ;;  %v6338_v52 = vsel %vm15983_vm0, %v16059_v34, %v5917_v37  ;;  %v13121_v21 = vsel %vm16061_vm13, %v16060_v4, %v5909_v12  ;;  %vm16064_vm14 = vmmov %vm15983_vm0  ;;  %v6527_v37 = vcombine.high %v12770_v51, %v12780_v62  ;;  %v16066_v34 = vld [vmem:[#allocation40_spill] sm:$0xff]  ;;  %v16078_v51 = vld [vmem:[#allocation54_spill] sm:$0xff] }
 0x643   : > { %16057 = vst [vmem:[#allocation140_spill] sm:$0xff] %v13109_v38  ;;  %v7759_v48 = vcombine.high %v13105_v41, %v13109_v38  ;;  %6268 = vbcast.lane.b32.xlu1 %v6261_v26, 265  ;;  %v7487_v53 = vcombine.high %v6334_v31, %v6338_v52  ;;  %16062 = vst [vmem:[#allocation39_spill] sm:$0xff] %v13121_v21  ;;  %v7486_v47 = vcombine.low %v6334_v31, %v6338_v52  ;;  %v16125_v41 = vld [vmem:[#allocation4_spill] sm:$0xff]  ;;  %v16128_v38 = vld [vmem:[#allocation75_spill] sm:$0xff] }
 0x644   : > { %6264 = vbcast.lane.b32.xlu0 %v6261_v26, 257  ;;  %v6336_v26 = vsel %vm16067_vm15, %v16066_v34, %v5905_v16  ;;  %v7071_v16 = vcombine.high %v12966_v22, %v12976_v2  ;;  %v7207_v4 = vcombine.high %v13062_v6, %v13070_v42  ;;  %vm16070_vm13 = vmmov %vm15983_vm0 }
 0x645   : > { %v5933_v24 = vpop.permute.xlu1 %5932  ;;  %v5929_v17 = vpop.permute.xlu0 %5928  ;;  %vm16076_vm15 = vmmov %vm15983_vm0 }
 0x646   : > { %v13125_v5 = vsel %vm16064_vm14, %v16063_v25, %v5933_v24  ;;  %v6340_v0 = vsel %vm15983_vm0, %v16068_v54, %v5929_v17  ;;  %v13138_v25 = vrot.slane %v7759_v48, %v15988_v15  ;;  %v7494_v54 = vrot.slane %v7486_v47, %v15988_v15  ;;  %vm16073_vm14 = vmmov %vm15983_vm0 }
 0x647   : > { %16065 = vst [vmem:[#allocation121_spill] sm:$0xff] %v13125_v5  ;;  %v7775_v33 = vcombine.high %v13121_v21, %v13125_v5  ;;  %8584 = vrot.lane.b32.xlu1 %v6663_v14, %s9325_s14  ;;  %v7502_v12 = vcombine.low %v6336_v26, %v6340_v0  ;;  %v7503_v52 = vcombine.high %v6336_v26, %v6340_v0 }
 0x648   : > { %8582 = vrot.lane.b32.xlu0 %v6527_v37, %s9325_s14  ;;  %v7501_v14 = vrot.slane %v7487_v53, %v15988_v15  ;;  %v16075_v37 = vld [vmem:[#allocation73_spill] sm:$0xff] }
 0x649   : > { %v13141_v24 = vrot.slane %v7775_v33, %v15988_v15  ;;  %v5945_v31 = vpop.permute.xlu1 %5944  ;;  %v7510_v0 = vrot.slane %v7502_v12, %v15988_v15  ;;  %v7517_v17 = vrot.slane %v7503_v52, %v15988_v15  ;;  %v5941_v48 = vpop.permute.xlu0 %5940  ;;  %v16069_v12 = vld [vmem:[#allocation72_spill] sm:$0xff] }
 0x64a   : > { %v13159_v52 = vsel %vm16070_vm13, %v16069_v12, %v5945_v31  ;;  %vm16082_vm13 = vmmov %vm15983_vm0 }
 0x64b   : > { %v7838_v33 = vcombine.low %v13138_v25, %v13141_v24  ;;  %8588 = vrot.lane.b32.xlu1 %v7207_v4, %s9325_s14  ;;  %v7551_v34 = vcombine.high %v7494_v54, %v7510_v0  ;;  %v7566_v26 = vcombine.low %v7501_v14, %v7517_v17  ;;  %v7567_v42 = vcombine.high %v7501_v14, %v7517_v17  ;;  %v16077_v17 = vld [vmem:[#allocation83_spill] sm:$0xff] }
 0x64c   : > { %8586 = vrot.lane.b32.xlu0 %v7071_v16, %s9325_s14  ;;  %16071 = vst [vmem:[#allocation26_spill] sm:$0xff] %v13159_v52  ;;  %v6342_v4 = vsel %vm16076_vm15, %v16075_v37, %v5941_v48  ;;  %vm16087_vm15 = vmmov %vm15983_vm0  ;;  %v7550_v8 = vcombine.low %v7494_v54, %v7510_v0 }
 0x64d   : > { %v5957_v47 = vpop.permute.xlu1 %5956 }
 0x64e   : > { %v5953_v53 = vpop.permute.xlu0 %5952  ;;  %v13173_v31 = vsel %vm16079_vm12, %v16078_v51, %v5957_v47  ;;  %v13192_v0 = vrot.slane %v7550_v8, %v15997_v27  ;;  %vm16096_vm12 = vmmov %vm15983_vm0 }
 0x64f   : > { %16080 = vst [vmem:[#allocation30_spill] sm:$0xff] %v13173_v31 }
 0x650   : > { %16088 = vst [vmem:[#allocation88_spill] sm:$0xff] %v13192_v0 }
 0x651   : > { %v5969_v6 = vpop.permute.xlu1 %5968 }
 0x652   : > { %v13163_v44 = vsel %vm16073_vm14, %v16072_v32, %v5969_v6  ;;  %v5965_v2 = vpop.permute.xlu0 %5964  ;;  %vm16085_vm14 = vmmov %vm15983_vm0 }
 0x653   : > { %16074 = vst [vmem:[#allocation40_spill] sm:$0xff] %v13163_v44  ;;  %v7791_v14 = vcombine.high %v13159_v52, %v13163_v44  ;;  %v6346_v16 = vsel %vm15983_vm0, %v16077_v17, %v5965_v2  ;;  %v6344_v48 = vsel %vm16085_vm14, %v16084_v3, %v5953_v53  ;;  %vm16103_vm14 = vmmov %vm15983_vm0 }
 0x654   : > { %v7519_v22 = vcombine.high %v6342_v4, %v6346_v16  ;;  %v7518_v12 = vcombine.low %v6342_v4, %v6346_v16 }
 0x655   : > { %v5981_v62 = vpop.permute.xlu1 %5980  ;;  %v7805_v51 = vrot.slane %v7791_v14, %v15988_v15  ;;  %v13195_v14 = vrot.slane %v7551_v34, %v15997_v27  ;;  %v13213_v34 = vrot.slane %v7838_v33, %v15997_v27 }
 0x656   : > { %v13177_v32 = vsel %vm16082_vm13, %v16081_v30, %v5981_v62  ;;  %v5977_v6 = vpop.permute.xlu0 %5976  ;;  %v7526_v62 = vrot.slane %v7518_v12, %v15988_v15  ;;  %v7533_v30 = vrot.slane %v7519_v22, %v15988_v15  ;;  %v13198_v12 = vrot.slane %v7566_v26, %v15997_v27  ;;  %vm16101_vm13 = vmmov %vm15983_vm0 }
 0x657   : > { %16083 = vst [vmem:[#allocation72_spill] sm:$0xff] %v13177_v32  ;;  %v7807_v37 = vcombine.high %v13173_v31, %v13177_v32  ;;  %v6348_v2 = vsel %vm16087_vm15, %v16086_v19, %v5977_v6  ;;  %16090 = vst [vmem:[#allocation83_spill] sm:$0xff] %v13213_v34  ;;  %v13216_v26 = vrot.slane %v7567_v42, %v15997_v27 }
 0x658   : > { %v7534_v17 = vcombine.low %v6344_v48, %v6348_v2  ;;  %v7535_v9 = vcombine.high %v6344_v48, %v6348_v2  ;;  %vm16105_vm15 = vmmov %vm15983_vm0 }
 0x659   : > { %v7821_v47 = vrot.slane %v7807_v37, %v15988_v15  ;;  %v5993_v4 = vpop.permute.xlu1 %5992 }
 0x65a   : > { %v7542_v3 = vrot.slane %v7534_v17, %v15988_v15  ;;  %v7549_v53 = vrot.slane %v7535_v9, %v15988_v15  ;;  %v5989_v16 = vpop.permute.xlu0 %5988 }
 0x65b   : > { %v7870_v56 = vcombine.low %v7805_v51, %v7821_v47  ;;  %v7871_v18 = vcombine.high %v7805_v51, %v7821_v47 }
 0x65c   : > { %v7582_v19 = vcombine.low %v7526_v62, %v7542_v3  ;;  %v7583_v6 = vcombine.high %v7526_v62, %v7542_v3  ;;  %v7598_v48 = vcombine.low %v7533_v30, %v7549_v53  ;;  %v7599_v54 = vcombine.high %v7533_v30, %v7549_v53 }
 0x65d   : > { %v6005_v22 = vpop.permute.xlu1 %6004  ;;  %v13219_v51 = vrot.slane %v7870_v56, %v15997_v27  ;;  %v13222_v47 = vrot.slane %v7871_v18, %v15997_v27  ;;  %v16098_v56 = vld [vmem:[#allocation117_spill] sm:$0xff]  ;;  %v16100_v18 = vld [vmem:[#allocation43_spill] sm:$0xff] }
 0x65e   : > { %v13201_v37 = vrot.slane %v7582_v19, %v15997_v27  ;;  %v13204_v9 = vrot.slane %v7583_v6, %v15997_v27  ;;  %v13207_v2 = vrot.slane %v7598_v48, %v15997_v27  ;;  %v13210_v17 = vrot.slane %v7599_v54, %v15997_v27  ;;  %v6001_v8 = vpop.permute.xlu0 %6000  ;;  %v16095_v54 = vld [vmem:[#allocation133_spill] sm:$0xff] }
 0x65f   : > { %16091 = vst [vmem:[#allocation54_spill] sm:$0xff] %v13219_v51  ;;  %16092 = vst [vmem:[#allocation129_spill] sm:$0xff] %v13222_v47  ;;  %v16093_v6 = vcombine.high %v13138_v25, %v13141_v24  ;;  %v13248_v33 = vsel %vm16096_vm12, %v16095_v54, %v5993_v4  ;;  %v6350_v19 = vsel %vm16101_vm13, %v16100_v18, %v5989_v16  ;;  %v16102_v25 = vld [vmem:[#allocation118_spill] sm:$0xff]  ;;  %v16104_v18 = vld [vmem:[#allocation135_spill] sm:$0xff] }
 0x660   : > { %16089 = vst [vmem:[#allocation73_spill] sm:$0xff] %v13201_v37  ;;  %v7615_v62 = vcombine.high %v13192_v0, %v13201_v37  ;;  %16097 = vst [vmem:[#allocation132_spill] sm:$0xff] %v13248_v33  ;;  %v13271_v54 = vsel %vm16105_vm15, %v16104_v18, %v6005_v22  ;;  %v16110_v0 = vld [vmem:[#allocation134_spill] sm:$0xff]  ;;  %v16111_v51 = vld [vmem:[#allocation25_spill] sm:$0xff] }
 0x661   : > { %v6017_v42 = vpop.permute.xlu1 %6016  ;;  %v13244_v48 = vrot.slane %v16093_v6, %v15997_v27  ;;  %16106 = vst [vmem:[#allocation117_spill] sm:$0xff] %v13271_v54  ;;  %vm16108_vm12 = vmmov %vm15983_vm0 }
 0x662   : > { %v13252_v3 = vsel %vm15983_vm0, %v16098_v56, %v6017_v42  ;;  %8590 = vrot.lane.b32.xlu0 %v7615_v62, %s9325_s14  ;;  %v6013_v53 = vpop.permute.xlu0 %6012  ;;  %v6352_v42 = vsel %vm15983_vm0, %v16110_v0, %v6001_v8  ;;  %vm16112_vm13 = vmmov %vm15983_vm0 }
 0x663   : > { %16094 = vst [vmem:[#allocation57_spill] sm:$0xff] %v13244_v48  ;;  %16099 = vst [vmem:[#allocation133_spill] sm:$0xff] %v13252_v3  ;;  %v7895_v30 = vcombine.high %v13248_v33, %v13252_v3  ;;  %v6354_v24 = vsel %vm16103_vm14, %v16102_v25, %v6013_v53  ;;  %v16107_v53 = vld [vmem:[#allocation28_spill] sm:$0xff] }
 0x664   : > { %v7623_v6 = vcombine.high %v6350_v19, %v6354_v24  ;;  %v7622_v37 = vcombine.low %v6350_v19, %v6354_v24  ;;  %vm16114_vm14 = vmmov %vm15983_vm0 }
 0x665   : > { %v6029_v56 = vpop.permute.xlu1 %6028  ;;  %v13284_v22 = vrot.slane %v7895_v30, %v15988_v15  ;;  %vm16117_vm15 = vmmov %vm15983_vm0 }
 0x666   : > { %v13275_v25 = vsel %vm16108_vm12, %v16107_v53, %v6029_v56  ;;  %v6025_v4 = vpop.permute.xlu0 %6024  ;;  %v7630_v56 = vrot.slane %v7622_v37, %v15988_v15  ;;  %v7637_v18 = vrot.slane %v7623_v6, %v15988_v15  ;;  %v16113_v37 = vld [vmem:[#allocation55_spill] sm:$0xff]  ;;  %vm16120_vm12 = vmmov %vm15983_vm0 }
 0x667   : > { %16109 = vst [vmem:[#allocation43_spill] sm:$0xff] %v13275_v25  ;;  %v7911_v62 = vcombine.high %v13271_v54, %v13275_v25  ;;  %v6356_v34 = vsel %vm16112_vm13, %v16111_v51, %v6025_v4  ;;  %v16119_v54 = vld [vmem:[#allocation52_spill] sm:$0xff]  ;;  %vm16123_vm13 = vmmov %vm15983_vm0 }
 0x668   : > { %v7638_v16 = vcombine.low %v6352_v42, %v6356_v34  ;;  %v7639_v47 = vcombine.high %v6352_v42, %v6356_v34 }
 0x669   : > { %v13287_v19 = vrot.slane %v7911_v62, %v15988_v15  ;;  %v6041_v24 = vpop.permute.xlu1 %6040 }
 0x66a   : > { %v7646_v0 = vrot.slane %v7638_v16, %v15988_v15  ;;  %v7653_v8 = vrot.slane %v7639_v47, %v15988_v15  ;;  %v6037_v53 = vpop.permute.xlu0 %6036  ;;  %v13299_v6 = vsel %vm16114_vm14, %v16113_v37, %v6041_v24  ;;  %v16116_v16 = vld [vmem:[#allocation16_spill] sm:$0xff]  ;;  %vm16126_vm14 = vmmov %vm15983_vm0 }
 0x66b   : > { %v7974_v51 = vcombine.low %v13284_v22, %v13287_v19  ;;  %v7975_v34 = vcombine.high %v13284_v22, %v13287_v19  ;;  %16115 = vst [vmem:[#allocation118_spill] sm:$0xff] %v13299_v6  ;;  %v6358_v25 = vsel %vm16120_vm12, %v16119_v54, %v6037_v53  ;;  %v16121_v19 = vld [vmem:[#allocation2_spill] sm:$0xff]  ;;  %vm16131_vm12 = vmmov %vm15983_vm0 }
 0x66c   : > { %v7687_v30 = vcombine.high %v7630_v56, %v7646_v0  ;;  %v7702_v4 = vcombine.low %v7637_v18, %v7653_v8  ;;  %v7703_v42 = vcombine.high %v7637_v18, %v7653_v8  ;;  %v7686_v52 = vcombine.low %v7630_v56, %v7646_v0 }
 0x66d   : > { %v6053_v62 = vpop.permute.xlu1 %6052 }
 0x66e   : > { %v6049_v48 = vpop.permute.xlu0 %6048  ;;  %v13313_v24 = vsel %vm16123_vm13, %v16122_v20, %v6053_v62  ;;  %v13332_v0 = vrot.slane %v7686_v52, %v15997_v27  ;;  %vm16145_vm13 = vmmov %vm15983_vm0 }
 0x66f   : > { %16124 = vst [vmem:[#allocation28_spill] sm:$0xff] %v13313_v24 }
 0x670   : > { %16132 = vst [vmem:[#allocation25_spill] sm:$0xff] %v13332_v0 }
 0x671   : > { %v6065_v33 = vpop.permute.xlu1 %6064 }
 0x672   : > { %v13303_v47 = vsel %vm16117_vm15, %v16116_v16, %v6065_v33  ;;  %v6061_v3 = vpop.permute.xlu0 %6060  ;;  %vm16129_vm15 = vmmov %vm15983_vm0 }
 0x673   : > { %16118 = vst [vmem:[#allocation135_spill] sm:$0xff] %v13303_v47  ;;  %v7927_v22 = vcombine.high %v13299_v6, %v13303_v47  ;;  %v6362_v18 = vsel %vm15983_vm0, %v16121_v19, %v6061_v3  ;;  %v6360_v54 = vsel %vm16129_vm15, %v16128_v38, %v6049_v48  ;;  %v16130_v6 = vld [vmem:[#allocation99_spill] sm:$0xff]  ;;  %vm16151_vm15 = vmmov %vm15983_vm0 }
 0x674   : > { %v7655_v8 = vcombine.high %v6358_v25, %v6362_v18  ;;  %v7654_v37 = vcombine.low %v6358_v25, %v6362_v18 }
 0x675   : > { %v6077_v43 = vpop.permute.xlu1 %6076  ;;  %v7941_v20 = vrot.slane %v7927_v22, %v15988_v15  ;;  %v13335_v22 = vrot.slane %v7687_v30, %v15997_v27  ;;  %v13353_v30 = vrot.slane %v7974_v51, %v15997_v27  ;;  %v16144_v51 = vld [vmem:[#allocation38_spill] sm:$0xff] }
 0x676   : > { %v13317_v33 = vsel %vm16126_vm14, %v16125_v41, %v6077_v43  ;;  %v6073_v16 = vpop.permute.xlu0 %6072  ;;  %v7662_v43 = vrot.slane %v7654_v37, %v15988_v15  ;;  %v7669_v41 = vrot.slane %v7655_v8, %v15988_v15  ;;  %v13338_v37 = vrot.slane %v7702_v4, %v15997_v27  ;;  %vm16148_vm14 = vmmov %vm15983_vm0 }
 0x677   : > { %16127 = vst [vmem:[#allocation134_spill] sm:$0xff] %v13317_v33  ;;  %v7943_v53 = vcombine.high %v13313_v24, %v13317_v33  ;;  %v6364_v3 = vsel %vm16131_vm12, %v16130_v6, %v6073_v16  ;;  %16137 = vst [vmem:[#allocation86_spill] sm:$0xff] %v13353_v30  ;;  %v13356_v4 = vrot.slane %v7703_v42, %v15997_v27 }
 0x678   : > { %v7670_v19 = vcombine.low %v6360_v54, %v6364_v3  ;;  %v7671_v47 = vcombine.high %v6360_v54, %v6364_v3  ;;  %16133 = vst [vmem:[#allocation55_spill] sm:$0xff] %v13338_v37  ;;  %vm16154_vm12 = vmmov %vm15983_vm0  ;;  %v16215_v37 = vld [vmem:[#allocation50_spill] sm:$0xff] }
 0x679   : > { %v7957_v25 = vrot.slane %v7943_v53, %v15988_v15  ;;  %v6089_v62 = vpop.permute.xlu1 %6088  ;;  %16138 = vst [vmem:[#allocation4_spill] sm:$0xff] %v13356_v4 }
 0x67a   : > { %v7678_v38 = vrot.slane %v7670_v19, %v15988_v15  ;;  %v7685_v48 = vrot.slane %v7671_v47, %v15988_v15  ;;  %v6085_v18 = vpop.permute.xlu0 %6084 }
 0x67b   : > { %v8006_v24 = vcombine.low %v7941_v20, %v7957_v25  ;;  %v8007_v33 = vcombine.high %v7941_v20, %v7957_v25 }
 0x67c   : > { %v7718_v6 = vcombine.low %v7662_v43, %v7678_v38  ;;  %v7719_v16 = vcombine.high %v7662_v43, %v7678_v38  ;;  %v7734_v54 = vcombine.low %v7669_v41, %v7685_v48  ;;  %v7735_v56 = vcombine.high %v7669_v41, %v7685_v48 }
 0x67d   : > { %v6101_v8 = vpop.permute.xlu1 %6100  ;;  %v13359_v20 = vrot.slane %v8006_v24, %v15997_v27  ;;  %v13362_v25 = vrot.slane %v8007_v33, %v15997_v27  ;;  %v16150_v33 = vld [vmem:[#allocation5_spill] sm:$0xff] }
 0x67e   : > { %v13341_v53 = vrot.slane %v7718_v6, %v15997_v27  ;;  %v13344_v47 = vrot.slane %v7719_v16, %v15997_v27  ;;  %v13347_v3 = vrot.slane %v7734_v54, %v15997_v27  ;;  %v13350_v19 = vrot.slane %v7735_v56, %v15997_v27  ;;  %v6097_v52 = vpop.permute.xlu0 %6096  ;;  %v16142_v54 = vld [vmem:[#allocation105_spill] sm:$0xff] }
 0x67f   : > { %16139 = vst [vmem:[#allocation75_spill] sm:$0xff] %v13359_v20  ;;  %16140 = vst [vmem:[#allocation99_spill] sm:$0xff] %v13362_v25  ;;  %v13381_v16 = vrot.slane %v7975_v34, %v15997_v27  ;;  %v13385_v56 = vsel %vm15983_vm0, %v16142_v54, %v6089_v62 }
 0x680   : > { %16134 = vst [vmem:[#allocation16_spill] sm:$0xff] %v13341_v53  ;;  %16135 = vst [vmem:[#allocation52_spill] sm:$0xff] %v13347_v3  ;;  %v7751_v43 = vcombine.high %v13332_v0, %v13341_v53 }
 0x681   : > { %16136 = vst [vmem:[#allocation2_spill] sm:$0xff] %v13350_v19  ;;  %v6113_v42 = vpop.permute.xlu1 %6112  ;;  %16141 = vst [vmem:[#allocation141_spill] sm:$0xff] %v13381_v16  ;;  %v16156_v19 = vld [vmem:[#allocation111_spill] sm:$0xff] }
 0x682   : > { %16143 = vst [vmem:[#allocation105_spill] sm:$0xff] %v13385_v56  ;;  %v13389_v38 = vsel %vm16145_vm13, %v16144_v51, %v6113_v42  ;;  %8592 = vrot.lane.b32.xlu1 %v7751_v43, %s9325_s14  ;;  %v6109_v24 = vpop.permute.xlu0 %6108  ;;  %v16147_v42 = vld [vmem:[#allocation102_spill] sm:$0xff]  ;;  %vm16157_vm13 = vmmov %vm15983_vm0 }
 0x683   : > { %16146 = vst [vmem:[#allocation38_spill] sm:$0xff] %v13389_v38  ;;  %v8303_v48 = vcombine.high %v13385_v56, %v13389_v38  ;;  %v13404_v43 = vsel %vm16148_vm14, %v16147_v42, %v6101_v8  ;;  %v16153_v8 = vld [vmem:[#allocation100_spill] sm:$0xff]  ;;  %v13424_v4 = vsel %vm16157_vm13, %v16156_v19, %v6109_v24  ;;  %v16158_v56 = vld [vmem:[#allocation23_spill] sm:$0xff]  ;;  %vm16159_vm14 = vmmov %vm15983_vm0 }
 0x684   : > { %16149 = vst [vmem:[#allocation102_spill] sm:$0xff] %v13404_v43  ;;  %v16164_v38 = vld [vmem:[#allocation113_spill] sm:$0xff]  ;;  %v16166_v24 = vld [vmem:[#allocation91_spill] sm:$0xff]  ;;  %vm16168_vm13 = vmmov %vm15983_vm0 }
 0x685   : > { %v6125_v54 = vpop.permute.xlu1 %6124  ;;  %v8317_v34 = vrot.slane %v8303_v48, %v15988_v15 }
 0x686   : > { %v13408_v41 = vsel %vm16151_vm15, %v16150_v33, %v6125_v54  ;;  %v6121_v53 = vpop.permute.xlu0 %6120  ;;  %v16155_v33 = vld [vmem:[#allocation37_spill] sm:$0xff]  ;;  %vm16162_vm15 = vmmov %vm15983_vm0 }
 0x687   : > { %16152 = vst [vmem:[#allocation5_spill] sm:$0xff] %v13408_v41  ;;  %v8319_v6 = vcombine.high %v13404_v43, %v13408_v41  ;;  %v13416_v42 = vsel %vm16154_vm12, %v16153_v8, %v6121_v53  ;;  %v13420_v54 = vsel %vm15983_vm0, %v16155_v33, %v6097_v52  ;;  %vm16165_vm12 = vmmov %vm15983_vm0  ;;  %v16169_v41 = vld [vmem:[#allocation17_spill] sm:$0xff] }
 0x688   : > { %v13438_v52 = vsel %vm16165_vm12, %v16164_v38, %v6085_v18  ;;  %vm16176_vm12 = vmmov %vm15983_vm0 }
 0x689   : > { %v8333_v62 = vrot.slane %v8319_v6, %v15988_v15  ;;  %v6137_v20 = vpop.permute.xlu1 %6136  ;;  %v8046_v6 = vcombine.low %v13420_v54, %v13416_v42 }
 0x68a   : > { %v6133_v30 = vpop.permute.xlu0 %6132 }
 0x68b   : > { %v8382_v0 = vcombine.low %v8317_v34, %v8333_v62  ;;  %v8383_v51 = vcombine.high %v8317_v34, %v8333_v62  ;;  %v13430_v34 = vsel %vm16159_vm14, %v16158_v56, %v6137_v20  ;;  %v16161_v62 = vld [vmem:[#allocation45_spill] sm:$0xff]  ;;  %v8030_v20 = vcombine.low %v13438_v52, %v13424_v4  ;;  %v16167_v56 = vld [vmem:[#allocation70_spill] sm:$0xff]  ;;  %vm16170_vm14 = vmmov %vm15983_vm0 }
 0x68c   : > { %16160 = vst [vmem:[#allocation100_spill] sm:$0xff] %v13430_v34  ;;  %v13450_v43 = vsel %vm16168_vm13, %v16167_v56, %v6133_v30  ;;  %vm16185_vm13 = vmmov %vm15983_vm0 }
 0x68d   : > { %v6149_v25 = vpop.permute.xlu1 %6148 }
 0x68e   : > { %v6145_v16 = vpop.permute.xlu0 %6144  ;;  %v13455_v18 = vsel %vm16170_vm14, %v16169_v41, %v6149_v25  ;;  %v8038_v25 = vrot.slane %v8030_v20, %v15988_v15  ;;  %vm16188_vm14 = vmmov %vm15983_vm0 }
 0x68f   : > { %16171 = vst [vmem:[#allocation111_spill] sm:$0xff] %v13455_v18 }
 0x691   : > { %v6161_v48 = vpop.permute.xlu1 %6160 }
 0x692   : > { %v13434_v53 = vsel %vm16162_vm15, %v16161_v62, %v6161_v48  ;;  %v6157_v8 = vpop.permute.xlu0 %6156  ;;  %v8054_v62 = vrot.slane %v8046_v6, %v15988_v15  ;;  %vm16173_vm15 = vmmov %vm15983_vm0  ;;  %v16177_v6 = vld [vmem:[#allocation67_spill] sm:$0xff] }
 0x693   : > { %16163 = vst [vmem:[#allocation37_spill] sm:$0xff] %v13434_v53  ;;  %v8335_v19 = vcombine.high %v13430_v34, %v13434_v53  ;;  %v13444_v33 = vsel %vm15983_vm0, %v16166_v24, %v6157_v8  ;;  %v16172_v34 = vld [vmem:[#allocation66_spill] sm:$0xff] }
 0x694   : > { %v8062_v38 = vcombine.low %v13450_v43, %v13444_v33  ;;  %v16175_v53 = vld [vmem:[#allocation110_spill] sm:$0xff]  ;;  %v8094_v5 = vcombine.low %v8038_v25, %v8054_v62 }
 0x695   : > { %v6173_v48 = vpop.permute.xlu1 %6172  ;;  %v13465_v44 = vsel %vm16176_vm12, %v16175_v53, %v6145_v16  ;;  %vm16194_vm12 = vmmov %vm15983_vm0 }
 0x696   : > { %v13461_v8 = vsel %vm16173_vm15, %v16172_v34, %v6173_v48  ;;  %v6169_v24 = vpop.permute.xlu0 %6168  ;;  %v8349_v34 = vrot.slane %v8335_v19, %v15988_v15  ;;  %v8070_v16 = vrot.slane %v8062_v38, %v15988_v15  ;;  %v13481_v20 = vrot.slane %v8094_v5, %v15997_v27  ;;  %vm16191_vm15 = vmmov %vm15983_vm0 }
 0x697   : > { %16174 = vst [vmem:[#allocation23_spill] sm:$0xff] %v13461_v8  ;;  %v8351_v30 = vcombine.high %v13455_v18, %v13461_v8  ;;  %v13471_v56 = vsel %vm15983_vm0, %v16177_v6, %v6169_v24  ;;  %v16196_v5 = vcombine.low %v12773_v61, %v12783_v55 }
 0x698   : > { %v8078_v41 = vcombine.low %v13465_v44, %v13471_v56  ;;  %16178 = vst [vmem:[#allocation45_spill] sm:$0xff] %v13481_v20 }
 0x699   : > { %v8365_v48 = vrot.slane %v8351_v30, %v15988_v15  ;;  %v6185_v21 = vpop.permute.xlu1 %6184 }
 0x69a   : > { %v8086_v53 = vrot.slane %v8078_v41, %v15988_v15  ;;  %v6181_v18 = vpop.permute.xlu0 %6180  ;;  %v13495_v41 = vrot.slane %v8382_v0, %v15997_v27 }
 0x69b   : > { %v8414_v8 = vcombine.low %v8349_v34, %v8365_v48  ;;  %v8415_v31 = vcombine.high %v8349_v34, %v8365_v48  ;;  %v13500_v48 = vrot.slane %v8383_v51, %v15997_v27 }
 0x69c   : > { %v8126_v24 = vcombine.low %v8070_v16, %v8086_v53  ;;  %16182 = vst [vmem:[#allocation17_spill] sm:$0xff] %v13495_v41 }
 0x69d   : > { %v6197_v6 = vpop.permute.xlu1 %6196  ;;  %v13487_v30 = vrot.slane %v8414_v8, %v15997_v27  ;;  %v13490_v13 = vrot.slane %v8415_v31, %v15997_v27  ;;  %16183 = vst [vmem:[#allocation66_spill] sm:$0xff] %v13500_v48 }
 0x69e   : > { %v13484_v32 = vrot.slane %v8126_v24, %v15997_v27  ;;  %v6193_v19 = vpop.permute.xlu0 %6192  ;;  %v16184_v24 = vld [vmem:[#allocation107_spill] sm:$0xff] }
 0x69f   : > { %16180 = vst [vmem:[#allocation91_spill] sm:$0xff] %v13487_v30  ;;  %16181 = vst [vmem:[#allocation70_spill] sm:$0xff] %v13490_v13  ;;  %v13504_v8 = vsel %vm16185_vm13, %v16184_v24, %v6185_v21  ;;  %v8127_v30 = vcombine.high %v8070_v16, %v8086_v53  ;;  %v16198_v16 = vcombine.low %v13195_v14, %v13204_v9 }
 0x6a0   : > { %16179 = vst [vmem:[#allocation113_spill] sm:$0xff] %v13484_v32  ;;  %v8159_v38 = vcombine.high %v13481_v20, %v13484_v32  ;;  %16186 = vst [vmem:[#allocation110_spill] sm:$0xff] %v13504_v8  ;;  %v16193_v32 = vld [vmem:[#allocation104_spill] sm:$0xff] }
 0x6a1   : > { %v6209_v34 = vpop.permute.xlu1 %6208  ;;  %vm16201_vm13 = vmmov %vm15983_vm0 }
 0x6a2   : > { %v13508_v31 = vsel %vm16188_vm14, %v16187_v29, %v6209_v34  ;;  %8594 = vrot.lane.b32.xlu0 %v8159_v38, %s9325_s14  ;;  %v6205_v35 = vpop.permute.xlu0 %6204  ;;  %v16190_v34 = vld [vmem:[#allocation6_spill] sm:$0xff]  ;;  %vm16203_vm14 = vmmov %vm15983_vm0 }
 0x6a3   : > { %16189 = vst [vmem:[#allocation67_spill] sm:$0xff] %v13508_v31  ;;  %v8439_v0 = vcombine.high %v13504_v8, %v13508_v31  ;;  %v13523_v38 = vsel %vm16191_vm15, %v16190_v34, %v6197_v6  ;;  %v8095_v34 = vcombine.high %v8038_v25, %v8054_v62  ;;  %v16199_v62 = vld [vmem:[#allocation20_spill] sm:$0xff]  ;;  %vm16205_vm15 = vmmov %vm15983_vm0 }
 0x6a4   : > { %16192 = vst [vmem:[#allocation107_spill] sm:$0xff] %v13523_v38 }
 0x6a5   : > { %v6221_v24 = vpop.permute.xlu1 %6220  ;;  %v8453_v29 = vrot.slane %v8439_v0, %v15988_v15  ;;  %v8109_v31 = vrot.slane %v8095_v34, %v15997_v27 }
 0x6a6   : > { %v13527_v20 = vsel %vm16194_vm12, %v16193_v32, %v6221_v24  ;;  %8614 = vrot.lane.b32.xlu0 %v16196_v5, %s9326_s15  ;;  %v6217_v51 = vpop.permute.xlu0 %6216  ;;  %v16197_v32 = vcombine.low %v12969_v57, %v12979_v11  ;;  %v8141_v5 = vrot.slane %v8127_v30, %v15997_v27  ;;  %vm16208_vm12 = vmmov %vm15983_vm0 }
 0x6a7   : > { %16195 = vst [vmem:[#allocation95_spill] sm:$0xff] %v13527_v20  ;;  %v8455_v21 = vcombine.high %v13523_v38, %v13527_v20  ;;  %v13549_v25 = vsel %vm15983_vm0, %v16199_v62, %v6217_v51  ;;  %v16204_v38 = vld [vmem:[#allocation14_spill] sm:$0xff]  ;;  %v16207_v20 = vld [vmem:[#allocation101_spill] sm:$0xff] }
 0x6a8   : > { %v8160_v0 = vcombine.low %v8109_v31, %v8141_v5  ;;  %v16210_v62 = vld [vmem:[#allocation78_spill] sm:$0xff] }
 0x6a9   : > { %v8469_v13 = vrot.slane %v8455_v21, %v15988_v15  ;;  %v6233_v6 = vpop.permute.xlu1 %6232  ;;  %v16200_v21 = vld [vmem:[#allocation103_spill] sm:$0xff] }
 0x6aa   : > { %8618 = vrot.lane.b32.xlu0 %v16197_v32, %s9326_s15  ;;  %v6229_v24 = vpop.permute.xlu0 %6228  ;;  %v13553_v32 = vsel %vm16201_vm13, %v16200_v21, %v6193_v19  ;;  %v13572_v21 = vsel %vm15983_vm0, %v16210_v62, %v6181_v18  ;;  %vm16212_vm13 = vmmov %vm15983_vm0 }
 0x6ab   : > { %v8518_v48 = vcombine.low %v8453_v29, %v8469_v13  ;;  %v8519_v41 = vcombine.high %v8453_v29, %v8469_v13  ;;  %v16202_v13 = vld [vmem:[#allocation98_spill] sm:$0xff]  ;;  %v8182_v34 = vcombine.low %v13553_v32, %v13549_v25 }
 0x6ac   : > { %v13557_v30 = vsel %vm16203_vm14, %v16202_v13, %v6205_v35  ;;  %v16211_v13 = vld [vmem:[#allocation109_spill] sm:$0xff]  ;;  %vm16214_vm14 = vmmov %vm15983_vm0 }
 0x6ad   : > { %v6245_v8 = vpop.permute.xlu1 %6244 }
 0x6ae   : > { %8622 = vrot.lane.b32.xlu0 %v16198_v16, %s9326_s15  ;;  %v6241_v53 = vpop.permute.xlu0 %6240  ;;  %v13563_v16 = vsel %vm16205_vm15, %v16204_v38, %v6233_v6  ;;  %v8166_v38 = vcombine.low %v13572_v21, %v13557_v30  ;;  %v16213_v6 = vld [vmem:[#allocation71_spill] sm:$0xff]  ;;  %vm16216_vm15 = vmmov %vm15983_vm0 }
 0x6af   : > { %16206 = vst [vmem:[#allocation6_spill] sm:$0xff] %v13563_v16  ;;  %v13589_v18 = vsel %vm16216_vm15, %v16215_v37, %v6245_v8  ;;  %v16223_v8 = vld [vmem:[#allocation32_spill] sm:$0xff]  ;;  %vm16258_vm15 = vmmov %vm15983_vm0 }
 0x6b0   : > { %16217 = vst [vmem:[#allocation20_spill] sm:$0xff] %v13589_v18 }
 0x6b1   : > { %v6257_v29 = vpop.permute.xlu1 %6256 }
 0x6b2   : > { %v13567_v51 = vsel %vm16208_vm12, %v16207_v20, %v6257_v29  ;;  %8626 = vrot.lane.b32.xlu0 %v8160_v0, %s9326_s15  ;;  %v6253_v19 = vpop.permute.xlu0 %6252  ;;  %v13584_v20 = vsel %vm16214_vm14, %v16213_v6, %v6229_v24  ;;  %v8190_v29 = vrot.slane %v8182_v34, %v15988_v15  ;;  %vm16219_vm12 = vmmov %vm15983_vm0  ;;  %v16222_v6 = vld [vmem:[#allocation123_spill] sm:$0xff] }
 0x6b3   : > { %16209 = vst [vmem:[#allocation104_spill] sm:$0xff] %v13567_v51  ;;  %v8471_v35 = vcombine.high %v13563_v16, %v13567_v51  ;;  %v13578_v3 = vsel %vm16212_vm13, %v16211_v13, %v6253_v19  ;;  %v16218_v16 = vld [vmem:[#allocation82_spill] sm:$0xff]  ;;  %v16221_v13 = vcombine.high %v12773_v61, %v12783_v55  ;;  %v13603_v34 = vsel %vm15983_vm0, %v16222_v6, %v6241_v53  ;;  %vm16224_vm13 = vmmov %vm15983_vm0 }
 0x6b4   : > { %v8198_v62 = vcombine.low %v13584_v20, %v13578_v3  ;;  %vm16255_vm14 = vmmov %vm15983_vm0 }
 0x6b5   : > { %v6269_v0 = vpop.permute.xlu1 %6268  ;;  %v8485_v61 = vrot.slane %v8471_v35, %v15988_v15 }
 0x6b6   : > { %v13595_v19 = vsel %vm16219_vm12, %v16218_v16, %v6269_v0  ;;  %8646 = vrot.lane.b32.xlu0 %v16221_v13, %s9327_s16  ;;  %v6265_v24 = vpop.permute.xlu0 %6264  ;;  %v8174_v16 = vrot.slane %v8166_v38, %v15988_v15  ;;  %v8206_v53 = vrot.slane %v8198_v62, %v15988_v15  ;;  %v16228_v62 = vcombine.high %v13195_v14, %v13204_v9  ;;  %vm16261_vm12 = vmmov %vm15983_vm0  ;;  %v16330_v14 = vld [vmem:[#allocation77_spill] sm:$0xff] }
 0x6b7   : > { %16220 = vst [vmem:[#allocation103_spill] sm:$0xff] %v13595_v19  ;;  %v8487_v37 = vcombine.high %v13589_v18, %v13595_v19  ;;  %v13609_v51 = vsel %vm16224_vm13, %v16223_v8, %v6265_v24  ;;  %v16225_v18 = vcombine.high %v12969_v57, %v12979_v11  ;;  %v8079_v11 = vcombine.high %v13465_v44, %v13471_v56  ;;  %vm16266_vm13 = vmmov %vm15983_vm0 }
 0x6b8   : > { %v8214_v0 = vcombine.low %v13603_v34, %v13609_v51  ;;  %v8230_v13 = vcombine.low %v8174_v16, %v8190_v29  ;;  %v8047_v9 = vcombine.high %v13420_v54, %v13416_v42  ;;  %v8031_v42 = vcombine.high %v13438_v52, %v13424_v4 }
 0x6b9   : > { %v8501_v55 = vrot.slane %v8487_v37, %v15988_v15 }
 0x6ba   : > { %v8222_v6 = vrot.slane %v8214_v0, %v15988_v15  ;;  %8650 = vrot.lane.b32.xlu0 %v16225_v18, %s9327_s16  ;;  %v13623_v19 = vrot.slane %v8230_v13, %v15997_v27  ;;  %v8161_v18 = vcombine.high %v8109_v31, %v8141_v5  ;;  %v8063_v13 = vcombine.high %v13450_v43, %v13444_v33 }
 0x6bb   : > { %v8550_v24 = vcombine.low %v8485_v61, %v8501_v55  ;;  %v8551_v8 = vcombine.high %v8485_v61, %v8501_v55  ;;  %v13643_v61 = vrot.slane %v8518_v48, %v15997_v27  ;;  %v13646_v55 = vrot.slane %v8519_v41, %v15997_v27 }
 0x6bc   : > { %v8262_v38 = vcombine.low %v8206_v53, %v8222_v6  ;;  %16226 = vst [vmem:[#allocation98_spill] sm:$0xff] %v13623_v19  ;;  %v8093_v43 = vrot.slane %v8079_v11, %v15988_v15  ;;  %v8061_v54 = vrot.slane %v8047_v9, %v15988_v15  ;;  %v8077_v33 = vrot.slane %v8063_v13, %v15988_v15 }
 0x6bd   : > { %v13633_v37 = vrot.slane %v8550_v24, %v15997_v27  ;;  %v13636_v57 = vrot.slane %v8551_v8, %v15997_v27  ;;  %16231 = vst [vmem:[#allocation109_spill] sm:$0xff] %v13643_v61  ;;  %16232 = vst [vmem:[#allocation71_spill] sm:$0xff] %v13646_v55  ;;  %v16233_v31 = vcombine.low %v12792_v28, %v12786_v1  ;;  %v16337_v55 = vld [vmem:[#allocation21_spill] sm:$0xff] }
 0x6be   : > { %v13626_v35 = vrot.slane %v8262_v38, %v15997_v27  ;;  %8654 = vrot.lane.b32.xlu0 %v16228_v62, %s9327_s16  ;;  %v16234_v5 = vcombine.low %v12871_v50, %v12881_v63  ;;  %v8045_v24 = vrot.slane %v8031_v42, %v15988_v15  ;;  %v8142_v8 = vcombine.low %v8077_v33, %v8093_v43 }
 0x6bf   : > { %16229 = vst [vmem:[#allocation101_spill] sm:$0xff] %v13633_v37  ;;  %16230 = vst [vmem:[#allocation78_spill] sm:$0xff] %v13636_v57  ;;  %v8263_v4 = vcombine.high %v8206_v53, %v8222_v6  ;;  %v8231_v38 = vcombine.high %v8174_v16, %v8190_v29  ;;  %v16235_v62 = vcombine.low %v12988_v60, %v12982_v46  ;;  %v16338_v37 = vld [vmem:[#allocation59_spill] sm:$0xff] }
 0x6c0   : > { %16227 = vst [vmem:[#allocation14_spill] sm:$0xff] %v13626_v35  ;;  %v8295_v0 = vcombine.high %v13623_v19, %v13626_v35  ;;  %v8110_v52 = vcombine.low %v8045_v24, %v8061_v54  ;;  %v16236_v11 = vcombine.low %v13065_v40, %v13073_v23  ;;  %v16237_v29 = vcombine.low %v13198_v12, %v13207_v2  ;;  %v16344_v35 = vld [vmem:[#allocation36_spill] sm:$0xff] }
 0x6c1   : > { %v8245_v53 = vrot.slane %v8231_v38, %v15997_v27  ;;  %v16238_v16 = vcombine.low %v13335_v22, %v13344_v47  ;;  %v16239_v42 = vcombine.high %v12792_v28, %v12786_v1  ;;  %v16243_v1 = vcombine.high %v13198_v12, %v13207_v2  ;;  %v16251_v38 = vld [vmem:[#allocation52_spill] sm:$0xff] }
 0x6c2   : > { %8658 = vrot.lane.b32.xlu0 %v8161_v18, %s9327_s16  ;;  %8596 = vrot.lane.b32.xlu1 %v8295_v0, %s9325_s14  ;;  %v8150_v18 = vrot.slane %v8142_v8, %v15997_v27  ;;  %v8277_v0 = vrot.slane %v8263_v4, %v15997_v27  ;;  %v8118_v9 = vrot.slane %v8110_v52, %v15997_v27  ;;  %v16250_v52 = vld [vmem:[#allocation55_spill] sm:$0xff] }
 0x6c3   : > { %v16242_v8 = vcombine.high %v13065_v40, %v13073_v23  ;;  %v16244_v28 = vcombine.high %v13335_v22, %v13344_v47  ;;  %v8199_v40 = vcombine.high %v13584_v20, %v13578_v3  ;;  %v8167_v23 = vcombine.high %v13572_v21, %v13557_v30 }
 0x6c4   : > { %v8162_v6 = vcombine.low %v8118_v9, %v8150_v18  ;;  %v8296_v13 = vcombine.low %v8245_v53, %v8277_v0  ;;  %v16245_v47 = vcombine.low %v12795_v49, %v12789_v10  ;;  %v16246_v3 = vcombine.low %v12894_v36, %v12884_v59 }
 0x6c5   : > { %v13741_v22 = vrot.slane %v8199_v40, %v15988_v15  ;;  %v16247_v20 = vcombine.low %v12991_v39, %v12985_v7  ;;  %v16249_v4 = vcombine.low %v13216_v26, %v13210_v17  ;;  %v16268_v40 = vld [vmem:[#allocation33_spill] sm:$0xff] }
 0x6c6   : > { %8678 = vrot.lane.b32.xlu0 %v16233_v31, %s9328_s17  ;;  %8616 = vrot.lane.b32.xlu1 %v16234_v5, %s9326_s15  ;;  %v16240_v31 = vcombine.high %v12871_v50, %v12881_v63  ;;  %v16241_v5 = vcombine.high %v12988_v60, %v12982_v46  ;;  %v8215_v50 = vcombine.high %v13603_v34, %v13609_v51 }
 0x6c7   : > { %v8163_v63 = vcombine.high %v8118_v9, %v8150_v18  ;;  %v8297_v46 = vcombine.high %v8245_v53, %v8277_v0  ;;  %v8183_v60 = vcombine.high %v13553_v32, %v13549_v25  ;;  %v8143_v25 = vcombine.high %v8077_v33, %v8093_v43  ;;  %v16254_v18 = vld [vmem:[#allocation63_spill] sm:$0xff] }
 0x6c8   : > { %v13735_v12 = vrot.slane %v8215_v50, %v15988_v15  ;;  %v13752_v32 = vrot.slane %v8167_v23, %v15988_v15  ;;  %v8111_v51 = vcombine.high %v8045_v24, %v8061_v54  ;;  %v16248_v34 = vcombine.low %v13082_v45, %v13076_v58  ;;  %v16264_v50 = vld [vmem:[#allocation130_spill] sm:$0xff] }
 0x6c9   : > { %v13738_v2 = vrot.slane %v8183_v60, %v15988_v15  ;;  %v13767_v43 = vrot.slane %v8143_v25, %v15997_v27  ;;  %v16267_v60 = vld [vmem:[#allocation7_spill] sm:$0xff] }
 0x6ca   : > { %8682 = vrot.lane.b32.xlu0 %v16235_v62, %s9328_s17  ;;  %8620 = vrot.lane.b32.xlu1 %v16236_v11, %s9326_s15  ;;  %v8278_v30 = vcombine.low %v13741_v22, %v13735_v12  ;;  %v13773_v54 = vrot.slane %v8111_v51, %v15997_v27  ;;  %v16252_v62 = vcombine.low %v16250_v52, %v16251_v38  ;;  %v16253_v11 = vld [vmem:[#allocation122_spill] sm:$0xff]  ;;  %v16274_v51 = vld [vmem:[#allocation27_spill] sm:$0xff] }
 0x6cb   : > { %v8246_v21 = vcombine.low %v13752_v32, %v13738_v2  ;;  %v13789_v0 = vsel %vm16255_vm14, %v16254_v18, %v16253_v11  ;;  %vm16269_vm14 = vmmov %vm15983_vm0  ;;  %v16278_v18 = vld [vmem:[#allocation49_spill] sm:$0xff]  ;;  %v8247_v41 = vcombine.high %v13752_v32, %v13738_v2  ;;  %v16331_v2 = vld [vmem:[#allocation94_spill] sm:$0xff] }
 0x6cc   : > { %v13770_v33 = vrot.slane %v8278_v30, %v15997_v27  ;;  %v8164_v9 = vcombine.low %v13773_v54, %v13767_v43  ;;  %v13822_v23 = vsel %vm16269_vm14, %v16268_v40, %v16267_v60  ;;  %v16273_v30 = vld [vmem:[#allocation79_spill] sm:$0xff]  ;;  %vm16283_vm14 = vmmov %vm15983_vm0 }
 0x6cd   : > { %v13776_v24 = vrot.slane %v8246_v21, %v15997_v27 }
 0x6ce   : > { %8686 = vrot.lane.b32.xlu0 %v16237_v29, %s9328_s17  ;;  %8624 = vrot.lane.b32.xlu1 %v16238_v16, %s9326_s15  ;;  %v16256_v29 = vld [vmem:[#allocation114_spill] sm:$0xff]  ;;  %v16257_v16 = vld [vmem:[#allocation12_spill] sm:$0xff] }
 0x6cf   : > { %v8298_v53 = vcombine.low %v13776_v24, %v13770_v33 }
 0x6d2   : > { %8690 = vrot.lane.b32.xlu0 %v8162_v6, %s9328_s17  ;;  %8628 = vrot.lane.b32.xlu1 %v8296_v13, %s9326_s15  ;;  %v13798_v6 = vsel %vm16258_vm15, %v16257_v16, %v16256_v29  ;;  %v16259_v13 = vld [vmem:[#allocation127_spill] sm:$0xff]  ;;  %vm16272_vm15 = vmmov %vm15983_vm0  ;;  %v16281_v29 = vld [vmem:[#allocation44_spill] sm:$0xff] }
 0x6d3   : > { %v16282_v16 = vld [vmem:[#allocation116_spill] sm:$0xff] }
 0x6d6   : > { %8710 = vrot.lane.b32.xlu0 %v16239_v42, %s9329_s18  ;;  %8648 = vrot.lane.b32.xlu1 %v16240_v31, %s9327_s16  ;;  %v16260_v42 = vld [vmem:[#allocation65_spill] sm:$0xff] }
 0x6d7   : > { %v13803_v31 = vsel %vm16261_vm12, %v16260_v42, %v16259_v13  ;;  %vm16275_vm12 = vmmov %vm15983_vm0  ;;  %v13851_v13 = vsel %vm16283_vm14, %v16282_v16, %v16281_v29  ;;  %v16284_v42 = vld [vmem:[#allocation128_spill] sm:$0xff]  ;;  %v16298_v16 = vld [vmem:[#allocation69_spill] sm:$0xff] }
 0x6d8   : > { %v13832_v21 = vsel %vm16275_vm12, %v16274_v51, %v16273_v30  ;;  %v16290_v30 = vld [vmem:[#allocation96_spill] sm:$0xff]  ;;  %vm16291_vm12 = vmmov %vm15983_vm0 }
 0x6d9   : > { %vm16300_vm14 = vmmov %vm15983_vm0 }
 0x6da   : > { %8714 = vrot.lane.b32.xlu0 %v16241_v5, %s9329_s18  ;;  %8652 = vrot.lane.b32.xlu1 %v16242_v8, %s9327_s16  ;;  %v16262_v5 = vld [vmem:[#allocation46_spill] sm:$0xff] }
 0x6db   : > { %v16263_v8 = vld [vmem:[#allocation62_spill] sm:$0xff] }
 0x6de   : > { %8718 = vrot.lane.b32.xlu0 %v16243_v1, %s9329_s18  ;;  %8656 = vrot.lane.b32.xlu1 %v16244_v28, %s9327_s16  ;;  %v13808_v1 = vsel %vm15983_vm0, %v16263_v8, %v16262_v5  ;;  %v6718_v28 = vcombine.low %v13803_v31, %v13789_v0  ;;  %v16285_v5 = vld [vmem:[#allocation120_spill] sm:$0xff] }
 0x6e0   : > { %v13869_v40 = vrot.slane %v6718_v28, %v15988_v15 }
 0x6e2   : > { %8722 = vrot.lane.b32.xlu0 %v8163_v63, %s9329_s18  ;;  %8660 = vrot.lane.b32.xlu1 %v8297_v46, %s9327_s16  ;;  %v16265_v63 = vld [vmem:[#allocation34_spill] sm:$0xff] }
 0x6e3   : > { %v13817_v46 = vsel %vm16266_vm13, %v16265_v63, %v16264_v50  ;;  %vm16280_vm13 = vmmov %vm15983_vm0  ;;  %v16287_v50 = vcombine.high %v12795_v49, %v12789_v10  ;;  %v16288_v63 = vcombine.high %v12894_v36, %v12884_v59  ;;  %v16292_v10 = vld [vmem:[#allocation41_spill] sm:$0xff]  ;;  %v16293_v49 = vld [vmem:[#allocation92_spill] sm:$0xff] }
 0x6e4   : > { %v16295_v59 = vld [vmem:[#allocation68_spill] sm:$0xff]  ;;  %v16296_v36 = vld [vmem:[#allocation85_spill] sm:$0xff] }
 0x6e6   : > { %8742 = vrot.lane.b32.xlu0 %v16245_v47, %s9330_s19  ;;  %8680 = vrot.lane.b32.xlu1 %v16246_v3, %s9328_s17  ;;  %v16270_v47 = vld [vmem:[#allocation19_spill] sm:$0xff] }
 0x6e7   : > { %v16271_v3 = vld [vmem:[#allocation3_spill] sm:$0xff] }
 0x6e8   : > { %v13827_v25 = vsel %vm16272_vm15, %v16271_v3, %v16270_v47  ;;  %vm16286_vm15 = vmmov %vm15983_vm0  ;;  %v7262_v47 = vcombine.low %v13851_v13, %v13832_v21  ;;  %v16289_v3 = vld [vmem:[#allocation124_spill] sm:$0xff] }
 0x6e9   : > { %v6702_v11 = vcombine.low %v13827_v25, %v13808_v1  ;;  %v13856_v8 = vsel %vm16286_vm15, %v16285_v5, %v16284_v42  ;;  %v13876_v51 = vsel %vm16291_vm12, %v16290_v30, %v16289_v3  ;;  %v16299_v42 = vld [vmem:[#allocation90_spill] sm:$0xff]  ;;  %vm16332_vm15 = vmmov %vm15983_vm0 }
 0x6ea   : > { %8746 = vrot.lane.b32.xlu0 %v16247_v20, %s9330_s19  ;;  %8684 = vrot.lane.b32.xlu1 %v16248_v34, %s9328_s17  ;;  %v16276_v20 = vld [vmem:[#allocation106_spill] sm:$0xff]  ;;  %v16277_v34 = vld [vmem:[#allocation31_spill] sm:$0xff]  ;;  %v13901_v5 = vsel %vm16300_vm14, %v16299_v42, %v16298_v16  ;;  %v13919_v30 = vrot.slane %v7262_v47, %v15988_v15  ;;  %v16308_v16 = vld [vmem:[#allocation40_spill] sm:$0xff]  ;;  %v16310_v47 = vcombine.high %v13216_v26, %v13210_v17 }
 0x6eb   : > { %16301 = vst [vmem:[#allocation82_spill] sm:$0xff] %v13901_v5  ;;  %v16309_v42 = vld [vmem:[#allocation26_spill] sm:$0xff]  ;;  %v16314_v26 = vld [vmem:[#allocation23_spill] sm:$0xff]  ;;  %v14049_v32 = vsel %vm16332_vm15, %v16331_v2, %v16330_v14  ;;  %vm16339_vm12 = vmmov %vm15983_vm0 }
 0x6ec   : > { %16333 = vst [vmem:[#allocation55_spill] sm:$0xff] %v14049_v32  ;;  %v14065_v61 = vsel %vm16339_vm12, %v16338_v37, %v16337_v55  ;;  %v16341_v14 = vld [vmem:[#allocation48_spill] sm:$0xff]  ;;  %v16342_v2 = vld [vmem:[#allocation93_spill] sm:$0xff]  ;;  %vm16351_vm14 = vmmov %vm15983_vm0 }
 0x6ed   : > { %16340 = vst [vmem:[#allocation52_spill] sm:$0xff] %v14065_v61  ;;  %v16349_v55 = vld [vmem:[#allocation24_spill] sm:$0xff]  ;;  %vm16355_vm15 = vmmov %vm15983_vm0 }
 0x6ee   : > { %8750 = vrot.lane.b32.xlu0 %v16249_v4, %s9330_s19  ;;  %8688 = vrot.lane.b32.xlu1 %v16252_v62, %s9328_s17  ;;  %v13837_v4 = vsel %vm15983_vm0, %v16277_v34, %v16276_v20  ;;  %v6686_v62 = vcombine.low %v13817_v46, %v13798_v6  ;;  %v13881_v20 = vsel %vm15983_vm0, %v16293_v49, %v16292_v10  ;;  %v16304_v10 = vld [vmem:[#allocation72_spill] sm:$0xff]  ;;  %vm16359_vm12 = vmmov %vm15983_vm0 }
 0x6ef   : > { %v6670_v60 = vcombine.low %v13837_v4, %v13822_v23  ;;  %16294 = vst [vmem:[#allocation50_spill] sm:$0xff] %v13881_v20  ;;  %v7214_v3 = vcombine.low %v13901_v5, %v13881_v20  ;;  %v16354_v5 = vld [vmem:[#allocation61_spill] sm:$0xff] }
 0x6f0   : > { %v13889_v28 = vrot.slane %v6686_v62, %v15988_v15  ;;  %v16303_v62 = vcombine.high %v13082_v45, %v13076_v58 }
 0x6f2   : > { %8754 = vrot.lane.b32.xlu0 %v8164_v9, %s9330_s19  ;;  %8692 = vrot.lane.b32.xlu1 %v8298_v53, %s9328_s17  ;;  %v16279_v9 = vld [vmem:[#allocation89_spill] sm:$0xff] }
 0x6f3   : > { %v13846_v53 = vsel %vm16280_vm13, %v16279_v9, %v16278_v18  ;;  %vm16297_vm13 = vmmov %vm15983_vm0  ;;  %v13892_v18 = vrot.slane %v6702_v11, %v15988_v15  ;;  %v13912_v11 = vrot.slane %v6670_v60, %v15988_v15  ;;  %v16306_v60 = vld [vmem:[#allocation121_spill] sm:$0xff] }
 0x6f4   : > { %v13886_v34 = vsel %vm16297_vm13, %v16296_v36, %v16295_v59  ;;  %v7230_v9 = vcombine.low %v13876_v51, %v13846_v53  ;;  %v16307_v59 = vld [vmem:[#allocation39_spill] sm:$0xff]  ;;  %vm16346_vm13 = vmmov %vm15983_vm0 }
 0x6f5   : > { %v7246_v29 = vcombine.low %v13886_v34, %v13856_v8  ;;  %v6734_v49 = vcombine.low %v13912_v11, %v13889_v28  ;;  %v7774_v36 = vcombine.low %v16307_v59, %v16306_v60  ;;  %v16313_v60 = vld [vmem:[#allocation139_spill] sm:$0xff] }
 0x6f6   : > { %8774 = vrot.lane.b32.xlu0 %v16287_v50, %s9331_s20  ;;  %8712 = vrot.lane.b32.xlu1 %v16288_v63, %s9329_s18  ;;  %v16302_v50 = vcombine.high %v12991_v39, %v12985_v7  ;;  %v6766_v63 = vcombine.low %v13892_v18, %v13869_v40  ;;  %v16305_v7 = vld [vmem:[#allocation30_spill] sm:$0xff]  ;;  %v13926_v58 = vrot.slane %v7230_v9, %v15988_v15 }
 0x6f7   : > { %v7806_v39 = vcombine.low %v16305_v7, %v16304_v10  ;;  %v13929_v45 = vrot.slane %v7246_v29, %v15988_v15  ;;  %v13947_v29 = vrot.slane %v7214_v3, %v15988_v15  ;;  %v16312_v7 = vld [vmem:[#allocation140_spill] sm:$0xff] }
 0x6f8   : > { %v13944_v9 = vrot.slane %v6766_v63, %v15997_v27  ;;  %v7758_v59 = vcombine.low %v16313_v60, %v16312_v7  ;;  %v13963_v63 = vrot.slane %v6734_v49, %v15997_v27  ;;  %v16317_v7 = vld [vmem:[#allocation102_spill] sm:$0xff] }
 0x6f9   : > { %v7310_v10 = vcombine.low %v13929_v45, %v13919_v30  ;;  %v13954_v17 = vrot.slane %v7806_v39, %v15988_v15  ;;  %v7278_v3 = vcombine.low %v13947_v29, %v13926_v58 }
 0x6fa   : > { %8778 = vrot.lane.b32.xlu0 %v16302_v50, %s9331_s20  ;;  %8716 = vrot.lane.b32.xlu1 %v16303_v62, %s9329_s18  ;;  %v7790_v50 = vcombine.low %v16309_v42, %v16308_v16  ;;  %v16311_v62 = vcombine.high %v16250_v52, %v16251_v38  ;;  %v16315_v16 = vld [vmem:[#allocation111_spill] sm:$0xff]  ;;  %v8165_v52 = vcombine.high %v13773_v54, %v13767_v43  ;;  %v16319_v43 = vld [vmem:[#allocation100_spill] sm:$0xff] }
 0x6fb   : > { %v8350_v42 = vcombine.low %v16315_v16, %v16314_v26  ;;  %v8299_v38 = vcombine.high %v13776_v24, %v13770_v33  ;;  %v16318_v26 = vld [vmem:[#allocation37_spill] sm:$0xff]  ;;  %v13980_v33 = vrot.slane %v7310_v10, %v15997_v27  ;;  %v6798_v24 = vcombine.low %v13963_v63, %v13944_v9 }
 0x6fc   : > { %v13971_v39 = vrot.slane %v7790_v50, %v15988_v15  ;;  %v8334_v54 = vcombine.low %v16319_v43, %v16318_v26  ;;  %v13985_v49 = vrot.slane %v7758_v59, %v15988_v15  ;;  %v16320_v50 = vld [vmem:[#allocation38_spill] sm:$0xff]  ;;  %v16321_v16 = vld [vmem:[#allocation105_spill] sm:$0xff]  ;;  %v14005_v26 = vpop.permute.xlu0 %8582  ;;  %v16323_v43 = vld [vmem:[#allocation11_spill] sm:$0xff] }
 0x6fd   : > { %16322 = vst [vmem:[#allocation123_spill] sm:$0xff] %v14005_v26  ;;  %v16350_v26 = vld [vmem:[#allocation64_spill] sm:$0xff] }
 0x6fe   : > { %8782 = vrot.lane.b32.xlu0 %v16310_v47, %s9331_s20  ;;  %8720 = vrot.lane.b32.xlu1 %v16311_v62, %s9329_s18  ;;  %v13968_v47 = vrot.slane %v7774_v36, %v15988_v15  ;;  %v16316_v62 = vld [vmem:[#allocation5_spill] sm:$0xff]  ;;  %v7854_v36 = vcombine.low %v13971_v39, %v13954_v17  ;;  %v14003_v59 = vrot.slane %v8334_v54, %v15988_v15 }
 0x6ff   : > { %v8318_v60 = vcombine.low %v16317_v7, %v16316_v62  ;;  %v8302_v62 = vcombine.low %v16321_v16, %v16320_v50  ;;  %v13992_v7 = vrot.slane %v8350_v42, %v15988_v15  ;;  %v16324_v42 = vld [vmem:[#allocation10_spill] sm:$0xff] }
 0x700   : > { %v7822_v10 = vcombine.low %v13985_v49, %v13968_v47  ;;  %v16325_v50 = vcombine.low %v16323_v43, %v16324_v42  ;;  %v14015_v16 = vrot.slane %v7854_v36, %v15997_v27  ;;  %v16326_v36 = vld [vmem:[#allocation138_spill] sm:$0xff] }
 0x701   : > { %v8398_v54 = vcombine.low %v14003_v59, %v13992_v7 }
 0x702   : > { %8786 = vrot.lane.b32.xlu0 %v8165_v52, %s9331_s20  ;;  %8724 = vrot.lane.b32.xlu1 %v8299_v38, %s9329_s18  ;;  %v13995_v52 = vrot.slane %v7278_v3, %v15997_v27  ;;  %v14000_v38 = vrot.slane %v8318_v60, %v15988_v15  ;;  %v14018_v60 = vrot.slane %v8302_v62, %v15988_v15  ;;  %v16327_v62 = vld [vmem:[#allocation137_spill] sm:$0xff] }
 0x703   : > { %v14025_v48 = vrot.slane %v7822_v10, %v15997_v27  ;;  %v16328_v56 = vcombine.low %v16326_v36, %v16327_v62  ;;  %v14037_v44 = vrot.slane %v8398_v54, %v15997_v27  ;;  %v16334_v54 = vld [vmem:[#allocation4_spill] sm:$0xff] }
 0x704   : > { %v7342_v3 = vcombine.low %v13995_v52, %v13980_v33 }
 0x705   : > { %v7886_v10 = vcombine.low %v14025_v48, %v14015_v16 }
 0x706   : > { %8806 = vrot.lane.b32.xlu0 %v6798_v24, %s9332_s21  ;;  %8744 = vrot.lane.b32.xlu1 %v16325_v50, %s9330_s19  ;;  %v8279_v24 = vcombine.high %v13741_v22, %v13735_v12  ;;  %v8366_v50 = vcombine.low %v14018_v60, %v14000_v38  ;;  %v14042_v22 = vpop.permute.xlu0 %8586 }
 0x707   : > { %16329 = vst [vmem:[#allocation32_spill] sm:$0xff] %v14042_v22 }
 0x708   : > { %v14040_v12 = vrot.slane %v8279_v24, %v15997_v27  ;;  %v16335_v24 = vld [vmem:[#allocation2_spill] sm:$0xff] }
 0x709   : > { %v16336_v57 = vcombine.low %v16334_v54, %v16335_v24 }
 0x70a   : > { %8810 = vrot.lane.b32.xlu0 %v7342_v3, %s9332_s21  ;;  %8748 = vrot.lane.b32.xlu1 %v16328_v56, %s9330_s19  ;;  %v14052_v3 = vrot.slane %v8366_v50, %v15997_v27  ;;  %v14055_v56 = vrot.slane %v8247_v41, %v15997_v27  ;;  %v14070_v50 = vsel %vm15983_vm0, %v16342_v2, %v16341_v14  ;;  %v16345_v41 = vld [vmem:[#allocation97_spill] sm:$0xff]  ;;  %v16353_v2 = vld [vmem:[#allocation8_spill] sm:$0xff] }
 0x70b   : > { %16343 = vst [vmem:[#allocation122_spill] sm:$0xff] %v14070_v50  ;;  %v14075_v19 = vsel %vm16346_vm13, %v16345_v41, %v16344_v35  ;;  %v6854_v37 = vcombine.low %v14070_v50, %v14049_v32  ;;  %v14088_v14 = vsel %vm16351_vm14, %v16350_v26, %v16349_v55  ;;  %v14093_v35 = vsel %vm16355_vm15, %v16354_v5, %v16353_v2  ;;  %v16357_v41 = vld [vmem:[#allocation125_spill] sm:$0xff]  ;;  %v16361_v5 = vld [vmem:[#allocation112_spill] sm:$0xff]  ;;  %vm16366_vm13 = vmmov %vm15983_vm0 }
 0x70c   : > { %16347 = vst [vmem:[#allocation63_spill] sm:$0xff] %v14075_v19  ;;  %v8300_v22 = vcombine.low %v14055_v56, %v14040_v12  ;;  %16352 = vst [vmem:[#allocation12_spill] sm:$0xff] %v14088_v14  ;;  %v6767_v50 = vcombine.high %v13892_v18, %v13869_v40  ;;  %v6822_v26 = vcombine.low %v14088_v14, %v14065_v61  ;;  %v16362_v2 = vld [vmem:[#allocation60_spill] sm:$0xff] }
 0x70d   : > { %16356 = vst [vmem:[#allocation127_spill] sm:$0xff] %v14093_v35  ;;  %v14111_v32 = vsel %vm15983_vm0, %v16362_v2, %v16361_v5  ;;  %v6799_v40 = vcombine.high %v13963_v63, %v13944_v9  ;;  %v6735_v18 = vcombine.high %v13912_v11, %v13889_v28  ;;  %v16368_v5 = vld [vmem:[#allocation51_spill] sm:$0xff]  ;;  %v16369_v2 = vld [vmem:[#allocation84_spill] sm:$0xff]  ;;  %vm16370_vm14 = vmmov %vm15983_vm0  ;;  %v16380_v11 = vcombine.high %v16323_v43, %v16324_v42 }
 0x70e   : > { %8814 = vrot.lane.b32.xlu0 %v7886_v10, %s9332_s21  ;;  %8752 = vrot.lane.b32.xlu1 %v16336_v57, %s9330_s19  ;;  %v14077_v10 = vpop.permute.xlu0 %8590  ;;  %v8430_v57 = vcombine.low %v14052_v3, %v14037_v44  ;;  %16363 = vst [vmem:[#allocation46_spill] sm:$0xff] %v14111_v32  ;;  %v14132_v14 = vsel %vm16370_vm14, %v16369_v2, %v16368_v5  ;;  %vm16374_vm15 = vmmov %vm15983_vm0  ;;  %v16376_v9 = vld [vmem:[#allocation74_spill] sm:$0xff]  ;;  %v16377_v63 = vld [vmem:[#allocation131_spill] sm:$0xff] }
 0x70f   : > { %16348 = vst [vmem:[#allocation114_spill] sm:$0xff] %v14077_v10  ;;  %v16358_v10 = vld [vmem:[#allocation58_spill] sm:$0xff]  ;;  %16371 = vst [vmem:[#allocation130_spill] sm:$0xff] %v14132_v14  ;;  %v14153_v5 = vrot.slane %v6822_v26, %v15988_v15  ;;  %v16385_v43 = vld [vmem:[#allocation53_spill] sm:$0xff] }
 0x710   : > { %v14098_v20 = vsel %vm16359_vm12, %v16358_v10, %v16357_v41  ;;  %v16364_v10 = vld [vmem:[#allocation47_spill] sm:$0xff]  ;;  %vm16378_vm12 = vmmov %vm15983_vm0 }
 0x711   : > { %16360 = vst [vmem:[#allocation65_spill] sm:$0xff] %v14098_v20  ;;  %v6838_v55 = vcombine.low %v14098_v20, %v14075_v19  ;;  %v16365_v41 = vld [vmem:[#allocation119_spill] sm:$0xff]  ;;  %v6806_v20 = vcombine.low %v14111_v32, %v14093_v35  ;;  %v14127_v19 = vrot.slane %v6854_v37, %v15988_v15  ;;  %v14142_v28 = vsel %vm16378_vm12, %v16377_v63, %v16376_v9  ;;  %v16382_v9 = vld [vmem:[#allocation56_spill] sm:$0xff]  ;;  %v16384_v63 = vld [vmem:[#allocation81_spill] sm:$0xff] }
 0x712   : > { %8818 = vrot.lane.b32.xlu0 %v8430_v57, %s9332_s21  ;;  %8756 = vrot.lane.b32.xlu1 %v8300_v22, %s9330_s19  ;;  %v14116_v57 = vsel %vm16366_vm13, %v16365_v41, %v16364_v10  ;;  %v16372_v10 = vld [vmem:[#allocation115_spill] sm:$0xff]  ;;  %16379 = vst [vmem:[#allocation7_spill] sm:$0xff] %v14142_v28  ;;  %v14150_v37 = vrot.slane %v6767_v50, %v15997_v27  ;;  %vm16386_vm13 = vmmov %vm15983_vm0  ;;  %v16388_v50 = vld [vmem:[#allocation108_spill] sm:$0xff] }
 0x713   : > { %16367 = vst [vmem:[#allocation62_spill] sm:$0xff] %v14116_v57  ;;  %v16373_v41 = vld [vmem:[#allocation15_spill] sm:$0xff]  ;;  %v14156_v2 = vrot.slane %v6838_v55, %v15988_v15  ;;  %v14168_v42 = vsel %vm16386_vm13, %v16385_v43, %v16384_v63  ;;  %vm16390_vm14 = vmmov %vm15983_vm0  ;;  %v14187_v63 = vrot.slane %v6806_v20, %v15988_v15 }
 0x714   : > { %v14118_v22 = vpop.permute.xlu0 %8594  ;;  %v14137_v61 = vsel %vm16374_vm15, %v16373_v41, %v16372_v10  ;;  %v16381_v41 = vld [vmem:[#allocation76_spill] sm:$0xff]  ;;  %16387 = vst [vmem:[#allocation19_spill] sm:$0xff] %v14168_v42  ;;  %vm16394_vm15 = vmmov %vm15983_vm0 }
 0x715   : > { %16375 = vst [vmem:[#allocation34_spill] sm:$0xff] %v14137_v61  ;;  %v7398_v10 = vcombine.low %v14137_v61, %v14116_v57  ;;  %v7343_v61 = vcombine.high %v13995_v52, %v13980_v33  ;;  %v14180_v57 = vrot.slane %v6735_v18, %v15997_v27  ;;  %v6902_v43 = vcombine.low %v14156_v2, %v14127_v19 }
 0x716   : > { %8838 = vrot.lane.b32.xlu0 %v6799_v40, %s9333_s22  ;;  %8776 = vrot.lane.b32.xlu1 %v16380_v11, %s9331_s20  ;;  %v14163_v40 = vsel %vm15983_vm0, %v16382_v9, %v16381_v41  ;;  %v16389_v11 = vld [vmem:[#allocation87_spill] sm:$0xff]  ;;  %v16396_v33 = vcombine.high %v16326_v36, %v16327_v62  ;;  %v7311_v52 = vcombine.high %v13929_v45, %v13919_v30 }
 0x717   : > { %16383 = vst [vmem:[#allocation33_spill] sm:$0xff] %v14163_v40  ;;  %v14173_v26 = vsel %vm16390_vm14, %v16389_v11, %v16388_v50  ;;  %v7366_v41 = vcombine.low %v14163_v40, %v14132_v14  ;;  %v16392_v50 = vld [vmem:[#allocation126_spill] sm:$0xff]  ;;  %v16393_v11 = vld [vmem:[#allocation29_spill] sm:$0xff]  ;;  %v14206_v18 = vrot.slane %v7398_v10, %v15988_v15  ;;  %v6800_v36 = vcombine.low %v14180_v57, %v14150_v37  ;;  %v16400_v10 = vld [vmem:[#allocation43_spill] sm:$0xff] }
 0x718   : > { %16391 = vst [vmem:[#allocation3_spill] sm:$0xff] %v14173_v26  ;;  %v14175_v55 = vpop.permute.xlu0 %8614  ;;  %v7382_v9 = vcombine.low %v14173_v26, %v14142_v28  ;;  %v14194_v32 = vsel %vm16394_vm15, %v16393_v11, %v16392_v50  ;;  %v6870_v50 = vcombine.low %v14187_v63, %v14153_v5  ;;  %v16397_v11 = vld [vmem:[#allocation134_spill] sm:$0xff]  ;;  %v16398_v26 = vld [vmem:[#allocation28_spill] sm:$0xff]  ;;  %v7279_v30 = vcombine.high %v13947_v29, %v13926_v58 }
 0x719   : > { %16395 = vst [vmem:[#allocation79_spill] sm:$0xff] %v14194_v32  ;;  %v7350_v20 = vcombine.low %v14194_v32, %v14168_v42  ;;  %v14219_v45 = vrot.slane %v7366_v41, %v15988_v15  ;;  %v14227_v42 = vrot.slane %v6902_v43, %v15997_v27  ;;  %v16404_v58 = vcombine.high %v16334_v54, %v16335_v24  ;;  %v16407_v54 = vld [vmem:[#allocation103_spill] sm:$0xff]  ;;  %v16408_v24 = vld [vmem:[#allocation20_spill] sm:$0xff] }
 0x71a   : > { %8842 = vrot.lane.b32.xlu0 %v7343_v61, %s9333_s22  ;;  %8780 = vrot.lane.b32.xlu1 %v16396_v33, %s9331_s20  ;;  %v7942_v61 = vcombine.low %v16398_v26, %v16397_v11  ;;  %v14222_v62 = vrot.slane %v7382_v9, %v15988_v15  ;;  %v16401_v33 = vld [vmem:[#allocation117_spill] sm:$0xff]  ;;  %v16402_v26 = vld [vmem:[#allocation135_spill] sm:$0xff]  ;;  %v16403_v11 = vld [vmem:[#allocation118_spill] sm:$0xff]  ;;  %v14237_v29 = vrot.slane %v7311_v52, %v15997_v27 }
 0x71b   : > { %v7910_v32 = vcombine.low %v16401_v33, %v16400_v10  ;;  %v7926_v40 = vcombine.low %v16403_v11, %v16402_v26  ;;  %v14240_v41 = vrot.slane %v7350_v20, %v15988_v15  ;;  %v7887_v43 = vcombine.high %v14025_v48, %v14015_v16  ;;  %v16405_v10 = vld [vmem:[#allocation133_spill] sm:$0xff]  ;;  %v16406_v33 = vld [vmem:[#allocation132_spill] sm:$0xff] }
 0x71c   : > { %v14212_v28 = vpop.permute.xlu0 %8618  ;;  %v7446_v9 = vcombine.low %v14222_v62, %v14206_v18  ;;  %v14249_v26 = vrot.slane %v7942_v61, %v15988_v15  ;;  %v8486_v11 = vcombine.low %v16408_v24, %v16407_v54  ;;  %v8301_v20 = vcombine.high %v14055_v56, %v14040_v12  ;;  %v16412_v24 = vld [vmem:[#allocation104_spill] sm:$0xff]  ;;  %v16413_v12 = vld [vmem:[#allocation6_spill] sm:$0xff] }
 0x71d   : > { %16399 = vst [vmem:[#allocation27_spill] sm:$0xff] %v14212_v28  ;;  %v14261_v14 = vrot.slane %v7279_v30, %v15997_v27  ;;  %v7414_v48 = vcombine.low %v14240_v41, %v14219_v45  ;;  %v14266_v16 = vrot.slane %v7910_v32, %v15988_v15  ;;  %v14269_v61 = vrot.slane %v7926_v40, %v15988_v15  ;;  %v14307_v28 = vpop.permute.xlu1 %8584 }
 0x71e   : > { %8870 = vrot.lane.b32.xlu0 %v6800_v36, %s9334_s23  ;;  %8784 = vrot.lane.b32.xlu1 %v16404_v58, %s9331_s20  ;;  %v7894_v36 = vcombine.low %v16406_v33, %v16405_v10  ;;  %v14258_v58 = vrot.slane %v6870_v50, %v15997_v27  ;;  %v16410_v10 = vld [vmem:[#allocation95_spill] sm:$0xff]  ;;  %v8470_v56 = vcombine.low %v16413_v12, %v16412_v24  ;;  %v16415_v24 = vld [vmem:[#allocation110_spill] sm:$0xff] }
 0x71f   : > { %v16411_v33 = vld [vmem:[#allocation107_spill] sm:$0xff]  ;;  %v14278_v50 = vrot.slane %v7446_v9, %v15997_v27  ;;  %v7344_v32 = vcombine.low %v14261_v14, %v14237_v29  ;;  %v14297_v12 = vrot.slane %v7414_v48, %v15997_v27  ;;  %v6801_v48 = vcombine.high %v14180_v57, %v14150_v37 }
 0x720   : > { %v14253_v52 = vpop.permute.xlu0 %8622  ;;  %v8454_v54 = vcombine.low %v16411_v33, %v16410_v10  ;;  %v6934_v40 = vcombine.low %v14258_v58, %v14227_v42  ;;  %v14285_v30 = vrot.slane %v7894_v36, %v15988_v15  ;;  %v7990_v10 = vcombine.low %v14269_v61, %v14249_v26  ;;  %v16414_v33 = vld [vmem:[#allocation67_spill] sm:$0xff] }
 0x721   : > { %16409 = vst [vmem:[#allocation106_spill] sm:$0xff] %v14253_v52  ;;  %v14305_v35 = vrot.slane %v8470_v56, %v15988_v15  ;;  %v6671_v37 = vcombine.high %v13837_v4, %v13822_v23 }
 0x722   : > { %8846 = vrot.lane.b32.xlu0 %v7887_v43, %s9333_s22  ;;  %8788 = vrot.lane.b32.xlu1 %v8301_v20, %s9331_s20  ;;  %v8438_v43 = vcombine.low %v16415_v24, %v16414_v33  ;;  %v14292_v20 = vrot.slane %v8486_v11, %v15988_v15  ;;  %v7958_v52 = vcombine.low %v14285_v30, %v14266_v16 }
 0x723   : > { %v14302_v36 = vrot.slane %v8454_v54, %v15988_v15  ;;  %v6719_v11 = vcombine.high %v13803_v31, %v13789_v0  ;;  %v7478_v33 = vcombine.low %v14297_v12, %v14278_v50  ;;  %v7855_v54 = vcombine.high %v13971_v39, %v13954_v17 }
 0x724   : > { %v14294_v9 = vpop.permute.xlu0 %8626  ;;  %v14320_v56 = vrot.slane %v7990_v10, %v15997_v27  ;;  %v14323_v24 = vrot.slane %v8438_v43, %v15988_v15  ;;  %v6687_v0 = vcombine.high %v13817_v46, %v13798_v6  ;;  %v6703_v31 = vcombine.high %v13827_v25, %v13808_v1  ;;  %v14353_v25 = vpop.permute.xlu1 %8588 }
 0x725   : > { %v7823_v17 = vcombine.high %v13985_v49, %v13968_v47  ;;  %v14336_v39 = vrot.slane %v7958_v52, %v15997_v27  ;;  %v14345_v6 = vrot.slane %v6719_v11, %v15988_v15  ;;  %v14348_v1 = vrot.slane %v7855_v54, %v15997_v27 }
 0x726   : > { %8874 = vrot.lane.b32.xlu0 %v7344_v32, %s9334_s23  ;;  %8808 = vrot.lane.b32.xlu1 %v6934_v40, %s9332_s21  ;;  %v8534_v32 = vcombine.low %v14305_v35, %v14292_v20  ;;  %v8502_v57 = vcombine.low %v14323_v24, %v14302_v36  ;;  %v8431_v49 = vcombine.high %v14052_v3, %v14037_v44 }
 0x727   : > { %v8022_v52 = vcombine.low %v14336_v39, %v14320_v56  ;;  %v14362_v23 = vrot.slane %v6687_v0, %v15988_v15  ;;  %v14365_v4 = vrot.slane %v6703_v31, %v15988_v15  ;;  %v14368_v10 = vrot.slane %v7823_v17, %v15997_v27 }
 0x728   : > { %v14327_v40 = vpop.permute.xlu0 %8646  ;;  %v14351_v46 = vrot.slane %v8534_v32, %v15997_v27  ;;  %v14371_v43 = vrot.slane %v8502_v57, %v15997_v27  ;;  %v14376_v44 = vrot.slane %v6671_v37, %v15988_v15  ;;  %v14380_v11 = vpop.permute.xlu1 %8592  ;;  %v6903_v31 = vcombine.high %v14156_v2, %v14127_v19  ;;  %v16416_v2 = vld [vmem:[#allocation50_spill] sm:$0xff] }
 0x729   : > { %v6782_v3 = vcombine.low %v14365_v4, %v14345_v6  ;;  %v7263_v17 = vcombine.high %v13851_v13, %v13832_v21  ;;  %v8399_v57 = vcombine.high %v14003_v59, %v13992_v7  ;;  %v6871_v19 = vcombine.high %v14187_v63, %v14153_v5  ;;  %v16417_v5 = vld [vmem:[#allocation82_spill] sm:$0xff] }
 0x72a   : > { %8902 = vrot.lane.b32.xlu0 %v6801_v48, %s9335_s24  ;;  %8812 = vrot.lane.b32.xlu1 %v7478_v33, %s9332_s21  ;;  %v7888_v33 = vcombine.low %v14368_v10, %v14348_v1  ;;  %v8566_v54 = vcombine.low %v14371_v43, %v14351_v46  ;;  %v6750_v32 = vcombine.low %v14376_v44, %v14362_v23 }
 0x72b   : > { %v14393_v0 = vrot.slane %v6782_v3, %v15997_v27  ;;  %v7231_v21 = vcombine.high %v13876_v51, %v13846_v53  ;;  %v7247_v13 = vcombine.high %v13886_v34, %v13856_v8  ;;  %v8367_v7 = vcombine.high %v14018_v60, %v14000_v38 }
 0x72c   : > { %v14355_v47 = vpop.permute.xlu0 %8650  ;;  %v14408_v3 = vrot.slane %v6750_v32, %v15997_v27  ;;  %v6917_v59 = vrot.slane %v6903_v31, %v15997_v27  ;;  %v14426_v53 = vrot.slane %v7263_v17, %v15988_v15  ;;  %v14429_v8 = vrot.slane %v8399_v57, %v15997_v27 }
 0x72d   : > { %v7479_v38 = vcombine.high %v14297_v12, %v14278_v50  ;;  %v6885_v60 = vrot.slane %v6871_v19, %v15997_v27  ;;  %v14437_v63 = vrot.slane %v7231_v21, %v15988_v15  ;;  %v7447_v12 = vcombine.high %v14222_v62, %v14206_v18 }
 0x72e   : > { %8850 = vrot.lane.b32.xlu0 %v8431_v49, %s9333_s22  ;;  %8816 = vrot.lane.b32.xlu1 %v8022_v52, %s9332_s21  ;;  %v7345_v52 = vcombine.high %v14261_v14, %v14237_v29  ;;  %v6802_v14 = vcombine.low %v14408_v3, %v14393_v0  ;;  %v14440_v29 = vrot.slane %v7247_v13, %v15988_v15 }
 0x72f   : > { %v14468_v18 = vrot.slane %v7447_v12, %v15997_v27  ;;  %v7889_v13 = vcombine.high %v14368_v10, %v14348_v1  ;;  %v16423_v12 = vld [vmem:[#allocation42_spill] sm:$0xff] }
 0x730   : > { %v14382_v48 = vpop.permute.xlu0 %8654  ;;  %v7326_v50 = vcombine.low %v14440_v29, %v14426_v53 }
 0x732   : > { %8878 = vrot.lane.b32.xlu0 %v7888_v33, %s9334_s23  ;;  %8820 = vrot.lane.b32.xlu1 %v8566_v54, %s9332_s21  ;;  %v6935_v33 = vcombine.high %v14258_v58, %v14227_v42  ;;  %v7215_v42 = vcombine.high %v16417_v5, %v16416_v2  ;;  %v14443_v58 = vrot.slane %v8367_v7, %v15997_v27  ;;  %v16419_v2 = vld [vmem:[#allocation113_spill] sm:$0xff] }
 0x733   : > { %v6936_v54 = vcombine.low %v6885_v60, %v6917_v59  ;;  %v14465_v19 = vrot.slane %v7326_v50, %v15997_v27  ;;  %v8023_v7 = vcombine.high %v14336_v39, %v14320_v56  ;;  %v16421_v50 = vld [vmem:[#allocation123_spill] sm:$0xff] }
 0x734   : > { %v14401_v37 = vpop.permute.xlu1 %8596  ;;  %v8659_v49 = vpop.permute.xlu0 %8658  ;;  %v14448_v32 = vrot.slane %v7215_v42, %v15988_v15  ;;  %v8432_v57 = vcombine.low %v14443_v58, %v14429_v8 }
 0x736   : > { %8906 = vrot.lane.b32.xlu0 %v7345_v52, %s9335_s24  ;;  %8840 = vrot.lane.b32.xlu1 %v6935_v33, %s9333_s22  ;;  %v7294_v52 = vcombine.low %v14448_v32, %v14437_v63  ;;  %v7415_v33 = vcombine.high %v14240_v41, %v14219_v45 }
 0x738   : > { %v14431_v51 = vpop.permute.xlu1 %8616  ;;  %v8679_v34 = vpop.permute.xlu0 %8678  ;;  %v14477_v45 = vrot.slane %v7294_v52, %v15997_v27  ;;  %v14480_v41 = vrot.slane %v7415_v33, %v15997_v27 }
 0x73a   : > { %8934 = vrot.lane.b32.xlu0 %v6802_v14, %s9336_s25  ;;  %8844 = vrot.lane.b32.xlu1 %v7479_v38, %s9333_s22  ;;  %v16418_v14 = vld [vmem:[#allocation45_spill] sm:$0xff]  ;;  %v7346_v38 = vcombine.low %v14477_v45, %v14465_v19 }
 0x73b   : > { %v16420_v5 = vcombine.low %v16418_v14, %v16419_v2  ;;  %v7991_v2 = vcombine.high %v14269_v61, %v14249_v26 }
 0x73c   : > { %v14454_v31 = vpop.permute.xlu1 %8620  ;;  %v8683_v17 = vpop.permute.xlu0 %8682 }
 0x73d   : > { %v9060_v42 = vsel %vm4518_vm1, %v16420_v5, %v14118_v22  ;;  %v16422_v22 = vld [vmem:[#allocation80_spill] sm:$0xff] }
 0x73e   : > { %8882 = vrot.lane.b32.xlu0 %v8432_v57, %s9334_s23  ;;  %8872 = vrot.lane.b32.xlu1 %v6936_v54, %s9334_s23  ;;  %v9068_v1 = vsel %vm4527_vm2, %v9060_v42, %v14294_v9  ;;  %v7480_v54 = vcombine.low %v14480_v41, %v14468_v18  ;;  %v16424_v57 = vcombine.low %v16422_v22, %v16423_v12  ;;  %v16430_v22 = vld [vmem:[#allocation65_spill] sm:$0xff] }
 0x73f   : > { %v9076_v56 = vsel %vm4536_vm3, %v9068_v1, %v8659_v49  ;;  %v16425_v49 = vld [vmem:[#allocation55_spill] sm:$0xff] }
 0x740   : > { %v14470_v62 = vpop.permute.xlu1 %8624  ;;  %v8687_v21 = vpop.permute.xlu0 %8686  ;;  %v9054_v52 = vsel %vm4518_vm1, %v16424_v57, %v16421_v50  ;;  %v16429_v50 = vld [vmem:[#allocation63_spill] sm:$0xff]  ;;  %v16431_v57 = vld [vmem:[#allocation32_spill] sm:$0xff] }
 0x741   : > { %v9062_v9 = vsel %vm4527_vm2, %v9054_v52, %v14175_v55  ;;  %v6803_v55 = vcombine.high %v14408_v3, %v14393_v0  ;;  %v6839_v12 = vcombine.high %v16430_v22, %v16429_v50  ;;  %v16433_v52 = vld [vmem:[#allocation18_spill] sm:$0xff]  ;;  %v16436_v3 = vld [vmem:[#allocation127_spill] sm:$0xff] }
 0x742   : > { %8910 = vrot.lane.b32.xlu0 %v7889_v13, %s9335_s24  ;;  %8848 = vrot.lane.b32.xlu1 %v8023_v7, %s9333_s22  ;;  %v16426_v13 = vld [vmem:[#allocation122_spill] sm:$0xff]  ;;  %v9070_v14 = vsel %vm4536_vm3, %v9062_v9, %v14327_v40 }
 0x743   : > { %v6855_v7 = vcombine.high %v16426_v13, %v16425_v49  ;;  %v9078_v5 = vsel %vm4545_vm4, %v9070_v14, %v8679_v34  ;;  %v16432_v40 = vld [vmem:[#allocation22_spill] sm:$0xff]  ;;  %v7959_v34 = vcombine.high %v14285_v30, %v14266_v16  ;;  %v16435_v49 = vld [vmem:[#allocation27_spill] sm:$0xff] }
 0x744   : > { %v14492_v39 = vpop.permute.xlu1 %8628  ;;  %v8691_v10 = vpop.permute.xlu0 %8690  ;;  %v16434_v9 = vcombine.low %v16432_v40, %v16433_v52 }
 0x745   : > { %v9084_v33 = vsel %vm4545_vm4, %v9076_v56, %v8691_v10  ;;  %v6937_v56 = vcombine.high %v6885_v60, %v6917_v59  ;;  %v16427_v10 = vld [vmem:[#allocation52_spill] sm:$0xff]  ;;  %v16437_v59 = vld [vmem:[#allocation46_spill] sm:$0xff]  ;;  %v14538_v13 = vrot.slane %v6855_v7, %v15988_v15 }
 0x746   : > { %8938 = vrot.lane.b32.xlu0 %v7346_v38, %s9336_s25  ;;  %8876 = vrot.lane.b32.xlu1 %v7480_v54, %s9334_s23  ;;  %v16428_v38 = vld [vmem:[#allocation12_spill] sm:$0xff]  ;;  %v9056_v26 = vsel %vm4518_vm1, %v16434_v9, %v16431_v57  ;;  %v6807_v60 = vcombine.high %v16437_v59, %v16436_v3  ;;  %v14565_v57 = vrot.slane %v7959_v34, %v15997_v27  ;;  %v16446_v59 = vld [vmem:[#allocation62_spill] sm:$0xff] }
 0x747   : > { %v6823_v54 = vcombine.high %v16428_v38, %v16427_v10  ;;  %v9064_v0 = vsel %vm4527_vm2, %v9056_v26, %v16435_v49  ;;  %v14556_v10 = vrot.slane %v6839_v12, %v15988_v15  ;;  %v16440_v38 = vld [vmem:[#allocation73_spill] sm:$0xff]  ;;  %v16443_v49 = vld [vmem:[#allocation83_spill] sm:$0xff] }
 0x748   : > { %v14515_v42 = vpop.permute.xlu1 %8648  ;;  %v8711_v1 = vpop.permute.xlu0 %8710  ;;  %v9072_v14 = vsel %vm4536_vm3, %v9064_v0, %v14355_v47  ;;  %v16438_v47 = vld [vmem:[#allocation114_spill] sm:$0xff] }
 0x749   : > { %v9086_v61 = vsel %vm4554_vm5, %v9078_v5, %v8711_v1  ;;  %v14543_v5 = vrot.slane %v7991_v2, %v15997_v27  ;;  %v9080_v16 = vsel %vm4545_vm4, %v9072_v14, %v8683_v17  ;;  %v14553_v7 = vrot.slane %v6823_v54, %v15988_v15  ;;  %v16439_v2 = vld [vmem:[#allocation88_spill] sm:$0xff]  ;;  %v16444_v0 = vld [vmem:[#allocation54_spill] sm:$0xff] }
 0x74a   : > { %8966 = vrot.lane.b32.xlu0 %v6803_v55, %s9337_s26  ;;  %8904 = vrot.lane.b32.xlu1 %v6937_v56, %s9335_s24  ;;  %v8433_v55 = vcombine.high %v14443_v58, %v14429_v8  ;;  %v8567_v56 = vcombine.high %v14371_v43, %v14351_v46  ;;  %v16441_v50 = vcombine.low %v16439_v2, %v16440_v38  ;;  %v16442_v8 = vld [vmem:[#allocation106_spill] sm:$0xff] }
 0x74b   : > { %v6783_v43 = vcombine.high %v14365_v4, %v14345_v6  ;;  %v14574_v58 = vrot.slane %v6807_v60, %v15988_v15  ;;  %v6918_v54 = vcombine.low %v14556_v10, %v14538_v13  ;;  %v8024_v26 = vcombine.low %v14565_v57, %v14543_v5  ;;  %v16448_v38 = vld [vmem:[#allocation130_spill] sm:$0xff] }
 0x74c   : > { %v14546_v30 = vpop.permute.xlu1 %8652  ;;  %v8715_v1 = vpop.permute.xlu0 %8714  ;;  %v9058_v17 = vsel %vm4518_vm1, %v16441_v50, %v16438_v47  ;;  %v6751_v6 = vcombine.high %v14376_v44, %v14362_v23  ;;  %v16447_v23 = vld [vmem:[#allocation34_spill] sm:$0xff]  ;;  %v8535_v60 = vcombine.high %v14305_v35, %v14292_v20  ;;  %v16449_v50 = vld [vmem:[#allocation33_spill] sm:$0xff]  ;;  %v16450_v35 = vld [vmem:[#allocation7_spill] sm:$0xff] }
 0x74d   : > { %v9088_v22 = vsel %vm4554_vm5, %v9080_v16, %v8715_v1  ;;  %v9066_v46 = vsel %vm4527_vm2, %v9058_v17, %v16442_v8  ;;  %v6886_v4 = vcombine.low %v14574_v58, %v14553_v7  ;;  %v14599_v3 = vrot.slane %v6918_v54, %v15997_v27  ;;  %v16451_v20 = vld [vmem:[#allocation3_spill] sm:$0xff] }
 0x74e   : > { %8914 = vrot.lane.b32.xlu0 %v8433_v55, %s9335_s24  ;;  %8852 = vrot.lane.b32.xlu1 %v8567_v56, %s9333_s22  ;;  %v9074_v12 = vsel %vm4536_vm3, %v9066_v46, %v14382_v48  ;;  %v16445_v48 = vcombine.low %v16443_v49, %v16444_v0  ;;  %v7399_v44 = vcombine.high %v16447_v23, %v16446_v59 }
 0x74f   : > { %v9082_v40 = vsel %vm4545_vm4, %v9074_v12, %v8687_v21  ;;  %v14596_v21 = vrot.slane %v6783_v43, %v15997_v27  ;;  %v7481_v1 = vcombine.high %v14480_v41, %v14468_v18  ;;  %v7347_v55 = vcombine.high %v14477_v45, %v14465_v19  ;;  %v16452_v45 = vld [vmem:[#allocation19_spill] sm:$0xff] }
 0x750   : > { %v14581_v52 = vpop.permute.xlu1 %8656  ;;  %v8719_v9 = vpop.permute.xlu0 %8718  ;;  %v14610_v56 = vrot.slane %v6751_v6, %v15997_v27  ;;  %v14613_v47 = vrot.slane %v6886_v4, %v15997_v27  ;;  %v7367_v17 = vcombine.high %v16449_v50, %v16448_v38  ;;  %v7383_v8 = vcombine.high %v16451_v20, %v16450_v35  ;;  %v16453_v41 = vld [vmem:[#allocation79_spill] sm:$0xff]  ;;  %v16457_v35 = vld [vmem:[#allocation98_spill] sm:$0xff] }
 0x751   : > { %v9090_v34 = vsel %vm4554_vm5, %v9082_v40, %v8719_v9  ;;  %v8503_v18 = vcombine.high %v14323_v24, %v14302_v36  ;;  %v7351_v46 = vcombine.high %v16453_v41, %v16452_v45  ;;  %v14632_v43 = vrot.slane %v8535_v60, %v15997_v27  ;;  %v16458_v20 = vld [vmem:[#allocation14_spill] sm:$0xff] }
 0x752   : > { %8942 = vrot.lane.b32.xlu0 %v16445_v48, %s9336_s25  ;;  %8880 = vrot.lane.b32.xlu1 %v8024_v26, %s9334_s23  ;;  %v6804_v19 = vcombine.low %v14610_v56, %v14596_v21  ;;  %v6938_v36 = vcombine.low %v14613_v47, %v14599_v3  ;;  %v14638_v40 = vrot.slane %v7367_v17, %v15988_v15 }
 0x753   : > { %v14641_v9 = vrot.slane %v7383_v8, %v15988_v15  ;;  %v8517_v26 = vrot.slane %v8503_v18, %v15997_v27  ;;  %v7327_v6 = vcombine.high %v14440_v29, %v14426_v53  ;;  %v14649_v4 = vrot.slane %v7351_v46, %v15988_v15  ;;  %v16455_v53 = vld [vmem:[#allocation91_spill] sm:$0xff] }
 0x754   : > { %v8661_v14 = vpop.permute.xlu1 %8660  ;;  %v8723_v16 = vpop.permute.xlu0 %8722  ;;  %v7295_v60 = vcombine.high %v14448_v32, %v14437_v63  ;;  %v8025_v63 = vcombine.high %v14565_v57, %v14543_v5  ;;  %v16459_v8 = vcombine.low %v16457_v35, %v16458_v20  ;;  %v16468_v35 = vld [vmem:[#allocation16_spill] sm:$0xff] }
 0x755   : > { %v9092_v2 = vsel %vm4554_vm5, %v9084_v33, %v8723_v16  ;;  %v14629_v33 = vrot.slane %v7399_v44, %v15988_v15  ;;  %v8568_v23 = vcombine.low %v8517_v26, %v14632_v43  ;;  %v7430_v16 = vcombine.low %v14649_v4, %v14638_v40  ;;  %v16454_v15 = vld [vmem:[#allocation17_spill] sm:$0xff] }
 0x756   : > { %8908 = vrot.lane.b32.xlu1 %v7481_v1, %s9335_s24  ;;  %8970 = vrot.lane.b32.xlu0 %v7347_v55, %s9337_s26  ;;  %v16456_v29 = vcombine.low %v16454_v15, %v16455_v53  ;;  %v14665_v1 = vrot.slane %v7327_v6, %v15997_v27  ;;  %v7309_v50 = vrot.slane %v7295_v60, %v15997_v27  ;;  %v16464_v60 = vld [vmem:[#allocation13_spill] sm:$0xff] }
 0x757   : > { %v7438_v17 = vrot.slane %v7430_v16, %v15997_v27  ;;  %v9061_v18 = vsel %vm4518_vm1, %v16459_v8, %v14401_v37  ;;  %v16461_v37 = vld [vmem:[#allocation9_spill] sm:$0xff] }
 0x758   : > { %v8681_v54 = vpop.permute.xlu1 %8680  ;;  %v8743_v12 = vpop.permute.xlu0 %8742  ;;  %v9069_v5 = vsel %vm4527_vm2, %v9061_v18, %v14492_v39  ;;  %v7348_v46 = vcombine.low %v7309_v50, %v14665_v1 }
 0x759   : > { %v9094_v24 = vsel %vm4563_vm6, %v9086_v61, %v8743_v12  ;;  %v7462_v61 = vcombine.low %v14641_v9, %v14629_v33  ;;  %v9077_v57 = vsel %vm4536_vm3, %v9069_v5, %v8661_v14  ;;  %v16462_v12 = vld [vmem:[#allocation35_spill] sm:$0xff]  ;;  %v6887_v5 = vcombine.high %v14574_v58, %v14553_v7 }
 0x75a   : > { %8936 = vrot.lane.b32.xlu1 %v6938_v36, %s9336_s25  ;;  %8998 = vrot.lane.b32.xlu0 %v6804_v19, %s9338_s27  ;;  %v16460_v19 = vcombine.high %v16443_v49, %v16444_v0  ;;  %v16463_v36 = vcombine.low %v16461_v37, %v16462_v12 }
 0x75b   : > { %v14668_v55 = vrot.slane %v7462_v61, %v15997_v27 }
 0x75c   : > { %v8685_v48 = vpop.permute.xlu1 %8684  ;;  %v8747_v59 = vpop.permute.xlu0 %8746  ;;  %v9055_v6 = vsel %vm4518_vm1, %v16463_v36, %v14307_v28  ;;  %v6939_v28 = vcombine.high %v14613_v47, %v14599_v3 }
 0x75d   : > { %v9096_v44 = vsel %vm4563_vm6, %v9088_v22, %v8747_v59  ;;  %v7482_v41 = vcombine.low %v7438_v17, %v14668_v55  ;;  %v9063_v39 = vsel %vm4527_vm2, %v9055_v6, %v14431_v51  ;;  %v16465_v51 = vld [vmem:[#allocation136_spill] sm:$0xff] }
 0x75e   : > { %8884 = vrot.lane.b32.xlu1 %v8568_v23, %s9334_s23  ;;  %8946 = vrot.lane.b32.xlu0 %v16456_v29, %s9336_s25  ;;  %v9071_v14 = vsel %vm4536_vm3, %v9063_v39, %v14515_v42  ;;  %v16466_v16 = vcombine.low %v16464_v60, %v16465_v51 }
 0x75f   : > { %v9079_v61 = vsel %vm4545_vm4, %v9071_v14, %v8681_v54 }
 0x760   : > { %v8689_v22 = vpop.permute.xlu1 %8688  ;;  %v8751_v38 = vpop.permute.xlu0 %8750  ;;  %v9057_v29 = vsel %vm4518_vm1, %v16466_v16, %v14353_v25  ;;  %v8569_v25 = vcombine.high %v8517_v26, %v14632_v43 }
 0x761   : > { %v9098_v32 = vsel %vm4563_vm6, %v9090_v34, %v8751_v38  ;;  %v9065_v54 = vsel %vm4527_vm2, %v9057_v29, %v14454_v31 }
 0x762   : > { %8912 = vrot.lane.b32.xlu1 %v8025_v63, %s9335_s24  ;;  %8974 = vrot.lane.b32.xlu0 %v16460_v19, %s9337_s26  ;;  %v16467_v63 = vld [vmem:[#allocation25_spill] sm:$0xff] }
 0x764   : > { %v8693_v34 = vpop.permute.xlu1 %8692  ;;  %v8755_v45 = vpop.permute.xlu0 %8754 }
 0x765   : > { %v9085_v49 = vsel %vm4545_vm4, %v9077_v57, %v8693_v34  ;;  %v9100_v0 = vsel %vm4563_vm6, %v9092_v2, %v8755_v45  ;;  %v6805_v2 = vcombine.high %v14610_v56, %v14596_v21  ;;  %v9073_v21 = vsel %vm4536_vm3, %v9065_v54, %v14546_v30  ;;  %v16475_v34 = vld [vmem:[#allocation129_spill] sm:$0xff] }
 0x766   : > { %8940 = vrot.lane.b32.xlu1 %v7482_v41, %s9336_s25  ;;  %9002 = vrot.lane.b32.xlu0 %v7348_v46, %s9338_s27  ;;  %v9081_v3 = vsel %vm4545_vm4, %v9073_v21, %v8685_v48  ;;  %v16470_v30 = vcombine.high %v16454_v15, %v16455_v53  ;;  %v16471_v15 = vld [vmem:[#allocation86_spill] sm:$0xff]  ;;  %v16472_v53 = vld [vmem:[#allocation75_spill] sm:$0xff]  ;;  %v7483_v41 = vcombine.high %v7438_v17, %v14668_v55 }
 0x767   : > { %v16473_v57 = vcombine.low %v16471_v15, %v16472_v53  ;;  %v6901_v46 = vrot.slane %v6887_v5, %v15997_v27  ;;  %v16478_v55 = vld [vmem:[#allocation70_spill] sm:$0xff]  ;;  %v7463_v17 = vcombine.high %v14641_v9, %v14629_v33 }
 0x768   : > { %v8713_v59 = vpop.permute.xlu1 %8712  ;;  %v8775_v23 = vpop.permute.xlu0 %8774 }
 0x769   : > { %v9087_v38 = vsel %vm4554_vm5, %v9079_v61, %v8713_v59  ;;  %v9102_v42 = vsel %vm4572_vm7, %v9094_v24, %v8775_v23  ;;  %v16469_v24 = vcombine.low %v16467_v63, %v16468_v35  ;;  %v7431_v59 = vcombine.high %v14649_v4, %v14638_v40  ;;  %v16480_v23 = vld [vmem:[#allocation109_spill] sm:$0xff] }
 0x76a   : > { %8968 = vrot.lane.b32.xlu1 %v6939_v28, %s9337_s26  ;;  %9030 = vrot.lane.b32.xlu0 %v6805_v2, %s9339_s28  ;;  %v16481_v28 = vld [vmem:[#allocation101_spill] sm:$0xff]  ;;  %v7477_v33 = vrot.slane %v7463_v17, %v15997_v27  ;;  %v16484_v4 = vcombine.high %v16471_v15, %v16472_v53 }
 0x76b   : > { %v9059_v20 = vsel %vm4518_vm1, %v16469_v24, %v14380_v11  ;;  %v6919_v11 = vcombine.high %v14556_v10, %v14538_v13  ;;  %v16482_v2 = vcombine.low %v16480_v23, %v16481_v28  ;;  %v7445_v40 = vrot.slane %v7431_v59, %v15997_v27 }
 0x76c   : > { %v8717_v56 = vpop.permute.xlu1 %8716  ;;  %v8779_v47 = vpop.permute.xlu0 %8778  ;;  %v9067_v18 = vsel %vm4527_vm2, %v9059_v20, %v14470_v62  ;;  %vm16495_vm1 = vcmask 195584   ;;  %vm16496_vm2 = vcmask 211968  }
 0x76d   : > { %v9089_v31 = vsel %vm4554_vm5, %v9081_v3, %v8717_v56  ;;  %v9104_v8 = vsel %vm4572_vm7, %v9096_v44, %v8779_v47  ;;  %v9075_v43 = vsel %vm4536_vm3, %v9067_v18, %v14581_v52  ;;  %v16474_v52 = vld [vmem:[#allocation57_spill] sm:$0xff]  ;;  %v6933_v10 = vrot.slane %v6919_v11, %v15997_v27  ;;  %vm16504_vm12 = vmmov %vm16496_vm2 }
 0x76e   : > { %8916 = vrot.lane.b32.xlu1 %v8569_v25, %s9335_s24  ;;  %8978 = vrot.lane.b32.xlu0 %v16470_v30, %s9337_s26  ;;  %v9083_v26 = vsel %vm4545_vm4, %v9075_v43, %v8689_v22  ;;  %v16476_v13 = vcombine.low %v16474_v52, %v16475_v34  ;;  %v16483_v60 = vcombine.high %v16474_v52, %v16475_v34  ;;  %vm16497_vm3 = vcmask 228352   ;;  %vm16507_vm14 = vmmov %vm16495_vm1 }
 0x76f   : > { %v6940_v36 = vcombine.low %v6901_v46, %v6933_v10  ;;  %v7484_v21 = vcombine.low %v7445_v40, %v7477_v33  ;;  %v6941_v25 = vcombine.high %v6901_v46, %v6933_v10  ;;  %v16486_v18 = vcombine.high %v16480_v23, %v16481_v28  ;;  %vm16505_vm0 = vmmov %vm16497_vm3 }
 0x770   : > { %v8721_v48 = vpop.permute.xlu1 %8720  ;;  %v8783_v44 = vpop.permute.xlu0 %8782  ;;  %v7485_v15 = vcombine.high %v7445_v40, %v7477_v33  ;;  %vm16498_vm4 = vcmask 244736   ;;  %vm16508_vm15 = vmmov %vm16496_vm2 }
 0x771   : > { %v9091_v19 = vsel %vm4554_vm5, %v9083_v26, %v8721_v48  ;;  %v9106_v62 = vsel %vm4572_vm7, %v9098_v32, %v8783_v44  ;;  %v7349_v32 = vcombine.high %v7309_v50, %v14665_v1  ;;  %v16477_v1 = vld [vmem:[#allocation66_spill] sm:$0xff]  ;;  %v16487_v48 = vld [vmem:[#allocation141_spill] sm:$0xff]  ;;  %v16488_v44 = vld [vmem:[#allocation99_spill] sm:$0xff] }
 0x772   : > { %8944 = vrot.lane.b32.xlu1 %v16473_v57, %s9336_s25  ;;  %9006 = vrot.lane.b32.xlu0 %v16476_v13, %s9338_s27  ;;  %v16479_v50 = vcombine.low %v16477_v1, %v16478_v55  ;;  %v16493_v46 = vcombine.high %v16487_v48, %v16488_v44  ;;  %vm16506_vm13 = vmmov %vm16498_vm4 }
 0x774   : > { %v8725_v22 = vpop.permute.xlu1 %8724  ;;  %v8787_v45 = vpop.permute.xlu0 %8786 }
 0x775   : > { %v9093_v7 = vsel %vm4554_vm5, %v9085_v49, %v8725_v22  ;;  %v9108_v58 = vsel %vm4572_vm7, %v9100_v0, %v8787_v45  ;;  %v16490_v22 = vld [vmem:[#allocation71_spill] sm:$0xff]  ;;  %v16491_v45 = vld [vmem:[#allocation78_spill] sm:$0xff]  ;;  %vm16499_vm5 = vmmov %vm16495_vm1 }
 0x776   : > { %8972 = vrot.lane.b32.xlu1 %v7483_v41, %s9337_s26  ;;  %9034 = vrot.lane.b32.xlu0 %v7349_v32, %s9339_s28  ;;  %v16492_v41 = vcombine.low %v16490_v22, %v16491_v45 }
 0x778   : > { %v8745_v37 = vpop.permute.xlu1 %8744  ;;  %v8807_v12 = vpop.permute.xlu0 %8806 }
 0x779   : > { %v9095_v6 = vsel %vm4563_vm6, %v9087_v38, %v8745_v37  ;;  %v9110_v39 = vsel %vm4581_vm8, %v9102_v42, %v8807_v12  ;;  %v16485_v38 = vcombine.high %v16477_v1, %v16478_v55 }
 0x77a   : > { %9000 = vrot.lane.b32.xlu1 %v6940_v36, %s9338_s27  ;;  %9010 = vrot.lane.b32.xlu0 %v16479_v50, %s9338_s27 }
 0x77c   : > { %v8749_v49 = vpop.permute.xlu1 %8748  ;;  %v8811_v0 = vpop.permute.xlu0 %8810 }
 0x77d   : > { %v9097_v14 = vsel %vm4563_vm6, %v9089_v31, %v8749_v49  ;;  %v9112_v61 = vsel %vm4581_vm8, %v9104_v8, %v8811_v0 }
 0x77e   : > { %8948 = vrot.lane.b32.xlu1 %v16482_v2, %s9336_s25  ;;  %9038 = vrot.lane.b32.xlu0 %v16483_v60, %s9339_s28 }
 0x780   : > { %v8753_v9 = vpop.permute.xlu1 %8752  ;;  %v8815_v51 = vpop.permute.xlu0 %8814 }
 0x781   : > { %v9099_v16 = vsel %vm4563_vm6, %v9091_v19, %v8753_v9  ;;  %v9114_v29 = vsel %vm4581_vm8, %v9106_v62, %v8815_v51  ;;  %v16489_v19 = vcombine.low %v16487_v48, %v16488_v44 }
 0x782   : > { %8976 = vrot.lane.b32.xlu1 %v16484_v4, %s9337_s26  ;;  %9042 = vrot.lane.b32.xlu0 %v16485_v38, %s9339_s28 }
 0x784   : > { %v8757_v42 = vpop.permute.xlu1 %8756  ;;  %v8819_v54 = vpop.permute.xlu0 %8818 }
 0x785   : > { %v9101_v3 = vsel %vm4563_vm6, %v9093_v7, %v8757_v42  ;;  %v9116_v56 = vsel %vm4581_vm8, %v9108_v58, %v8819_v54  ;;  %vm16500_vm6 = vmmov %vm16496_vm2 }
 0x786   : > { %9004 = vrot.lane.b32.xlu1 %v7484_v21, %s9338_s27 }
 0x788   : > { %v8777_v27 = vpop.permute.xlu1 %8776  ;;  %v8839_v47 = vpop.permute.xlu0 %8838 }
 0x789   : > { %v9103_v63 = vsel %vm4572_vm7, %v9095_v6, %v8777_v27  ;;  %v9118_v35 = vsel %vm4590_vm9, %v9110_v39, %v8839_v47  ;;  %v16494_v39 = vcombine.high %v16490_v22, %v16491_v45 }
 0x78a   : > { %9032 = vrot.lane.b32.xlu1 %v6941_v25, %s9339_s28 }
 0x78c   : > { %v8781_v24 = vpop.permute.xlu1 %8780  ;;  %v8843_v20 = vpop.permute.xlu0 %8842 }
 0x78d   : > { %v9105_v31 = vsel %vm4572_vm7, %v9097_v14, %v8781_v24  ;;  %v9120_v8 = vsel %vm4590_vm9, %v9112_v61, %v8843_v20 }
 0x78e   : > { %8980 = vrot.lane.b32.xlu1 %v16486_v18, %s9337_s26 }
 0x790   : > { %v8785_v30 = vpop.permute.xlu1 %8784  ;;  %v8871_v43 = vpop.permute.xlu0 %8870 }
 0x791   : > { %v9107_v11 = vsel %vm4572_vm7, %v9099_v16, %v8785_v30  ;;  %v9126_v26 = vsel %vm4599_vm10, %v9118_v35, %v8871_v43 }
 0x792   : > { %9008 = vrot.lane.b32.xlu1 %v16489_v19, %s9338_s27 }
 0x794   : > { %v8789_v62 = vpop.permute.xlu1 %8788  ;;  %v8847_v5 = vpop.permute.xlu0 %8846 }
 0x795   : > { %v9109_v53 = vsel %vm4572_vm7, %v9101_v3, %v8789_v62  ;;  %v9122_v57 = vsel %vm4590_vm9, %v9114_v29, %v8847_v5  ;;  %vm16501_vm7 = vmmov %vm16497_vm3 }
 0x796   : > { %9036 = vrot.lane.b32.xlu1 %v7485_v15, %s9339_s28 }
 0x798   : > { %v8809_v52 = vpop.permute.xlu1 %8808  ;;  %v8875_v34 = vpop.permute.xlu0 %8874 }
 0x799   : > { %v9111_v13 = vsel %vm4581_vm8, %v9103_v63, %v8809_v52  ;;  %v9128_v10 = vsel %vm4599_vm10, %v9120_v8, %v8875_v34 }
 0x79a   : > { %9012 = vrot.lane.b32.xlu1 %v16492_v41, %s9338_s27 }
 0x79c   : > { %v8813_v32 = vpop.permute.xlu1 %8812  ;;  %v8903_v7 = vpop.permute.xlu0 %8902 }
 0x79d   : > { %v9113_v58 = vsel %vm4581_vm8, %v9105_v31, %v8813_v32  ;;  %v9134_v43 = vsel %vm4608_vm11, %v9126_v26, %v8903_v7 }
 0x79e   : > { %9040 = vrot.lane.b32.xlu1 %v16493_v46, %s9339_s28 }
 0x7a0   : > { %v8817_v37 = vpop.permute.xlu1 %8816  ;;  %v8851_v12 = vpop.permute.xlu0 %8850 }
 0x7a1   : > { %v9115_v36 = vsel %vm4581_vm8, %v9107_v11, %v8817_v37  ;;  %v14829_v6 = vsel %vm4590_vm9, %v9116_v56, %v8851_v12 }
 0x7a2   : > { %9044 = vrot.lane.b32.xlu1 %v16494_v39, %s9339_s28 }
 0x7a4   : > { %v8821_v1 = vpop.permute.xlu1 %8820  ;;  %v8879_v55 = vpop.permute.xlu0 %8878 }
 0x7a5   : > { %v9117_v50 = vsel %vm4581_vm8, %v9109_v53, %v8821_v1  ;;  %v9130_v17 = vsel %vm4599_vm10, %v9122_v57, %v8879_v55  ;;  %vm16502_vm8 = vmmov %vm16498_vm4 }
 0x7a8   : > { %v8841_v49 = vpop.permute.xlu1 %8840  ;;  %v8907_v0 = vpop.permute.xlu0 %8906 }
 0x7a9   : > { %v9119_v14 = vsel %vm4590_vm9, %v9111_v13, %v8841_v49  ;;  %v9136_v34 = vsel %vm4608_vm11, %v9128_v10, %v8907_v0 }
 0x7ac   : > { %v8845_v61 = vpop.permute.xlu1 %8844  ;;  %v8935_v59 = vpop.permute.xlu0 %8934 }
 0x7ad   : > { %v9121_v23 = vsel %vm4590_vm9, %v9113_v58, %v8845_v61  ;;  %v9142_v11 = vsel %vm16495_vm1, %v9134_v43, %v8935_v59 }
 0x7b0   : > { %v8873_v28 = vpop.permute.xlu1 %8872  ;;  %v8883_v2 = vpop.permute.xlu0 %8882 }
 0x7b1   : > { %v14840_v60 = vsel %vm4599_vm10, %v9119_v14, %v8873_v28  ;;  %v9132_v12 = vsel %vm4599_vm10, %v14829_v6, %v8883_v2 }
 0x7b4   : > { %v8849_v33 = vpop.permute.xlu1 %8848  ;;  %v8911_v9 = vpop.permute.xlu0 %8910 }
 0x7b5   : > { %v9123_v51 = vsel %vm4590_vm9, %v9115_v36, %v8849_v33  ;;  %v9138_v46 = vsel %vm4608_vm11, %v9130_v17, %v8911_v9 }
 0x7b8   : > { %v8877_v16 = vpop.permute.xlu1 %8876  ;;  %v8939_v29 = vpop.permute.xlu0 %8938 }
 0x7b9   : > { %v14844_v40 = vsel %vm4599_vm10, %v9121_v23, %v8877_v16  ;;  %v9144_v26 = vsel %vm16499_vm5, %v9136_v34, %v8939_v29 }
 0x7bc   : > { %v8905_v4 = vpop.permute.xlu1 %8904  ;;  %v8967_v38 = vpop.permute.xlu0 %8966 }
 0x7bd   : > { %v9150_v48 = vsel %vm16496_vm2, %v9142_v11, %v8967_v38  ;;  %vm16510_vm2 = vmmov %vm16498_vm4  ;;  %v9135_v23 = vsel %vm4608_vm11, %v14840_v60, %v8905_v4 }
 0x7c0   : > { %v8853_v42 = vpop.permute.xlu1 %8852  ;;  %v8915_v54 = vpop.permute.xlu0 %8914 }
 0x7c1   : > { %v14847_v21 = vsel %vm4590_vm9, %v9117_v50, %v8853_v42  ;;  %vm16503_vm9 = vmmov %vm16495_vm1  ;;  %v9140_v55 = vsel %vm4608_vm11, %v9132_v12, %v8915_v54 }
 0x7c2   : > { %vm16509_vm1 = vmmov %vm16505_vm0 }
 0x7c4   : > { %v8881_v3 = vpop.permute.xlu1 %8880  ;;  %v8943_v56 = vpop.permute.xlu0 %8942 }
 0x7c5   : > { %v14850_v27 = vsel %vm4599_vm10, %v9123_v51, %v8881_v3  ;;  %v9146_v37 = vsel %vm16503_vm9, %v9138_v46, %v8943_v56  ;;  %vm16517_vm9 = vmmov %vm16505_vm0 }
 0x7c8   : > { %v8909_v47 = vpop.permute.xlu1 %8908  ;;  %v8971_v25 = vpop.permute.xlu0 %8970 }
 0x7c9   : > { %v9152_v13 = vsel %vm16500_vm6, %v9144_v26, %v8971_v25  ;;  %v9137_v38 = vsel %vm4608_vm11, %v14844_v40, %v8909_v47 }
 0x7cc   : > { %v8937_v63 = vpop.permute.xlu1 %8936  ;;  %v8999_v35 = vpop.permute.xlu0 %8998 }
 0x7cd   : > { %v9158_v44 = vsel %vm16497_vm3, %v9150_v48, %v8999_v35  ;;  %vm16511_vm3 = vmmov %vm16499_vm5 }
 0x7ce   : > { %v9143_v28 = vsel %vm16511_vm3, %v9135_v23, %v8937_v63  ;;  %vm16513_vm5 = vmmov %vm16505_vm0 }
 0x7d0   : > { %v14852_v24 = vpop.permute.xlu1 %8884  ;;  %v8947_v20 = vpop.permute.xlu0 %8946 }
 0x7d1   : > { %v9148_v49 = vsel %vm16507_vm14, %v9140_v55, %v8947_v20  ;;  %v9133_v47 = vsel %vm4599_vm10, %v14847_v21, %v14852_v24  ;;  %vm16521_vm14 = vmmov %vm16509_vm1 }
 0x7d4   : > { %v14854_v31 = vpop.permute.xlu1 %8912  ;;  %v8975_v8 = vpop.permute.xlu0 %8974 }
 0x7d5   : > { %v9154_v10 = vsel %vm16504_vm12, %v9146_v37, %v8975_v8  ;;  %vm16518_vm12 = vmmov %vm16510_vm2  ;;  %v9139_v25 = vsel %vm4608_vm11, %v14850_v27, %v14854_v31 }
 0x7d8   : > { %v8941_v18 = vpop.permute.xlu1 %8940  ;;  %v9003_v30 = vpop.permute.xlu0 %9002 }
 0x7d9   : > { %v9160_v22 = vsel %vm16501_vm7, %v9152_v13, %v9003_v30  ;;  %vm16515_vm7 = vmmov %vm16511_vm3 }
 0x7da   : > { %v9145_v42 = vsel %vm16515_vm7, %v9137_v38, %v8941_v18 }
 0x7dc   : > { %v8969_v19 = vpop.permute.xlu1 %8968  ;;  %v9031_v62 = vpop.permute.xlu0 %9030 }
 0x7dd   : > { %v9166_v5 = vsel %vm16498_vm4, %v9158_v44, %v9031_v62  ;;  %vm16512_vm4 = vmmov %vm16500_vm6 }
 0x7de   : > { %9182 = vrot.lane.b32.xlu0 %v9166_v5, %s9340_s4  ;;  %v9151_v2 = vsel %vm16512_vm4, %v9143_v28, %v8969_v19  ;;  %vm16514_vm6 = vmmov %vm16510_vm2 }
 0x7df   : > { %vm16526_vm10 = vmmov %vm16514_vm6 }
 0x7e0   : > { %v8917_v15 = vpop.permute.xlu1 %8916  ;;  %v8979_v53 = vpop.permute.xlu0 %8978 }
 0x7e1   : > { %v9156_v17 = vsel %vm16508_vm15, %v9148_v49, %v8979_v53  ;;  %v9141_v8 = vsel %vm4608_vm11, %v9133_v47, %v8917_v15  ;;  %vm16522_vm15 = vmmov %vm16510_vm2  ;;  %vm9206_vm11 = vcmask 523520  }
 0x7e4   : > { %v8945_v57 = vpop.permute.xlu1 %8944  ;;  %v9007_v52 = vpop.permute.xlu0 %9006 }
 0x7e5   : > { %v9162_v36 = vsel %vm16505_vm0, %v9154_v10, %v9007_v52  ;;  %vm16519_vm0 = vmmov %vm16511_vm3 }
 0x7e6   : > { %v9147_v63 = vsel %vm16519_vm0, %v9139_v25, %v8945_v57  ;;  %vm16525_vm3 = vmmov %vm16513_vm5 }
 0x7e8   : > { %v8973_v45 = vpop.permute.xlu1 %8972  ;;  %v9035_v41 = vpop.permute.xlu0 %9034 }
 0x7e9   : > { %v9168_v32 = vsel %vm16502_vm8, %v9160_v22, %v9035_v41  ;;  %vm16516_vm8 = vmmov %vm16512_vm4 }
 0x7ea   : > { %9186 = vrot.lane.b32.xlu0 %v9168_v32, %s9340_s4  ;;  %v9153_v60 = vsel %vm16516_vm8, %v9145_v42, %v8973_v45 }
 0x7ec   : > { %v9001_v7 = vpop.permute.xlu1 %9000  ;;  %v9011_v58 = vpop.permute.xlu0 %9010 }
 0x7ed   : > { %v9164_v0 = vsel %vm16509_vm1, %v9156_v17, %v9011_v58  ;;  %v9159_v33 = vsel %vm16513_vm5, %v9151_v2, %v9001_v7  ;;  %vm16523_vm1 = vmmov %vm16519_vm0 }
 0x7f0   : > { %v8949_v39 = vpop.permute.xlu1 %8948  ;;  %v9039_v1 = vpop.permute.xlu0 %9038 }
 0x7f1   : > { %v9170_v50 = vsel %vm16506_vm13, %v9162_v36, %v9039_v1  ;;  %vm16520_vm13 = vmmov %vm16512_vm4  ;;  %v9149_v27 = vsel %vm16523_vm1, %v9141_v8, %v8949_v39 }
 0x7f2   : > { %9190 = vrot.lane.b32.xlu0 %v9170_v50, %s9340_s4 }
 0x7f4   : > { %v8977_v14 = vpop.permute.xlu1 %8976  ;;  %v9043_v61 = vpop.permute.xlu0 %9042 }
 0x7f5   : > { %v9172_v6 = vsel %vm16510_vm2, %v9164_v0, %v9043_v61  ;;  %v9155_v40 = vsel %vm16520_vm13, %v9147_v63, %v8977_v14  ;;  %vm16524_vm2 = vmmov %vm16512_vm4 }
 0x7f6   : > { %9194 = vrot.lane.b32.xlu0 %v9172_v6, %s9340_s4 }
 0x7f8   : > { %v9005_v59 = vpop.permute.xlu1 %9004 }
 0x7f9   : > { %v9161_v4 = vsel %vm16517_vm9, %v9153_v60, %v9005_v59 }
 0x7fc   : > { %v9033_v9 = vpop.permute.xlu1 %9032 }
 0x7fd   : > { %v9167_v51 = vsel %vm16514_vm6, %v9159_v33, %v9033_v9 }
 0x7fe   : > { %9184 = vrot.lane.b32.xlu1 %v9167_v51, %s9340_s4 }
 0x800   : > { %v8981_v16 = vpop.permute.xlu1 %8980 }
 0x801   : > { %v9157_v31 = vsel %vm16524_vm2, %v9149_v27, %v8981_v16 }
 0x804   : > { %v9009_v29 = vpop.permute.xlu1 %9008 }
 0x805   : > { %v9163_v35 = vsel %vm16521_vm14, %v9155_v40, %v9009_v29 }
 0x808   : > { %v9037_v54 = vpop.permute.xlu1 %9036 }
 0x809   : > { %v9169_v3 = vsel %vm16518_vm12, %v9161_v4, %v9037_v54 }
 0x80a   : > { %9188 = vrot.lane.b32.xlu1 %v9169_v3, %s9340_s4 }
 0x80c   : > { %v9013_v56 = vpop.permute.xlu1 %9012 }
 0x80d   : > { %v9165_v30 = vsel %vm16525_vm3, %v9157_v31, %v9013_v56 }
 0x810   : > { %v9041_v20 = vpop.permute.xlu1 %9040 }
 0x811   : > { %v9171_v18 = vsel %vm16522_vm15, %v9163_v35, %v9041_v20 }
 0x812   : > { %9192 = vrot.lane.b32.xlu1 %v9171_v18, %s9340_s4 }
 0x814   : > { %v9045_v21 = vpop.permute.xlu1 %9044 }
 0x815   : > { %v9173_v24 = vsel %vm16526_vm10, %v9165_v30, %v9045_v21 }
 0x816   : > { %9196 = vrot.lane.b32.xlu1 %v9173_v24, %s9340_s4 }
 0x850   : > { %v9183_v43 = vpop.permute.xlu0 %9182 }
 0x851   : > { %9207 = vst.msk [vmem:[%s12097_s3] sm:$0xff] %vm9206_vm11, %v9183_v43 }
 0x85c   : > { %v9187_v11 = vpop.permute.xlu0 %9186 }
 0x85d   : > { %9209 = vst.msk [vmem:[%s12097_s3 + $0x10] sm:$0xff] %vm9206_vm11, %v9187_v11 }
 0x864   : > { %v9191_v48 = vpop.permute.xlu0 %9190 }
 0x865   : > { %9211 = vst.msk [vmem:[%s12097_s3 + $0x20] sm:$0xff] %vm9206_vm11, %v9191_v48 }
 0x868   : > { %v9195_v44 = vpop.permute.xlu0 %9194 }
 0x869   : > { %9213 = vst.msk [vmem:[%s12097_s3 + $0x30] sm:$0xff] %vm9206_vm11, %v9195_v44 }
 0x870   : > { %v9185_v19 = vpop.permute.xlu1 %9184 }
 0x871   : > { %9208 = vst.msk [vmem:[%s12097_s3 + $0x8] sm:$0xff] %vm9206_vm11, %v9185_v19 }
 0x87c   : > { %v9189_v62 = vpop.permute.xlu1 %9188 }
 0x87d   : > { %9210 = vst.msk [vmem:[%s12097_s3 + $0x18] sm:$0xff] %vm9206_vm11, %v9189_v62 }
 0x884   : > { %v9193_v5 = vpop.permute.xlu1 %9192 }
 0x885   : > { %9212 = vst.msk [vmem:[%s12097_s3 + $0x28] sm:$0xff] %vm9206_vm11, %v9193_v5 }
 0x888   : > { %v9197_v15 = vpop.permute.xlu1 %9196 }
 0x889   : > { %9214 = vst.msk [vmem:[%s12097_s3 + $0x38] sm:$0xff] %vm9206_vm11, %v9197_v15 }
 0x88a PF: > { %s11_s6 = sadd.s32 1, %s9320_s6  }
 0x88b   : > { %p8_p4 = scmp.ge.s32.totalorder %s11_s6, 4  }
 0x88d   :  { %10 = sbr.rel (!%p8_p4) target bundleno = 1 (0x1), region = 54 }

// kernel: _upsample2x_forward.1
= control target key start
LH: loop header
LB: loop body
LE: loop exit
PB: predicated region body
PF: predicated region fallthrough
CT: control target
= control target key end

     0   :  { %s635_s6 = smov 0   ;;  %s892_s0 = inlined_call_operand.vmem [shape: f32[8,18,18], index: 0, kind: input, shape index: {}]   ;;  %s893_s1 = inlined_call_operand.vmem [shape: f32[8,16,64], index: 1, kind: output, shape index: {}]  }
   0x1 LB: > { %s587_s7 = sadd.s32 4294967295, %s619_s6   ;;  %p591_p0 = scmp.ge.s32.totalorder %s619_s6, 1  ;;  %s619_s6 = sphi %s635_s6, %s11_s6  }
   0x2   : > { %p89_p1 = scmp.lt.s32.totalorder %s619_s6, 3 }
   0x4   : > { %p90_p2 = pnand %p591_p0, %p89_p1 }
   0x5   : > { %s592_s8 = sshll.u32 (!%p90_p2), %s587_s7, 2  ;;  %s621_s13 = smov (!%p90_p2), 127  }
   0x6   : > { %93 = sbr.rel (%p90_p2) target bundleno = 304 (0x130), region = 24  ;;  %p112_p3 = scmp.lt.s32.totalorder (!%p90_p2), %s592_s8, 7 }
   0x7   : > { %s622_s14 = smov (!%p90_p2), 15   ;;  %s623_s15 = smov (!%p90_p2), 32  }
   0x8   : > { %s624_s16 = smov (!%p90_p2), 47  }
   0xb   : > { %s895_s8 = smov (!%p112_p3, %s592_s8), 7  ;;  %vm261_vm0 = vcmask 130048   ;;  %vm302_vm1 = vcmask 261248   ;;  %vm479_vm2 = vcmask 392448   ;;  %vm520_vm3 = vcmask 523648  }
   0xc   : > { %s600_s9 = smul.u32 24, %s895_s8  ;;  %s599_s17 = sshll.u32 %s895_s8, 4 }
   0xd   : > { %s815_s20 = scalar_lea.vmem %s893_s1, %s599_s17 }
   0xe   : > { %s649_s12 = scalar_lea.vmem %s892_s0, %s600_s9 }
   0xf   : > { %v125_v0 = vld [vmem:[%s649_s12] sm:$0xff]  ;;  %v127_v2 = vld [vmem:[%s649_s12 + $0x18] sm:$0xff]  ;;  %v126_v7 = vld [vmem:[%s649_s12 + $0x8] sm:$0xff] }
  0x10   : > { %v141_v1 = vld [vmem:[%s649_s12 + $0x1] sm:$0xff]  ;;  %v133_v3 = vmul.f32 0.25, %v125_v0  ;;  %v135_v5 = vmul.f32 0.25, %v127_v2  ;;  %v143_v6 = vld [vmem:[%s649_s12 + $0x19] sm:$0xff]  ;;  %v142_v8 = vld [vmem:[%s649_s12 + $0x9] sm:$0xff]  ;;  %v134_v10 = vmul.f32 0.25, %v126_v7 }
  0x11   : > { %v149_v4 = vmul.f32 0.75, %v141_v1  ;;  %v151_v9 = vmul.f32 0.75, %v143_v6  ;;  %v150_v11 = vmul.f32 0.75, %v142_v8  ;;  %v128_v12 = vld [vmem:[%s649_s12 + $0x20] sm:$0xff]  ;;  %v130_v14 = vld [vmem:[%s649_s12 + $0x38] sm:$0xff]  ;;  %v129_v20 = vld [vmem:[%s649_s12 + $0x30] sm:$0xff] }
  0x12   : > { %v144_v13 = vld [vmem:[%s649_s12 + $0x21] sm:$0xff]  ;;  %v136_v16 = vmul.f32 0.25, %v128_v12  ;;  %v138_v18 = vmul.f32 0.25, %v130_v14  ;;  %v146_v19 = vld [vmem:[%s649_s12 + $0x39] sm:$0xff]  ;;  %v145_v21 = vld [vmem:[%s649_s12 + $0x31] sm:$0xff]  ;;  %v137_v25 = vmul.f32 0.25, %v129_v20 }
  0x13   : > { %v660_v15 = vadd.f32 %v149_v4, %v133_v3  ;;  %v152_v17 = vmul.f32 0.75, %v144_v13  ;;  %v665_v22 = vadd.f32 %v151_v9, %v135_v5  ;;  %v667_v23 = vadd.f32 %v150_v11, %v134_v10  ;;  %v131_v26 = vld [vmem:[%s649_s12 + $0x48] sm:$0xff]  ;;  %v132_v30 = vld [vmem:[%s649_s12 + $0x50] sm:$0xff]  ;;  %v329_v50 = vld [vmem:[%s649_s12 + $0x1a] sm:$0xff] }
  0x14   : > { %v154_v24 = vmul.f32 0.75, %v146_v19  ;;  %v153_v29 = vmul.f32 0.75, %v145_v21  ;;  %v148_v31 = vld [vmem:[%s649_s12 + $0x51] sm:$0xff]  ;;  %v147_v32 = vld [vmem:[%s649_s12 + $0x49] sm:$0xff]  ;;  %v139_v36 = vmul.f32 0.25, %v131_v26  ;;  %v140_v40 = vmul.f32 0.25, %v132_v30 }
  0x15   : > { %v671_v27 = vmul.f32 0.25, %v660_v15  ;;  %v673_v28 = vadd.f32 %v152_v17, %v136_v16  ;;  %v679_v33 = vmul.f32 0.25, %v665_v22  ;;  %v684_v34 = vmul.f32 0.25, %v667_v23  ;;  %v327_v42 = vld [vmem:[%s649_s12 + $0x2] sm:$0xff]  ;;  %v328_v43 = vld [vmem:[%s649_s12 + $0xa] sm:$0xff]  ;;  %v331_v58 = vld [vmem:[%s649_s12 + $0x32] sm:$0xff] }
  0x16   : > { %v686_v35 = vadd.f32 %v153_v29, %v137_v25  ;;  %v155_v37 = vmul.f32 0.75, %v147_v32  ;;  %v693_v39 = vadd.f32 %v154_v24, %v138_v18  ;;  %v156_v41 = vmul.f32 0.75, %v148_v31  ;;  %v330_v51 = vld [vmem:[%s649_s12 + $0x22] sm:$0xff]  ;;  %v332_v59 = vld [vmem:[%s649_s12 + $0x3a] sm:$0xff]  ;;  %v333_v2 = vld [vmem:[%s649_s12 + $0x4a] sm:$0xff] }
  0x17   : > { %229 = vrot.lane.b32.xlu0 %v671_v27, %s621_s13  ;;  %233 = vrot.lane.b32.xlu1 %v679_v33, %s621_s13  ;;  %v691_v38 = vmul.f32 0.25, %v673_v28  ;;  %v335_v46 = vmul.f32 0.25, %v327_v42  ;;  %v336_v49 = vmul.f32 0.25, %v328_v43  ;;  %v337_v54 = vmul.f32 0.25, %v329_v50  ;;  %v334_v3 = vld [vmem:[%s649_s12 + $0x52] sm:$0xff] }
  0x18   : > { %v700_v44 = vmul.f32 0.25, %v686_v35  ;;  %v702_v45 = vadd.f32 %v155_v37, %v139_v36  ;;  %v707_v47 = vmul.f32 0.25, %v693_v39  ;;  %v709_v48 = vadd.f32 %v156_v41, %v140_v40 }
  0x19   : > { %v343_v53 = vadd.f32 %v335_v46, %v149_v4  ;;  %v344_v56 = vadd.f32 %v336_v49, %v150_v11  ;;  %v338_v57 = vmul.f32 0.25, %v330_v51  ;;  %v345_v61 = vadd.f32 %v337_v54, %v151_v9 }
  0x1a   : > { %v716_v52 = vmul.f32 0.25, %v702_v45  ;;  %v721_v55 = vmul.f32 0.25, %v709_v48  ;;  %v339_v62 = vmul.f32 0.25, %v331_v58  ;;  %v340_v1 = vmul.f32 0.25, %v332_v59 }
  0x1b   : > { %231 = vrot.lane.b32.xlu0 %v684_v34, %s621_s13  ;;  %235 = vrot.lane.b32.xlu1 %v691_v38, %s621_s13  ;;  %v727_v60 = vmul.f32 0.75, %v343_v53  ;;  %v731_v63 = vmul.f32 0.75, %v344_v56  ;;  %v346_v0 = vadd.f32 %v338_v57, %v152_v17  ;;  %v737_v4 = vmul.f32 0.75, %v345_v61 }
  0x1c   : > { %v347_v5 = vadd.f32 %v339_v62, %v153_v29  ;;  %v341_v6 = vmul.f32 0.25, %v333_v2  ;;  %v348_v8 = vadd.f32 %v340_v1, %v154_v24  ;;  %v342_v9 = vmul.f32 0.25, %v334_v3 }
  0x1d   : > { %v741_v7 = vmul.f32 0.75, %v346_v0  ;;  %v351_v17 = vmul.f32 0.25, %v343_v53  ;;  %v352_v18 = vmul.f32 0.25, %v344_v56  ;;  %v353_v19 = vmul.f32 0.25, %v345_v61 }
  0x1e   : > { %v745_v10 = vmul.f32 0.75, %v347_v5  ;;  %v349_v11 = vadd.f32 %v341_v6, %v155_v37  ;;  %v749_v12 = vmul.f32 0.75, %v348_v8  ;;  %v350_v13 = vadd.f32 %v342_v9, %v156_v41 }
  0x1f   : > { %237 = vrot.lane.b32.xlu0 %v700_v44, %s621_s13  ;;  %239 = vrot.lane.b32.xlu1 %v707_v47, %s621_s13  ;;  %v354_v20 = vmul.f32 0.25, %v346_v0  ;;  %v766_v21 = vmul.f32 0.25, %v347_v5  ;;  %v769_v24 = vmul.f32 0.25, %v348_v8  ;;  %v173_v29 = vmul.f32 0.75, %v660_v15 }
  0x20   : > { %v753_v14 = vmul.f32 0.75, %v349_v11  ;;  %v757_v16 = vmul.f32 0.75, %v350_v13  ;;  %v773_v25 = vmul.f32 0.25, %v349_v11  ;;  %v777_v26 = vmul.f32 0.25, %v350_v13 }
  0x21   : > { %v174_v30 = vmul.f32 0.75, %v667_v23  ;;  %v175_v31 = vmul.f32 0.75, %v665_v22  ;;  %v176_v32 = vmul.f32 0.75, %v673_v28  ;;  %v177_v36 = vmul.f32 0.75, %v686_v35 }
  0x22   : > { %v178_v15 = vmul.f32 0.75, %v693_v39  ;;  %v179_v23 = vmul.f32 0.75, %v702_v45  ;;  %v180_v22 = vmul.f32 0.75, %v709_v48 }
  0x23   : > { %241 = vrot.lane.b32.xlu0 %v716_v52, %s621_s13  ;;  %243 = vrot.lane.b32.xlu1 %v721_v55, %s621_s13 }
  0x27   : > { %375 = vrot.lane.b32.xlu0 %v727_v60, %s621_s13  ;;  %377 = vrot.lane.b32.xlu1 %v731_v63, %s621_s13 }
  0x2b   : > { %379 = vrot.lane.b32.xlu0 %v737_v4, %s621_s13  ;;  %381 = vrot.lane.b32.xlu1 %v741_v7, %s621_s13 }
  0x2f   : > { %383 = vrot.lane.b32.xlu0 %v745_v10, %s621_s13  ;;  %385 = vrot.lane.b32.xlu1 %v749_v12, %s621_s13 }
  0x33   : > { %387 = vrot.lane.b32.xlu0 %v753_v14, %s621_s13  ;;  %389 = vrot.lane.b32.xlu1 %v757_v16, %s621_s13 }
  0x37   : > { %415 = vrot.lane.b32.xlu0 %v351_v17, %s621_s13  ;;  %417 = vrot.lane.b32.xlu1 %v352_v18, %s621_s13 }
  0x3b   : > { %419 = vrot.lane.b32.xlu0 %v353_v19, %s621_s13  ;;  %421 = vrot.lane.b32.xlu1 %v354_v20, %s621_s13 }
  0x3f   : > { %423 = vrot.lane.b32.xlu0 %v766_v21, %s621_s13  ;;  %425 = vrot.lane.b32.xlu1 %v769_v24, %s621_s13 }
  0x43   : > { %427 = vrot.lane.b32.xlu0 %v773_v25, %s621_s13  ;;  %429 = vrot.lane.b32.xlu1 %v777_v26, %s621_s13 }
  0x47   : > { %189 = vrot.lane.b32.xlu0 %v173_v29, %s621_s13  ;;  %191 = vrot.lane.b32.xlu1 %v174_v30, %s621_s13 }
  0x4b   : > { %193 = vrot.lane.b32.xlu0 %v175_v31, %s621_s13  ;;  %195 = vrot.lane.b32.xlu1 %v176_v32, %s621_s13 }
  0x4f   : > { %197 = vrot.lane.b32.xlu0 %v177_v36, %s621_s13  ;;  %199 = vrot.lane.b32.xlu1 %v178_v15, %s621_s13 }
  0x53   : > { %201 = vrot.lane.b32.xlu0 %v179_v23, %s621_s13  ;;  %203 = vrot.lane.b32.xlu1 %v180_v22, %s621_s13 }
  0x89   : > { %v230_v28 = vpop.permute.xlu0 %229  ;;  %v234_v40 = vpop.permute.xlu1 %233 }
  0x8a   : > { %v253_v37 = vadd.f32 %v230_v28, %v173_v29  ;;  %v255_v35 = vadd.f32 %v234_v40, %v175_v31 }
  0x8c   : > { %278 = vrot.lane.b32.xlu0 %v253_v37, %s622_s14 }
  0x8d   : > { %v232_v41 = vpop.permute.xlu0 %231  ;;  %v236_v42 = vpop.permute.xlu1 %235 }
  0x8e   : > { %v254_v39 = vadd.f32 %v232_v41, %v174_v30  ;;  %v256_v43 = vadd.f32 %v236_v42, %v176_v32 }
  0x90   : > { %282 = vrot.lane.b32.xlu0 %v255_v35, %s622_s14  ;;  %280 = vrot.lane.b32.xlu1 %v254_v39, %s622_s14 }
  0x91   : > { %v238_v45 = vpop.permute.xlu0 %237  ;;  %v240_v46 = vpop.permute.xlu1 %239 }
  0x92   : > { %v257_v49 = vadd.f32 %v238_v45, %v177_v36  ;;  %v258_v48 = vadd.f32 %v240_v46, %v178_v15 }
  0x94   : > { %284 = vrot.lane.b32.xlu1 %v256_v43, %s622_s14  ;;  %286 = vrot.lane.b32.xlu0 %v257_v49, %s622_s14 }
  0x95   : > { %v242_v50 = vpop.permute.xlu0 %241  ;;  %v244_v51 = vpop.permute.xlu1 %243 }
  0x96   : > { %v259_v53 = vadd.f32 %v242_v50, %v179_v23  ;;  %v260_v54 = vadd.f32 %v244_v51, %v180_v22 }
  0x98   : > { %288 = vrot.lane.b32.xlu1 %v258_v48, %s622_s14  ;;  %290 = vrot.lane.b32.xlu0 %v259_v53, %s622_s14 }
  0x99   : > { %v376_v56 = vpop.permute.xlu0 %375  ;;  %v378_v57 = vpop.permute.xlu1 %377 }
  0x9a   : > { %v399_v58 = vadd.f32 %v376_v56, %v351_v17  ;;  %v400_v59 = vadd.f32 %v378_v57, %v352_v18 }
  0x9c   : > { %292 = vrot.lane.b32.xlu1 %v260_v54, %s622_s14  ;;  %455 = vrot.lane.b32.xlu0 %v399_v58, %s623_s15 }
  0x9d   : > { %v380_v61 = vpop.permute.xlu0 %379  ;;  %v382_v62 = vpop.permute.xlu1 %381 }
  0x9e   : > { %v401_v0 = vadd.f32 %v380_v61, %v353_v19  ;;  %v402_v1 = vadd.f32 %v382_v62, %v354_v20 }
  0xa0   : > { %457 = vrot.lane.b32.xlu1 %v400_v59, %s623_s15  ;;  %459 = vrot.lane.b32.xlu0 %v401_v0, %s623_s15 }
  0xa1   : > { %v384_v2 = vpop.permute.xlu0 %383  ;;  %v386_v3 = vpop.permute.xlu1 %385 }
  0xa2   : > { %v403_v5 = vadd.f32 %v384_v2, %v766_v21  ;;  %v404_v6 = vadd.f32 %v386_v3, %v769_v24 }
  0xa4   : > { %461 = vrot.lane.b32.xlu1 %v402_v1, %s623_s15  ;;  %463 = vrot.lane.b32.xlu0 %v403_v5, %s623_s15 }
  0xa5   : > { %v388_v8 = vpop.permute.xlu0 %387  ;;  %v390_v9 = vpop.permute.xlu1 %389 }
  0xa6   : > { %v405_v11 = vadd.f32 %v388_v8, %v773_v25  ;;  %v406_v13 = vadd.f32 %v390_v9, %v777_v26 }
  0xa8   : > { %465 = vrot.lane.b32.xlu1 %v404_v6, %s623_s15  ;;  %467 = vrot.lane.b32.xlu0 %v405_v11, %s623_s15 }
  0xa9   : > { %v416_v17 = vpop.permute.xlu0 %415  ;;  %v418_v18 = vpop.permute.xlu1 %417 }
  0xaa   : > { %v439_v19 = vadd.f32 %v416_v17, %v727_v60  ;;  %v440_v20 = vadd.f32 %v418_v18, %v731_v63 }
  0xac   : > { %469 = vrot.lane.b32.xlu1 %v406_v13, %s623_s15  ;;  %496 = vrot.lane.b32.xlu0 %v439_v19, %s624_s16 }
  0xad   : > { %v420_v21 = vpop.permute.xlu0 %419  ;;  %v422_v24 = vpop.permute.xlu1 %421 }
  0xae   : > { %v441_v29 = vadd.f32 %v420_v21, %v737_v4  ;;  %v442_v25 = vadd.f32 %v422_v24, %v741_v7 }
  0xb0   : > { %498 = vrot.lane.b32.xlu1 %v440_v20, %s624_s16  ;;  %500 = vrot.lane.b32.xlu0 %v441_v29, %s624_s16 }
  0xb1   : > { %v424_v26 = vpop.permute.xlu0 %423  ;;  %v426_v30 = vpop.permute.xlu1 %425 }
  0xb2   : > { %v443_v31 = vadd.f32 %v424_v26, %v745_v10  ;;  %v444_v60 = vadd.f32 %v426_v30, %v749_v12 }
  0xb4   : > { %502 = vrot.lane.b32.xlu1 %v442_v25, %s624_s16  ;;  %504 = vrot.lane.b32.xlu0 %v443_v31, %s624_s16 }
  0xb5   : > { %v428_v63 = vpop.permute.xlu0 %427  ;;  %v430_v32 = vpop.permute.xlu1 %429 }
  0xb6   : > { %v445_v36 = vadd.f32 %v428_v63, %v753_v14  ;;  %v446_v4 = vadd.f32 %v430_v32, %v757_v16 }
  0xb8   : > { %506 = vrot.lane.b32.xlu1 %v444_v60, %s624_s16  ;;  %508 = vrot.lane.b32.xlu0 %v445_v36, %s624_s16 }
  0xb9   : > { %v190_v7 = vpop.permute.xlu0 %189  ;;  %v192_v12 = vpop.permute.xlu1 %191 }
  0xba   : > { %v213_v10 = vadd.f32 %v190_v7, %v671_v27  ;;  %v214_v14 = vadd.f32 %v192_v12, %v684_v34 }
  0xbc   : > { %510 = vrot.lane.b32.xlu1 %v446_v4, %s624_s16  ;;  %262 = vst.msk [vmem:[%s815_s20] sm:$0xff] %vm261_vm0, %v213_v10  ;;  %263 = vst.msk [vmem:[%s815_s20 + $0x8] sm:$0xff] %vm261_vm0, %v214_v14 }
  0xbd   : > { %v194_v16 = vpop.permute.xlu0 %193  ;;  %v196_v23 = vpop.permute.xlu1 %195 }
  0xbe   : > { %v215_v15 = vadd.f32 %v194_v16, %v679_v33  ;;  %v216_v22 = vadd.f32 %v196_v23, %v691_v38 }
  0xc0   : > { %264 = vst.msk [vmem:[%s815_s20 + $0x10] sm:$0xff] %vm261_vm0, %v215_v15  ;;  %265 = vst.msk [vmem:[%s815_s20 + $0x18] sm:$0xff] %vm261_vm0, %v216_v22 }
  0xc1   : > { %v198_v27 = vpop.permute.xlu0 %197  ;;  %v200_v28 = vpop.permute.xlu1 %199 }
  0xc2   : > { %v217_v34 = vadd.f32 %v198_v27, %v700_v44  ;;  %v218_v37 = vadd.f32 %v200_v28, %v707_v47 }
  0xc4   : > { %266 = vst.msk [vmem:[%s815_s20 + $0x20] sm:$0xff] %vm261_vm0, %v217_v34  ;;  %267 = vst.msk [vmem:[%s815_s20 + $0x28] sm:$0xff] %vm261_vm0, %v218_v37 }
  0xc5   : > { %v202_v33 = vpop.permute.xlu0 %201  ;;  %v204_v40 = vpop.permute.xlu1 %203 }
  0xc6   : > { %v219_v38 = vadd.f32 %v202_v33, %v716_v52  ;;  %v220_v35 = vadd.f32 %v204_v40, %v721_v55 }
  0xc8   : > { %268 = vst.msk [vmem:[%s815_s20 + $0x30] sm:$0xff] %vm261_vm0, %v219_v38  ;;  %269 = vst.msk [vmem:[%s815_s20 + $0x38] sm:$0xff] %vm261_vm0, %v220_v35 }
  0xfe   : > { %v279_v44 = vpop.permute.xlu0 %278 }
  0xff   : > { %303 = vst.msk [vmem:[%s815_s20] sm:$0xff] %vm302_vm1, %v279_v44 }
 0x102   : > { %v281_v47 = vpop.permute.xlu1 %280  ;;  %v283_v41 = vpop.permute.xlu0 %282 }
 0x103   : > { %304 = vst.msk [vmem:[%s815_s20 + $0x8] sm:$0xff] %vm302_vm1, %v281_v47  ;;  %305 = vst.msk [vmem:[%s815_s20 + $0x10] sm:$0xff] %vm302_vm1, %v283_v41 }
 0x106   : > { %v285_v52 = vpop.permute.xlu1 %284  ;;  %v287_v55 = vpop.permute.xlu0 %286 }
 0x107   : > { %306 = vst.msk [vmem:[%s815_s20 + $0x18] sm:$0xff] %vm302_vm1, %v285_v52  ;;  %307 = vst.msk [vmem:[%s815_s20 + $0x20] sm:$0xff] %vm302_vm1, %v287_v55 }
 0x10a   : > { %v289_v39 = vpop.permute.xlu1 %288  ;;  %v291_v42 = vpop.permute.xlu0 %290 }
 0x10b   : > { %308 = vst.msk [vmem:[%s815_s20 + $0x28] sm:$0xff] %vm302_vm1, %v289_v39  ;;  %309 = vst.msk [vmem:[%s815_s20 + $0x30] sm:$0xff] %vm302_vm1, %v291_v42 }
 0x10e   : > { %v293_v43 = vpop.permute.xlu1 %292  ;;  %v456_v45 = vpop.permute.xlu0 %455 }
 0x10f   : > { %310 = vst.msk [vmem:[%s815_s20 + $0x38] sm:$0xff] %vm302_vm1, %v293_v43 }
 0x110   : > { %480 = vst.msk [vmem:[%s815_s20] sm:$0xff] %vm479_vm2, %v456_v45 }
 0x112   : > { %v458_v46 = vpop.permute.xlu1 %457  ;;  %v460_v49 = vpop.permute.xlu0 %459 }
 0x113   : > { %481 = vst.msk [vmem:[%s815_s20 + $0x8] sm:$0xff] %vm479_vm2, %v458_v46  ;;  %482 = vst.msk [vmem:[%s815_s20 + $0x10] sm:$0xff] %vm479_vm2, %v460_v49 }
 0x116   : > { %v462_v48 = vpop.permute.xlu1 %461  ;;  %v464_v50 = vpop.permute.xlu0 %463 }
 0x117   : > { %483 = vst.msk [vmem:[%s815_s20 + $0x18] sm:$0xff] %vm479_vm2, %v462_v48  ;;  %484 = vst.msk [vmem:[%s815_s20 + $0x20] sm:$0xff] %vm479_vm2, %v464_v50 }
 0x11a   : > { %v466_v51 = vpop.permute.xlu1 %465  ;;  %v468_v53 = vpop.permute.xlu0 %467 }
 0x11b   : > { %485 = vst.msk [vmem:[%s815_s20 + $0x28] sm:$0xff] %vm479_vm2, %v466_v51  ;;  %486 = vst.msk [vmem:[%s815_s20 + $0x30] sm:$0xff] %vm479_vm2, %v468_v53 }
 0x11e   : > { %v470_v54 = vpop.permute.xlu1 %469  ;;  %v497_v56 = vpop.permute.xlu0 %496 }
 0x11f   : > { %487 = vst.msk [vmem:[%s815_s20 + $0x38] sm:$0xff] %vm479_vm2, %v470_v54 }
 0x120   : > { %521 = vst.msk [vmem:[%s815_s20] sm:$0xff] %vm520_vm3, %v497_v56 }
 0x122   : > { %v499_v57 = vpop.permute.xlu1 %498  ;;  %v501_v58 = vpop.permute.xlu0 %500 }
 0x123   : > { %522 = vst.msk [vmem:[%s815_s20 + $0x8] sm:$0xff] %vm520_vm3, %v499_v57  ;;  %523 = vst.msk [vmem:[%s815_s20 + $0x10] sm:$0xff] %vm520_vm3, %v501_v58 }
 0x126   : > { %v503_v59 = vpop.permute.xlu1 %502  ;;  %v505_v61 = vpop.permute.xlu0 %504 }
 0x127   : > { %524 = vst.msk [vmem:[%s815_s20 + $0x18] sm:$0xff] %vm520_vm3, %v503_v59  ;;  %525 = vst.msk [vmem:[%s815_s20 + $0x20] sm:$0xff] %vm520_vm3, %v505_v61 }
 0x12a   : > { %v507_v62 = vpop.permute.xlu1 %506  ;;  %v509_v0 = vpop.permute.xlu0 %508 }
 0x12b   : > { %526 = vst.msk [vmem:[%s815_s20 + $0x28] sm:$0xff] %vm520_vm3, %v507_v62  ;;  %527 = vst.msk [vmem:[%s815_s20 + $0x30] sm:$0xff] %vm520_vm3, %v509_v0 }
 0x12e   : > { %v511_v1 = vpop.permute.xlu1 %510 }
 0x12f   : > { %528 = vst.msk [vmem:[%s815_s20 + $0x38] sm:$0xff] %vm520_vm3, %v511_v1 }
 0x130 PF: > { %s11_s6 = sadd.s32 1, %s619_s6  }
 0x131   : > { %p8_p4 = scmp.ge.s32.totalorder %s11_s6, 4  }
 0x133   :  { %10 = sbr.rel (!%p8_p4) target bundleno = 1 (0x1), region = 54 }

</bundles_post_ra>
